<compile_context>
chip_gen: v7x
topology: tpu7x:2x2x1
jax: 0.10.0
libtpu: 0.0.40
codegen_flags: <defaults>
</compile_context>

<pallas_src>
import functools

import jax
import jax.numpy as jnp
from jax import lax
from jax.experimental import pallas as pl
from jax.experimental.pallas import tpu as pltpu


# ----------------------------------------------------------------------------
# Generic single-block pallas_call helper (whole operands resident in VMEM).
# Total footprint per call is < 2 MB, so one block per call is the right shape.
# ----------------------------------------------------------------------------
def fused_call(kernel, out_shapes, arrays):
    """out_shapes: list of (shape, dtype). arrays: list of 2-D operands."""
    in_specs = [pl.BlockSpec(a.shape, lambda i: (0, 0)) for a in arrays]
    out_shape = tuple(jax.ShapeDtypeStruct(s, d) for s, d in out_shapes)
    out_specs = tuple(pl.BlockSpec(s, lambda i: (0, 0)) for s, _ in out_shapes)
    return pl.pallas_call(
        kernel,
        out_shape=out_shape,
        grid=(1,),
        in_specs=in_specs,
        out_specs=out_specs,
        compiler_params=pltpu.CompilerParams(dimension_semantics=("arbitrary",)),
    )(*arrays)


# ----------------------------------------------------------------------------
# Pallas kernels
# ----------------------------------------------------------------------------
def _conv_bn_lrelu_kernel(p_ref, w_ref, gb_ref, o_ref, *, eps, slope):
    # (M, K)bf16 @ (K, C)bf16 -> f32, training-mode BN (batch stats, biased
    # var), LeakyReLU(0.01).  Conv bias omitted (cancels in y - mean).
    y = jnp.dot(p_ref[...], w_ref[...], preferred_element_type=jnp.float32)
    mean = jnp.mean(y, axis=0, keepdims=True)
    var = jnp.mean(jnp.square(y - mean), axis=0, keepdims=True)
    y = (y - mean) * lax.rsqrt(var + eps) * gb_ref[0:1, :] + gb_ref[1:2, :]
    o_ref[...] = jnp.where(y >= 0.0, y, slope * y).astype(o_ref.dtype)


def _deconv_bn_lrelu_kernel(p_ref, w_ref, gb_ref, o_ref, *, eps, slope,
                            inv_count, cout):
    # Sub-pixel transpose conv: (M, 4Cin) @ (4Cin, 4Cout), output columns are
    # (phase, channel).  BN stats are per real channel, aggregated over rows
    # AND the 4 phases via pltpu.roll lane rotations (result is already
    # replicated across the 4 phase blocks, so no broadcast is needed).
    y = jnp.dot(p_ref[...], w_ref[...], preferred_element_type=jnp.float32)
    col_sum = jnp.sum(y, axis=0, keepdims=True)                      # (1, 4C)
    tot = (col_sum
           + pltpu.roll(col_sum, cout, axis=1)
           + pltpu.roll(col_sum, 2 * cout, axis=1)
           + pltpu.roll(col_sum, 3 * cout, axis=1))
    mean = tot * inv_count
    yc = y - mean
    col_sq = jnp.sum(yc * yc, axis=0, keepdims=True)
    tot2 = (col_sq
            + pltpu.roll(col_sq, cout, axis=1)
            + pltpu.roll(col_sq, 2 * cout, axis=1)
            + pltpu.roll(col_sq, 3 * cout, axis=1))
    var = tot2 * inv_count
    y = yc * lax.rsqrt(var + eps) * gb_ref[0:1, :] + gb_ref[1:2, :]
    o_ref[...] = jnp.where(y >= 0.0, y, slope * y).astype(o_ref.dtype)


def _convT_tanh_kernel(w_ref, p_ref, b_ref, o_ref):
    # Transposed final conv: (Co8, K)bf16 @ (K, M)bf16 -> f32, + per-row bias,
    # tanh.  Output rows = out channels (7 real + 1 pad), lanes = N*OH*OW,
    # so the store is lane-dense.
    y = jnp.dot(w_ref[...], p_ref[...], preferred_element_type=jnp.float32)
    o_ref[...] = jnp.tanh(y + b_ref[...])


def _latent_fused_kernel(flat_ref, wz_ref, bz_ref, u_ref, grp_ref, wd_ref,
                         bd_ref, q_ref, d_ref, *, inv_temp, eps):
    # fc_z -> Gumbel-softmax (per group of 7 lanes) -> decoder_input, fully in
    # VMEM.  Softmax groups handled with a (140,140) group-membership matmul
    # so no lane->row reshape is needed inside the kernel.
    z = jnp.dot(flat_ref[...], wz_ref[...],
                preferred_element_type=jnp.float32) + bz_ref[...]      # (N,140)
    q_ref[...] = z
    g = -jnp.log(-jnp.log(u_ref[...] + eps) + eps)
    logits = (z + g) * inv_temp
    m = jnp.max(logits, axis=-1, keepdims=True)   # per-row const: softmax-invariant
    # Clamp high enough (-75) that a group only degrades toward uniform if its
    # logits sit > 75 below the global row max (exp(-75) is still a normal f32,
    # so the per-group denominator never underflows to 0).
    shifted = jnp.maximum(logits - m, -75.0)
    e = jnp.exp(shifted)
    denom = jnp.dot(e, grp_ref[...], preferred_element_type=jnp.float32)
    s = e * pl.reciprocal(denom, approx=True)                          # (N,140)
    d = jnp.dot(s.astype(jnp.bfloat16), wd_ref[...],
                preferred_element_type=jnp.float32) + bd_ref[...]      # (N,2304)
    d_ref[...] = d.astype(d_ref.dtype)


# ----------------------------------------------------------------------------
# Host-side layer wrappers (patch gather in XLA, math in Pallas)
# ----------------------------------------------------------------------------
def im2col_nhwc(x, k, stride, padding):
    """x: (N,H,W,C) -> patches (N*OH*OW, k*k*C), K ordered (kh, kw, c)."""
    xp = jnp.pad(x, ((0, 0), (padding, padding), (padding, padding), (0, 0)))
    N, Hp, Wp, C = xp.shape
    OH = (Hp - k) // stride + 1
    OW = (Wp - k) // stride + 1
    cols = []
    for i in range(k):
        for j in range(k):
            cols.append(xp[:, i:i + stride * OH:stride, j:j + stride * OW:stride, :])
    p = jnp.concatenate(cols, axis=-1).reshape(N * OH * OW, k * k * C)
    return p, OH, OW


def conv_bn_lrelu(x, w2, gb, stride, padding, k=3, eps=1e-5, slope=0.01):
    """x NHWC bf16; w2 (Kpad, Cout) bf16 MXU-ready; gb (2, Cout) f32.
    Returns NHWC bf16."""
    N = x.shape[0]
    Cout = w2.shape[1]
    P, OH, OW = im2col_nhwc(x, k, stride, padding)
    K, Kw = P.shape[1], w2.shape[0]
    if Kw != K:                                  # ragged K (layer 1: 63 -> 64)
        P = jnp.pad(P, ((0, 0), (0, Kw - K)))
    M = P.shape[0]
    kern = functools.partial(_conv_bn_lrelu_kernel, eps=eps, slope=slope)
    y = fused_call(kern, [((M, Cout), jnp.bfloat16)], [P, w2, gb])[0]
    return y.reshape(N, OH, OW, Cout)


def deconv_bn_lrelu(x, weq, gb4, eps=1e-5, slope=0.01):
    """ConvTranspose2d(k=3, s=2, p=1, op=1) + BN + LeakyReLU via 4-phase
    sub-pixel decomposition.  x NHWC bf16 -> (N, 2H, 2W, Cout) bf16."""
    N, H, W, Cin = x.shape
    Cout = weq.shape[1] // 4
    xp = jnp.pad(x, ((0, 0), (0, 1), (0, 1), (0, 0)))    # bottom/right zero pad
    a00 = xp[:, :H, :W, :]
    a01 = xp[:, :H, 1:W + 1, :]
    a10 = xp[:, 1:H + 1, :W, :]
    a11 = xp[:, 1:H + 1, 1:W + 1, :]
    P = jnp.concatenate([a00, a01, a10, a11], axis=-1).reshape(N * H * W, 4 * Cin)
    M = N * H * W
    kern = functools.partial(_deconv_bn_lrelu_kernel, eps=eps, slope=slope,
                             inv_count=1.0 / (4.0 * M), cout=Cout)
    y = fused_call(kern, [((M, 4 * Cout), jnp.bfloat16)], [P, weq, gb4])[0]
    # Interleave phases: (M, 4Cout) -> (N, 2H, 2W, Cout)
    y = y.reshape(N, H, W, 2, 2, Cout).transpose(0, 1, 3, 2, 4, 5)
    return y.reshape(N, 2 * H, 2 * W, Cout)


def conv_tanh_t(x, wct, bct, k=3, stride=1, padding=1):
    """Final conv + tanh, computed transposed for lane-dense stores.
    x NHWC bf16; wct (8, K) bf16; bct (8, 1) f32.
    Returns ((8, N*OH*OW) f32, OH, OW) with column order (n, oh, ow)."""
    P, OH, OW = im2col_nhwc(x, k, stride, padding)       # (M, K) bf16
    M = P.shape[0]
    y = fused_call(_convT_tanh_kernel, [((wct.shape[0], M), jnp.float32)],
                   [wct, P.T, bct])[0]
    return y, OH, OW


# ----------------------------------------------------------------------------
# Parameters (deterministic synthetic init) + one-time MXU-ready packing
# ----------------------------------------------------------------------------
IN_CHANNELS = 7
LATENT_DIM = 20
CATEGORICAL_DIM = 7
HIDDEN_DIMS = (64, 128, 256)
TEMPERATURE = 0.5


def init_params(key):
    keys = iter(jax.random.split(key, 64))

    def nrm(shape, scale=0.05):
        return (scale * jax.random.normal(next(keys), shape)).astype(jnp.float32)

    params = {"encoder": [], "decoder": [], "final": {}}
    cin = IN_CHANNELS
    for h in HIDDEN_DIMS:
        params["encoder"].append({
            "w": nrm((h, cin, 3, 3)),
            "b": nrm((h,)),                   # kept for fidelity; cancels in BN
            "gamma": jnp.ones((h,), jnp.float32),
            "beta": jnp.zeros((h,), jnp.float32),
        })
        cin = h

    flat_dim = HIDDEN_DIMS[-1] * 3 * 3                 # 2304
    zdim = LATENT_DIM * CATEGORICAL_DIM                # 140
    params["fc_z"] = {"w": nrm((flat_dim, zdim)), "b": nrm((zdim,))}
    params["decoder_input"] = {"w": nrm((zdim, flat_dim)), "b": nrm((flat_dim,))}

    rev = list(HIDDEN_DIMS)[::-1]                      # [256, 128, 64]
    for i in range(len(rev) - 1):
        params["decoder"].append({
            "w": nrm((rev[i], rev[i + 1], 3, 3)),      # ConvT layout (Cin,Cout,k,k)
            "b": nrm((rev[i + 1],)),
            "gamma": jnp.ones((rev[i + 1],), jnp.float32),
            "beta": jnp.zeros((rev[i + 1],), jnp.float32),
        })
    params["final"] = {
        "wt": nrm((rev[-1], rev[-1], 3, 3)),
        "bt": nrm((rev[-1],)),
        "gamma": jnp.ones((rev[-1],), jnp.float32),
        "beta": jnp.zeros((rev[-1],), jnp.float32),
        "wc": nrm((7, rev[-1], 3, 3)),
        "bc": nrm((7,)),
    }
    return params


def _conv_weight_matrix(w):
    """(Cout, Cin, KH, KW) Conv2d layout -> (KH*KW*Cin, Cout), K order (kh,kw,c)."""
    Cout, Cin, KH, KW = w.shape
    return w.transpose(2, 3, 1, 0).reshape(KH * KW * Cin, Cout)


def _deconv_weight_matrix(w):
    """w: (Cin, Cout, 3, 3) ConvTranspose2d layout -> (4*Cin, 4*Cout) sub-pixel
    weight.  Rows blocked [a00,a01,a10,a11]; cols blocked by phase (ph,pw)."""
    Cin, Cout = w.shape[0], w.shape[1]
    Z = jnp.zeros((Cin, Cout), w.dtype)
    t = lambda kh, kw: w[:, :, kh, kw]
    row_a00 = jnp.concatenate([t(1, 1), t(1, 2), t(2, 1), t(2, 2)], axis=1)
    row_a01 = jnp.concatenate([Z,       t(1, 0), Z,       t(2, 0)], axis=1)
    row_a10 = jnp.concatenate([Z,       Z,       t(0, 1), t(0, 2)], axis=1)
    row_a11 = jnp.concatenate([Z,       Z,       Z,       t(0, 0)], axis=1)
    return jnp.concatenate([row_a00, row_a01, row_a10, row_a11], axis=0)


def pack_params(params):
    """One-time (outside jit) repack into MXU-ready operands.
    Conv/ConvTranspose biases are dropped: a per-channel constant added before
    batch-stat BatchNorm cancels exactly in (y - mean)."""
    packed = {"encoder": [], "decoder": []}

    for layer in params["encoder"]:
        w2 = _conv_weight_matrix(layer["w"])
        kpad = -(-w2.shape[0] // 64) * 64              # 63 -> 64 for layer 1
        if kpad != w2.shape[0]:
            w2 = jnp.pad(w2, ((0, kpad - w2.shape[0]), (0, 0)))
        packed["encoder"].append({
            "w": w2.astype(jnp.bfloat16),
            "gb": jnp.stack([layer["gamma"], layer["beta"]]).astype(jnp.float32),
        })

    zdim = LATENT_DIM * CATEGORICAL_DIM
    flat_dim = HIDDEN_DIMS[-1] * 3 * 3
    idx = jnp.arange(zdim)
    packed["grp"] = (idx[:, None] // CATEGORICAL_DIM ==
                     idx[None, :] // CATEGORICAL_DIM).astype(jnp.float32)
    packed["fc_z_w"] = params["fc_z"]["w"].astype(jnp.bfloat16)
    packed["fc_z_b"] = params["fc_z"]["b"].reshape(1, zdim).astype(jnp.float32)
    packed["dec_in_w"] = params["decoder_input"]["w"].astype(jnp.bfloat16)
    packed["dec_in_b"] = params["decoder_input"]["b"].reshape(1, flat_dim).astype(jnp.float32)

    dec_layers = list(params["decoder"]) + [{
        "w": params["final"]["wt"],
        "gamma": params["final"]["gamma"],
        "beta": params["final"]["beta"],
    }]
    for layer in dec_layers:
        packed["decoder"].append({
            "w": _deconv_weight_matrix(layer["w"]).astype(jnp.bfloat16),
            "gb": jnp.stack([jnp.tile(layer["gamma"], 4),
                             jnp.tile(layer["beta"], 4)]).astype(jnp.float32),
        })

    wct = _conv_weight_matrix(params["final"]["wc"]).T            # (7, 576)
    packed["final_w"] = jnp.pad(wct, ((0, 1), (0, 0))).astype(jnp.bfloat16)   # (8,576)
    packed["final_b"] = jnp.pad(params["final"]["bc"],
                                (0, 1)).reshape(8, 1).astype(jnp.float32)
    return packed


# ----------------------------------------------------------------------------
# Forward pass:  forward(x) -> [recons, input, q]
# ----------------------------------------------------------------------------
def categorical_vae_forward(packed, x, u, temp=TEMPERATURE):
    N = x.shape[0]
    zdim = LATENT_DIM * CATEGORICAL_DIM
    flat_dim = HIDDEN_DIMS[-1] * 3 * 3

    # ---- encode (NHWC bf16 internally) ----
    h = x.transpose(0, 2, 3, 1).astype(jnp.bfloat16)   # NCHW -> NHWC once
    for layer in packed["encoder"]:
        h = conv_bn_lrelu(h, layer["w"], layer["gb"], stride=2, padding=1)
    # flatten in PyTorch NCHW order so fc_z weights keep their semantics
    flat = h.transpose(0, 3, 1, 2).reshape(N, flat_dim)

    # ---- fc_z -> Gumbel-softmax -> decoder_input (one fused kernel) ----
    kern = functools.partial(_latent_fused_kernel, inv_temp=1.0 / temp, eps=1e-7)
    q2d, d = fused_call(
        kern,
        [((N, zdim), jnp.float32), ((N, flat_dim), jnp.bfloat16)],
        [flat, packed["fc_z_w"], packed["fc_z_b"], u.reshape(N, zdim),
         packed["grp"], packed["dec_in_w"], packed["dec_in_b"]])
    q = q2d.reshape(N, LATENT_DIM, CATEGORICAL_DIM)

    # ---- decode ----
    h = d.reshape(N, HIDDEN_DIMS[-1], 3, 3).transpose(0, 2, 3, 1)   # -> NHWC
    for layer in packed["decoder"]:
        h = deconv_bn_lrelu(h, layer["w"], layer["gb"])

    yt, OH, OW = conv_tanh_t(h, packed["final_w"], packed["final_b"])
    recons = yt[:7].reshape(7, N, OH, OW).transpose(1, 0, 2, 3)     # -> NCHW

    return recons, x, q


# ----------------------------------------------------------------------------
if __name__ == "__main__":
    key = jax.random.PRNGKey(0)
    kp, kx, ku = jax.random.split(key, 3)

    params = init_params(kp)
    packed = jax.device_put(pack_params(params))   # one-time repack, outside jit

    B, C, H, W = 2, IN_CHANNELS, 24, 24
    x = jax.random.normal(kx, (B, C, H, W), jnp.float32)
    # rand_like(z) equivalent: uniform [0,1) noise for the Gumbel trick.
    u = jax.random.uniform(ku, (B, LATENT_DIM, CATEGORICAL_DIM), jnp.float32)

    fwd = jax.jit(categorical_vae_forward)
    recons, inp, q = fwd(packed, x, u)
    jax.block_until_ready((recons, inp, q))

    assert recons.shape == (B, 7, 24, 24), recons.shape
    assert inp.shape == (B, C, H, W), inp.shape
    assert q.shape == (B, LATENT_DIM, CATEGORICAL_DIM), q.shape
    assert bool(jnp.all(jnp.isfinite(recons))) and bool(jnp.all(jnp.isfinite(q)))
    print("KERNEL_OK")
</pallas_src>

<mosaic_0001>
module attributes {stable_mosaic.version = 11 : i64} {
  func.func @_conv_bn_lrelu_kernel(%arg0: i32, %arg1: memref<288x64xbf16, #tpu.memory_space<vmem>>, %arg2: memref<64x64xbf16, #tpu.memory_space<vmem>>, %arg3: memref<2x64xf32, #tpu.memory_space<vmem>>, %arg4: memref<288x64xbf16, #tpu.memory_space<vmem>>) attributes {dimension_semantics = [#tpu.dimension_semantics<arbitrary>], iteration_bounds = array<i64: 1>, scalar_prefetch = 0 : i64, scratch_operands = 0 : i64, tpu.core_type = #tpu.core_type<tc>, window_params = [{pipeline_mode = #tpu.pipeline_mode<synchronous>, transform_indices = @transform_0, window_bounds = array<i64: 288, 64>}, {pipeline_mode = #tpu.pipeline_mode<synchronous>, transform_indices = @transform_1, window_bounds = array<i64: 64, 64>}, {pipeline_mode = #tpu.pipeline_mode<synchronous>, transform_indices = @transform_2, window_bounds = array<i64: 2, 64>}, {pipeline_mode = #tpu.pipeline_mode<synchronous>, transform_indices = @transform_3, window_bounds = array<i64: 288, 64>}]} {
    %c0 = arith.constant 0 : index
    %c0_0 = arith.constant 0 : index
    %0 = vector.load %arg1[%c0, %c0_0] : memref<288x64xbf16, #tpu.memory_space<vmem>>, vector<288x64xbf16>
    %c0_1 = arith.constant 0 : index
    %c0_2 = arith.constant 0 : index
    %1 = vector.load %arg2[%c0_1, %c0_2] : memref<64x64xbf16, #tpu.memory_space<vmem>>, vector<64x64xbf16>
    %cst = arith.constant dense<0.000000e+00> : vector<288x64xf32>
    %2 = tpu.matmul %0, %1, %cst {dimension_numbers = #tpu.dot_dimension_numbers<[1], [0], [0], [1], [0, 0, 1, 1], [], []>} : vector<288x64xbf16>, vector<64x64xbf16>, vector<288x64xf32> -> vector<288x64xf32>
    %cst_3 = arith.constant dense<0.000000e+00> : vector<64xf32>
    %3 = vector.multi_reduction <add>, %2, %cst_3 [0] : vector<288x64xf32> to vector<64xf32>
    %4 = vector.shape_cast %3 : vector<64xf32> to vector<1x64xf32>
    %cst_4 = arith.constant 2.880000e+02 : f32
    %5 = vector.broadcast %cst_4 : f32 to vector<1x64xf32>
    %6 = arith.divf %4, %5 : vector<1x64xf32>
    %7 = vector.broadcast %6 : vector<1x64xf32> to vector<288x64xf32>
    %8 = arith.subf %2, %7 : vector<288x64xf32>
    %9 = arith.mulf %8, %8 : vector<288x64xf32>
    %cst_5 = arith.constant dense<0.000000e+00> : vector<64xf32>
    %10 = vector.multi_reduction <add>, %9, %cst_5 [0] : vector<288x64xf32> to vector<64xf32>
    %11 = vector.shape_cast %10 : vector<64xf32> to vector<1x64xf32>
    %cst_6 = arith.constant 2.880000e+02 : f32
    %12 = vector.broadcast %cst_6 : f32 to vector<1x64xf32>
    %13 = arith.divf %11, %12 : vector<1x64xf32>
    %14 = vector.broadcast %6 : vector<1x64xf32> to vector<288x64xf32>
    %15 = arith.subf %2, %14 : vector<288x64xf32>
    %cst_7 = arith.constant 9.99999974E-6 : f32
    %16 = vector.broadcast %cst_7 : f32 to vector<1x64xf32>
    %17 = arith.addf %13, %16 : vector<1x64xf32>
    %18 = math.rsqrt %17 : vector<1x64xf32>
    %19 = vector.broadcast %18 : vector<1x64xf32> to vector<288x64xf32>
    %20 = arith.mulf %15, %19 : vector<288x64xf32>
    %c0_8 = arith.constant 0 : index
    %c0_9 = arith.constant 0 : index
    %21 = vector.load %arg3[%c0_8, %c0_9] : memref<2x64xf32, #tpu.memory_space<vmem>>, vector<1x64xf32>
    %22 = vector.broadcast %21 : vector<1x64xf32> to vector<288x64xf32>
    %23 = arith.mulf %20, %22 : vector<288x64xf32>
    %c1 = arith.constant 1 : index
    %c0_10 = arith.constant 0 : index
    %24 = vector.load %arg3[%c1, %c0_10] : memref<2x64xf32, #tpu.memory_space<vmem>>, vector<1x64xf32>
    %25 = vector.broadcast %24 : vector<1x64xf32> to vector<288x64xf32>
    %26 = arith.addf %23, %25 : vector<288x64xf32>
    %cst_11 = arith.constant 0.000000e+00 : f32
    %27 = vector.broadcast %cst_11 : f32 to vector<288x64xf32>
    %28 = arith.cmpf oge, %26, %27 : vector<288x64xf32>
    %cst_12 = arith.constant 0.00999999977 : f32
    %29 = vector.broadcast %cst_12 : f32 to vector<288x64xf32>
    %30 = arith.mulf %29, %26 : vector<288x64xf32>
    %31 = arith.select %28, %26, %30 : vector<288x64xi1>, vector<288x64xf32>
    %32 = arith.truncf %31 : vector<288x64xf32> to vector<288x64xbf16>
    %c0_13 = arith.constant 0 : index
    %c0_14 = arith.constant 0 : index
    %33 = vector.load %arg4[%c0_13, %c0_14] : memref<288x64xbf16, #tpu.memory_space<vmem>>, vector<288x64xbf16>
    tpu.vector_store %arg4[%c0_13, %c0_14], %32 {strides = array<i32>} : memref<288x64xbf16, #tpu.memory_space<vmem>>, vector<288x64xbf16>,
    return
  }
  func.func @transform_0(%arg0: i32) -> (i32, i32) {
    %c0_i32 = arith.constant 0 : i32
    %c0_i32_0 = arith.constant 0 : i32
    %c0_i32_1 = arith.constant 0 : i32
    return %c0_i32, %c0_i32_0 : i32, i32
  }
  func.func @transform_1(%arg0: i32) -> (i32, i32) {
    %c0_i32 = arith.constant 0 : i32
    %c0_i32_0 = arith.constant 0 : i32
    %c0_i32_1 = arith.constant 0 : i32
    return %c0_i32, %c0_i32_0 : i32, i32
  }
  func.func @transform_2(%arg0: i32) -> (i32, i32) {
    %c0_i32 = arith.constant 0 : i32
    %c0_i32_0 = arith.constant 0 : i32
    %c0_i32_1 = arith.constant 0 : i32
    return %c0_i32, %c0_i32_0 : i32, i32
  }
  func.func @transform_3(%arg0: i32) -> (i32, i32) {
    %c0_i32 = arith.constant 0 : i32
    %c0_i32_0 = arith.constant 0 : i32
    %c0_i32_1 = arith.constant 0 : i32
    return %c0_i32, %c0_i32_0 : i32, i32
  }
}

module attributes {stable_mosaic.version = 11 : i64} {
  func.func @_conv_bn_lrelu_kernel(%arg0: i32, %arg1: memref<72x576xbf16, #tpu.memory_space<vmem>>, %arg2: memref<576x128xbf16, #tpu.memory_space<vmem>>, %arg3: memref<2x128xf32, #tpu.memory_space<vmem>>, %arg4: memref<72x128xbf16, #tpu.memory_space<vmem>>) attributes {dimension_semantics = [#tpu.dimension_semantics<arbitrary>], iteration_bounds = array<i64: 1>, scalar_prefetch = 0 : i64, scratch_operands = 0 : i64, tpu.core_type = #tpu.core_type<tc>, window_params = [{pipeline_mode = #tpu.pipeline_mode<synchronous>, transform_indices = @transform_0, window_bounds = array<i64: 72, 576>}, {pipeline_mode = #tpu.pipeline_mode<synchronous>, transform_indices = @transform_1, window_bounds = array<i64: 576, 128>}, {pipeline_mode = #tpu.pipeline_mode<synchronous>, transform_indices = @transform_2, window_bounds = array<i64: 2, 128>}, {pipeline_mode = #tpu.pipeline_mode<synchronous>, transform_indices = @transform_3, window_bounds = array<i64: 72, 128>}]} {
    %c0 = arith.constant 0 : index
    %c0_0 = arith.constant 0 : index
    %0 = vector.load %arg1[%c0, %c0_0] : memref<72x576xbf16, #tpu.memory_space<vmem>>, vector<72x576xbf16>
    %c0_1 = arith.constant 0 : index
    %c0_2 = arith.constant 0 : index
    %1 = vector.load %arg2[%c0_1, %c0_2] : memref<576x128xbf16, #tpu.memory_space<vmem>>, vector<576x128xbf16>
    %cst = arith.constant dense<0.000000e+00> : vector<72x128xf32>
    %2 = tpu.matmul %0, %1, %cst {dimension_numbers = #tpu.dot_dimension_numbers<[1], [0], [0], [1], [0, 0, 1, 1], [], []>} : vector<72x576xbf16>, vector<576x128xbf16>, vector<72x128xf32> -> vector<72x128xf32>
    %cst_3 = arith.constant dense<0.000000e+00> : vector<128xf32>
    %3 = vector.multi_reduction <add>, %2, %cst_3 [0] : vector<72x128xf32> to vector<128xf32>
    %4 = vector.shape_cast %3 : vector<128xf32> to vector<1x128xf32>
    %cst_4 = arith.constant 7.200000e+01 : f32
    %5 = vector.broadcast %cst_4 : f32 to vector<1x128xf32>
    %6 = arith.divf %4, %5 : vector<1x128xf32>
    %7 = vector.broadcast %6 : vector<1x128xf32> to vector<72x128xf32>
    %8 = arith.subf %2, %7 : vector<72x128xf32>
    %9 = arith.mulf %8, %8 : vector<72x128xf32>
    %cst_5 = arith.constant dense<0.000000e+00> : vector<128xf32>
    %10 = vector.multi_reduction <add>, %9, %cst_5 [0] : vector<72x128xf32> to vector<128xf32>
    %11 = vector.shape_cast %10 : vector<128xf32> to vector<1x128xf32>
    %cst_6 = arith.constant 7.200000e+01 : f32
    %12 = vector.broadcast %cst_6 : f32 to vector<1x128xf32>
    %13 = arith.divf %11, %12 : vector<1x128xf32>
    %14 = vector.broadcast %6 : vector<1x128xf32> to vector<72x128xf32>
    %15 = arith.subf %2, %14 : vector<72x128xf32>
    %cst_7 = arith.constant 9.99999974E-6 : f32
    %16 = vector.broadcast %cst_7 : f32 to vector<1x128xf32>
    %17 = arith.addf %13, %16 : vector<1x128xf32>
    %18 = math.rsqrt %17 : vector<1x128xf32>
    %19 = vector.broadcast %18 : vector<1x128xf32> to vector<72x128xf32>
    %20 = arith.mulf %15, %19 : vector<72x128xf32>
    %c0_8 = arith.constant 0 : index
    %c0_9 = arith.constant 0 : index
    %21 = vector.load %arg3[%c0_8, %c0_9] : memref<2x128xf32, #tpu.memory_space<vmem>>, vector<1x128xf32>
    %22 = vector.broadcast %21 : vector<1x128xf32> to vector<72x128xf32>
    %23 = arith.mulf %20, %22 : vector<72x128xf32>
    %c1 = arith.constant 1 : index
    %c0_10 = arith.constant 0 : index
    %24 = vector.load %arg3[%c1, %c0_10] : memref<2x128xf32, #tpu.memory_space<vmem>>, vector<1x128xf32>
    %25 = vector.broadcast %24 : vector<1x128xf32> to vector<72x128xf32>
    %26 = arith.addf %23, %25 : vector<72x128xf32>
    %cst_11 = arith.constant 0.000000e+00 : f32
    %27 = vector.broadcast %cst_11 : f32 to vector<72x128xf32>
    %28 = arith.cmpf oge, %26, %27 : vector<72x128xf32>
    %cst_12 = arith.constant 0.00999999977 : f32
    %29 = vector.broadcast %cst_12 : f32 to vector<72x128xf32>
    %30 = arith.mulf %29, %26 : vector<72x128xf32>
    %31 = arith.select %28, %26, %30 : vector<72x128xi1>, vector<72x128xf32>
    %32 = arith.truncf %31 : vector<72x128xf32> to vector<72x128xbf16>
    %c0_13 = arith.constant 0 : index
    %c0_14 = arith.constant 0 : index
    %33 = vector.load %arg4[%c0_13, %c0_14] : memref<72x128xbf16, #tpu.memory_space<vmem>>, vector<72x128xbf16>
    tpu.vector_store %arg4[%c0_13, %c0_14], %32 {strides = array<i32>} : memref<72x128xbf16, #tpu.memory_space<vmem>>, vector<72x128xbf16>,
    return
  }
  func.func @transform_0(%arg0: i32) -> (i32, i32) {
    %c0_i32 = arith.constant 0 : i32
    %c0_i32_0 = arith.constant 0 : i32
    %c0_i32_1 = arith.constant 0 : i32
    return %c0_i32, %c0_i32_0 : i32, i32
  }
  func.func @transform_1(%arg0: i32) -> (i32, i32) {
    %c0_i32 = arith.constant 0 : i32
    %c0_i32_0 = arith.constant 0 : i32
    %c0_i32_1 = arith.constant 0 : i32
    return %c0_i32, %c0_i32_0 : i32, i32
  }
  func.func @transform_2(%arg0: i32) -> (i32, i32) {
    %c0_i32 = arith.constant 0 : i32
    %c0_i32_0 = arith.constant 0 : i32
    %c0_i32_1 = arith.constant 0 : i32
    return %c0_i32, %c0_i32_0 : i32, i32
  }
  func.func @transform_3(%arg0: i32) -> (i32, i32) {
    %c0_i32 = arith.constant 0 : i32
    %c0_i32_0 = arith.constant 0 : i32
    %c0_i32_1 = arith.constant 0 : i32
    return %c0_i32, %c0_i32_0 : i32, i32
  }
}

module attributes {stable_mosaic.version = 11 : i64} {
  func.func @_conv_bn_lrelu_kernel(%arg0: i32, %arg1: memref<18x1152xbf16, #tpu.memory_space<vmem>>, %arg2: memref<1152x256xbf16, #tpu.memory_space<vmem>>, %arg3: memref<2x256xf32, #tpu.memory_space<vmem>>, %arg4: memref<18x256xbf16, #tpu.memory_space<vmem>>) attributes {dimension_semantics = [#tpu.dimension_semantics<arbitrary>], iteration_bounds = array<i64: 1>, scalar_prefetch = 0 : i64, scratch_operands = 0 : i64, tpu.core_type = #tpu.core_type<tc>, window_params = [{pipeline_mode = #tpu.pipeline_mode<synchronous>, transform_indices = @transform_0, window_bounds = array<i64: 18, 1152>}, {pipeline_mode = #tpu.pipeline_mode<synchronous>, transform_indices = @transform_1, window_bounds = array<i64: 1152, 256>}, {pipeline_mode = #tpu.pipeline_mode<synchronous>, transform_indices = @transform_2, window_bounds = array<i64: 2, 256>}, {pipeline_mode = #tpu.pipeline_mode<synchronous>, transform_indices = @transform_3, window_bounds = array<i64: 18, 256>}]} {
    %c0 = arith.constant 0 : index
    %c0_0 = arith.constant 0 : index
    %0 = vector.load %arg1[%c0, %c0_0] : memref<18x1152xbf16, #tpu.memory_space<vmem>>, vector<18x1152xbf16>
    %c0_1 = arith.constant 0 : index
    %c0_2 = arith.constant 0 : index
    %1 = vector.load %arg2[%c0_1, %c0_2] : memref<1152x256xbf16, #tpu.memory_space<vmem>>, vector<1152x256xbf16>
    %cst = arith.constant dense<0.000000e+00> : vector<18x256xf32>
    %2 = tpu.matmul %0, %1, %cst {dimension_numbers = #tpu.dot_dimension_numbers<[1], [0], [0], [1], [0, 0, 1, 1], [], []>} : vector<18x1152xbf16>, vector<1152x256xbf16>, vector<18x256xf32> -> vector<18x256xf32>
    %cst_3 = arith.constant dense<0.000000e+00> : vector<256xf32>
    %3 = vector.multi_reduction <add>, %2, %cst_3 [0] : vector<18x256xf32> to vector<256xf32>
    %4 = vector.shape_cast %3 : vector<256xf32> to vector<1x256xf32>
    %cst_4 = arith.constant 1.800000e+01 : f32
    %5 = vector.broadcast %cst_4 : f32 to vector<1x256xf32>
    %6 = arith.divf %4, %5 : vector<1x256xf32>
    %7 = vector.broadcast %6 : vector<1x256xf32> to vector<18x256xf32>
    %8 = arith.subf %2, %7 : vector<18x256xf32>
    %9 = arith.mulf %8, %8 : vector<18x256xf32>
    %cst_5 = arith.constant dense<0.000000e+00> : vector<256xf32>
    %10 = vector.multi_reduction <add>, %9, %cst_5 [0] : vector<18x256xf32> to vector<256xf32>
    %11 = vector.shape_cast %10 : vector<256xf32> to vector<1x256xf32>
    %cst_6 = arith.constant 1.800000e+01 : f32
    %12 = vector.broadcast %cst_6 : f32 to vector<1x256xf32>
    %13 = arith.divf %11, %12 : vector<1x256xf32>
    %14 = vector.broadcast %6 : vector<1x256xf32> to vector<18x256xf32>
    %15 = arith.subf %2, %14 : vector<18x256xf32>
    %cst_7 = arith.constant 9.99999974E-6 : f32
    %16 = vector.broadcast %cst_7 : f32 to vector<1x256xf32>
    %17 = arith.addf %13, %16 : vector<1x256xf32>
    %18 = math.rsqrt %17 : vector<1x256xf32>
    %19 = vector.broadcast %18 : vector<1x256xf32> to vector<18x256xf32>
    %20 = arith.mulf %15, %19 : vector<18x256xf32>
    %c0_8 = arith.constant 0 : index
    %c0_9 = arith.constant 0 : index
    %21 = vector.load %arg3[%c0_8, %c0_9] : memref<2x256xf32, #tpu.memory_space<vmem>>, vector<1x256xf32>
    %22 = vector.broadcast %21 : vector<1x256xf32> to vector<18x256xf32>
    %23 = arith.mulf %20, %22 : vector<18x256xf32>
    %c1 = arith.constant 1 : index
    %c0_10 = arith.constant 0 : index
    %24 = vector.load %arg3[%c1, %c0_10] : memref<2x256xf32, #tpu.memory_space<vmem>>, vector<1x256xf32>
    %25 = vector.broadcast %24 : vector<1x256xf32> to vector<18x256xf32>
    %26 = arith.addf %23, %25 : vector<18x256xf32>
    %cst_11 = arith.constant 0.000000e+00 : f32
    %27 = vector.broadcast %cst_11 : f32 to vector<18x256xf32>
    %28 = arith.cmpf oge, %26, %27 : vector<18x256xf32>
    %cst_12 = arith.constant 0.00999999977 : f32
    %29 = vector.broadcast %cst_12 : f32 to vector<18x256xf32>
    %30 = arith.mulf %29, %26 : vector<18x256xf32>
    %31 = arith.select %28, %26, %30 : vector<18x256xi1>, vector<18x256xf32>
    %32 = arith.truncf %31 : vector<18x256xf32> to vector<18x256xbf16>
    %c0_13 = arith.constant 0 : index
    %c0_14 = arith.constant 0 : index
    %33 = vector.load %arg4[%c0_13, %c0_14] : memref<18x256xbf16, #tpu.memory_space<vmem>>, vector<18x256xbf16>
    tpu.vector_store %arg4[%c0_13, %c0_14], %32 {strides = array<i32>} : memref<18x256xbf16, #tpu.memory_space<vmem>>, vector<18x256xbf16>,
    return
  }
  func.func @transform_0(%arg0: i32) -> (i32, i32) {
    %c0_i32 = arith.constant 0 : i32
    %c0_i32_0 = arith.constant 0 : i32
    %c0_i32_1 = arith.constant 0 : i32
    return %c0_i32, %c0_i32_0 : i32, i32
  }
  func.func @transform_1(%arg0: i32) -> (i32, i32) {
    %c0_i32 = arith.constant 0 : i32
    %c0_i32_0 = arith.constant 0 : i32
    %c0_i32_1 = arith.constant 0 : i32
    return %c0_i32, %c0_i32_0 : i32, i32
  }
  func.func @transform_2(%arg0: i32) -> (i32, i32) {
    %c0_i32 = arith.constant 0 : i32
    %c0_i32_0 = arith.constant 0 : i32
    %c0_i32_1 = arith.constant 0 : i32
    return %c0_i32, %c0_i32_0 : i32, i32
  }
  func.func @transform_3(%arg0: i32) -> (i32, i32) {
    %c0_i32 = arith.constant 0 : i32
    %c0_i32_0 = arith.constant 0 : i32
    %c0_i32_1 = arith.constant 0 : i32
    return %c0_i32, %c0_i32_0 : i32, i32
  }
}

module attributes {stable_mosaic.version = 11 : i64} {
  func.func @_latent_fused_kernel(%arg0: i32, %arg1: memref<2x2304xbf16, #tpu.memory_space<vmem>>, %arg2: memref<2304x140xbf16, #tpu.memory_space<vmem>>, %arg3: memref<1x140xf32, #tpu.memory_space<vmem>>, %arg4: memref<2x140xf32, #tpu.memory_space<vmem>>, %arg5: memref<140x140xf32, #tpu.memory_space<vmem>>, %arg6: memref<140x2304xbf16, #tpu.memory_space<vmem>>, %arg7: memref<1x2304xf32, #tpu.memory_space<vmem>>, %arg8: memref<2x140xf32, #tpu.memory_space<vmem>>, %arg9: memref<2x2304xbf16, #tpu.memory_space<vmem>>) attributes {dimension_semantics = [#tpu.dimension_semantics<arbitrary>], iteration_bounds = array<i64: 1>, scalar_prefetch = 0 : i64, scratch_operands = 0 : i64, tpu.core_type = #tpu.core_type<tc>, window_params = [{pipeline_mode = #tpu.pipeline_mode<synchronous>, transform_indices = @transform_0, window_bounds = array<i64: 2, 2304>}, {pipeline_mode = #tpu.pipeline_mode<synchronous>, transform_indices = @transform_1, window_bounds = array<i64: 2304, 140>}, {pipeline_mode = #tpu.pipeline_mode<synchronous>, transform_indices = @transform_2, window_bounds = array<i64: 1, 140>}, {pipeline_mode = #tpu.pipeline_mode<synchronous>, transform_indices = @transform_3, window_bounds = array<i64: 2, 140>}, {pipeline_mode = #tpu.pipeline_mode<synchronous>, transform_indices = @transform_4, window_bounds = array<i64: 140, 140>}, {pipeline_mode = #tpu.pipeline_mode<synchronous>, transform_indices = @transform_5, window_bounds = array<i64: 140, 2304>}, {pipeline_mode = #tpu.pipeline_mode<synchronous>, transform_indices = @transform_6, window_bounds = array<i64: 1, 2304>}, {pipeline_mode = #tpu.pipeline_mode<synchronous>, transform_indices = @transform_7, window_bounds = array<i64: 2, 140>}, {pipeline_mode = #tpu.pipeline_mode<synchronous>, transform_indices = @transform_8, window_bounds = array<i64: 2, 2304>}]} {
    %c0 = arith.constant 0 : index
    %c0_0 = arith.constant 0 : index
    %0 = vector.load %arg1[%c0, %c0_0] : memref<2x2304xbf16, #tpu.memory_space<vmem>>, vector<2x2304xbf16>
    %c0_1 = arith.constant 0 : index
    %c0_2 = arith.constant 0 : index
    %1 = vector.load %arg2[%c0_1, %c0_2] : memref<2304x140xbf16, #tpu.memory_space<vmem>>, vector<2304x140xbf16>
    %cst = arith.constant dense<0.000000e+00> : vector<2x140xf32>
    %2 = tpu.matmul %0, %1, %cst {dimension_numbers = #tpu.dot_dimension_numbers<[1], [0], [0], [1], [0, 0, 1, 1], [], []>} : vector<2x2304xbf16>, vector<2304x140xbf16>, vector<2x140xf32> -> vector<2x140xf32>
    %c0_3 = arith.constant 0 : index
    %c0_4 = arith.constant 0 : index
    %3 = vector.load %arg3[%c0_3, %c0_4] : memref<1x140xf32, #tpu.memory_space<vmem>>, vector<1x140xf32>
    %4 = vector.broadcast %3 : vector<1x140xf32> to vector<2x140xf32>
    %5 = arith.addf %2, %4 : vector<2x140xf32>
    %c0_5 = arith.constant 0 : index
    %c0_6 = arith.constant 0 : index
    %6 = vector.load %arg8[%c0_5, %c0_6] : memref<2x140xf32, #tpu.memory_space<vmem>>, vector<2x140xf32>
    tpu.vector_store %arg8[%c0_5, %c0_6], %5 {strides = array<i32>} : memref<2x140xf32, #tpu.memory_space<vmem>>, vector<2x140xf32>,
    %c0_7 = arith.constant 0 : index
    %c0_8 = arith.constant 0 : index
    %7 = vector.load %arg4[%c0_7, %c0_8] : memref<2x140xf32, #tpu.memory_space<vmem>>, vector<2x140xf32>
    %cst_9 = arith.constant 1.000000e-07 : f32
    %8 = vector.broadcast %cst_9 : f32 to vector<2x140xf32>
    %9 = arith.addf %7, %8 : vector<2x140xf32>
    %10 = math.log %9 : vector<2x140xf32>
    %cst_10 = arith.constant 0.000000e+00 : f32
    %11 = vector.broadcast %cst_10 : f32 to vector<2x140xf32>
    %12 = arith.subf %11, %10 : vector<2x140xf32>
    %cst_11 = arith.constant 1.000000e-07 : f32
    %13 = vector.broadcast %cst_11 : f32 to vector<2x140xf32>
    %14 = arith.addf %12, %13 : vector<2x140xf32>
    %15 = math.log %14 : vector<2x140xf32>
    %cst_12 = arith.constant 0.000000e+00 : f32
    %16 = vector.broadcast %cst_12 : f32 to vector<2x140xf32>
    %17 = arith.subf %16, %15 : vector<2x140xf32>
    %18 = arith.addf %5, %17 : vector<2x140xf32>
    %cst_13 = arith.constant 2.000000e+00 : f32
    %19 = vector.broadcast %cst_13 : f32 to vector<2x140xf32>
    %20 = arith.mulf %18, %19 : vector<2x140xf32>
    %cst_14 = arith.constant dense<0xFF800000> : vector<2xf32>
    %21 = vector.multi_reduction <maximumf>, %20, %cst_14 [1] : vector<2x140xf32> to vector<2xf32>
    %22 = vector.shape_cast %21 : vector<2xf32> to vector<2x1xf32>
    %23 = vector.broadcast %22 : vector<2x1xf32> to vector<2x140xf32>
    %24 = arith.subf %20, %23 : vector<2x140xf32>
    %cst_15 = arith.constant -7.500000e+01 : f32
    %25 = vector.broadcast %cst_15 : f32 to vector<2x140xf32>
    %26 = arith.maximumf %24, %25 : vector<2x140xf32>
    %27 = math.exp %26 : vector<2x140xf32>
    %c0_16 = arith.constant 0 : index
    %c0_17 = arith.constant 0 : index
    %28 = vector.load %arg5[%c0_16, %c0_17] : memref<140x140xf32, #tpu.memory_space<vmem>>, vector<140x140xf32>
    %cst_18 = arith.constant dense<0.000000e+00> : vector<2x140xf32>
    %29 = tpu.matmul %27, %28, %cst_18 {dimension_numbers = #tpu.dot_dimension_numbers<[1], [0], [0], [1], [0, 0, 1, 1], [], []>} : vector<2x140xf32>, vector<140x140xf32>, vector<2x140xf32> -> vector<2x140xf32>
    %30 = tpu.reciprocal %29 {approx = true} : vector<2x140xf32> -> vector<2x140xf32>
    %31 = arith.mulf %27, %30 : vector<2x140xf32>
    %32 = arith.truncf %31 : vector<2x140xf32> to vector<2x140xbf16>
    %c0_19 = arith.constant 0 : index
    %c0_20 = arith.constant 0 : index
    %33 = vector.load %arg6[%c0_19, %c0_20] : memref<140x2304xbf16, #tpu.memory_space<vmem>>, vector<140x2304xbf16>
    %cst_21 = arith.constant dense<0.000000e+00> : vector<2x2304xf32>
    %34 = tpu.matmul %32, %33, %cst_21 {dimension_numbers = #tpu.dot_dimension_numbers<[1], [0], [0], [1], [0, 0, 1, 1], [], []>} : vector<2x140xbf16>, vector<140x2304xbf16>, vector<2x2304xf32> -> vector<2x2304xf32>
    %c0_22 = arith.constant 0 : index
    %c0_23 = arith.constant 0 : index
    %35 = vector.load %arg7[%c0_22, %c0_23] : memref<1x2304xf32, #tpu.memory_space<vmem>>, vector<1x2304xf32>
    %36 = vector.broadcast %35 : vector<1x2304xf32> to vector<2x2304xf32>
    %37 = arith.addf %34, %36 : vector<2x2304xf32>
    %38 = arith.truncf %37 : vector<2x2304xf32> to vector<2x2304xbf16>
    %c0_24 = arith.constant 0 : index
    %c0_25 = arith.constant 0 : index
    %39 = vector.load %arg9[%c0_24, %c0_25] : memref<2x2304xbf16, #tpu.memory_space<vmem>>, vector<2x2304xbf16>
    tpu.vector_store %arg9[%c0_24, %c0_25], %38 {strides = array<i32>} : memref<2x2304xbf16, #tpu.memory_space<vmem>>, vector<2x2304xbf16>,
    return
  }
  func.func @transform_0(%arg0: i32) -> (i32, i32) {
    %c0_i32 = arith.constant 0 : i32
    %c0_i32_0 = arith.constant 0 : i32
    %c0_i32_1 = arith.constant 0 : i32
    return %c0_i32, %c0_i32_0 : i32, i32
  }
  func.func @transform_1(%arg0: i32) -> (i32, i32) {
    %c0_i32 = arith.constant 0 : i32
    %c0_i32_0 = arith.constant 0 : i32
    %c0_i32_1 = arith.constant 0 : i32
    return %c0_i32, %c0_i32_0 : i32, i32
  }
  func.func @transform_2(%arg0: i32) -> (i32, i32) {
    %c0_i32 = arith.constant 0 : i32
    %c0_i32_0 = arith.constant 0 : i32
    %c0_i32_1 = arith.constant 0 : i32
    return %c0_i32, %c0_i32_0 : i32, i32
  }
  func.func @transform_3(%arg0: i32) -> (i32, i32) {
    %c0_i32 = arith.constant 0 : i32
    %c0_i32_0 = arith.constant 0 : i32
    %c0_i32_1 = arith.constant 0 : i32
    return %c0_i32, %c0_i32_0 : i32, i32
  }
  func.func @transform_4(%arg0: i32) -> (i32, i32) {
    %c0_i32 = arith.constant 0 : i32
    %c0_i32_0 = arith.constant 0 : i32
    %c0_i32_1 = arith.constant 0 : i32
    return %c0_i32, %c0_i32_0 : i32, i32
  }
  func.func @transform_5(%arg0: i32) -> (i32, i32) {
    %c0_i32 = arith.constant 0 : i32
    %c0_i32_0 = arith.constant 0 : i32
    %c0_i32_1 = arith.constant 0 : i32
    return %c0_i32, %c0_i32_0 : i32, i32
  }
  func.func @transform_6(%arg0: i32) -> (i32, i32) {
    %c0_i32 = arith.constant 0 : i32
    %c0_i32_0 = arith.constant 0 : i32
    %c0_i32_1 = arith.constant 0 : i32
    return %c0_i32, %c0_i32_0 : i32, i32
  }
  func.func @transform_7(%arg0: i32) -> (i32, i32) {
    %c0_i32 = arith.constant 0 : i32
    %c0_i32_0 = arith.constant 0 : i32
    %c0_i32_1 = arith.constant 0 : i32
    return %c0_i32, %c0_i32_0 : i32, i32
  }
  func.func @transform_8(%arg0: i32) -> (i32, i32) {
    %c0_i32 = arith.constant 0 : i32
    %c0_i32_0 = arith.constant 0 : i32
    %c0_i32_1 = arith.constant 0 : i32
    return %c0_i32, %c0_i32_0 : i32, i32
  }
}

module attributes {stable_mosaic.version = 11 : i64} {
  func.func @_deconv_bn_lrelu_kernel(%arg0: i32, %arg1: memref<18x1024xbf16, #tpu.memory_space<vmem>>, %arg2: memref<1024x512xbf16, #tpu.memory_space<vmem>>, %arg3: memref<2x512xf32, #tpu.memory_space<vmem>>, %arg4: memref<18x512xbf16, #tpu.memory_space<vmem>>) attributes {dimension_semantics = [#tpu.dimension_semantics<arbitrary>], iteration_bounds = array<i64: 1>, scalar_prefetch = 0 : i64, scratch_operands = 0 : i64, tpu.core_type = #tpu.core_type<tc>, window_params = [{pipeline_mode = #tpu.pipeline_mode<synchronous>, transform_indices = @transform_0, window_bounds = array<i64: 18, 1024>}, {pipeline_mode = #tpu.pipeline_mode<synchronous>, transform_indices = @transform_1, window_bounds = array<i64: 1024, 512>}, {pipeline_mode = #tpu.pipeline_mode<synchronous>, transform_indices = @transform_2, window_bounds = array<i64: 2, 512>}, {pipeline_mode = #tpu.pipeline_mode<synchronous>, transform_indices = @transform_3, window_bounds = array<i64: 18, 512>}]} {
    %c0 = arith.constant 0 : index
    %c0_0 = arith.constant 0 : index
    %0 = vector.load %arg1[%c0, %c0_0] : memref<18x1024xbf16, #tpu.memory_space<vmem>>, vector<18x1024xbf16>
    %c0_1 = arith.constant 0 : index
    %c0_2 = arith.constant 0 : index
    %1 = vector.load %arg2[%c0_1, %c0_2] : memref<1024x512xbf16, #tpu.memory_space<vmem>>, vector<1024x512xbf16>
    %cst = arith.constant dense<0.000000e+00> : vector<18x512xf32>
    %2 = tpu.matmul %0, %1, %cst {dimension_numbers = #tpu.dot_dimension_numbers<[1], [0], [0], [1], [0, 0, 1, 1], [], []>} : vector<18x1024xbf16>, vector<1024x512xbf16>, vector<18x512xf32> -> vector<18x512xf32>
    %cst_3 = arith.constant dense<0.000000e+00> : vector<512xf32>
    %3 = vector.multi_reduction <add>, %2, %cst_3 [0] : vector<18x512xf32> to vector<512xf32>
    %4 = vector.shape_cast %3 : vector<512xf32> to vector<1x512xf32>
    %c128_i32 = arith.constant 128 : i32
    %5 = tpu.dynamic_rotate %4 by %c128_i32 dim 1 : vector<1x512xf32>, i32 -> vector<1x512xf32>
    %6 = arith.addf %4, %5 : vector<1x512xf32>
    %c256_i32 = arith.constant 256 : i32
    %7 = tpu.dynamic_rotate %4 by %c256_i32 dim 1 : vector<1x512xf32>, i32 -> vector<1x512xf32>
    %8 = arith.addf %6, %7 : vector<1x512xf32>
    %c384_i32 = arith.constant 384 : i32
    %9 = tpu.dynamic_rotate %4 by %c384_i32 dim 1 : vector<1x512xf32>, i32 -> vector<1x512xf32>
    %10 = arith.addf %8, %9 : vector<1x512xf32>
    %cst_4 = arith.constant 0.013888889 : f32
    %11 = vector.broadcast %cst_4 : f32 to vector<1x512xf32>
    %12 = arith.mulf %10, %11 : vector<1x512xf32>
    %13 = vector.broadcast %12 : vector<1x512xf32> to vector<18x512xf32>
    %14 = arith.subf %2, %13 : vector<18x512xf32>
    %15 = arith.mulf %14, %14 : vector<18x512xf32>
    %cst_5 = arith.constant dense<0.000000e+00> : vector<512xf32>
    %16 = vector.multi_reduction <add>, %15, %cst_5 [0] : vector<18x512xf32> to vector<512xf32>
    %17 = vector.shape_cast %16 : vector<512xf32> to vector<1x512xf32>
    %c128_i32_6 = arith.constant 128 : i32
    %18 = tpu.dynamic_rotate %17 by %c128_i32_6 dim 1 : vector<1x512xf32>, i32 -> vector<1x512xf32>
    %19 = arith.addf %17, %18 : vector<1x512xf32>
    %c256_i32_7 = arith.constant 256 : i32
    %20 = tpu.dynamic_rotate %17 by %c256_i32_7 dim 1 : vector<1x512xf32>, i32 -> vector<1x512xf32>
    %21 = arith.addf %19, %20 : vector<1x512xf32>
    %c384_i32_8 = arith.constant 384 : i32
    %22 = tpu.dynamic_rotate %17 by %c384_i32_8 dim 1 : vector<1x512xf32>, i32 -> vector<1x512xf32>
    %23 = arith.addf %21, %22 : vector<1x512xf32>
    %cst_9 = arith.constant 0.013888889 : f32
    %24 = vector.broadcast %cst_9 : f32 to vector<1x512xf32>
    %25 = arith.mulf %23, %24 : vector<1x512xf32>
    %cst_10 = arith.constant 9.99999974E-6 : f32
    %26 = vector.broadcast %cst_10 : f32 to vector<1x512xf32>
    %27 = arith.addf %25, %26 : vector<1x512xf32>
    %28 = math.rsqrt %27 : vector<1x512xf32>
    %29 = vector.broadcast %28 : vector<1x512xf32> to vector<18x512xf32>
    %30 = arith.mulf %14, %29 : vector<18x512xf32>
    %c0_11 = arith.constant 0 : index
    %c0_12 = arith.constant 0 : index
    %31 = vector.load %arg3[%c0_11, %c0_12] : memref<2x512xf32, #tpu.memory_space<vmem>>, vector<1x512xf32>
    %32 = vector.broadcast %31 : vector<1x512xf32> to vector<18x512xf32>
    %33 = arith.mulf %30, %32 : vector<18x512xf32>
    %c1 = arith.constant 1 : index
    %c0_13 = arith.constant 0 : index
    %34 = vector.load %arg3[%c1, %c0_13] : memref<2x512xf32, #tpu.memory_space<vmem>>, vector<1x512xf32>
    %35 = vector.broadcast %34 : vector<1x512xf32> to vector<18x512xf32>
    %36 = arith.addf %33, %35 : vector<18x512xf32>
    %cst_14 = arith.constant 0.000000e+00 : f32
    %37 = vector.broadcast %cst_14 : f32 to vector<18x512xf32>
    %38 = arith.cmpf oge, %36, %37 : vector<18x512xf32>
    %cst_15 = arith.constant 0.00999999977 : f32
    %39 = vector.broadcast %cst_15 : f32 to vector<18x512xf32>
    %40 = arith.mulf %39, %36 : vector<18x512xf32>
    %41 = arith.select %38, %36, %40 : vector<18x512xi1>, vector<18x512xf32>
    %42 = arith.truncf %41 : vector<18x512xf32> to vector<18x512xbf16>
    %c0_16 = arith.constant 0 : index
    %c0_17 = arith.constant 0 : index
    %43 = vector.load %arg4[%c0_16, %c0_17] : memref<18x512xbf16, #tpu.memory_space<vmem>>, vector<18x512xbf16>
    tpu.vector_store %arg4[%c0_16, %c0_17], %42 {strides = array<i32>} : memref<18x512xbf16, #tpu.memory_space<vmem>>, vector<18x512xbf16>,
    return
  }
  func.func @transform_0(%arg0: i32) -> (i32, i32) {
    %c0_i32 = arith.constant 0 : i32
    %c0_i32_0 = arith.constant 0 : i32
    %c0_i32_1 = arith.constant 0 : i32
    return %c0_i32, %c0_i32_0 : i32, i32
  }
  func.func @transform_1(%arg0: i32) -> (i32, i32) {
    %c0_i32 = arith.constant 0 : i32
    %c0_i32_0 = arith.constant 0 : i32
    %c0_i32_1 = arith.constant 0 : i32
    return %c0_i32, %c0_i32_0 : i32, i32
  }
  func.func @transform_2(%arg0: i32) -> (i32, i32) {
    %c0_i32 = arith.constant 0 : i32
    %c0_i32_0 = arith.constant 0 : i32
    %c0_i32_1 = arith.constant 0 : i32
    return %c0_i32, %c0_i32_0 : i32, i32
  }
  func.func @transform_3(%arg0: i32) -> (i32, i32) {
    %c0_i32 = arith.constant 0 : i32
    %c0_i32_0 = arith.constant 0 : i32
    %c0_i32_1 = arith.constant 0 : i32
    return %c0_i32, %c0_i32_0 : i32, i32
  }
}

module attributes {stable_mosaic.version = 11 : i64} {
  func.func @_deconv_bn_lrelu_kernel(%arg0: i32, %arg1: memref<72x512xbf16, #tpu.memory_space<vmem>>, %arg2: memref<512x256xbf16, #tpu.memory_space<vmem>>, %arg3: memref<2x256xf32, #tpu.memory_space<vmem>>, %arg4: memref<72x256xbf16, #tpu.memory_space<vmem>>) attributes {dimension_semantics = [#tpu.dimension_semantics<arbitrary>], iteration_bounds = array<i64: 1>, scalar_prefetch = 0 : i64, scratch_operands = 0 : i64, tpu.core_type = #tpu.core_type<tc>, window_params = [{pipeline_mode = #tpu.pipeline_mode<synchronous>, transform_indices = @transform_0, window_bounds = array<i64: 72, 512>}, {pipeline_mode = #tpu.pipeline_mode<synchronous>, transform_indices = @transform_1, window_bounds = array<i64: 512, 256>}, {pipeline_mode = #tpu.pipeline_mode<synchronous>, transform_indices = @transform_2, window_bounds = array<i64: 2, 256>}, {pipeline_mode = #tpu.pipeline_mode<synchronous>, transform_indices = @transform_3, window_bounds = array<i64: 72, 256>}]} {
    %c0 = arith.constant 0 : index
    %c0_0 = arith.constant 0 : index
    %0 = vector.load %arg1[%c0, %c0_0] : memref<72x512xbf16, #tpu.memory_space<vmem>>, vector<72x512xbf16>
    %c0_1 = arith.constant 0 : index
    %c0_2 = arith.constant 0 : index
    %1 = vector.load %arg2[%c0_1, %c0_2] : memref<512x256xbf16, #tpu.memory_space<vmem>>, vector<512x256xbf16>
    %cst = arith.constant dense<0.000000e+00> : vector<72x256xf32>
    %2 = tpu.matmul %0, %1, %cst {dimension_numbers = #tpu.dot_dimension_numbers<[1], [0], [0], [1], [0, 0, 1, 1], [], []>} : vector<72x512xbf16>, vector<512x256xbf16>, vector<72x256xf32> -> vector<72x256xf32>
    %cst_3 = arith.constant dense<0.000000e+00> : vector<256xf32>
    %3 = vector.multi_reduction <add>, %2, %cst_3 [0] : vector<72x256xf32> to vector<256xf32>
    %4 = vector.shape_cast %3 : vector<256xf32> to vector<1x256xf32>
    %c64_i32 = arith.constant 64 : i32
    %5 = tpu.dynamic_rotate %4 by %c64_i32 dim 1 : vector<1x256xf32>, i32 -> vector<1x256xf32>
    %6 = arith.addf %4, %5 : vector<1x256xf32>
    %c128_i32 = arith.constant 128 : i32
    %7 = tpu.dynamic_rotate %4 by %c128_i32 dim 1 : vector<1x256xf32>, i32 -> vector<1x256xf32>
    %8 = arith.addf %6, %7 : vector<1x256xf32>
    %c192_i32 = arith.constant 192 : i32
    %9 = tpu.dynamic_rotate %4 by %c192_i32 dim 1 : vector<1x256xf32>, i32 -> vector<1x256xf32>
    %10 = arith.addf %8, %9 : vector<1x256xf32>
    %cst_4 = arith.constant 0.00347222225 : f32
    %11 = vector.broadcast %cst_4 : f32 to vector<1x256xf32>
    %12 = arith.mulf %10, %11 : vector<1x256xf32>
    %13 = vector.broadcast %12 : vector<1x256xf32> to vector<72x256xf32>
    %14 = arith.subf %2, %13 : vector<72x256xf32>
    %15 = arith.mulf %14, %14 : vector<72x256xf32>
    %cst_5 = arith.constant dense<0.000000e+00> : vector<256xf32>
    %16 = vector.multi_reduction <add>, %15, %cst_5 [0] : vector<72x256xf32> to vector<256xf32>
    %17 = vector.shape_cast %16 : vector<256xf32> to vector<1x256xf32>
    %c64_i32_6 = arith.constant 64 : i32
    %18 = tpu.dynamic_rotate %17 by %c64_i32_6 dim 1 : vector<1x256xf32>, i32 -> vector<1x256xf32>
    %19 = arith.addf %17, %18 : vector<1x256xf32>
    %c128_i32_7 = arith.constant 128 : i32
    %20 = tpu.dynamic_rotate %17 by %c128_i32_7 dim 1 : vector<1x256xf32>, i32 -> vector<1x256xf32>
    %21 = arith.addf %19, %20 : vector<1x256xf32>
    %c192_i32_8 = arith.constant 192 : i32
    %22 = tpu.dynamic_rotate %17 by %c192_i32_8 dim 1 : vector<1x256xf32>, i32 -> vector<1x256xf32>
    %23 = arith.addf %21, %22 : vector<1x256xf32>
    %cst_9 = arith.constant 0.00347222225 : f32
    %24 = vector.broadcast %cst_9 : f32 to vector<1x256xf32>
    %25 = arith.mulf %23, %24 : vector<1x256xf32>
    %cst_10 = arith.constant 9.99999974E-6 : f32
    %26 = vector.broadcast %cst_10 : f32 to vector<1x256xf32>
    %27 = arith.addf %25, %26 : vector<1x256xf32>
    %28 = math.rsqrt %27 : vector<1x256xf32>
    %29 = vector.broadcast %28 : vector<1x256xf32> to vector<72x256xf32>
    %30 = arith.mulf %14, %29 : vector<72x256xf32>
    %c0_11 = arith.constant 0 : index
    %c0_12 = arith.constant 0 : index
    %31 = vector.load %arg3[%c0_11, %c0_12] : memref<2x256xf32, #tpu.memory_space<vmem>>, vector<1x256xf32>
    %32 = vector.broadcast %31 : vector<1x256xf32> to vector<72x256xf32>
    %33 = arith.mulf %30, %32 : vector<72x256xf32>
    %c1 = arith.constant 1 : index
    %c0_13 = arith.constant 0 : index
    %34 = vector.load %arg3[%c1, %c0_13] : memref<2x256xf32, #tpu.memory_space<vmem>>, vector<1x256xf32>
    %35 = vector.broadcast %34 : vector<1x256xf32> to vector<72x256xf32>
    %36 = arith.addf %33, %35 : vector<72x256xf32>
    %cst_14 = arith.constant 0.000000e+00 : f32
    %37 = vector.broadcast %cst_14 : f32 to vector<72x256xf32>
    %38 = arith.cmpf oge, %36, %37 : vector<72x256xf32>
    %cst_15 = arith.constant 0.00999999977 : f32
    %39 = vector.broadcast %cst_15 : f32 to vector<72x256xf32>
    %40 = arith.mulf %39, %36 : vector<72x256xf32>
    %41 = arith.select %38, %36, %40 : vector<72x256xi1>, vector<72x256xf32>
    %42 = arith.truncf %41 : vector<72x256xf32> to vector<72x256xbf16>
    %c0_16 = arith.constant 0 : index
    %c0_17 = arith.constant 0 : index
    %43 = vector.load %arg4[%c0_16, %c0_17] : memref<72x256xbf16, #tpu.memory_space<vmem>>, vector<72x256xbf16>
    tpu.vector_store %arg4[%c0_16, %c0_17], %42 {strides = array<i32>} : memref<72x256xbf16, #tpu.memory_space<vmem>>, vector<72x256xbf16>,
    return
  }
  func.func @transform_0(%arg0: i32) -> (i32, i32) {
    %c0_i32 = arith.constant 0 : i32
    %c0_i32_0 = arith.constant 0 : i32
    %c0_i32_1 = arith.constant 0 : i32
    return %c0_i32, %c0_i32_0 : i32, i32
  }
  func.func @transform_1(%arg0: i32) -> (i32, i32) {
    %c0_i32 = arith.constant 0 : i32
    %c0_i32_0 = arith.constant 0 : i32
    %c0_i32_1 = arith.constant 0 : i32
    return %c0_i32, %c0_i32_0 : i32, i32
  }
  func.func @transform_2(%arg0: i32) -> (i32, i32) {
    %c0_i32 = arith.constant 0 : i32
    %c0_i32_0 = arith.constant 0 : i32
    %c0_i32_1 = arith.constant 0 : i32
    return %c0_i32, %c0_i32_0 : i32, i32
  }
  func.func @transform_3(%arg0: i32) -> (i32, i32) {
    %c0_i32 = arith.constant 0 : i32
    %c0_i32_0 = arith.constant 0 : i32
    %c0_i32_1 = arith.constant 0 : i32
    return %c0_i32, %c0_i32_0 : i32, i32
  }
}

module attributes {stable_mosaic.version = 11 : i64} {
  func.func @_deconv_bn_lrelu_kernel(%arg0: i32, %arg1: memref<288x256xbf16, #tpu.memory_space<vmem>>, %arg2: memref<256x256xbf16, #tpu.memory_space<vmem>>, %arg3: memref<2x256xf32, #tpu.memory_space<vmem>>, %arg4: memref<288x256xbf16, #tpu.memory_space<vmem>>) attributes {dimension_semantics = [#tpu.dimension_semantics<arbitrary>], iteration_bounds = array<i64: 1>, scalar_prefetch = 0 : i64, scratch_operands = 0 : i64, tpu.core_type = #tpu.core_type<tc>, window_params = [{pipeline_mode = #tpu.pipeline_mode<synchronous>, transform_indices = @transform_0, window_bounds = array<i64: 288, 256>}, {pipeline_mode = #tpu.pipeline_mode<synchronous>, transform_indices = @transform_1, window_bounds = array<i64: 256, 256>}, {pipeline_mode = #tpu.pipeline_mode<synchronous>, transform_indices = @transform_2, window_bounds = array<i64: 2, 256>}, {pipeline_mode = #tpu.pipeline_mode<synchronous>, transform_indices = @transform_3, window_bounds = array<i64: 288, 256>}]} {
    %c0 = arith.constant 0 : index
    %c0_0 = arith.constant 0 : index
    %0 = vector.load %arg1[%c0, %c0_0] : memref<288x256xbf16, #tpu.memory_space<vmem>>, vector<288x256xbf16>
    %c0_1 = arith.constant 0 : index
    %c0_2 = arith.constant 0 : index
    %1 = vector.load %arg2[%c0_1, %c0_2] : memref<256x256xbf16, #tpu.memory_space<vmem>>, vector<256x256xbf16>
    %cst = arith.constant dense<0.000000e+00> : vector<288x256xf32>
    %2 = tpu.matmul %0, %1, %cst {dimension_numbers = #tpu.dot_dimension_numbers<[1], [0], [0], [1], [0, 0, 1, 1], [], []>} : vector<288x256xbf16>, vector<256x256xbf16>, vector<288x256xf32> -> vector<288x256xf32>
    %cst_3 = arith.constant dense<0.000000e+00> : vector<256xf32>
    %3 = vector.multi_reduction <add>, %2, %cst_3 [0] : vector<288x256xf32> to vector<256xf32>
    %4 = vector.shape_cast %3 : vector<256xf32> to vector<1x256xf32>
    %c64_i32 = arith.constant 64 : i32
    %5 = tpu.dynamic_rotate %4 by %c64_i32 dim 1 : vector<1x256xf32>, i32 -> vector<1x256xf32>
    %6 = arith.addf %4, %5 : vector<1x256xf32>
    %c128_i32 = arith.constant 128 : i32
    %7 = tpu.dynamic_rotate %4 by %c128_i32 dim 1 : vector<1x256xf32>, i32 -> vector<1x256xf32>
    %8 = arith.addf %6, %7 : vector<1x256xf32>
    %c192_i32 = arith.constant 192 : i32
    %9 = tpu.dynamic_rotate %4 by %c192_i32 dim 1 : vector<1x256xf32>, i32 -> vector<1x256xf32>
    %10 = arith.addf %8, %9 : vector<1x256xf32>
    %cst_4 = arith.constant 8.68055562E-4 : f32
    %11 = vector.broadcast %cst_4 : f32 to vector<1x256xf32>
    %12 = arith.mulf %10, %11 : vector<1x256xf32>
    %13 = vector.broadcast %12 : vector<1x256xf32> to vector<288x256xf32>
    %14 = arith.subf %2, %13 : vector<288x256xf32>
    %15 = arith.mulf %14, %14 : vector<288x256xf32>
    %cst_5 = arith.constant dense<0.000000e+00> : vector<256xf32>
    %16 = vector.multi_reduction <add>, %15, %cst_5 [0] : vector<288x256xf32> to vector<256xf32>
    %17 = vector.shape_cast %16 : vector<256xf32> to vector<1x256xf32>
    %c64_i32_6 = arith.constant 64 : i32
    %18 = tpu.dynamic_rotate %17 by %c64_i32_6 dim 1 : vector<1x256xf32>, i32 -> vector<1x256xf32>
    %19 = arith.addf %17, %18 : vector<1x256xf32>
    %c128_i32_7 = arith.constant 128 : i32
    %20 = tpu.dynamic_rotate %17 by %c128_i32_7 dim 1 : vector<1x256xf32>, i32 -> vector<1x256xf32>
    %21 = arith.addf %19, %20 : vector<1x256xf32>
    %c192_i32_8 = arith.constant 192 : i32
    %22 = tpu.dynamic_rotate %17 by %c192_i32_8 dim 1 : vector<1x256xf32>, i32 -> vector<1x256xf32>
    %23 = arith.addf %21, %22 : vector<1x256xf32>
    %cst_9 = arith.constant 8.68055562E-4 : f32
    %24 = vector.broadcast %cst_9 : f32 to vector<1x256xf32>
    %25 = arith.mulf %23, %24 : vector<1x256xf32>
    %cst_10 = arith.constant 9.99999974E-6 : f32
    %26 = vector.broadcast %cst_10 : f32 to vector<1x256xf32>
    %27 = arith.addf %25, %26 : vector<1x256xf32>
    %28 = math.rsqrt %27 : vector<1x256xf32>
    %29 = vector.broadcast %28 : vector<1x256xf32> to vector<288x256xf32>
    %30 = arith.mulf %14, %29 : vector<288x256xf32>
    %c0_11 = arith.constant 0 : index
    %c0_12 = arith.constant 0 : index
    %31 = vector.load %arg3[%c0_11, %c0_12] : memref<2x256xf32, #tpu.memory_space<vmem>>, vector<1x256xf32>
    %32 = vector.broadcast %31 : vector<1x256xf32> to vector<288x256xf32>
    %33 = arith.mulf %30, %32 : vector<288x256xf32>
    %c1 = arith.constant 1 : index
    %c0_13 = arith.constant 0 : index
    %34 = vector.load %arg3[%c1, %c0_13] : memref<2x256xf32, #tpu.memory_space<vmem>>, vector<1x256xf32>
    %35 = vector.broadcast %34 : vector<1x256xf32> to vector<288x256xf32>
    %36 = arith.addf %33, %35 : vector<288x256xf32>
    %cst_14 = arith.constant 0.000000e+00 : f32
    %37 = vector.broadcast %cst_14 : f32 to vector<288x256xf32>
    %38 = arith.cmpf oge, %36, %37 : vector<288x256xf32>
    %cst_15 = arith.constant 0.00999999977 : f32
    %39 = vector.broadcast %cst_15 : f32 to vector<288x256xf32>
    %40 = arith.mulf %39, %36 : vector<288x256xf32>
    %41 = arith.select %38, %36, %40 : vector<288x256xi1>, vector<288x256xf32>
    %42 = arith.truncf %41 : vector<288x256xf32> to vector<288x256xbf16>
    %c0_16 = arith.constant 0 : index
    %c0_17 = arith.constant 0 : index
    %43 = vector.load %arg4[%c0_16, %c0_17] : memref<288x256xbf16, #tpu.memory_space<vmem>>, vector<288x256xbf16>
    tpu.vector_store %arg4[%c0_16, %c0_17], %42 {strides = array<i32>} : memref<288x256xbf16, #tpu.memory_space<vmem>>, vector<288x256xbf16>,
    return
  }
  func.func @transform_0(%arg0: i32) -> (i32, i32) {
    %c0_i32 = arith.constant 0 : i32
    %c0_i32_0 = arith.constant 0 : i32
    %c0_i32_1 = arith.constant 0 : i32
    return %c0_i32, %c0_i32_0 : i32, i32
  }
  func.func @transform_1(%arg0: i32) -> (i32, i32) {
    %c0_i32 = arith.constant 0 : i32
    %c0_i32_0 = arith.constant 0 : i32
    %c0_i32_1 = arith.constant 0 : i32
    return %c0_i32, %c0_i32_0 : i32, i32
  }
  func.func @transform_2(%arg0: i32) -> (i32, i32) {
    %c0_i32 = arith.constant 0 : i32
    %c0_i32_0 = arith.constant 0 : i32
    %c0_i32_1 = arith.constant 0 : i32
    return %c0_i32, %c0_i32_0 : i32, i32
  }
  func.func @transform_3(%arg0: i32) -> (i32, i32) {
    %c0_i32 = arith.constant 0 : i32
    %c0_i32_0 = arith.constant 0 : i32
    %c0_i32_1 = arith.constant 0 : i32
    return %c0_i32, %c0_i32_0 : i32, i32
  }
}

module attributes {stable_mosaic.version = 11 : i64} {
  func.func @_convT_tanh_kernel(%arg0: i32, %arg1: memref<8x576xbf16, #tpu.memory_space<vmem>>, %arg2: memref<576x1152xbf16, #tpu.memory_space<vmem>>, %arg3: memref<8x1xf32, #tpu.memory_space<vmem>>, %arg4: memref<8x1152xf32, #tpu.memory_space<vmem>>) attributes {dimension_semantics = [#tpu.dimension_semantics<arbitrary>], iteration_bounds = array<i64: 1>, scalar_prefetch = 0 : i64, scratch_operands = 0 : i64, tpu.core_type = #tpu.core_type<tc>, window_params = [{pipeline_mode = #tpu.pipeline_mode<synchronous>, transform_indices = @transform_0, window_bounds = array<i64: 8, 576>}, {pipeline_mode = #tpu.pipeline_mode<synchronous>, transform_indices = @transform_1, window_bounds = array<i64: 576, 1152>}, {pipeline_mode = #tpu.pipeline_mode<synchronous>, transform_indices = @transform_2, window_bounds = array<i64: 8, 1>}, {pipeline_mode = #tpu.pipeline_mode<synchronous>, transform_indices = @transform_3, window_bounds = array<i64: 8, 1152>}]} {
    %c0 = arith.constant 0 : index
    %c0_0 = arith.constant 0 : index
    %0 = vector.load %arg1[%c0, %c0_0] : memref<8x576xbf16, #tpu.memory_space<vmem>>, vector<8x576xbf16>
    %c0_1 = arith.constant 0 : index
    %c0_2 = arith.constant 0 : index
    %1 = vector.load %arg2[%c0_1, %c0_2] : memref<576x1152xbf16, #tpu.memory_space<vmem>>, vector<576x1152xbf16>
    %cst = arith.constant dense<0.000000e+00> : vector<8x1152xf32>
    %2 = tpu.matmul %0, %1, %cst {dimension_numbers = #tpu.dot_dimension_numbers<[1], [0], [0], [1], [0, 0, 1, 1], [], []>} : vector<8x576xbf16>, vector<576x1152xbf16>, vector<8x1152xf32> -> vector<8x1152xf32>
    %c0_3 = arith.constant 0 : index
    %c0_4 = arith.constant 0 : index
    %3 = vector.load %arg3[%c0_3, %c0_4] : memref<8x1xf32, #tpu.memory_space<vmem>>, vector<8x1xf32>
    %4 = vector.broadcast %3 : vector<8x1xf32> to vector<8x1152xf32>
    %5 = arith.addf %2, %4 : vector<8x1152xf32>
    %6 = math.tanh %5 : vector<8x1152xf32>
    %c0_5 = arith.constant 0 : index
    %c0_6 = arith.constant 0 : index
    %7 = vector.load %arg4[%c0_5, %c0_6] : memref<8x1152xf32, #tpu.memory_space<vmem>>, vector<8x1152xf32>
    tpu.vector_store %arg4[%c0_5, %c0_6], %6 {strides = array<i32>} : memref<8x1152xf32, #tpu.memory_space<vmem>>, vector<8x1152xf32>,
    return
  }
  func.func @transform_0(%arg0: i32) -> (i32, i32) {
    %c0_i32 = arith.constant 0 : i32
    %c0_i32_0 = arith.constant 0 : i32
    %c0_i32_1 = arith.constant 0 : i32
    return %c0_i32, %c0_i32_0 : i32, i32
  }
  func.func @transform_1(%arg0: i32) -> (i32, i32) {
    %c0_i32 = arith.constant 0 : i32
    %c0_i32_0 = arith.constant 0 : i32
    %c0_i32_1 = arith.constant 0 : i32
    return %c0_i32, %c0_i32_0 : i32, i32
  }
  func.func @transform_2(%arg0: i32) -> (i32, i32) {
    %c0_i32 = arith.constant 0 : i32
    %c0_i32_0 = arith.constant 0 : i32
    %c0_i32_1 = arith.constant 0 : i32
    return %c0_i32, %c0_i32_0 : i32, i32
  }
  func.func @transform_3(%arg0: i32) -> (i32, i32) {
    %c0_i32 = arith.constant 0 : i32
    %c0_i32_0 = arith.constant 0 : i32
    %c0_i32_1 = arith.constant 0 : i32
    return %c0_i32, %c0_i32_0 : i32, i32
  }
}

</mosaic_0001>

<bundles_post_ra>
// kernel: categorical_vae_forward.8
= control target key start
LH: loop header
LB: loop body
LE: loop exit
PB: predicated region body
PF: predicated region fallthrough
CT: control target
= control target key end

     0   :  { %vm173_vm0 = vcmask 523264   ;;  %s2281_s1 = inlined_call_operand.vmem [shape: bf16[64,64], index: 1, kind: input, shape index: {}]   ;;  %s2282_s0 = inlined_call_operand.vmem [shape: bf16[288,64], index: 0, kind: input, shape index: {}]   ;;  %s2283_s2 = inlined_call_operand.vmem [shape: f32[2,64], index: 2, kind: input, shape index: {}]   ;;  %s2284_s3 = inlined_call_operand.vmem [shape: bf16[288,64], index: 3, kind: output, shape index: {}]  }
   0x1   :  { %v1235_v0 = vld [vmem:[%s2281_s1] sm:$0xff]   ;;  %v1236_v1 = vld [vmem:[%s2281_s1 + $0x8] sm:$0xff]   ;;  %v1237_v2 = vld [vmem:[%s2281_s1 + $0x10] sm:$0xff]  }
   0x2   :  { %1183 = vmatprep.subr.bf16.mxu0 %v1235_v0  ;;  %1227 = vmatprep.subr.bf16.mxu1 %v1235_v0  ;;  %v1239_v3 = vld [vmem:[%s2282_s0] sm:$0xff]   ;;  %v1238_v4 = vld [vmem:[%s2281_s1 + $0x18] sm:$0xff]   ;;  %v1240_v5 = vld [vmem:[%s2282_s0 + $0x8] sm:$0xff]  }
   0x3   :  { %1184 = vmatpush3.bf16.msra.mxu0 %v1235_v0  ;;  %1231 = vmatpush3.bf16.msra.mxu1 %v1235_v0  ;;  %v1241_v6 = vld [vmem:[%s2282_s0 + $0x10] sm:$0xff]   ;;  %v1250_v8 = vld [vmem:[%s2282_s0 + $0x58] sm:$0xff]   ;;  %v1251_v9 = vld [vmem:[%s2282_s0 + $0x60] sm:$0xff]  }
   0x4   :  { %1185 = vmatprep.subr.bf16.mxu0 %v1236_v1  ;;  %1228 = vmatprep.subr.bf16.mxu1 %v1236_v1  ;;  %v1249_v7 = vld [vmem:[%s2282_s0 + $0x50] sm:$0xff]   ;;  %v1242_v10 = vld [vmem:[%s2282_s0 + $0x18] sm:$0xff]   ;;  %v1252_v11 = vld [vmem:[%s2282_s0 + $0x68] sm:$0xff]  }
   0x5   :  { %1191 = vmatprep.mubr.msk.bf16.mxu0 %vm173_vm0, %v1239_v3  ;;  %1211 = vmatprep.mubr.msk.bf16.mxu1 %vm173_vm0, %v1249_v7  ;;  %v1243_v12 = vld [vmem:[%s2282_s0 + $0x20] sm:$0xff]   ;;  %v1253_v13 = vld [vmem:[%s2282_s0 + $0x70] sm:$0xff]   ;;  %v1244_v14 = vld [vmem:[%s2282_s0 + $0x28] sm:$0xff]  }
   0x6   :  { %v1254_v15 = vld [vmem:[%s2282_s0 + $0x78] sm:$0xff]   ;;  %v1245_v16 = vld [vmem:[%s2282_s0 + $0x30] sm:$0xff]   ;;  %v1255_v17 = vld [vmem:[%s2282_s0 + $0x80] sm:$0xff]  }
   0x7   :  { %1186 = vmatpush3.bf16.msra.mxu0 %v1236_v1  ;;  %1232 = vmatpush3.bf16.msra.mxu1 %v1236_v1  ;;  %v1246_v18 = vld [vmem:[%s2282_s0 + $0x38] sm:$0xff]   ;;  %v1256_v19 = vld [vmem:[%s2282_s0 + $0x88] sm:$0xff]   ;;  %v1247_v20 = vld [vmem:[%s2282_s0 + $0x40] sm:$0xff]  }
   0x8   :  { %1187 = vmatprep.subr.bf16.mxu0 %v1237_v2  ;;  %1229 = vmatprep.subr.bf16.mxu1 %v1237_v2  ;;  %v1248_v21 = vld [vmem:[%s2282_s0 + $0x48] sm:$0xff]  }
   0xb   :  { %1188 = vmatpush3.bf16.msra.mxu0 %v1237_v2  ;;  %1233 = vmatpush3.bf16.msra.mxu1 %v1237_v2 }
   0xc   :  { %1189 = vmatprep.subr.bf16.mxu0 %v1238_v4  ;;  %1230 = vmatprep.subr.bf16.mxu1 %v1238_v4 }
   0xf   :  { %1190 = vmatpush3.bf16.msra.mxu0 %v1238_v4  ;;  %1234 = vmatpush3.bf16.msra.mxu1 %v1238_v4 }
  0x12   :  { %1192 = vmatmul.mubr.msk.bf16.vlgmr.msra.gmra.mrb[0].mxu0 %vm173_vm0, %v1240_v5  ;;  %1212 = vmatmul.mubr.msk.bf16.vlgmr.msra.gmra.mrb[0].mxu1 %vm173_vm0, %v1250_v8 }
  0x13   :  { %1195 = vmatprep.mubr.msk.bf16.mxu0 %vm173_vm0, %v1241_v6  ;;  %1215 = vmatprep.mubr.msk.bf16.mxu1 %vm173_vm0, %v1251_v9 }
  0x1a   :  { %1196 = vmatmul.mubr.msk.bf16.gmra.mrb[4].mxu0 %vm173_vm0, %v1242_v10  ;;  %1216 = vmatmul.mubr.msk.bf16.gmra.mrb[4].mxu1 %vm173_vm0, %v1252_v11 }
  0x1b   :  { %1199 = vmatprep.mubr.msk.bf16.mxu0 %vm173_vm0, %v1243_v12  ;;  %1219 = vmatprep.mubr.msk.bf16.mxu1 %vm173_vm0, %v1253_v13 }
  0x22   :  { %1200 = vmatmul.mubr.msk.bf16.gmra.mrb[8].mxu0 %vm173_vm0, %v1244_v14  ;;  %1220 = vmatmul.mubr.msk.bf16.gmra.mrb[8].mxu1 %vm173_vm0, %v1254_v15 }
  0x23   :  { %1203 = vmatprep.mubr.msk.bf16.mxu0 %vm173_vm0, %v1245_v16  ;;  %1223 = vmatprep.mubr.msk.bf16.mxu1 %vm173_vm0, %v1255_v17 }
  0x2a   :  { %1204 = vmatmul.mubr.msk.bf16.gmra.mrb[12].mxu0 %vm173_vm0, %v1246_v18  ;;  %1224 = vmatmul.mubr.msk.bf16.gmra.mrb[12].mxu1 %vm173_vm0, %v1256_v19 }
  0x2b   :  { %1207 = vmatprep.mubr.msk.bf16.mxu0 %vm173_vm0, %v1247_v20 }
  0x32   :  { %1208 = vmatmul.mubr.msk.bf16.gmra.mrb[16].mxu0 %vm173_vm0, %v1248_v21 }
  0xe5   :  { %v1363_v22 = vpop.f32.mrb[0].mxu0  ;;  %v1365_v23 = vpop.f32.mrb[0].mxu1 }
  0xe6   :  { %v1367_v24 = vpop.f32.mrb[1].mxu0  ;;  %v1369_v25 = vpop.f32.mrb[1].mxu1  ;;  %v408_v33 = vsel %vm173_vm0, %v1363_v22, 0.0 }
  0xe7   :  { %v1371_v26 = vpop.f32.mrb[2].mxu0  ;;  %v1373_v27 = vpop.f32.mrb[2].mxu1  ;;  %v405_v30 = vsel %vm173_vm0, %v1367_v24, 0.0 }
  0xe8   :  { %v1375_v28 = vpop.f32.mrb[3].mxu0  ;;  %v1377_v29 = vpop.f32.mrb[3].mxu1  ;;  %v410_v35 = vsel %vm173_vm0, %v1371_v26, 0.0 }
  0xe9   :  { %v406_v31 = vsel %vm173_vm0, %v1375_v28, 0.0 }
  0xea   :  { %v407_v32 = vadd.f32 %v406_v31, %v405_v30 }
  0xec   :  { %v409_v34 = vadd.f32 %v408_v33, %v407_v32 }
  0xed   :  { %v1387_v36 = vpop.f32.mrb[4].mxu0  ;;  %v1389_v37 = vpop.f32.mrb[4].mxu1 }
  0xee   :  { %v1391_v38 = vpop.f32.mrb[5].mxu0  ;;  %v411_v39 = vadd.f32 %v410_v35, %v409_v34  ;;  %v1393_v40 = vpop.f32.mrb[5].mxu1  ;;  %v416_v49 = vsel %vm173_vm0, %v1387_v36, 0.0 }
  0xef   :  { %v412_v41 = vsel %vm173_vm0, %v1391_v38, 0.0  ;;  %v1397_v42 = vpop.f32.mrb[6].mxu0  ;;  %v1399_v43 = vpop.f32.mrb[6].mxu1 }
  0xf0   :  { %v413_v44 = vadd.f32 %v412_v41, %v411_v39  ;;  %v1401_v45 = vpop.f32.mrb[7].mxu0  ;;  %v1403_v46 = vpop.f32.mrb[7].mxu1  ;;  %v418_v51 = vsel %vm173_vm0, %v1397_v42, 0.0 }
  0xf1   :  { %v414_v47 = vsel %vm173_vm0, %v1401_v45, 0.0 }
  0xf2   :  { %v415_v48 = vadd.f32 %v414_v47, %v413_v44 }
  0xf4   :  { %v417_v50 = vadd.f32 %v416_v49, %v415_v48  ;;  %v444_v48 = vsel %vm173_vm0, %v1369_v25, 0.0 }
  0xf5   :  { %v1411_v52 = vpop.f32.mrb[8].mxu0  ;;  %v1413_v53 = vpop.f32.mrb[8].mxu1 }
  0xf6   :  { %v1415_v54 = vpop.f32.mrb[9].mxu0  ;;  %v419_v55 = vadd.f32 %v418_v51, %v417_v50  ;;  %v1417_v56 = vpop.f32.mrb[9].mxu1  ;;  %v424_v1 = vsel %vm173_vm0, %v1411_v52, 0.0  ;;  %v446_v51 = vsel %vm173_vm0, %v1377_v29, 0.0 }
  0xf7   :  { %v420_v57 = vsel %vm173_vm0, %v1415_v54, 0.0  ;;  %v1421_v58 = vpop.f32.mrb[10].mxu0  ;;  %v1423_v59 = vpop.f32.mrb[10].mxu1 }
  0xf8   :  { %v421_v60 = vadd.f32 %v420_v57, %v419_v55  ;;  %v1425_v61 = vpop.f32.mrb[11].mxu0  ;;  %v1427_v62 = vpop.f32.mrb[11].mxu1  ;;  %v426_v3 = vsel %vm173_vm0, %v1421_v58, 0.0  ;;  %v448_v57 = vsel %vm173_vm0, %v1365_v23, 0.0 }
  0xf9   :  { %v422_v63 = vsel %vm173_vm0, %v1425_v61, 0.0 }
  0xfa   :  { %v423_v0 = vadd.f32 %v422_v63, %v421_v60  ;;  %v450_v63 = vsel %vm173_vm0, %v1373_v27, 0.0 }
  0xfc   :  { %v425_v2 = vadd.f32 %v424_v1, %v423_v0  ;;  %v452_v0 = vsel %vm173_vm0, %v1393_v40, 0.0 }
  0xfd   :  { %v1435_v4 = vpop.f32.mrb[12].mxu0  ;;  %v1437_v5 = vpop.f32.mrb[12].mxu1 }
  0xfe   :  { %v1439_v6 = vpop.f32.mrb[13].mxu0  ;;  %v427_v7 = vadd.f32 %v426_v3, %v425_v2  ;;  %v1441_v8 = vpop.f32.mrb[13].mxu1  ;;  %v432_v17 = vsel %vm173_vm0, %v1435_v4, 0.0  ;;  %v454_v3 = vsel %vm173_vm0, %v1403_v46, 0.0 }
  0xff   :  { %v428_v9 = vsel %vm173_vm0, %v1439_v6, 0.0  ;;  %v1445_v10 = vpop.f32.mrb[14].mxu0  ;;  %v1447_v11 = vpop.f32.mrb[14].mxu1 }
 0x100   :  { %v429_v12 = vadd.f32 %v428_v9, %v427_v7  ;;  %v1449_v13 = vpop.f32.mrb[15].mxu0  ;;  %v1451_v14 = vpop.f32.mrb[15].mxu1  ;;  %v434_v19 = vsel %vm173_vm0, %v1445_v10, 0.0  ;;  %v456_v9 = vsel %vm173_vm0, %v1389_v37, 0.0 }
 0x101   :  { %v430_v15 = vsel %vm173_vm0, %v1449_v13, 0.0 }
 0x102   :  { %v431_v16 = vadd.f32 %v430_v15, %v429_v12  ;;  %v458_v15 = vsel %vm173_vm0, %v1399_v43, 0.0 }
 0x104   :  { %v433_v18 = vadd.f32 %v432_v17, %v431_v16  ;;  %v460_v16 = vsel %vm173_vm0, %v1417_v56, 0.0 }
 0x105   :  { %v1459_v20 = vpop.f32.mrb[16].mxu0 }
 0x106   :  { %v1461_v21 = vpop.f32.mrb[17].mxu0  ;;  %v435_v30 = vadd.f32 %v434_v19, %v433_v18  ;;  %v440_v41 = vsel %vm173_vm0, %v1459_v20, 0.0  ;;  %v462_v19 = vsel %vm173_vm0, %v1427_v62, 0.0 }
 0x107   :  { %v436_v31 = vsel %vm173_vm0, %v1461_v21, 0.0  ;;  %v1465_v32 = vpop.f32.mrb[18].mxu0 }
 0x108   :  { %v437_v33 = vadd.f32 %v436_v31, %v435_v30  ;;  %v1467_v34 = vpop.f32.mrb[19].mxu0  ;;  %v442_v47 = vsel %vm173_vm0, %v1465_v32, 0.0  ;;  %v464_v31 = vsel %vm173_vm0, %v1413_v53, 0.0 }
 0x109   :  { %v438_v35 = vsel %vm173_vm0, %v1467_v34, 0.0 }
 0x10a   :  { %v439_v39 = vadd.f32 %v438_v35, %v437_v33  ;;  %v466_v35 = vsel %vm173_vm0, %v1423_v59, 0.0 }
 0x10c   :  { %v441_v44 = vadd.f32 %v440_v41, %v439_v39  ;;  %v468_v39 = vsel %vm173_vm0, %v1441_v8, 0.0 }
 0x10e   :  { %v443_v49 = vadd.f32 %v442_v47, %v441_v44  ;;  %v470_v47 = vsel %vm173_vm0, %v1451_v14, 0.0 }
 0x110   :  { %v445_v50 = vadd.f32 %v444_v48, %v443_v49  ;;  %v472_v49 = vsel %vm173_vm0, %v1437_v5, 0.0 }
 0x112   :  { %v447_v55 = vadd.f32 %v446_v51, %v445_v50  ;;  %v474_v51 = vsel %vm173_vm0, %v1447_v11, 0.0 }
 0x114   :  { %v449_v60 = vadd.f32 %v448_v57, %v447_v55 }
 0x116   :  { %v451_v1 = vadd.f32 %v450_v63, %v449_v60 }
 0x118   :  { %v453_v2 = vadd.f32 %v452_v0, %v451_v1 }
 0x11a   :  { %v455_v7 = vadd.f32 %v454_v3, %v453_v2 }
 0x11c   :  { %v457_v12 = vadd.f32 %v456_v9, %v455_v7 }
 0x11e   :  { %v459_v17 = vadd.f32 %v458_v15, %v457_v12 }
 0x120   :  { %v461_v18 = vadd.f32 %v460_v16, %v459_v17 }
 0x122   :  { %v463_v30 = vadd.f32 %v462_v19, %v461_v18 }
 0x124   :  { %v465_v33 = vadd.f32 %v464_v31, %v463_v30 }
 0x126   :  { %v467_v41 = vadd.f32 %v466_v35, %v465_v33 }
 0x128   :  { %v469_v44 = vadd.f32 %v468_v39, %v467_v41 }
 0x12a   :  { %v471_v48 = vadd.f32 %v470_v47, %v469_v44 }
 0x12c   :  { %v473_v50 = vadd.f32 %v472_v49, %v471_v48 }
 0x12e   :  { %v475_v55 = vadd.f32 %v474_v51, %v473_v50 }
 0x130   :  { %v476_v57 = vrot.slane %v475_v55, 4 }
 0x132   :  { %v477_v60 = vadd.f32 %v476_v57, %v475_v55 }
 0x134   :  { %v478_v63 = vrot.slane %v477_v60, 2 }
 0x136   :  { %v479_v0 = vadd.f32 %v478_v63, %v477_v60 }
 0x138   :  { %v480_v1 = vrot.slane %v479_v0, 1 }
 0x13a   :  { %v481_v2 = vadd.f32 %v480_v1, %v479_v0 }
 0x13c   :  { %v483_v3 = vmul.f32 0.0034722222, %v481_v2 }
 0x13e   :  { %v1508_v7 = vsub.f32 %v1367_v24, %v483_v3  ;;  %v1511_v9 = vsub.f32 %v1375_v28, %v483_v3  ;;  %v1514_v12 = vsub.f32 %v1363_v22, %v483_v3  ;;  %v1517_v15 = vsub.f32 %v1371_v26, %v483_v3 }
 0x13f   :  { %v1520_v16 = vsub.f32 %v1391_v38, %v483_v3  ;;  %v1523_v17 = vsub.f32 %v1401_v45, %v483_v3  ;;  %v1526_v18 = vsub.f32 %v1387_v36, %v483_v3  ;;  %v1529_v24 = vsub.f32 %v1397_v42, %v483_v3 }
 0x140   :  { %v1532_v28 = vsub.f32 %v1415_v54, %v483_v3  ;;  %v1535_v22 = vsub.f32 %v1425_v61, %v483_v3  ;;  %v1538_v26 = vsub.f32 %v1411_v52, %v483_v3  ;;  %v1541_v38 = vsub.f32 %v1421_v58, %v483_v3 }
 0x141   :  { %v1544_v45 = vsub.f32 %v1439_v6, %v483_v3  ;;  %v1547_v36 = vsub.f32 %v1449_v13, %v483_v3  ;;  %v1550_v42 = vsub.f32 %v1435_v4, %v483_v3  ;;  %v1553_v54 = vsub.f32 %v1445_v10, %v483_v3 }
 0x142   :  { %v1556_v61 = vsub.f32 %v1461_v21, %v483_v3  ;;  %v1559_v52 = vsub.f32 %v1467_v34, %v483_v3  ;;  %v1562_v58 = vsub.f32 %v1459_v20, %v483_v3  ;;  %v1565_v6 = vsub.f32 %v1465_v32, %v483_v3 }
 0x143   :  { %v1568_v13 = vsub.f32 %v1369_v25, %v483_v3  ;;  %v1571_v4 = vsub.f32 %v1377_v29, %v483_v3  ;;  %v1574_v10 = vsub.f32 %v1365_v23, %v483_v3  ;;  %v1577_v21 = vsub.f32 %v1373_v27, %v483_v3 }
 0x144   :  { %v1580_v34 = vsub.f32 %v1393_v40, %v483_v3  ;;  %v1583_v20 = vsub.f32 %v1403_v46, %v483_v3  ;;  %v1586_v32 = vsub.f32 %v1389_v37, %v483_v3  ;;  %v1589_v25 = vsub.f32 %v1399_v43, %v483_v3 }
 0x145   :  { %v1592_v29 = vsub.f32 %v1417_v56, %v483_v3  ;;  %v1595_v23 = vsub.f32 %v1427_v62, %v483_v3  ;;  %v1598_v27 = vsub.f32 %v1413_v53, %v483_v3  ;;  %v1601_v40 = vsub.f32 %v1423_v59, %v483_v3 }
 0x146   :  { %v1604_v46 = vsub.f32 %v1441_v8, %v483_v3  ;;  %v1607_v37 = vsub.f32 %v1451_v14, %v483_v3  ;;  %v1610_v43 = vsub.f32 %v1437_v5, %v483_v3  ;;  %v1613_v56 = vsub.f32 %v1447_v11, %v483_v3 }
 0x147   :  { %v520_v62 = vmul.f32 %v1508_v7, %v1508_v7  ;;  %v521_v53 = vmul.f32 %v1511_v9, %v1511_v9  ;;  %v522_v59 = vmul.f32 %v1514_v12, %v1514_v12  ;;  %v523_v8 = vmul.f32 %v1517_v15, %v1517_v15 }
 0x148   :  { %v524_v11 = vmul.f32 %v1520_v16, %v1520_v16  ;;  %v525_v33 = vmul.f32 %v1523_v17, %v1523_v17  ;;  %v526_v41 = vmul.f32 %v1526_v18, %v1526_v18  ;;  %v527_v48 = vmul.f32 %v1529_v24, %v1529_v24 }
 0x149   :  { %v556_v14 = vsel %vm173_vm0, %v520_v62, 0.0  ;;  %v557_v5 = vsel %vm173_vm0, %v521_v53, 0.0  ;;  %v559_v30 = vsel %vm173_vm0, %v522_v59, 0.0  ;;  %v561_v35 = vsel %vm173_vm0, %v523_v8, 0.0 }
 0x14a   :  { %v558_v19 = vadd.f32 %v557_v5, %v556_v14  ;;  %v563_v44 = vsel %vm173_vm0, %v524_v11, 0.0  ;;  %v565_v49 = vsel %vm173_vm0, %v525_v33, 0.0  ;;  %v528_v51 = vmul.f32 %v1532_v28, %v1532_v28 }
 0x14b   :  { %v567_v55 = vsel %vm173_vm0, %v526_v41, 0.0  ;;  %v529_v60 = vmul.f32 %v1535_v22, %v1535_v22  ;;  %v569_v63 = vsel %vm173_vm0, %v527_v48, 0.0  ;;  %v530_v1 = vmul.f32 %v1538_v26, %v1538_v26 }
 0x14c   :  { %v560_v31 = vadd.f32 %v559_v30, %v558_v19  ;;  %v571_v2 = vsel %vm173_vm0, %v528_v51, 0.0  ;;  %v531_v62 = vmul.f32 %v1541_v38, %v1541_v38  ;;  %v532_v8 = vmul.f32 %v1544_v45, %v1544_v45 }
 0x14d   :  { %v573_v53 = vsel %vm173_vm0, %v529_v60, 0.0  ;;  %v575_v14 = vsel %vm173_vm0, %v530_v1, 0.0  ;;  %v533_v19 = vmul.f32 %v1547_v36, %v1547_v36 }
 0x14e   :  { %v562_v39 = vadd.f32 %v561_v35, %v560_v31  ;;  %v577_v11 = vsel %vm173_vm0, %v531_v62, 0.0  ;;  %v534_v31 = vmul.f32 %v1550_v42, %v1550_v42  ;;  %v579_v33 = vsel %vm173_vm0, %v532_v8, 0.0 }
 0x14f   :  { %v581_v41 = vsel %vm173_vm0, %v533_v19, 0.0 }
 0x150   :  { %v564_v47 = vadd.f32 %v563_v44, %v562_v39  ;;  %v535_v39 = vmul.f32 %v1553_v54, %v1553_v54  ;;  %v583_v48 = vsel %vm173_vm0, %v534_v31, 0.0 }
 0x152   :  { %v566_v50 = vadd.f32 %v565_v49, %v564_v47  ;;  %v536_v47 = vmul.f32 %v1556_v61, %v1556_v61  ;;  %v585_v51 = vsel %vm173_vm0, %v535_v39, 0.0 }
 0x154   :  { %v568_v57 = vadd.f32 %v567_v55, %v566_v50  ;;  %v537_v50 = vmul.f32 %v1559_v52, %v1559_v52  ;;  %v587_v60 = vsel %vm173_vm0, %v536_v47, 0.0 }
 0x156   :  { %v570_v0 = vadd.f32 %v569_v63, %v568_v57  ;;  %v538_v57 = vmul.f32 %v1562_v58, %v1562_v58  ;;  %v589_v1 = vsel %vm173_vm0, %v537_v50, 0.0 }
 0x158   :  { %v572_v3 = vadd.f32 %v571_v2, %v570_v0  ;;  %v539_v0 = vmul.f32 %v1565_v6, %v1565_v6  ;;  %v591_v62 = vsel %vm173_vm0, %v538_v57, 0.0 }
 0x15a   :  { %v574_v59 = vadd.f32 %v573_v53, %v572_v3  ;;  %v540_v3 = vmul.f32 %v1568_v13, %v1568_v13  ;;  %v593_v8 = vsel %vm173_vm0, %v539_v0, 0.0 }
 0x15c   :  { %v576_v5 = vadd.f32 %v575_v14, %v574_v59  ;;  %v541_v59 = vmul.f32 %v1571_v4, %v1571_v4  ;;  %v595_v19 = vsel %vm173_vm0, %v540_v3, 0.0 }
 0x15e   :  { %v578_v30 = vadd.f32 %v577_v11, %v576_v5  ;;  %v542_v5 = vmul.f32 %v1574_v10, %v1574_v10  ;;  %v597_v31 = vsel %vm173_vm0, %v541_v59, 0.0 }
 0x160   :  { %v580_v35 = vadd.f32 %v579_v33, %v578_v30  ;;  %v543_v30 = vmul.f32 %v1577_v21, %v1577_v21  ;;  %v599_v39 = vsel %vm173_vm0, %v542_v5, 0.0 }
 0x162   :  { %v582_v44 = vadd.f32 %v581_v41, %v580_v35  ;;  %v544_v35 = vmul.f32 %v1580_v34, %v1580_v34  ;;  %v601_v47 = vsel %vm173_vm0, %v543_v30, 0.0 }
 0x164   :  { %v584_v49 = vadd.f32 %v583_v48, %v582_v44  ;;  %v545_v44 = vmul.f32 %v1583_v20, %v1583_v20  ;;  %v603_v50 = vsel %vm173_vm0, %v544_v35, 0.0 }
 0x166   :  { %v586_v55 = vadd.f32 %v585_v51, %v584_v49  ;;  %v546_v49 = vmul.f32 %v1586_v32, %v1586_v32  ;;  %v605_v57 = vsel %vm173_vm0, %v545_v44, 0.0 }
 0x168   :  { %v588_v63 = vadd.f32 %v587_v60, %v586_v55  ;;  %v547_v55 = vmul.f32 %v1589_v25, %v1589_v25  ;;  %v607_v0 = vsel %vm173_vm0, %v546_v49, 0.0 }
 0x16a   :  { %v590_v2 = vadd.f32 %v589_v1, %v588_v63  ;;  %v548_v63 = vmul.f32 %v1592_v29, %v1592_v29  ;;  %v609_v3 = vsel %vm173_vm0, %v547_v55, 0.0 }
 0x16c   :  { %v592_v53 = vadd.f32 %v591_v62, %v590_v2  ;;  %v549_v2 = vmul.f32 %v1595_v23, %v1595_v23  ;;  %v611_v59 = vsel %vm173_vm0, %v548_v63, 0.0 }
 0x16e   :  { %v594_v14 = vadd.f32 %v593_v8, %v592_v53  ;;  %v550_v53 = vmul.f32 %v1598_v27, %v1598_v27  ;;  %v613_v5 = vsel %vm173_vm0, %v549_v2, 0.0 }
 0x170   :  { %v596_v11 = vadd.f32 %v595_v19, %v594_v14  ;;  %v551_v14 = vmul.f32 %v1601_v40, %v1601_v40  ;;  %v615_v30 = vsel %vm173_vm0, %v550_v53, 0.0 }
 0x172   :  { %v598_v33 = vadd.f32 %v597_v31, %v596_v11  ;;  %v552_v11 = vmul.f32 %v1604_v46, %v1604_v46  ;;  %v617_v35 = vsel %vm173_vm0, %v551_v14, 0.0 }
 0x174   :  { %v600_v41 = vadd.f32 %v599_v39, %v598_v33  ;;  %v553_v33 = vmul.f32 %v1607_v37, %v1607_v37  ;;  %v619_v44 = vsel %vm173_vm0, %v552_v11, 0.0 }
 0x176   :  { %v602_v48 = vadd.f32 %v601_v47, %v600_v41  ;;  %v554_v41 = vmul.f32 %v1610_v43, %v1610_v43  ;;  %v621_v49 = vsel %vm173_vm0, %v553_v33, 0.0 }
 0x178   :  { %v604_v51 = vadd.f32 %v603_v50, %v602_v48  ;;  %v555_v48 = vmul.f32 %v1613_v56, %v1613_v56 }
 0x17a   :  { %v606_v60 = vadd.f32 %v605_v57, %v604_v51  ;;  %v623_v51 = vsel %vm173_vm0, %v554_v41, 0.0  ;;  %v625_v57 = vsel %vm173_vm0, %v555_v48, 0.0 }
 0x17c   :  { %v608_v1 = vadd.f32 %v607_v0, %v606_v60 }
 0x17e   :  { %v610_v62 = vadd.f32 %v609_v3, %v608_v1 }
 0x180   :  { %v612_v8 = vadd.f32 %v611_v59, %v610_v62 }
 0x182   :  { %v614_v19 = vadd.f32 %v613_v5, %v612_v8 }
 0x184   :  { %v616_v31 = vadd.f32 %v615_v30, %v614_v19 }
 0x186   :  { %v618_v39 = vadd.f32 %v617_v35, %v616_v31 }
 0x188   :  { %v620_v47 = vadd.f32 %v619_v44, %v618_v39 }
 0x18a   :  { %v622_v50 = vadd.f32 %v621_v49, %v620_v47 }
 0x18c   :  { %v624_v55 = vadd.f32 %v623_v51, %v622_v50 }
 0x18e   :  { %v626_v60 = vadd.f32 %v625_v57, %v624_v55 }
 0x190   :  { %v627_v63 = vrot.slane %v626_v60, 4 }
 0x192   :  { %v628_v0 = vadd.f32 %v627_v63, %v626_v60 }
 0x194   :  { %v629_v1 = vrot.slane %v628_v0, 2 }
 0x196   :  { %v630_v2 = vadd.f32 %v629_v1, %v628_v0 }
 0x198   :  { %v631_v3 = vrot.slane %v630_v2, 1 }
 0x19a   :  { %v632_v62 = vadd.f32 %v631_v3, %v630_v2 }
 0x19c   :  { %v633_v53 = vmul.f32 0.0034722222, %v632_v62 }
 0x19e   :  { %v634_v59 = vadd.f32 1e-05, %v633_v53 }
 0x1a0   :  { %1257 = vrsqrt.f32 %v634_v59 }
 0x1aa   :  { %v1258_v8 = vpop.eup %1257 }
 0x1ab   :  { %v658_v14 = vmul.f32 %v1258_v8, %v1574_v10  ;;  %v659_v5 = vmul.f32 %v1258_v8, %v1577_v21  ;;  %v660_v19 = vmul.f32 %v1258_v8, %v1580_v34  ;;  %v661_v11 = vmul.f32 %v1258_v8, %v1583_v20 }
 0x1ac   :  { %v662_v30 = vmul.f32 %v1258_v8, %v1586_v32  ;;  %v663_v31 = vmul.f32 %v1258_v8, %v1589_v25  ;;  %v664_v33 = vmul.f32 %v1258_v8, %v1592_v29  ;;  %v665_v35 = vmul.f32 %v1258_v8, %v1595_v23 }
 0x1ad   :  { %v666_v39 = vmul.f32 %v1258_v8, %v1598_v27  ;;  %v667_v41 = vmul.f32 %v1258_v8, %v1601_v40  ;;  %v668_v10 = vmul.f32 %v1258_v8, %v1604_v46  ;;  %v669_v21 = vmul.f32 %v1258_v8, %v1607_v37 }
 0x1ae   :  { %v670_v34 = vmul.f32 %v1258_v8, %v1610_v43  ;;  %v671_v20 = vmul.f32 %v1258_v8, %v1613_v56  ;;  %v636_v32 = vmul.f32 %v1258_v8, %v1508_v7  ;;  %v637_v25 = vmul.f32 %v1258_v8, %v1511_v9 }
 0x1af   :  { %v638_v29 = vmul.f32 %v1258_v8, %v1514_v12  ;;  %v639_v23 = vmul.f32 %v1258_v8, %v1517_v15  ;;  %v640_v27 = vmul.f32 %v1258_v8, %v1520_v16  ;;  %v641_v40 = vmul.f32 %v1258_v8, %v1523_v17  ;;  %v1087_v15 = vld [vmem:[%s2283_s2] ss:$0 sm:$0xff] }
 0x1b0   :  { %v642_v46 = vmul.f32 %v1258_v8, %v1526_v18  ;;  %v643_v37 = vmul.f32 %v1258_v8, %v1529_v24  ;;  %v644_v43 = vmul.f32 %v1258_v8, %v1532_v28  ;;  %v645_v56 = vmul.f32 %v1258_v8, %v1535_v22 }
 0x1b1   :  { %v646_v7 = vmul.f32 %v1258_v8, %v1538_v26  ;;  %v647_v9 = vmul.f32 %v1258_v8, %v1541_v38  ;;  %v648_v12 = vmul.f32 %v1258_v8, %v1544_v45  ;;  %v649_v16 = vmul.f32 %v1258_v8, %v1547_v36 }
 0x1b2   :  { %v650_v17 = vmul.f32 %v1258_v8, %v1550_v42  ;;  %v651_v18 = vmul.f32 %v1258_v8, %v1553_v54  ;;  %v652_v24 = vmul.f32 %v1258_v8, %v1556_v61  ;;  %v653_v28 = vmul.f32 %v1258_v8, %v1559_v52 }
 0x1b3   :  { %v654_v22 = vmul.f32 %v1258_v8, %v1562_v58  ;;  %v655_v26 = vmul.f32 %v1258_v8, %v1565_v6  ;;  %v656_v38 = vmul.f32 %v1258_v8, %v1568_v13  ;;  %v657_v45 = vmul.f32 %v1258_v8, %v1571_v4 }
 0x1b4   :  { %v677_v44 = vmul.f32 %v1087_v15, %v636_v32  ;;  %v678_v47 = vmul.f32 %v1087_v15, %v637_v25  ;;  %v679_v48 = vmul.f32 %v1087_v15, %v638_v29  ;;  %v680_v36 = vmul.f32 %v1087_v15, %v639_v23  ;;  %v1088_v32 = vld [vmem:[%s2283_s2 + $0x1] ss:$0 sm:$0xff] }
 0x1b5   :  { %v681_v49 = vmul.f32 %v1087_v15, %v640_v27  ;;  %v682_v42 = vmul.f32 %v1087_v15, %v641_v40  ;;  %v683_v50 = vmul.f32 %v1087_v15, %v642_v46  ;;  %v684_v54 = vmul.f32 %v1087_v15, %v643_v37 }
 0x1b6   :  { %v685_v51 = vmul.f32 %v1087_v15, %v644_v43  ;;  %v686_v61 = vmul.f32 %v1087_v15, %v645_v56  ;;  %v687_v55 = vmul.f32 %v1087_v15, %v646_v7  ;;  %v688_v52 = vmul.f32 %v1087_v15, %v647_v9 }
 0x1b7   :  { %v689_v57 = vmul.f32 %v1087_v15, %v648_v12  ;;  %v690_v58 = vmul.f32 %v1087_v15, %v649_v16  ;;  %v691_v60 = vmul.f32 %v1087_v15, %v650_v17  ;;  %v692_v6 = vmul.f32 %v1087_v15, %v651_v18 }
 0x1b8   :  { %v693_v63 = vmul.f32 %v1087_v15, %v652_v24  ;;  %v694_v13 = vmul.f32 %v1087_v15, %v653_v28  ;;  %v695_v0 = vmul.f32 %v1087_v15, %v654_v22  ;;  %v696_v4 = vmul.f32 %v1087_v15, %v655_v26 }
 0x1b9   :  { %v697_v1 = vmul.f32 %v1087_v15, %v656_v38  ;;  %v698_v2 = vmul.f32 %v1087_v15, %v657_v45  ;;  %v699_v3 = vmul.f32 %v1087_v15, %v658_v14  ;;  %v700_v62 = vmul.f32 %v1087_v15, %v659_v5 }
 0x1ba   :  { %v701_v53 = vmul.f32 %v1087_v15, %v660_v19  ;;  %v702_v59 = vmul.f32 %v1087_v15, %v661_v11  ;;  %v703_v8 = vmul.f32 %v1087_v15, %v662_v30  ;;  %v704_v25 = vmul.f32 %v1087_v15, %v663_v31 }
 0x1bb   :  { %v705_v29 = vmul.f32 %v1087_v15, %v664_v33  ;;  %v706_v23 = vmul.f32 %v1087_v15, %v665_v35  ;;  %v707_v27 = vmul.f32 %v1087_v15, %v666_v39  ;;  %v708_v40 = vmul.f32 %v1087_v15, %v667_v41 }
 0x1bc   :  { %v709_v46 = vmul.f32 %v1087_v15, %v668_v10  ;;  %v710_v37 = vmul.f32 %v1087_v15, %v669_v21  ;;  %v711_v43 = vmul.f32 %v1087_v15, %v670_v34  ;;  %v712_v56 = vmul.f32 %v1087_v15, %v671_v20 }
 0x1bd   :  { %v1765_v7 = vadd.f32 %v1088_v32, %v677_v44  ;;  %v1767_v14 = vadd.f32 %v1088_v32, %v678_v47  ;;  %v1769_v5 = vadd.f32 %v1088_v32, %v679_v48  ;;  %v1771_v19 = vadd.f32 %v1088_v32, %v680_v36 }
 0x1be   :  { %v1773_v11 = vadd.f32 %v1088_v32, %v681_v49  ;;  %v1775_v30 = vadd.f32 %v1088_v32, %v682_v42  ;;  %v1777_v31 = vadd.f32 %v1088_v32, %v683_v50  ;;  %v1779_v33 = vadd.f32 %v1088_v32, %v684_v54 }
 0x1bf   :  { %v1781_v35 = vadd.f32 %v1088_v32, %v685_v51  ;;  %v1783_v39 = vadd.f32 %v1088_v32, %v686_v61  ;;  %v1785_v41 = vadd.f32 %v1088_v32, %v687_v55  ;;  %v1787_v10 = vadd.f32 %v1088_v32, %v688_v52 }
 0x1c0   :  { %v1789_v21 = vadd.f32 %v1088_v32, %v689_v57  ;;  %v1791_v34 = vadd.f32 %v1088_v32, %v690_v58  ;;  %v1793_v20 = vadd.f32 %v1088_v32, %v691_v60  ;;  %v1795_v9 = vadd.f32 %v1088_v32, %v692_v6 }
 0x1c1   :  { %v1797_v12 = vadd.f32 %v1088_v32, %v693_v63  ;;  %v1799_v15 = vadd.f32 %v1088_v32, %v694_v13  ;;  %v1801_v16 = vadd.f32 %v1088_v32, %v695_v0  ;;  %v1803_v17 = vadd.f32 %v1088_v32, %v696_v4 }
 0x1c2   :  { %v1805_v18 = vadd.f32 %v1088_v32, %v697_v1  ;;  %v1807_v24 = vadd.f32 %v1088_v32, %v698_v2  ;;  %v1809_v28 = vadd.f32 %v1088_v32, %v699_v3  ;;  %v1811_v22 = vadd.f32 %v1088_v32, %v700_v62 }
 0x1c3   :  { %v1813_v26 = vadd.f32 %v1088_v32, %v701_v53  ;;  %v1815_v38 = vadd.f32 %v1088_v32, %v702_v59  ;;  %v1817_v45 = vadd.f32 %v1088_v32, %v703_v8  ;;  %v1819_v44 = vadd.f32 %v1088_v32, %v704_v25 }
 0x1c4   :  { %v1821_v47 = vadd.f32 %v1088_v32, %v705_v29  ;;  %v1823_v48 = vadd.f32 %v1088_v32, %v706_v23  ;;  %v1825_v36 = vadd.f32 %v1088_v32, %v707_v27  ;;  %v1827_v49 = vadd.f32 %v1088_v32, %v708_v40 }
 0x1c5   :  { %v1829_v42 = vadd.f32 %v1088_v32, %v709_v46  ;;  %v1831_v50 = vadd.f32 %v1088_v32, %v710_v37  ;;  %vm754_vm1 = vcmp.ge.f32.partialorder %v1765_v7, 0.0  ;;  %vm755_vm2 = vcmp.ge.f32.partialorder %v1767_v14, 0.0 }
 0x1c6   :  { %vm756_vm3 = vcmp.ge.f32.partialorder %v1769_v5, 0.0  ;;  %vm757_vm4 = vcmp.ge.f32.partialorder %v1771_v19, 0.0  ;;  %vm758_vm5 = vcmp.ge.f32.partialorder %v1773_v11, 0.0  ;;  %vm759_vm6 = vcmp.ge.f32.partialorder %v1775_v30, 0.0 }
 0x1c7   :  { %vm760_vm7 = vcmp.ge.f32.partialorder %v1777_v31, 0.0  ;;  %vm761_vm8 = vcmp.ge.f32.partialorder %v1779_v33, 0.0  ;;  %vm762_vm9 = vcmp.ge.f32.partialorder %v1781_v35, 0.0  ;;  %v1842_v54 = vadd.f32 %v1088_v32, %v711_v43 }
 0x1c8   :  { %v790_v51 = vmul.f32 0.01, %v1765_v7  ;;  %v791_v61 = vmul.f32 0.01, %v1767_v14  ;;  %v792_v55 = vmul.f32 0.01, %v1769_v5  ;;  %v1848_v52 = vadd.f32 %v1088_v32, %v712_v56 }
 0x1c9   :  { %vm765_vm12 = vcmp.ge.f32.partialorder %v1787_v10, 0.0  ;;  %vm766_vm13 = vcmp.ge.f32.partialorder %v1789_v21, 0.0  ;;  %v793_v57 = vmul.f32 0.01, %v1771_v19  ;;  %v794_v58 = vmul.f32 0.01, %v1773_v11 }
 0x1ca   :  { %v795_v60 = vmul.f32 0.01, %v1775_v30  ;;  %vm771_vm11 = vcmp.ge.f32.partialorder %v1799_v15, 0.0  ;;  %v796_v6 = vmul.f32 0.01, %v1777_v31  ;;  %v1867_v0 = vsel %vm754_vm1, %v1765_v7, %v790_v51 }
 0x1cb   :  { %v797_v63 = vmul.f32 0.01, %v1779_v33  ;;  %v798_v13 = vmul.f32 0.01, %v1781_v35  ;;  %vm775_vm10 = vcmp.ge.f32.partialorder %v1807_v24, 0.0  ;;  %v1879_v3 = vsel %vm755_vm2, %v1767_v14, %v791_v61 }
 0x1cc   :  { %v799_v4 = vmul.f32 0.01, %v1783_v39  ;;  %v800_v1 = vmul.f32 0.01, %v1785_v41  ;;  %v801_v2 = vmul.f32 0.01, %v1787_v10  ;;  %v1891_v8 = vsel %vm756_vm3, %v1769_v5, %v792_v55 }
 0x1cd   :  { %vm779_vm0 = vcmp.ge.f32.partialorder %v1815_v38, 0.0  ;;  %v802_v62 = vmul.f32 0.01, %v1789_v21  ;;  %v803_v53 = vmul.f32 0.01, %v1791_v34  ;;  %vm783_vm15 = vcmp.ge.f32.partialorder %v1823_v48, 0.0 }
 0x1ce   :  { %v804_v59 = vmul.f32 0.01, %v1793_v20  ;;  %v805_v32 = vmul.f32 0.01, %v1795_v9  ;;  %v806_v25 = vmul.f32 0.01, %v1797_v12  ;;  %v1903_v23 = vsel %vm757_vm4, %v1771_v19, %v793_v57 }
 0x1cf   :  { %v807_v29 = vmul.f32 0.01, %v1799_v15  ;;  %vm785_vm2 = vcmp.ge.f32.partialorder %v1827_v49, 0.0  ;;  %vm786_vm1 = vcmp.ge.f32.partialorder %v1829_v42, 0.0  ;;  %vm787_vm14 = vcmp.ge.f32.partialorder %v1831_v50, 0.0 }
 0x1d0   :  { %v808_v27 = vmul.f32 0.01, %v1801_v16  ;;  %v809_v40 = vmul.f32 0.01, %v1803_v17  ;;  %v810_v46 = vmul.f32 0.01, %v1805_v18  ;;  %v1915_v37 = vsel %vm758_vm5, %v1773_v11, %v794_v58 }
 0x1d1   :  { %2285 = vst [vmem:[#allocation2_spill] sm:$0xff] %v1915_v37  ;;  %vm788_vm4 = vcmp.ge.f32.partialorder %v1842_v54, 0.0  ;;  %vm789_vm3 = vcmp.ge.f32.partialorder %v1848_v52, 0.0  ;;  %v811_v43 = vmul.f32 0.01, %v1807_v24  ;;  %v1925_v14 = vsel %vm759_vm6, %v1775_v30, %v795_v60 }
 0x1d2   :  { %v812_v56 = vmul.f32 0.01, %v1809_v28  ;;  %v813_v7 = vmul.f32 0.01, %v1811_v22  ;;  %2286 = vst [vmem:[#allocation3_spill] sm:$0xff] %v1925_v14  ;;  %v1933_v51 = vsel %vm760_vm7, %v1777_v31, %v796_v6  ;;  %v1941_v30 = vsel %vm761_vm8, %v1779_v33, %v797_v63 }
 0x1d3   :  { %v814_v5 = vmul.f32 0.01, %v1813_v26  ;;  %v815_v19 = vmul.f32 0.01, %v1815_v38  ;;  %v816_v11 = vmul.f32 0.01, %v1817_v45  ;;  %v834_v31 = vsel %vm762_vm9, %v1781_v35, %v798_v13 }
 0x1d4   :  { %2287 = vst [vmem:[#allocation4_spill] sm:$0xff] %v1933_v51  ;;  %v817_v61 = vmul.f32 0.01, %v1819_v44  ;;  %v818_v55 = vmul.f32 0.01, %v1821_v47  ;;  %2288 = vst [vmem:[#allocation5_spill] sm:$0xff] %v1941_v30  ;;  %v837_v30 = vsel %vm765_vm12, %v1787_v10, %v801_v2  ;;  %v838_v35 = vsel %vm766_vm13, %v1789_v21, %v802_v62 }
 0x1d5   :  { %v819_v57 = vmul.f32 0.01, %v1823_v48  ;;  %vm1006_vm5 = vcmask 519168   ;;  %v820_v58 = vmul.f32 0.01, %v1825_v36  ;;  %vm2289_vm6 = vcmp.ge.f32.partialorder %v1783_v39, 0.0 }
 0x1d6   :  { %v821_v60 = vmul.f32 0.01, %v1827_v49  ;;  %v822_v14 = vmul.f32 0.01, %v1829_v42  ;;  %v823_v6 = vmul.f32 0.01, %v1831_v50  ;;  %v835_v33 = vsel %vm2289_vm6, %v1783_v39, %v799_v4 }
 0x1d7   :  { %v824_v51 = vmul.f32 0.01, %v1842_v54  ;;  %v825_v37 = vmul.f32 0.01, %v1848_v52  ;;  %vm2290_vm7 = vcmp.ge.f32.partialorder %v1785_v41, 0.0  ;;  %vm2291_vm8 = vcmp.ge.f32.partialorder %v1791_v34, 0.0 }
 0x1d8   :  { %v836_v63 = vsel %vm2290_vm7, %v1785_v41, %v800_v1  ;;  %v839_v13 = vsel %vm2291_vm8, %v1791_v34, %v803_v53  ;;  %vm2292_vm9 = vcmp.ge.f32.partialorder %v1793_v20, 0.0  ;;  %vm2293_vm6 = vcmp.ge.f32.partialorder %v1795_v9, 0.0  ;;  %v2305_v1 = vld [vmem:[#allocation2_spill] sm:$0xff] }
 0x1d9   :  { %v1970_v39 = vsel %vm2292_vm9, %v1793_v20, %v804_v59  ;;  %v1975_v41 = vsel %vm2293_vm6, %v1795_v9, %v805_v32  ;;  %vm2294_vm12 = vcmp.ge.f32.partialorder %v1797_v12, 0.0  ;;  %v1985_v21 = vsel %vm771_vm11, %v1799_v15, %v807_v29  ;;  %v2306_v2 = vld [vmem:[#allocation3_spill] sm:$0xff] }
 0x1da   :  { %v1980_v10 = vsel %vm2294_vm12, %v1797_v12, %v806_v25  ;;  %vm2295_vm13 = vcmp.ge.f32.partialorder %v1801_v16, 0.0  ;;  %vm2296_vm7 = vcmp.ge.f32.partialorder %v1803_v17, 0.0  ;;  %vm2297_vm8 = vcmp.ge.f32.partialorder %v1805_v18, 0.0 }
 0x1db   :  { %v1990_v34 = vsel %vm2295_vm13, %v1801_v16, %v808_v27  ;;  %v1995_v20 = vsel %vm2296_vm7, %v1803_v17, %v809_v40  ;;  %v2000_v9 = vsel %vm2297_vm8, %v1805_v18, %v810_v46  ;;  %v2005_v12 = vsel %vm775_vm10, %v1807_v24, %v811_v43  ;;  %v2308_v59 = vld [vmem:[#allocation5_spill] sm:$0xff] }
 0x1dc   :  { %vm2298_vm11 = vcmp.ge.f32.partialorder %v1809_v28, 0.0  ;;  %vm2299_vm9 = vcmp.ge.f32.partialorder %v1811_v22, 0.0  ;;  %vm2300_vm6 = vcmp.ge.f32.partialorder %v1813_v26, 0.0  ;;  %v2025_v18 = vsel %vm779_vm0, %v1815_v38, %v815_v19 }
 0x1dd   :  { %v2010_v15 = vsel %vm2298_vm11, %v1809_v28, %v812_v56  ;;  %v2015_v16 = vsel %vm2299_vm9, %v1811_v22, %v813_v7  ;;  %v2020_v17 = vsel %vm2300_vm6, %v1813_v26, %v814_v5  ;;  %vm2301_vm10 = vcmp.ge.f32.partialorder %v1817_v45, 0.0 }
 0x1de   :  { %v2030_v24 = vsel %vm2301_vm10, %v1817_v45, %v816_v11  ;;  %vm2302_vm12 = vcmp.ge.f32.partialorder %v1819_v44, 0.0  ;;  %vm2303_vm13 = vcmp.ge.f32.partialorder %v1821_v47, 0.0  ;;  %v2045_v26 = vsel %vm783_vm15, %v1823_v48, %v819_v57 }
 0x1df   :  { %v2035_v28 = vsel %vm2302_vm12, %v1819_v44, %v817_v61  ;;  %v2040_v22 = vsel %vm2303_vm13, %v1821_v47, %v818_v55  ;;  %vm2304_vm0 = vcmp.ge.f32.partialorder %v1825_v36, 0.0  ;;  %v2055_v45 = vsel %vm785_vm2, %v1827_v49, %v821_v60 }
 0x1e0   :  { %v2050_v38 = vsel %vm2304_vm0, %v1825_v36, %v820_v58  ;;  %v2060_v44 = vsel %vm786_vm1, %v1829_v42, %v822_v14  ;;  %v2065_v47 = vsel %vm787_vm14, %v1831_v50, %v823_v6  ;;  %v2070_v48 = vsel %vm788_vm4, %v1842_v54, %v824_v51 }
 0x1e1   :  { %v2075_v36 = vsel %vm789_vm3, %v1848_v52, %v825_v37  ;;  %v1125_v49 = vpack.c.bf16 %v1867_v0, %v1867_v0  ;;  %v1126_v42 = vpack.c.bf16 %v1879_v3, %v1879_v3  ;;  %v1127_v50 = vpack.c.bf16 %v1891_v8, %v1891_v8  ;;  %v2307_v52 = vld [vmem:[#allocation4_spill] sm:$0xff] }
 0x1e2   :  { %v1128_v4 = vpack.c.bf16 %v1903_v23, %v1903_v23  ;;  %v1129_v54 = vpack.c.bf16 %v2305_v1, %v2305_v1  ;;  %v1130_v62 = vpack.c.bf16 %v2306_v2, %v2306_v2  ;;  %v1131_v53 = vpack.c.bf16 %v2307_v52, %v2307_v52 }
 0x1e3   :  { %v1132_v0 = vpack.c.bf16 %v2308_v59, %v2308_v59  ;;  %v1133_v32 = vpack.c.bf16 %v834_v31, %v834_v31  ;;  %v1134_v3 = vpack.c.bf16 %v835_v33, %v835_v33  ;;  %1007 = vst.msk [vmem:[%s2284_s3] sm:$0xf] %vm1006_vm5, %v1125_v49  ;;  %1008 = vst.msk [vmem:[%s2284_s3 + $0x4] sm:$0xf] %vm1006_vm5, %v1126_v42 }
 0x1e4   :  { %v1135_v8 = vpack.c.bf16 %v836_v63, %v836_v63  ;;  %v1136_v25 = vpack.c.bf16 %v837_v30, %v837_v30  ;;  %v1137_v29 = vpack.c.bf16 %v838_v35, %v838_v35  ;;  %v1138_v23 = vpack.c.bf16 %v839_v13, %v839_v13  ;;  %1009 = vst.msk [vmem:[%s2284_s3 + $0x8] sm:$0xf] %vm1006_vm5, %v1127_v50 }
 0x1e5   :  { %1010 = vst.msk [vmem:[%s2284_s3 + $0xc] sm:$0xf] %vm1006_vm5, %v1128_v4  ;;  %1011 = vst.msk [vmem:[%s2284_s3 + $0x10] sm:$0xf] %vm1006_vm5, %v1129_v54  ;;  %v1139_v27 = vpack.c.bf16 %v1970_v39, %v1970_v39  ;;  %v1140_v40 = vpack.c.bf16 %v1975_v41, %v1975_v41  ;;  %v1141_v46 = vpack.c.bf16 %v1980_v10, %v1980_v10 }
 0x1e6   :  { %1012 = vst.msk [vmem:[%s2284_s3 + $0x14] sm:$0xf] %vm1006_vm5, %v1130_v62  ;;  %v1142_v37 = vpack.c.bf16 %v1985_v21, %v1985_v21  ;;  %1013 = vst.msk [vmem:[%s2284_s3 + $0x18] sm:$0xf] %vm1006_vm5, %v1131_v53  ;;  %v1143_v43 = vpack.c.bf16 %v1990_v34, %v1990_v34  ;;  %v1144_v56 = vpack.c.bf16 %v1995_v20, %v1995_v20 }
 0x1e7   :  { %1014 = vst.msk [vmem:[%s2284_s3 + $0x1c] sm:$0xf] %vm1006_vm5, %v1132_v0  ;;  %1015 = vst.msk [vmem:[%s2284_s3 + $0x20] sm:$0xf] %vm1006_vm5, %v1133_v32  ;;  %v1145_v7 = vpack.c.bf16 %v2000_v9, %v2000_v9  ;;  %v1146_v14 = vpack.c.bf16 %v2005_v12, %v2005_v12  ;;  %v1147_v5 = vpack.c.bf16 %v2010_v15, %v2010_v15 }
 0x1e8   :  { %1016 = vst.msk [vmem:[%s2284_s3 + $0x24] sm:$0xf] %vm1006_vm5, %v1134_v3  ;;  %1017 = vst.msk [vmem:[%s2284_s3 + $0x28] sm:$0xf] %vm1006_vm5, %v1135_v8  ;;  %v1148_v19 = vpack.c.bf16 %v2015_v16, %v2015_v16  ;;  %v1149_v11 = vpack.c.bf16 %v2020_v17, %v2020_v17  ;;  %v1150_v51 = vpack.c.bf16 %v2025_v18, %v2025_v18 }
 0x1e9   :  { %1018 = vst.msk [vmem:[%s2284_s3 + $0x2c] sm:$0xf] %vm1006_vm5, %v1136_v25  ;;  %1019 = vst.msk [vmem:[%s2284_s3 + $0x30] sm:$0xf] %vm1006_vm5, %v1137_v29  ;;  %v1151_v61 = vpack.c.bf16 %v2030_v24, %v2030_v24  ;;  %v1152_v55 = vpack.c.bf16 %v2035_v28, %v2035_v28  ;;  %v1153_v57 = vpack.c.bf16 %v2040_v22, %v2040_v22 }
 0x1ea   :  { %1020 = vst.msk [vmem:[%s2284_s3 + $0x34] sm:$0xf] %vm1006_vm5, %v1138_v23  ;;  %1021 = vst.msk [vmem:[%s2284_s3 + $0x38] sm:$0xf] %vm1006_vm5, %v1139_v27  ;;  %v1154_v30 = vpack.c.bf16 %v2045_v26, %v2045_v26  ;;  %v1155_v58 = vpack.c.bf16 %v2050_v38, %v2050_v38  ;;  %v1156_v60 = vpack.c.bf16 %v2055_v45, %v2055_v45 }
 0x1eb   :  { %1022 = vst.msk [vmem:[%s2284_s3 + $0x3c] sm:$0xf] %vm1006_vm5, %v1140_v40  ;;  %1023 = vst.msk [vmem:[%s2284_s3 + $0x40] sm:$0xf] %vm1006_vm5, %v1141_v46  ;;  %v1157_v31 = vpack.c.bf16 %v2060_v44, %v2060_v44  ;;  %v1158_v6 = vpack.c.bf16 %v2065_v47, %v2065_v47  ;;  %v1159_v33 = vpack.c.bf16 %v2070_v48, %v2070_v48 }
 0x1ec   :  { %1024 = vst.msk [vmem:[%s2284_s3 + $0x44] sm:$0xf] %vm1006_vm5, %v1142_v37  ;;  %1025 = vst.msk [vmem:[%s2284_s3 + $0x48] sm:$0xf] %vm1006_vm5, %v1143_v43  ;;  %v1160_v63 = vpack.c.bf16 %v2075_v36, %v2075_v36 }
 0x1ed   :  { %1026 = vst.msk [vmem:[%s2284_s3 + $0x4c] sm:$0xf] %vm1006_vm5, %v1144_v56  ;;  %1027 = vst.msk [vmem:[%s2284_s3 + $0x50] sm:$0xf] %vm1006_vm5, %v1145_v7 }
 0x1ee   :  { %1028 = vst.msk [vmem:[%s2284_s3 + $0x54] sm:$0xf] %vm1006_vm5, %v1146_v14  ;;  %1029 = vst.msk [vmem:[%s2284_s3 + $0x58] sm:$0xf] %vm1006_vm5, %v1147_v5 }
 0x1ef   :  { %1030 = vst.msk [vmem:[%s2284_s3 + $0x5c] sm:$0xf] %vm1006_vm5, %v1148_v19  ;;  %1031 = vst.msk [vmem:[%s2284_s3 + $0x60] sm:$0xf] %vm1006_vm5, %v1149_v11 }
 0x1f0   :  { %1032 = vst.msk [vmem:[%s2284_s3 + $0x64] sm:$0xf] %vm1006_vm5, %v1150_v51  ;;  %1033 = vst.msk [vmem:[%s2284_s3 + $0x68] sm:$0xf] %vm1006_vm5, %v1151_v61 }
 0x1f1   :  { %1034 = vst.msk [vmem:[%s2284_s3 + $0x6c] sm:$0xf] %vm1006_vm5, %v1152_v55  ;;  %1035 = vst.msk [vmem:[%s2284_s3 + $0x70] sm:$0xf] %vm1006_vm5, %v1153_v57 }
 0x1f2   :  { %1036 = vst.msk [vmem:[%s2284_s3 + $0x74] sm:$0xf] %vm1006_vm5, %v1154_v30  ;;  %1037 = vst.msk [vmem:[%s2284_s3 + $0x78] sm:$0xf] %vm1006_vm5, %v1155_v58 }
 0x1f3   :  { %1038 = vst.msk [vmem:[%s2284_s3 + $0x7c] sm:$0xf] %vm1006_vm5, %v1156_v60  ;;  %1039 = vst.msk [vmem:[%s2284_s3 + $0x80] sm:$0xf] %vm1006_vm5, %v1157_v31 }
 0x1f4   :  { %1040 = vst.msk [vmem:[%s2284_s3 + $0x84] sm:$0xf] %vm1006_vm5, %v1158_v6  ;;  %1041 = vst.msk [vmem:[%s2284_s3 + $0x88] sm:$0xf] %vm1006_vm5, %v1159_v33 }
 0x1f5   :  { %1042 = vst.msk [vmem:[%s2284_s3 + $0x8c] sm:$0xf] %vm1006_vm5, %v1160_v63 }

// kernel: categorical_vae_forward.9
= control target key start
LH: loop header
LB: loop body
LE: loop exit
PB: predicated region body
PF: predicated region fallthrough
CT: control target
= control target key end

     0   :  { %v1163_v34 = vmov 0.0   ;;  %vm1164_vm0 = vmmov 0   ;;  %vm447_vm1 = vcmask 523264   ;;  %s1405_s1 = inlined_call_operand.vmem [shape: bf16[576,128], index: 1, kind: input, shape index: {}]   ;;  %s1406_s0 = inlined_call_operand.vmem [shape: bf16[72,576], index: 0, kind: input, shape index: {}]   ;;  %s1407_s2 = inlined_call_operand.vmem [shape: f32[2,128], index: 2, kind: input, shape index: {}]   ;;  %s1408_s3 = inlined_call_operand.vmem [shape: bf16[72,128], index: 3, kind: output, shape index: {}]  }
   0x1   :  { %v1092_v0 = vld [vmem:[%s1405_s1 + $0x40] sm:$0xff]   ;;  %v1096_v4 = vld [vmem:[%s1405_s1 + $0x48] sm:$0xff]   ;;  %v1100_v8 = vld [vmem:[%s1405_s1 + $0x50] sm:$0xff]  }
   0x2   :  { %v1093_v1 = vld [vmem:[%s1405_s1 + $0xc0] sm:$0xff]   ;;  %953 = vmatprep.subr.bf16.mxu0 %v1092_v0  ;;  %v1097_v5 = vld [vmem:[%s1405_s1 + $0xc8] sm:$0xff]   ;;  %v1101_v9 = vld [vmem:[%s1405_s1 + $0xd0] sm:$0xff]  }
   0x3   :  { %v1094_v2 = vld [vmem:[%s1405_s1] sm:$0xff]   ;;  %999 = vmatprep.subr.bf16.mxu1 %v1093_v1  ;;  %v1098_v6 = vld [vmem:[%s1405_s1 + $0x8] sm:$0xff]   ;;  %v1102_v10 = vld [vmem:[%s1405_s1 + $0x10] sm:$0xff]  }
   0x4   :  { %v1095_v3 = vld [vmem:[%s1405_s1 + $0x80] sm:$0xff]   ;;  %954 = vmatpush3.bf16.msra.mxu0 %v1094_v2  ;;  %v1099_v7 = vld [vmem:[%s1405_s1 + $0x88] sm:$0xff]   ;;  %v1103_v11 = vld [vmem:[%s1405_s1 + $0x90] sm:$0xff]  }
   0x5   :  { %1000 = vmatpush3.bf16.msra.mxu1 %v1095_v3  ;;  %955 = vmatprep.subr.bf16.mxu0 %v1096_v4  ;;  %v1104_v12 = vld [vmem:[%s1405_s1 + $0x58] sm:$0xff]   ;;  %v1108_v16 = vld [vmem:[%s1405_s1 + $0x60] sm:$0xff]   ;;  %v1112_v20 = vld [vmem:[%s1405_s1 + $0x68] sm:$0xff]  }
   0x6   :  { %1001 = vmatprep.subr.bf16.mxu1 %v1097_v5  ;;  %v1105_v13 = vld [vmem:[%s1405_s1 + $0xd8] sm:$0xff]   ;;  %v1109_v17 = vld [vmem:[%s1405_s1 + $0xe0] sm:$0xff]   ;;  %v1113_v21 = vld [vmem:[%s1405_s1 + $0xe8] sm:$0xff]  }
   0x7   :  { %v1106_v14 = vld [vmem:[%s1405_s1 + $0x18] sm:$0xff]   ;;  %v1110_v18 = vld [vmem:[%s1405_s1 + $0x20] sm:$0xff]   ;;  %v1114_v22 = vld [vmem:[%s1405_s1 + $0x28] sm:$0xff]  }
   0x8   :  { %956 = vmatpush3.bf16.msra.mxu0 %v1098_v6  ;;  %v1107_v15 = vld [vmem:[%s1405_s1 + $0x98] sm:$0xff]   ;;  %v1111_v19 = vld [vmem:[%s1405_s1 + $0xa0] sm:$0xff]   ;;  %v1115_v23 = vld [vmem:[%s1405_s1 + $0xa8] sm:$0xff]  }
   0x9   :  { %1002 = vmatpush3.bf16.msra.mxu1 %v1099_v7  ;;  %957 = vmatprep.subr.bf16.mxu0 %v1100_v8  ;;  %v1116_v24 = vld [vmem:[%s1405_s1 + $0x70] sm:$0xff]   ;;  %v1120_v28 = vld [vmem:[%s1405_s1 + $0x78] sm:$0xff]   ;;  %v1129_v36 = vld [vmem:[%s1406_s0 + $0xc] ss:$20 sps:$4 sm:$0xff]  }
   0xa   :  { %1003 = vmatprep.subr.bf16.mxu1 %v1101_v9  ;;  %v1117_v25 = vld [vmem:[%s1405_s1 + $0xf0] sm:$0xff]   ;;  %v1121_v29 = vld [vmem:[%s1405_s1 + $0xf8] sm:$0xff]   ;;  %v1130_v37 = vld [vmem:[%s1405_s1 + $0x100] sm:$0xff]   ;;  %567 = vmatprep.mubr.bf16.mxu1 %v1129_v36 }
   0xb   :  { %v1118_v26 = vld [vmem:[%s1405_s1 + $0x30] sm:$0xff]   ;;  %v1122_v30 = vld [vmem:[%s1405_s1 + $0x38] sm:$0xff]   ;;  %v1131_v38 = vld [vmem:[%s1406_s0 + $0x2c] ss:$20 sps:$4 sm:$0xff]  }
   0xc   :  { %958 = vmatpush3.bf16.msra.mxu0 %v1102_v10  ;;  %v1119_v27 = vld [vmem:[%s1405_s1 + $0xb0] sm:$0xff]   ;;  %v1123_v31 = vld [vmem:[%s1405_s1 + $0xb8] sm:$0xff]   ;;  %v1137_v40 = vld [vmem:[%s1405_s1 + $0x108] sm:$0xff]  }
   0xd   :  { %1004 = vmatpush3.bf16.msra.mxu1 %v1103_v11  ;;  %959 = vmatprep.subr.bf16.mxu0 %v1104_v12  ;;  %v1124_v32 = vld [vmem:[%s1406_s0] ss:$20 sps:$4 sm:$0xff]   ;;  %v1126_v33 = vld [vmem:[%s1406_s0 + $0x4] ss:$20 sps:$4 sm:$0xff]   ;;  %v1127_v35 = vld [vmem:[%s1406_s0 + $0x8] ss:$20 sps:$4 sm:$0xff]  }
   0xe   :  { %1005 = vmatprep.subr.bf16.mxu1 %v1105_v13  ;;  %495 = vmatprep.mubr.bf16.mxu0 %v1126_v33  ;;  %v1133_v39 = vld [vmem:[%s1406_s0 + $0x34] ss:$20 sps:$4 sm:$0xff]   ;;  %v1136_v42 = vld [vmem:[%s1406_s0 + $0x30] ss:$20 sps:$4 sm:$0xff]   ;;  %v1153_v47 = vld [vmem:[%s1405_s1 + $0x118] sm:$0xff]  }
   0xf   :  { %v1135_v41 = vld [vmem:[%s1406_s0 + $0x28] ss:$20 sps:$4 sm:$0xff]   ;;  %v1144_v45 = vld [vmem:[%s1405_s1 + $0x110] sm:$0xff]   ;;  %v1143_v48 = vld [vmem:[%s1406_s0 + $0x58] ss:$20 sps:$4 sm:$0xff]  }
  0x10   :  { %960 = vmatpush3.bf16.msra.mxu0 %v1106_v14  ;;  %v1138_v43 = vld [vmem:[%s1406_s0 + $0x54] ss:$20 sps:$4 sm:$0xff]   ;;  %v1140_v44 = vld [vmem:[%s1406_s0 + $0x5c] ss:$20 sps:$4 sm:$0xff]   ;;  %v1147_v50 = vld [vmem:[%s1406_s0 + $0x84] ss:$20 sps:$4 sm:$0xff]  }
  0x11   :  { %1006 = vmatpush3.bf16.msra.mxu1 %v1107_v15  ;;  %961 = vmatprep.subr.bf16.mxu0 %v1108_v16  ;;  %v1142_v46 = vld [vmem:[%s1406_s0 + $0x50] ss:$20 sps:$4 sm:$0xff]   ;;  %v40_v52 = vld [vmem:[%s1406_s0 + $0xa8] sm:$0xff]  ;;  %v1150_v54 = vld [vmem:[%s1406_s0 + $0x80] ss:$20 sps:$4 sm:$0xff]  }
  0x12   :  { %1007 = vmatprep.subr.bf16.mxu1 %v1109_v17  ;;  %v1145_v49 = vld [vmem:[%s1406_s0 + $0x7c] ss:$20 sps:$4 sm:$0xff]   ;;  %v39_v51 = vld [vmem:[%s1406_s0 + $0xa0] sm:$0xff]  ;;  %v1149_v53 = vld [vmem:[%s1406_s0 + $0x78] ss:$20 sps:$4 sm:$0xff]   ;;  %v867_v56 = vcombine.high %v40_v52, %v40_v52  ;;  %v866_v58 = vcombine.low %v40_v52, %v40_v52 }
  0x13   :  { %v865_v55 = vcombine.high %v39_v51, %v39_v51  ;;  %v864_v57 = vcombine.low %v39_v51, %v39_v51  ;;  %v1156_v59 = vld [vmem:[%s1406_s0 + $0x10] ss:$20 sps:$4 sm:$0xff]   ;;  %v1157_v60 = vld [vmem:[%s1406_s0 + $0x88] ss:$20 sps:$4 sm:$0xff]   ;;  %v1158_v61 = vld [vmem:[%s1406_s0 + $0x38] ss:$20 sps:$4 sm:$0xff]  }
  0x14   :  { %962 = vmatpush3.bf16.msra.mxu0 %v1110_v18  ;;  %v1159_v62 = vld [vmem:[%s1406_s0 + $0xb0] ss:$0 sps:$4 sm:$0xff]   ;;  %v1160_v63 = vld [vmem:[%s1406_s0 + $0x60] ss:$20 sps:$4 sm:$0xff]  }
  0x15   :  { %1008 = vmatpush3.bf16.msra.mxu1 %v1111_v19  ;;  %963 = vmatprep.subr.bf16.mxu0 %v1112_v20 }
  0x16   :  { %1009 = vmatprep.subr.bf16.mxu1 %v1113_v21 }
  0x18   :  { %964 = vmatpush3.bf16.msra.mxu0 %v1114_v22 }
  0x19   :  { %1010 = vmatpush3.bf16.msra.mxu1 %v1115_v23  ;;  %965 = vmatprep.subr.bf16.mxu0 %v1116_v24 }
  0x1a   :  { %1011 = vmatprep.subr.bf16.mxu1 %v1117_v25 }
  0x1c   :  { %966 = vmatpush3.bf16.msra.mxu0 %v1118_v26 }
  0x1d   :  { %1012 = vmatpush3.bf16.msra.mxu1 %v1119_v27  ;;  %967 = vmatprep.subr.bf16.mxu0 %v1120_v28 }
  0x1e   :  { %1013 = vmatprep.subr.bf16.mxu1 %v1121_v29 }
  0x20   :  { %968 = vmatpush3.bf16.msra.mxu0 %v1122_v30 }
  0x21   :  { %1014 = vmatpush3.bf16.msra.mxu1 %v1123_v31  ;;  %1054 = vmatprep.subr.bf16.mxu0 %v1163_v34 }
  0x22   :  { %1082 = vmatprep.subr.bf16.mxu1 %v1163_v34 }
  0x23   :  { %496 = vmatmul.mubr.bf16.vlgmr.msra.gmra.mrb[0].mxu0 %v1124_v32 }
  0x24   :  { %568 = vmatmul.mubr.bf16.vlgmr.msra.gmra.mrb[0].mxu1 %v1127_v35  ;;  %1055 = vmatpush3.bf16.msra.mxu0 %v1130_v37 }
  0x25   :  { %503 = vmatprep.mubr.bf16.mxu0 %v1131_v38  ;;  %1056 = vmatprep.subr.bf16.mxu0 %v1163_v34 }
  0x26   :  { %575 = vmatprep.mubr.bf16.mxu1 %v1133_v39  ;;  %1086 = vmatpush3.bf16.msra.mxu1 %v1130_v37 }
  0x27   :  { %1083 = vmatprep.subr.bf16.mxu1 %v1163_v34 }
  0x28   :  { %1057 = vmatpush3.bf16.msra.mxu0 %v1137_v40 }
  0x29   :  { %1058 = vmatprep.subr.bf16.mxu0 %v1163_v34 }
  0x2a   :  { %1087 = vmatpush3.bf16.msra.mxu1 %v1137_v40 }
  0x2b   :  { %504 = vmatmul.mubr.bf16.gmra.mrb[4].mxu0 %v1135_v41  ;;  %1084 = vmatprep.subr.bf16.mxu1 %v1163_v34 }
  0x2c   :  { %576 = vmatmul.mubr.bf16.gmra.mrb[4].mxu1 %v1136_v42  ;;  %511 = vmatprep.mubr.bf16.mxu0 %v1138_v43 }
  0x2d   :  { %583 = vmatprep.mubr.bf16.mxu1 %v1140_v44  ;;  %1059 = vmatpush3.bf16.msra.mxu0 %v1144_v45 }
  0x2e   :  { %1060 = vmatprep.subr.bf16.mxu0 %v1163_v34  ;;  %1088 = vmatpush3.bf16.msra.mxu1 %v1144_v45 }
  0x2f   :  { %1085 = vmatprep.subr.bf16.mxu1 %v1163_v34 }
  0x31   :  { %1061 = vmatpush3.bf16.msra.mxu0 %v1153_v47 }
  0x32   :  { %1089 = vmatpush3.bf16.msra.mxu1 %v1153_v47 }
  0x33   :  { %512 = vmatmul.mubr.bf16.gmra.mrb[8].mxu0 %v1142_v46 }
  0x34   :  { %584 = vmatmul.mubr.bf16.gmra.mrb[8].mxu1 %v1143_v48  ;;  %519 = vmatprep.mubr.bf16.mxu0 %v1145_v49 }
  0x35   :  { %591 = vmatprep.mubr.bf16.mxu1 %v1147_v50 }
  0x3b   :  { %520 = vmatmul.mubr.bf16.gmra.mrb[12].mxu0 %v1149_v53 }
  0x3c   :  { %592 = vmatmul.mubr.bf16.gmra.mrb[12].mxu1 %v1150_v54  ;;  %527 = vmatprep.mubr.bf16.mxu0 %v865_v55 }
  0x3d   :  { %599 = vmatprep.mubr.bf16.mxu1 %v867_v56 }
  0x43   :  { %528 = vmatmul.mubr.bf16.gmra.mrb[16].mxu0 %v864_v57 }
  0x44   :  { %600 = vmatmul.mubr.bf16.gmra.mrb[16].mxu1 %v866_v58  ;;  %1062 = vmatprep.mubr.msk.bf16.mxu0 %vm1164_vm0, %v1163_v34 }
  0x45   :  { %1074 = vmatprep.mubr.msk.bf16.mxu1 %vm1164_vm0, %v1163_v34 }
  0x4b   :  { %1063 = vmatmul.mubr.msk.bf16.vlgmr.msra.gmra.mrb[20].mxu0 %vm447_vm1, %v1156_v59 }
  0x4c   :  { %1075 = vmatmul.mubr.msk.bf16.vlgmr.msra.gmra.mrb[20].mxu1 %vm447_vm1, %v1157_v60  ;;  %1066 = vmatprep.mubr.msk.bf16.mxu0 %vm1164_vm0, %v1163_v34 }
  0x4d   :  { %1078 = vmatprep.mubr.msk.bf16.mxu1 %vm1164_vm0, %v1163_v34 }
  0x53   :  { %1067 = vmatmul.mubr.msk.bf16.gmra.mrb[24].mxu0 %vm447_vm1, %v1158_v61 }
  0x54   :  { %1079 = vmatmul.mubr.msk.bf16.gmra.mrb[24].mxu1 %vm447_vm1, %v1159_v62  ;;  %1070 = vmatprep.mubr.msk.bf16.mxu0 %vm1164_vm0, %v1163_v34 }
  0x5b   :  { %1071 = vmatmul.mubr.msk.bf16.gmra.mrb[28].mxu0 %vm447_vm1, %v1160_v63 }
  0xf6   :  { %v969_v0 = vpop.f32.mrb[0].mxu0 }
  0xf7   :  { %v1015_v1 = vpop.f32.mrb[0].mxu1  ;;  %v970_v2 = vpop.f32.mrb[1].mxu0 }
  0xf8   :  { %v971_v3 = vadd.f32 %v970_v2, %v969_v0  ;;  %v1016_v4 = vpop.f32.mrb[1].mxu1  ;;  %v972_v5 = vpop.f32.mrb[2].mxu0 }
  0xf9   :  { %v1017_v6 = vadd.f32 %v1016_v4, %v1015_v1  ;;  %v1018_v7 = vpop.f32.mrb[2].mxu1  ;;  %v973_v8 = vpop.f32.mrb[3].mxu0 }
  0xfa   :  { %v974_v9 = vadd.f32 %v973_v8, %v972_v5  ;;  %v1019_v10 = vpop.f32.mrb[3].mxu1 }
  0xfb   :  { %v1020_v11 = vadd.f32 %v1019_v10, %v1018_v7  ;;  %v570_v12 = vadd.f32 %v1017_v6, %v971_v3 }
  0xfd   :  { %v573_v13 = vadd.f32 %v1020_v11, %v974_v9 }
  0xfe   :  { %v975_v14 = vpop.f32.mrb[4].mxu0 }
  0xff   :  { %v1021_v15 = vpop.f32.mrb[4].mxu1  ;;  %v976_v16 = vpop.f32.mrb[5].mxu0 }
 0x100   :  { %v977_v17 = vadd.f32 %v976_v16, %v975_v14  ;;  %v1022_v18 = vpop.f32.mrb[5].mxu1  ;;  %v978_v19 = vpop.f32.mrb[6].mxu0 }
 0x101   :  { %v1023_v20 = vadd.f32 %v1022_v18, %v1021_v15  ;;  %v1024_v21 = vpop.f32.mrb[6].mxu1  ;;  %v979_v22 = vpop.f32.mrb[7].mxu0 }
 0x102   :  { %v980_v23 = vadd.f32 %v979_v22, %v978_v19  ;;  %v1025_v24 = vpop.f32.mrb[7].mxu1 }
 0x103   :  { %v1026_v25 = vadd.f32 %v1025_v24, %v1024_v21  ;;  %v578_v26 = vadd.f32 %v1023_v20, %v977_v17 }
 0x105   :  { %v581_v27 = vadd.f32 %v1026_v25, %v980_v23 }
 0x106   :  { %v981_v28 = vpop.f32.mrb[8].mxu0 }
 0x107   :  { %v1027_v29 = vpop.f32.mrb[8].mxu1  ;;  %v982_v30 = vpop.f32.mrb[9].mxu0 }
 0x108   :  { %v983_v31 = vadd.f32 %v982_v30, %v981_v28  ;;  %v1028_v32 = vpop.f32.mrb[9].mxu1  ;;  %v984_v33 = vpop.f32.mrb[10].mxu0 }
 0x109   :  { %v1029_v34 = vadd.f32 %v1028_v32, %v1027_v29  ;;  %v1030_v35 = vpop.f32.mrb[10].mxu1  ;;  %v985_v36 = vpop.f32.mrb[11].mxu0 }
 0x10a   :  { %v986_v37 = vadd.f32 %v985_v36, %v984_v33  ;;  %v1031_v38 = vpop.f32.mrb[11].mxu1 }
 0x10b   :  { %v1032_v39 = vadd.f32 %v1031_v38, %v1030_v35  ;;  %v586_v40 = vadd.f32 %v1029_v34, %v983_v31 }
 0x10d   :  { %v589_v41 = vadd.f32 %v1032_v39, %v986_v37 }
 0x10e   :  { %v987_v42 = vpop.f32.mrb[12].mxu0 }
 0x10f   :  { %v1033_v43 = vpop.f32.mrb[12].mxu1  ;;  %v988_v44 = vpop.f32.mrb[13].mxu0 }
 0x110   :  { %v989_v45 = vadd.f32 %v988_v44, %v987_v42  ;;  %v1034_v46 = vpop.f32.mrb[13].mxu1  ;;  %v990_v47 = vpop.f32.mrb[14].mxu0 }
 0x111   :  { %v1035_v48 = vadd.f32 %v1034_v46, %v1033_v43  ;;  %v1036_v49 = vpop.f32.mrb[14].mxu1  ;;  %v991_v50 = vpop.f32.mrb[15].mxu0 }
 0x112   :  { %v992_v51 = vadd.f32 %v991_v50, %v990_v47  ;;  %v1037_v52 = vpop.f32.mrb[15].mxu1 }
 0x113   :  { %v1038_v53 = vadd.f32 %v1037_v52, %v1036_v49  ;;  %v594_v54 = vadd.f32 %v1035_v48, %v989_v45 }
 0x115   :  { %v597_v55 = vadd.f32 %v1038_v53, %v992_v51 }
 0x116   :  { %v993_v56 = vpop.f32.mrb[16].mxu0 }
 0x117   :  { %v1039_v57 = vpop.f32.mrb[16].mxu1  ;;  %v994_v58 = vpop.f32.mrb[17].mxu0 }
 0x118   :  { %v995_v59 = vadd.f32 %v994_v58, %v993_v56  ;;  %v1040_v60 = vpop.f32.mrb[17].mxu1  ;;  %v996_v61 = vpop.f32.mrb[18].mxu0 }
 0x119   :  { %v1041_v62 = vadd.f32 %v1040_v60, %v1039_v57  ;;  %v997_v63 = vpop.f32.mrb[19].mxu0  ;;  %v1042_v0 = vpop.f32.mrb[18].mxu1 }
 0x11a   :  { %v1043_v1 = vpop.f32.mrb[19].mxu1 }
 0x11b   :  { %v602_v2 = vadd.f32 %v1041_v62, %v995_v59 }
 0x11e   :  { %v641_v3 = vpop.f32.mrb[20].mxu0 }
 0x11f   :  { %v642_v4 = vadd.f32 %v641_v3, %v570_v12  ;;  %v665_v5 = vpop.f32.mrb[20].mxu1  ;;  %v1064_v6 = vpop.f32.mrb[21].mxu0 }
 0x120   :  { %v666_v7 = vadd.f32 %v665_v5, %v594_v54  ;;  %v1076_v8 = vpop.f32.mrb[21].mxu1  ;;  %v644_v9 = vpop.f32.mrb[22].mxu0 }
 0x121   :  { %v645_v10 = vadd.f32 %v644_v9, %v573_v13  ;;  %v668_v11 = vpop.f32.mrb[22].mxu1  ;;  %v1065_v14 = vpop.f32.mrb[23].mxu0 }
 0x122   :  { %v669_v15 = vadd.f32 %v668_v11, %v597_v55  ;;  %v1077_v16 = vpop.f32.mrb[23].mxu1 }
 0x123   :  { %v679_v17 = vadd.f32 %v645_v10, %v642_v4 }
 0x126   :  { %v649_v18 = vpop.f32.mrb[24].mxu0 }
 0x127   :  { %v650_v19 = vadd.f32 %v649_v18, %v578_v26  ;;  %v673_v20 = vpop.f32.mrb[24].mxu1  ;;  %v1068_v21 = vpop.f32.mrb[25].mxu0 }
 0x128   :  { %v674_v22 = vadd.f32 %v673_v20, %v602_v2  ;;  %v652_v23 = vpop.f32.mrb[26].mxu0  ;;  %v1080_v24 = vpop.f32.mrb[25].mxu1  ;;  %v910_v20 = vld [vmem:[%s1407_s2] ss:$0 sm:$0xff] }
 0x129   :  { %v680_v25 = vadd.f32 %v679_v17, %v650_v19  ;;  %v653_v12 = vadd.f32 %v652_v23, %v581_v27  ;;  %v1069_v28 = vpop.f32.mrb[27].mxu0  ;;  %v676_v29 = vpop.f32.mrb[26].mxu1 }
 0x12a   :  { %v1081_v30 = vpop.f32.mrb[27].mxu1 }
 0x12b   :  { %v681_v31 = vadd.f32 %v680_v25, %v653_v12  ;;  %v911_v30 = vld [vmem:[%s1407_s2 + $0x1] ss:$0 sm:$0xff] }
 0x12e   :  { %v657_v32 = vpop.f32.mrb[28].mxu0 }
 0x12f   :  { %v658_v13 = vadd.f32 %v657_v32, %v586_v40  ;;  %v1072_v33 = vpop.f32.mrb[29].mxu0 }
 0x130   :  { %v660_v34 = vpop.f32.mrb[30].mxu0 }
 0x131   :  { %v682_v35 = vadd.f32 %v681_v31, %v658_v13  ;;  %v661_v36 = vadd.f32 %v660_v34, %v589_v41  ;;  %v1073_v37 = vpop.f32.mrb[31].mxu0 }
 0x133   :  { %v683_v38 = vadd.f32 %v682_v35, %v661_v36 }
 0x135   :  { %v684_v26 = vadd.f32 %v683_v38, %v666_v7 }
 0x137   :  { %v685_v39 = vadd.f32 %v684_v26, %v669_v15 }
 0x139   :  { %v686_v42 = vadd.f32 %v685_v39, %v674_v22 }
 0x13b   :  { %v687_v43 = vrot.slane %v686_v42, 4 }
 0x13d   :  { %v688_v44 = vadd.f32 %v687_v43, %v686_v42 }
 0x13f   :  { %v689_v45 = vrot.slane %v688_v44, 2 }
 0x141   :  { %v690_v46 = vadd.f32 %v689_v45, %v688_v44 }
 0x143   :  { %v691_v27 = vrot.slane %v690_v46, 1 }
 0x145   :  { %v692_v47 = vadd.f32 %v691_v27, %v690_v46 }
 0x147   :  { %v694_v48 = vmul.f32 0.013888889, %v692_v47 }
 0x149   :  { %v695_v49 = vsub.f32 %v642_v4, %v694_v48  ;;  %v696_v50 = vsub.f32 %v645_v10, %v694_v48  ;;  %v697_v51 = vsub.f32 %v650_v19, %v694_v48  ;;  %v698_v40 = vsub.f32 %v653_v12, %v694_v48 }
 0x14a   :  { %v699_v52 = vsub.f32 %v658_v13, %v694_v48  ;;  %v700_v53 = vsub.f32 %v661_v36, %v694_v48  ;;  %v701_v54 = vsub.f32 %v666_v7, %v694_v48  ;;  %v702_v41 = vsub.f32 %v669_v15, %v694_v48 }
 0x14b   :  { %v703_v55 = vsub.f32 %v674_v22, %v694_v48  ;;  %v704_v56 = vmul.f32 %v695_v49, %v695_v49  ;;  %v705_v57 = vmul.f32 %v696_v50, %v696_v50  ;;  %v706_v58 = vmul.f32 %v697_v51, %v697_v51 }
 0x14c   :  { %v707_v60 = vmul.f32 %v698_v40, %v698_v40  ;;  %v708_v62 = vmul.f32 %v699_v52, %v699_v52  ;;  %v709_v0 = vmul.f32 %v700_v53, %v700_v53  ;;  %v710_v2 = vmul.f32 %v701_v54, %v701_v54 }
 0x14d   :  { %v713_v59 = vadd.f32 %v705_v57, %v704_v56  ;;  %v711_v4 = vmul.f32 %v702_v41, %v702_v41  ;;  %v712_v6 = vmul.f32 %v703_v55, %v703_v55 }
 0x14f   :  { %v714_v61 = vadd.f32 %v713_v59, %v706_v58 }
 0x151   :  { %v715_v63 = vadd.f32 %v714_v61, %v707_v60 }
 0x153   :  { %v716_v1 = vadd.f32 %v715_v63, %v708_v62 }
 0x155   :  { %v717_v3 = vadd.f32 %v716_v1, %v709_v0 }
 0x157   :  { %v718_v5 = vadd.f32 %v717_v3, %v710_v2 }
 0x159   :  { %v719_v8 = vadd.f32 %v718_v5, %v711_v4 }
 0x15b   :  { %v720_v9 = vadd.f32 %v719_v8, %v712_v6 }
 0x15d   :  { %v721_v7 = vrot.slane %v720_v9, 4 }
 0x15f   :  { %v722_v10 = vadd.f32 %v721_v7, %v720_v9 }
 0x161   :  { %v723_v11 = vrot.slane %v722_v10, 2 }
 0x163   :  { %v724_v14 = vadd.f32 %v723_v11, %v722_v10 }
 0x165   :  { %v725_v15 = vrot.slane %v724_v14, 1 }
 0x167   :  { %v726_v16 = vadd.f32 %v725_v15, %v724_v14 }
 0x169   :  { %v727_v17 = vmul.f32 0.013888889, %v726_v16 }
 0x16b   :  { %v728_v18 = vadd.f32 1e-05, %v727_v17 }
 0x16d   :  { %1161 = vrsqrt.f32 %v728_v18 }
 0x177   :  { %v1162_v19 = vpop.eup %1161 }
 0x178   :  { %v730_v21 = vmul.f32 %v1162_v19, %v695_v49  ;;  %v731_v22 = vmul.f32 %v1162_v19, %v696_v50  ;;  %v732_v23 = vmul.f32 %v1162_v19, %v697_v51  ;;  %v733_v24 = vmul.f32 %v1162_v19, %v698_v40 }
 0x179   :  { %v734_v25 = vmul.f32 %v1162_v19, %v699_v52  ;;  %v735_v12 = vmul.f32 %v1162_v19, %v700_v53  ;;  %v736_v28 = vmul.f32 %v1162_v19, %v701_v54  ;;  %v737_v29 = vmul.f32 %v1162_v19, %v702_v41 }
 0x17a   :  { %v738_v31 = vmul.f32 %v1162_v19, %v703_v55  ;;  %v744_v32 = vmul.f32 %v910_v20, %v730_v21  ;;  %v745_v13 = vmul.f32 %v910_v20, %v731_v22  ;;  %v746_v33 = vmul.f32 %v910_v20, %v732_v23 }
 0x17b   :  { %v747_v34 = vmul.f32 %v910_v20, %v733_v24  ;;  %v748_v35 = vmul.f32 %v910_v20, %v734_v25  ;;  %v749_v36 = vmul.f32 %v910_v20, %v735_v12  ;;  %v750_v37 = vmul.f32 %v910_v20, %v736_v28 }
 0x17c   :  { %v751_v38 = vmul.f32 %v910_v20, %v737_v29  ;;  %v752_v26 = vmul.f32 %v910_v20, %v738_v31  ;;  %v758_v39 = vadd.f32 %v911_v30, %v744_v32  ;;  %v759_v42 = vadd.f32 %v911_v30, %v745_v13 }
 0x17d   :  { %v760_v43 = vadd.f32 %v911_v30, %v746_v33  ;;  %v761_v44 = vadd.f32 %v911_v30, %v747_v34  ;;  %v762_v45 = vadd.f32 %v911_v30, %v748_v35  ;;  %v763_v46 = vadd.f32 %v911_v30, %v749_v36 }
 0x17e   :  { %v764_v27 = vadd.f32 %v911_v30, %v750_v37  ;;  %v765_v47 = vadd.f32 %v911_v30, %v751_v38  ;;  %v766_v48 = vadd.f32 %v911_v30, %v752_v26  ;;  %vm767_vm2 = vcmp.ge.f32.partialorder %v758_v39, 0.0 }
 0x17f   :  { %vm768_vm3 = vcmp.ge.f32.partialorder %v759_v42, 0.0  ;;  %vm769_vm4 = vcmp.ge.f32.partialorder %v760_v43, 0.0  ;;  %vm770_vm5 = vcmp.ge.f32.partialorder %v761_v44, 0.0  ;;  %vm771_vm6 = vcmp.ge.f32.partialorder %v762_v45, 0.0 }
 0x180   :  { %vm772_vm7 = vcmp.ge.f32.partialorder %v763_v46, 0.0  ;;  %vm773_vm8 = vcmp.ge.f32.partialorder %v764_v27, 0.0  ;;  %vm774_vm9 = vcmp.ge.f32.partialorder %v765_v47, 0.0  ;;  %vm775_vm10 = vcmp.ge.f32.partialorder %v766_v48, 0.0 }
 0x181   :  { %v776_v49 = vmul.f32 0.01, %v758_v39  ;;  %v777_v50 = vmul.f32 0.01, %v759_v42  ;;  %v778_v51 = vmul.f32 0.01, %v760_v43 }
 0x182   :  { %v779_v40 = vmul.f32 0.01, %v761_v44  ;;  %v780_v52 = vmul.f32 0.01, %v762_v45  ;;  %v781_v53 = vmul.f32 0.01, %v763_v46 }
 0x183   :  { %v782_v54 = vmul.f32 0.01, %v764_v27  ;;  %v783_v41 = vmul.f32 0.01, %v765_v47  ;;  %v784_v55 = vmul.f32 0.01, %v766_v48  ;;  %v785_v56 = vsel %vm767_vm2, %v758_v39, %v776_v49 }
 0x184   :  { %v786_v57 = vsel %vm768_vm3, %v759_v42, %v777_v50  ;;  %v787_v58 = vsel %vm769_vm4, %v760_v43, %v778_v51  ;;  %v788_v59 = vsel %vm770_vm5, %v761_v44, %v779_v40  ;;  %v789_v60 = vsel %vm771_vm6, %v762_v45, %v780_v52 }
 0x185   :  { %v790_v61 = vsel %vm772_vm7, %v763_v46, %v781_v53  ;;  %v791_v62 = vsel %vm773_vm8, %v764_v27, %v782_v54  ;;  %v792_v63 = vsel %vm774_vm9, %v765_v47, %v783_v41  ;;  %v793_v0 = vsel %vm775_vm10, %v766_v48, %v784_v55 }
 0x186   :  { %v929_v1 = vpack.c.bf16 %v793_v0, %v793_v0  ;;  %v933_v2 = vpack.c.bf16 %v786_v57, %v785_v56  ;;  %v938_v3 = vpack.c.bf16 %v788_v59, %v787_v58  ;;  %v943_v4 = vpack.c.bf16 %v790_v61, %v789_v60 }
 0x187   :  { %v948_v5 = vpack.c.bf16 %v792_v63, %v791_v62 }
 0x188   :  { %934 = vst [vmem:[%s1408_s3] sm:$0xff] %v933_v2   ;;  %950 = vst [vmem:[%s1408_s3 + $0x8] sm:$0xff] %v938_v3  }
 0x189   :  { %951 = vst [vmem:[%s1408_s3 + $0x10] sm:$0xff] %v943_v4   ;;  %839 = vst [vmem:[%s1408_s3 + $0x20] sm:$0xf] %v929_v1 }
 0x18a   :  { %952 = vst [vmem:[%s1408_s3 + $0x18] sm:$0xff] %v948_v5  }

// kernel: categorical_vae_forward.10
= control target key start
LH: loop header
LB: loop body
LE: loop exit
PB: predicated region body
PF: predicated region fallthrough
CT: control target
= control target key end

     0   :  { %vm1228_vm0 = vcmask 1041408   ;;  %s2343_s1 = inlined_call_operand.vmem [shape: bf16[1152,256], index: 1, kind: input, shape index: {}]   ;;  %s2344_s0 = inlined_call_operand.vmem [shape: bf16[18,1152], index: 0, kind: input, shape index: {}]   ;;  %s2345_s2 = inlined_call_operand.vmem [shape: f32[2,256], index: 2, kind: input, shape index: {}]   ;;  %s2346_s3 = inlined_call_operand.vmem [shape: bf16[18,256], index: 3, kind: output, shape index: {}]  }
   0x1   :  { %v1587_v0 = vld [vmem:[%s2343_s1 + $0x4] ss:$8 sps:$4 sm:$0xff]   ;;  %v1591_v2 = vld [vmem:[%s2343_s1] ss:$8 sps:$4 sm:$0xff]   ;;  %v1593_v4 = vld [vmem:[%s2343_s1 + $0x14] ss:$8 sps:$4 sm:$0xff]  }
   0x2   :  { %v1589_v1 = vld [vmem:[%s2343_s1 + $0x204] ss:$8 sps:$4 sm:$0xff]   ;;  %972 = vmatprep.subr.bf16.mxu1 %v1587_v0  ;;  %v1592_v3 = vld [vmem:[%s2343_s1 + $0x200] ss:$8 sps:$4 sm:$0xff]   ;;  %v1595_v5 = vld [vmem:[%s2343_s1 + $0x214] ss:$8 sps:$4 sm:$0xff]  }
   0x3   :  { %1074 = vmatprep.subr.bf16.mxu0 %v1589_v1  ;;  %973 = vmatpush1.bf16.msra.mxu1 %v1591_v2  ;;  %v1597_v6 = vld [vmem:[%s2343_s1 + $0x10] ss:$8 sps:$4 sm:$0xff]   ;;  %v1599_v8 = vld [vmem:[%s2343_s1 + $0x24] ss:$8 sps:$4 sm:$0xff]   ;;  %v1603_v10 = vld [vmem:[%s2343_s1 + $0x20] ss:$8 sps:$4 sm:$0xff]  }
   0x4   :  { %1075 = vmatpush1.bf16.msra.mxu0 %v1592_v3  ;;  %974 = vmatprep.subr.bf16.mxu1 %v1593_v4  ;;  %v1598_v7 = vld [vmem:[%s2343_s1 + $0x210] ss:$8 sps:$4 sm:$0xff]   ;;  %v1601_v9 = vld [vmem:[%s2343_s1 + $0x224] ss:$8 sps:$4 sm:$0xff]   ;;  %v1604_v11 = vld [vmem:[%s2343_s1 + $0x220] ss:$8 sps:$4 sm:$0xff]  }
   0x5   :  { %1076 = vmatprep.subr.bf16.mxu0 %v1595_v5  ;;  %v1605_v12 = vld [vmem:[%s2343_s1 + $0x34] ss:$8 sps:$4 sm:$0xff]   ;;  %v1609_v14 = vld [vmem:[%s2343_s1 + $0x30] ss:$8 sps:$4 sm:$0xff]   ;;  %v1611_v16 = vld [vmem:[%s2343_s1 + $0x44] ss:$8 sps:$4 sm:$0xff]  }
   0x6   :  { %v1607_v13 = vld [vmem:[%s2343_s1 + $0x234] ss:$8 sps:$4 sm:$0xff]   ;;  %v1610_v15 = vld [vmem:[%s2343_s1 + $0x230] ss:$8 sps:$4 sm:$0xff]   ;;  %v1613_v17 = vld [vmem:[%s2343_s1 + $0x244] ss:$8 sps:$4 sm:$0xff]  }
   0x7   :  { %975 = vmatpush1.bf16.msra.mxu1 %v1597_v6  ;;  %v1615_v18 = vld [vmem:[%s2343_s1 + $0x40] ss:$8 sps:$4 sm:$0xff]   ;;  %v1617_v20 = vld [vmem:[%s2343_s1 + $0x54] ss:$8 sps:$4 sm:$0xff]   ;;  %v1621_v22 = vld [vmem:[%s2343_s1 + $0x50] ss:$8 sps:$4 sm:$0xff]  }
   0x8   :  { %1077 = vmatpush1.bf16.msra.mxu0 %v1598_v7  ;;  %976 = vmatprep.subr.bf16.mxu1 %v1599_v8  ;;  %v1616_v19 = vld [vmem:[%s2343_s1 + $0x240] ss:$8 sps:$4 sm:$0xff]   ;;  %v1619_v21 = vld [vmem:[%s2343_s1 + $0x254] ss:$8 sps:$4 sm:$0xff]   ;;  %v1622_v23 = vld [vmem:[%s2343_s1 + $0x250] ss:$8 sps:$4 sm:$0xff]  }
   0x9   :  { %1078 = vmatprep.subr.bf16.mxu0 %v1601_v9  ;;  %v1623_v24 = vld [vmem:[%s2343_s1 + $0x64] ss:$8 sps:$4 sm:$0xff]   ;;  %v1627_v26 = vld [vmem:[%s2343_s1 + $0x60] ss:$8 sps:$4 sm:$0xff]   ;;  %v1629_v28 = vld [vmem:[%s2343_s1 + $0x74] ss:$8 sps:$4 sm:$0xff]  }
   0xa   :  { %v1625_v25 = vld [vmem:[%s2343_s1 + $0x264] ss:$8 sps:$4 sm:$0xff]   ;;  %v1628_v27 = vld [vmem:[%s2343_s1 + $0x260] ss:$8 sps:$4 sm:$0xff]   ;;  %v1631_v29 = vld [vmem:[%s2343_s1 + $0x274] ss:$8 sps:$4 sm:$0xff]  }
   0xb   :  { %977 = vmatpush1.bf16.msra.mxu1 %v1603_v10  ;;  %v1633_v30 = vld [vmem:[%s2343_s1 + $0x70] ss:$8 sps:$4 sm:$0xff]   ;;  %v1635_v32 = vld [vmem:[%s2343_s1 + $0x84] ss:$8 sps:$4 sm:$0xff]   ;;  %v1639_v34 = vld [vmem:[%s2343_s1 + $0x80] ss:$8 sps:$4 sm:$0xff]  }
   0xc   :  { %1079 = vmatpush1.bf16.msra.mxu0 %v1604_v11  ;;  %978 = vmatprep.subr.bf16.mxu1 %v1605_v12  ;;  %v1634_v31 = vld [vmem:[%s2343_s1 + $0x270] ss:$8 sps:$4 sm:$0xff]   ;;  %v1637_v33 = vld [vmem:[%s2343_s1 + $0x284] ss:$8 sps:$4 sm:$0xff]   ;;  %v1640_v35 = vld [vmem:[%s2343_s1 + $0x280] ss:$8 sps:$4 sm:$0xff]  }
   0xd   :  { %1080 = vmatprep.subr.bf16.mxu0 %v1607_v13  ;;  %v1641_v36 = vld [vmem:[%s2343_s1 + $0x94] ss:$8 sps:$4 sm:$0xff]   ;;  %v1645_v38 = vld [vmem:[%s2343_s1 + $0x90] ss:$8 sps:$4 sm:$0xff]   ;;  %v1647_v40 = vld [vmem:[%s2343_s1 + $0xa4] ss:$8 sps:$4 sm:$0xff]  }
   0xe   :  { %v1643_v37 = vld [vmem:[%s2343_s1 + $0x294] ss:$8 sps:$4 sm:$0xff]   ;;  %v1646_v39 = vld [vmem:[%s2343_s1 + $0x290] ss:$8 sps:$4 sm:$0xff]   ;;  %v1649_v41 = vld [vmem:[%s2343_s1 + $0x2a4] ss:$8 sps:$4 sm:$0xff]  }
   0xf   :  { %979 = vmatpush1.bf16.msra.mxu1 %v1609_v14  ;;  %v1651_v42 = vld [vmem:[%s2343_s1 + $0xa0] ss:$8 sps:$4 sm:$0xff]   ;;  %v1653_v44 = vld [vmem:[%s2343_s1 + $0xb4] ss:$8 sps:$4 sm:$0xff]   ;;  %v1657_v46 = vld [vmem:[%s2343_s1 + $0xb0] ss:$8 sps:$4 sm:$0xff]  }
  0x10   :  { %1081 = vmatpush1.bf16.msra.mxu0 %v1610_v15  ;;  %980 = vmatprep.subr.bf16.mxu1 %v1611_v16  ;;  %v1652_v43 = vld [vmem:[%s2343_s1 + $0x2a0] ss:$8 sps:$4 sm:$0xff]   ;;  %v1655_v45 = vld [vmem:[%s2343_s1 + $0x2b4] ss:$8 sps:$4 sm:$0xff]   ;;  %v1658_v47 = vld [vmem:[%s2343_s1 + $0x2b0] ss:$8 sps:$4 sm:$0xff]  }
  0x11   :  { %1082 = vmatprep.subr.bf16.mxu0 %v1613_v17  ;;  %v1685_v48 = vld [vmem:[%s2344_s0 + $0x4] ss:$36 sps:$4 sm:$0xff]   ;;  %v1691_v51 = vld [vmem:[%s2344_s0 + $0x14] ss:$36 sps:$4 sm:$0xff]  }
  0x12   :  { %v1659_v49 = vld [vmem:[%s2343_s1 + $0xc4] ss:$8 sps:$4 sm:$0xff]   ;;  %1004 = vmatprep.mubr.bf16.mxu1 %v1685_v48  ;;  %v1663_v52 = vld [vmem:[%s2343_s1 + $0xc0] ss:$8 sps:$4 sm:$0xff]   ;;  %v1665_v54 = vld [vmem:[%s2343_s1 + $0xd4] ss:$8 sps:$4 sm:$0xff]   ;;  %1106 = vmatprep.mubr.bf16.mxu0 %v1691_v51 }
  0x13   :  { %981 = vmatpush1.bf16.msra.mxu1 %v1615_v18  ;;  %v1661_v50 = vld [vmem:[%s2343_s1 + $0x2c4] ss:$8 sps:$4 sm:$0xff]   ;;  %v1664_v53 = vld [vmem:[%s2343_s1 + $0x2c0] ss:$8 sps:$4 sm:$0xff]   ;;  %v1667_v55 = vld [vmem:[%s2343_s1 + $0x2d4] ss:$8 sps:$4 sm:$0xff]  }
  0x14   :  { %1083 = vmatpush1.bf16.msra.mxu0 %v1616_v19  ;;  %982 = vmatprep.subr.bf16.mxu1 %v1617_v20  ;;  %v1669_v56 = vld [vmem:[%s2343_s1 + $0xd0] ss:$8 sps:$4 sm:$0xff]   ;;  %v1671_v58 = vld [vmem:[%s2343_s1 + $0xe4] ss:$8 sps:$4 sm:$0xff]   ;;  %v1675_v60 = vld [vmem:[%s2343_s1 + $0xe0] ss:$8 sps:$4 sm:$0xff]  }
  0x15   :  { %1084 = vmatprep.subr.bf16.mxu0 %v1619_v21  ;;  %v1670_v57 = vld [vmem:[%s2343_s1 + $0x2d0] ss:$8 sps:$4 sm:$0xff]   ;;  %v1673_v59 = vld [vmem:[%s2343_s1 + $0x2e4] ss:$8 sps:$4 sm:$0xff]   ;;  %v1676_v61 = vld [vmem:[%s2343_s1 + $0x2e0] ss:$8 sps:$4 sm:$0xff]  }
  0x16   :  { %v1677_v62 = vld [vmem:[%s2343_s1 + $0xf4] ss:$8 sps:$4 sm:$0xff]   ;;  %v1681_v0 = vld [vmem:[%s2343_s1 + $0xf0] ss:$8 sps:$4 sm:$0xff]   ;;  %v1688_v2 = vld [vmem:[%s2343_s1 + $0x104] ss:$8 sps:$4 sm:$0xff]  }
  0x17   :  { %983 = vmatpush1.bf16.msra.mxu1 %v1621_v22  ;;  %v1679_v63 = vld [vmem:[%s2343_s1 + $0x2f4] ss:$8 sps:$4 sm:$0xff]   ;;  %v1682_v1 = vld [vmem:[%s2343_s1 + $0x2f0] ss:$8 sps:$4 sm:$0xff]   ;;  %v1694_v3 = vld [vmem:[%s2343_s1 + $0x304] ss:$8 sps:$4 sm:$0xff]  }
  0x18   :  { %1085 = vmatpush1.bf16.msra.mxu0 %v1622_v23  ;;  %984 = vmatprep.subr.bf16.mxu1 %v1623_v24  ;;  %v1683_v4 = vld [vmem:[%s2344_s0] ss:$36 sps:$4 sm:$0xff]   ;;  %v1689_v6 = vld [vmem:[%s2344_s0 + $0x10] ss:$36 sps:$4 sm:$0xff]  }
  0x19   :  { %1086 = vmatprep.subr.bf16.mxu0 %v1625_v25  ;;  %v1686_v5 = vld [vmem:[%s2343_s1 + $0x100] ss:$8 sps:$4 sm:$0xff]   ;;  %v1697_v8 = vld [vmem:[%s2343_s1 + $0x114] ss:$8 sps:$4 sm:$0xff]   ;;  %v1695_v10 = vld [vmem:[%s2343_s1 + $0x110] ss:$8 sps:$4 sm:$0xff]  }
  0x1a   :  { %v1692_v7 = vld [vmem:[%s2343_s1 + $0x300] ss:$8 sps:$4 sm:$0xff]   ;;  %v1700_v9 = vld [vmem:[%s2343_s1 + $0x314] ss:$8 sps:$4 sm:$0xff]   ;;  %v1698_v11 = vld [vmem:[%s2343_s1 + $0x310] ss:$8 sps:$4 sm:$0xff]  }
  0x1b   :  { %985 = vmatpush1.bf16.msra.mxu1 %v1627_v26  ;;  %v1703_v12 = vld [vmem:[%s2343_s1 + $0x124] ss:$8 sps:$4 sm:$0xff]   ;;  %v1701_v14 = vld [vmem:[%s2343_s1 + $0x120] ss:$8 sps:$4 sm:$0xff]   ;;  %v1709_v16 = vld [vmem:[%s2343_s1 + $0x134] ss:$8 sps:$4 sm:$0xff]  }
  0x1c   :  { %1087 = vmatpush1.bf16.msra.mxu0 %v1628_v27  ;;  %986 = vmatprep.subr.bf16.mxu1 %v1629_v28  ;;  %v1706_v13 = vld [vmem:[%s2343_s1 + $0x324] ss:$8 sps:$4 sm:$0xff]   ;;  %v1704_v15 = vld [vmem:[%s2343_s1 + $0x320] ss:$8 sps:$4 sm:$0xff]   ;;  %v1712_v17 = vld [vmem:[%s2343_s1 + $0x334] ss:$8 sps:$4 sm:$0xff]  }
  0x1d   :  { %1088 = vmatprep.subr.bf16.mxu0 %v1631_v29  ;;  %v1707_v18 = vld [vmem:[%s2343_s1 + $0x130] ss:$8 sps:$4 sm:$0xff]   ;;  %v1715_v20 = vld [vmem:[%s2343_s1 + $0x144] ss:$8 sps:$4 sm:$0xff]   ;;  %v1713_v22 = vld [vmem:[%s2343_s1 + $0x140] ss:$8 sps:$4 sm:$0xff]  }
  0x1e   :  { %v1710_v19 = vld [vmem:[%s2343_s1 + $0x330] ss:$8 sps:$4 sm:$0xff]   ;;  %v1718_v21 = vld [vmem:[%s2343_s1 + $0x344] ss:$8 sps:$4 sm:$0xff]   ;;  %v1716_v23 = vld [vmem:[%s2343_s1 + $0x340] ss:$8 sps:$4 sm:$0xff]  }
  0x1f   :  { %987 = vmatpush1.bf16.msra.mxu1 %v1633_v30  ;;  %v1721_v24 = vld [vmem:[%s2343_s1 + $0x154] ss:$8 sps:$4 sm:$0xff]   ;;  %v25_v26 = vld [vmem:[%s2344_s0 + $0x48] sm:$0x11]  ;;  %v1719_v30 = vld [vmem:[%s2343_s1 + $0x150] ss:$8 sps:$4 sm:$0xff]  }
  0x20   :  { %1089 = vmatpush1.bf16.msra.mxu0 %v1634_v31  ;;  %988 = vmatprep.subr.bf16.mxu1 %v1635_v32  ;;  %v1724_v25 = vld [vmem:[%s2343_s1 + $0x354] ss:$8 sps:$4 sm:$0xff]   ;;  %v1383_v27 = vcombine.high %v25_v26, %v25_v26  ;;  %v1382_v29 = vcombine.low %v25_v26, %v25_v26  ;;  %v1722_v31 = vld [vmem:[%s2343_s1 + $0x350] ss:$8 sps:$4 sm:$0xff]  }
  0x21   :  { %1090 = vmatprep.subr.bf16.mxu0 %v1637_v33  ;;  %v27_v28 = vld [vmem:[%s2344_s0 + $0x58] sm:$0x11] }
  0x22   :  { %v1387_v32 = vcombine.high %v27_v28, %v27_v28  ;;  %v1386_v33 = vcombine.low %v27_v28, %v27_v28  ;;  %v1745_v48 = vld [vmem:[%s2343_s1 + $0x194] ss:$8 sps:$4 sm:$0xff]   ;;  %v1746_v51 = vld [vmem:[%s2343_s1 + $0x390] ss:$8 sps:$4 sm:$0xff]   ;;  %v1813_v28 = vld [vmem:[%s2343_s1 + $0x444] ss:$8 sps:$4 sm:$0xff]  }
  0x23   :  { %989 = vmatpush1.bf16.msra.mxu1 %v1639_v34  ;;  %v1727_v34 = vld [vmem:[%s2343_s1 + $0x164] ss:$8 sps:$4 sm:$0xff]   ;;  %v1810_v26 = vld [vmem:[%s2343_s1 + $0x434] ss:$8 sps:$4 sm:$0xff]  }
  0x24   :  { %1091 = vmatpush1.bf16.msra.mxu0 %v1640_v35  ;;  %990 = vmatprep.subr.bf16.mxu1 %v1641_v36  ;;  %v1730_v35 = vld [vmem:[%s2343_s1 + $0x364] ss:$8 sps:$4 sm:$0xff]   ;;  %v1725_v36 = vld [vmem:[%s2343_s1 + $0x160] ss:$8 sps:$4 sm:$0xff]  }
  0x25   :  { %1092 = vmatprep.subr.bf16.mxu0 %v1643_v37  ;;  %v1728_v37 = vld [vmem:[%s2343_s1 + $0x360] ss:$8 sps:$4 sm:$0xff]  }
  0x27   :  { %991 = vmatpush1.bf16.msra.mxu1 %v1645_v38  ;;  %v1733_v38 = vld [vmem:[%s2343_s1 + $0x174] ss:$8 sps:$4 sm:$0xff]  }
  0x28   :  { %1093 = vmatpush1.bf16.msra.mxu0 %v1646_v39  ;;  %992 = vmatprep.subr.bf16.mxu1 %v1647_v40  ;;  %v1736_v39 = vld [vmem:[%s2343_s1 + $0x374] ss:$8 sps:$4 sm:$0xff]   ;;  %v1791_v40 = vld [vmem:[%s2344_s0 + $0xc] ss:$36 sps:$4 sm:$0xff]  }
  0x29   :  { %1094 = vmatprep.subr.bf16.mxu0 %v1649_v41  ;;  %v1794_v41 = vld [vmem:[%s2344_s0 + $0x1c] ss:$36 sps:$4 sm:$0xff]  }
  0x2b   :  { %993 = vmatpush1.bf16.msra.mxu1 %v1651_v42  ;;  %v1731_v42 = vld [vmem:[%s2343_s1 + $0x170] ss:$8 sps:$4 sm:$0xff]  }
  0x2c   :  { %1095 = vmatpush1.bf16.msra.mxu0 %v1652_v43  ;;  %994 = vmatprep.subr.bf16.mxu1 %v1653_v44  ;;  %v1734_v43 = vld [vmem:[%s2343_s1 + $0x370] ss:$8 sps:$4 sm:$0xff]   ;;  %v1739_v44 = vld [vmem:[%s2343_s1 + $0x184] ss:$8 sps:$4 sm:$0xff]  }
  0x2d   :  { %1096 = vmatprep.subr.bf16.mxu0 %v1655_v45  ;;  %v1742_v45 = vld [vmem:[%s2343_s1 + $0x384] ss:$8 sps:$4 sm:$0xff]  }
  0x2f   :  { %995 = vmatpush1.bf16.msra.mxu1 %v1657_v46  ;;  %v1737_v46 = vld [vmem:[%s2343_s1 + $0x180] ss:$8 sps:$4 sm:$0xff]  }
  0x30   :  { %1097 = vmatpush1.bf16.msra.mxu0 %v1658_v47  ;;  %996 = vmatprep.subr.bf16.mxu1 %v1659_v49  ;;  %v1740_v47 = vld [vmem:[%s2343_s1 + $0x380] ss:$8 sps:$4 sm:$0xff]   ;;  %v1748_v49 = vld [vmem:[%s2343_s1 + $0x394] ss:$8 sps:$4 sm:$0xff]  }
  0x31   :  { %1098 = vmatprep.subr.bf16.mxu0 %v1661_v50  ;;  %v1743_v50 = vld [vmem:[%s2343_s1 + $0x190] ss:$8 sps:$4 sm:$0xff]  }
  0x33   :  { %997 = vmatpush1.bf16.msra.mxu1 %v1663_v52  ;;  %v1751_v52 = vld [vmem:[%s2343_s1 + $0x1a4] ss:$8 sps:$4 sm:$0xff]  }
  0x34   :  { %1099 = vmatpush1.bf16.msra.mxu0 %v1664_v53  ;;  %998 = vmatprep.subr.bf16.mxu1 %v1665_v54  ;;  %v1754_v53 = vld [vmem:[%s2343_s1 + $0x3a4] ss:$8 sps:$4 sm:$0xff]   ;;  %v1749_v54 = vld [vmem:[%s2343_s1 + $0x1a0] ss:$8 sps:$4 sm:$0xff]  }
  0x35   :  { %1100 = vmatprep.subr.bf16.mxu0 %v1667_v55  ;;  %v1752_v55 = vld [vmem:[%s2343_s1 + $0x3a0] ss:$8 sps:$4 sm:$0xff]  }
  0x37   :  { %999 = vmatpush1.bf16.msra.mxu1 %v1669_v56  ;;  %v1757_v56 = vld [vmem:[%s2343_s1 + $0x1b4] ss:$8 sps:$4 sm:$0xff]  }
  0x38   :  { %1101 = vmatpush1.bf16.msra.mxu0 %v1670_v57  ;;  %1000 = vmatprep.subr.bf16.mxu1 %v1671_v58  ;;  %v1760_v57 = vld [vmem:[%s2343_s1 + $0x3b4] ss:$8 sps:$4 sm:$0xff]   ;;  %v1755_v58 = vld [vmem:[%s2343_s1 + $0x1b0] ss:$8 sps:$4 sm:$0xff]  }
  0x39   :  { %1102 = vmatprep.subr.bf16.mxu0 %v1673_v59  ;;  %v1758_v59 = vld [vmem:[%s2343_s1 + $0x3b0] ss:$8 sps:$4 sm:$0xff]  }
  0x3b   :  { %1001 = vmatpush1.bf16.msra.mxu1 %v1675_v60  ;;  %v1763_v60 = vld [vmem:[%s2343_s1 + $0x1c4] ss:$8 sps:$4 sm:$0xff]  }
  0x3c   :  { %1103 = vmatpush1.bf16.msra.mxu0 %v1676_v61  ;;  %1002 = vmatprep.subr.bf16.mxu1 %v1677_v62  ;;  %v1766_v61 = vld [vmem:[%s2343_s1 + $0x3c4] ss:$8 sps:$4 sm:$0xff]   ;;  %v1761_v62 = vld [vmem:[%s2343_s1 + $0x1c0] ss:$8 sps:$4 sm:$0xff]  }
  0x3d   :  { %1104 = vmatprep.subr.bf16.mxu0 %v1679_v63  ;;  %v1764_v63 = vld [vmem:[%s2343_s1 + $0x3c0] ss:$8 sps:$4 sm:$0xff]  }
  0x3f   :  { %1003 = vmatpush1.bf16.msra.mxu1 %v1681_v0  ;;  %v1769_v0 = vld [vmem:[%s2343_s1 + $0x1d4] ss:$8 sps:$4 sm:$0xff]  }
  0x40   :  { %1105 = vmatpush1.bf16.msra.mxu0 %v1682_v1  ;;  %1023 = vmatprep.subr.bf16.mxu1 %v1688_v2  ;;  %v1772_v1 = vld [vmem:[%s2343_s1 + $0x3d4] ss:$8 sps:$4 sm:$0xff]   ;;  %v1767_v2 = vld [vmem:[%s2343_s1 + $0x1d0] ss:$8 sps:$4 sm:$0xff]  }
  0x41   :  { %1125 = vmatprep.subr.bf16.mxu0 %v1694_v3  ;;  %v1770_v3 = vld [vmem:[%s2343_s1 + $0x3d0] ss:$8 sps:$4 sm:$0xff]  }
  0x42   :  { %1005 = vmatmul.mubr.bf16.vlgmr.msra.gmra.mrb[0].mxu1 %v1683_v4  ;;  %v1778_v4 = vld [vmem:[%s2343_s1 + $0x1e4] ss:$8 sps:$4 sm:$0xff]  }
  0x43   :  { %1107 = vmatmul.mubr.bf16.vlgmr.msra.gmra.mrb[0].mxu0 %v1689_v6  ;;  %1024 = vmatpush1.bf16.msra.mxu1 %v1686_v5  ;;  %v1782_v5 = vld [vmem:[%s2343_s1 + $0x3e4] ss:$8 sps:$4 sm:$0xff]   ;;  %v1776_v6 = vld [vmem:[%s2343_s1 + $0x1e0] ss:$8 sps:$4 sm:$0xff]  }
  0x44   :  { %1126 = vmatpush1.bf16.msra.mxu0 %v1692_v7  ;;  %1025 = vmatprep.subr.bf16.mxu1 %v1697_v8  ;;  %v1780_v7 = vld [vmem:[%s2343_s1 + $0x3e0] ss:$8 sps:$4 sm:$0xff]   ;;  %v1785_v8 = vld [vmem:[%s2343_s1 + $0x1f4] ss:$8 sps:$4 sm:$0xff]  }
  0x45   :  { %1127 = vmatprep.subr.bf16.mxu0 %v1700_v9  ;;  %1014 = vmatprep.mubr.bf16.mxu1 %v1383_v27  ;;  %v1788_v9 = vld [vmem:[%s2343_s1 + $0x3f4] ss:$8 sps:$4 sm:$0xff]   ;;  %v1808_v27 = vld [vmem:[%s2343_s1 + $0x430] ss:$8 sps:$4 sm:$0xff]  }
  0x46   :  { %1116 = vmatprep.mubr.bf16.mxu0 %v1387_v32  ;;  %v1814_v32 = vld [vmem:[%s2343_s1 + $0x450] ss:$8 sps:$4 sm:$0xff]  }
  0x47   :  { %1026 = vmatpush1.bf16.msra.mxu1 %v1695_v10  ;;  %v1783_v10 = vld [vmem:[%s2343_s1 + $0x1f0] ss:$8 sps:$4 sm:$0xff]  }
  0x48   :  { %1128 = vmatpush1.bf16.msra.mxu0 %v1698_v11  ;;  %1027 = vmatprep.subr.bf16.mxu1 %v1703_v12  ;;  %v1786_v11 = vld [vmem:[%s2343_s1 + $0x3f0] ss:$8 sps:$4 sm:$0xff]   ;;  %v1797_v12 = vld [vmem:[%s2343_s1 + $0x404] ss:$8 sps:$4 sm:$0xff]  }
  0x49   :  { %1129 = vmatprep.subr.bf16.mxu0 %v1706_v13  ;;  %v1789_v13 = vld [vmem:[%s2344_s0 + $0x8] ss:$36 sps:$4 sm:$0xff]  }
  0x4a   :  { %1015 = vmatmul.mubr.bf16.gmra.mrb[4].mxu1 %v1382_v29  ;;  %v1829_v29 = vmov 0  }
  0x4b   :  { %1028 = vmatpush1.bf16.msra.mxu1 %v1701_v14  ;;  %1117 = vmatmul.mubr.bf16.gmra.mrb[4].mxu0 %v1386_v33  ;;  %v1792_v14 = vld [vmem:[%s2344_s0 + $0x18] ss:$36 sps:$4 sm:$0xff]   ;;  %v1819_v33 = vld [vmem:[%s2343_s1 + $0x464] ss:$8 sps:$4 sm:$0xff]  }
  0x4c   :  { %1130 = vmatpush1.bf16.msra.mxu0 %v1704_v15  ;;  %1029 = vmatprep.subr.bf16.mxu1 %v1709_v16  ;;  %v26_v15 = vld [vmem:[%s2344_s0 + $0x50] sm:$0x11]  ;;  %v28_v16 = vld [vmem:[%s2344_s0 + $0x60] sm:$0x11] }
  0x4d   :  { %1131 = vmatprep.subr.bf16.mxu0 %v1712_v17  ;;  %1055 = vmatprep.mubr.bf16.mxu1 %v1791_v40  ;;  %v1795_v17 = vld [vmem:[%s2343_s1 + $0x400] ss:$8 sps:$4 sm:$0xff]  }
  0x4e   :  { %1157 = vmatprep.mubr.bf16.mxu0 %v1794_v41 }
  0x4f   :  { %1030 = vmatpush1.bf16.msra.mxu1 %v1707_v18  ;;  %v1800_v18 = vld [vmem:[%s2343_s1 + $0x414] ss:$8 sps:$4 sm:$0xff]  }
  0x50   :  { %1132 = vmatpush1.bf16.msra.mxu0 %v1710_v19  ;;  %1031 = vmatprep.subr.bf16.mxu1 %v1715_v20  ;;  %v1385_v19 = vcombine.high %v26_v15, %v26_v15  ;;  %v1389_v20 = vcombine.high %v28_v16, %v28_v16 }
  0x51   :  { %1133 = vmatprep.subr.bf16.mxu0 %v1718_v21  ;;  %v1798_v21 = vld [vmem:[%s2343_s1 + $0x410] ss:$8 sps:$4 sm:$0xff]  }
  0x53   :  { %1032 = vmatpush1.bf16.msra.mxu1 %v1713_v22  ;;  %v1807_v22 = vld [vmem:[%s2343_s1 + $0x424] ss:$8 sps:$4 sm:$0xff]  }
  0x54   :  { %1134 = vmatpush1.bf16.msra.mxu0 %v1716_v23  ;;  %1033 = vmatprep.subr.bf16.mxu1 %v1721_v24  ;;  %v1384_v23 = vcombine.low %v26_v15, %v26_v15  ;;  %v1388_v24 = vcombine.low %v28_v16, %v28_v16 }
  0x55   :  { %1135 = vmatprep.subr.bf16.mxu0 %v1724_v25  ;;  %v1805_v25 = vld [vmem:[%s2343_s1 + $0x420] ss:$8 sps:$4 sm:$0xff]  }
  0x57   :  { %1034 = vmatpush1.bf16.msra.mxu1 %v1719_v30  ;;  %v1811_v30 = vld [vmem:[%s2343_s1 + $0x440] ss:$8 sps:$4 sm:$0xff]  }
  0x58   :  { %1136 = vmatpush1.bf16.msra.mxu0 %v1722_v31  ;;  %1035 = vmatprep.subr.bf16.mxu1 %v1727_v34  ;;  %v1816_v31 = vld [vmem:[%s2343_s1 + $0x454] ss:$8 sps:$4 sm:$0xff]   ;;  %v1817_v34 = vld [vmem:[%s2343_s1 + $0x460] ss:$8 sps:$4 sm:$0xff]  }
  0x59   :  { %1137 = vmatprep.subr.bf16.mxu0 %v1730_v35  ;;  %v1822_v35 = vld [vmem:[%s2343_s1 + $0x474] ss:$8 sps:$4 sm:$0xff]  }
  0x5b   :  { %1036 = vmatpush1.bf16.msra.mxu1 %v1725_v36  ;;  %v1820_v36 = vld [vmem:[%s2343_s1 + $0x470] ss:$8 sps:$4 sm:$0xff]  }
  0x5c   :  { %1138 = vmatpush1.bf16.msra.mxu0 %v1728_v37  ;;  %1037 = vmatprep.subr.bf16.mxu1 %v1733_v38  ;;  %v1823_v37 = vld [vmem:[%s2344_s0 + $0x20] ss:$36 sps:$4 sm:$0xff]   ;;  %v1824_v38 = vld [vmem:[%s2344_s0 + $0x68] ss:$0 sps:$4 sm:$0x11]  }
  0x5d   :  { %1139 = vmatprep.subr.bf16.mxu0 %v1736_v39 }
  0x5f   :  { %1038 = vmatpush1.bf16.msra.mxu1 %v1731_v42 }
  0x60   :  { %1140 = vmatpush1.bf16.msra.mxu0 %v1734_v43  ;;  %1039 = vmatprep.subr.bf16.mxu1 %v1739_v44 }
  0x61   :  { %1141 = vmatprep.subr.bf16.mxu0 %v1742_v45 }
  0x63   :  { %1040 = vmatpush1.bf16.msra.mxu1 %v1737_v46 }
  0x64   :  { %1142 = vmatpush1.bf16.msra.mxu0 %v1740_v47  ;;  %1041 = vmatprep.subr.bf16.mxu1 %v1745_v48 }
  0x65   :  { %1143 = vmatprep.subr.bf16.mxu0 %v1748_v49 }
  0x67   :  { %1042 = vmatpush1.bf16.msra.mxu1 %v1743_v50 }
  0x68   :  { %1144 = vmatpush1.bf16.msra.mxu0 %v1746_v51  ;;  %1043 = vmatprep.subr.bf16.mxu1 %v1751_v52 }
  0x69   :  { %1145 = vmatprep.subr.bf16.mxu0 %v1754_v53 }
  0x6b   :  { %1044 = vmatpush1.bf16.msra.mxu1 %v1749_v54 }
  0x6c   :  { %1146 = vmatpush1.bf16.msra.mxu0 %v1752_v55  ;;  %1045 = vmatprep.subr.bf16.mxu1 %v1757_v56 }
  0x6d   :  { %1147 = vmatprep.subr.bf16.mxu0 %v1760_v57 }
  0x6f   :  { %1046 = vmatpush1.bf16.msra.mxu1 %v1755_v58 }
  0x70   :  { %1148 = vmatpush1.bf16.msra.mxu0 %v1758_v59  ;;  %1047 = vmatprep.subr.bf16.mxu1 %v1763_v60 }
  0x71   :  { %1149 = vmatprep.subr.bf16.mxu0 %v1766_v61 }
  0x73   :  { %1048 = vmatpush1.bf16.msra.mxu1 %v1761_v62 }
  0x74   :  { %1150 = vmatpush1.bf16.msra.mxu0 %v1764_v63  ;;  %1049 = vmatprep.subr.bf16.mxu1 %v1769_v0 }
  0x75   :  { %1151 = vmatprep.subr.bf16.mxu0 %v1772_v1 }
  0x77   :  { %1050 = vmatpush1.bf16.msra.mxu1 %v1767_v2 }
  0x78   :  { %1152 = vmatpush1.bf16.msra.mxu0 %v1770_v3  ;;  %1051 = vmatprep.subr.bf16.mxu1 %v1778_v4 }
  0x79   :  { %1153 = vmatprep.subr.bf16.mxu0 %v1782_v5 }
  0x7b   :  { %1052 = vmatpush1.bf16.msra.mxu1 %v1776_v6 }
  0x7c   :  { %1154 = vmatpush1.bf16.msra.mxu0 %v1780_v7  ;;  %1053 = vmatprep.subr.bf16.mxu1 %v1785_v8 }
  0x7d   :  { %1155 = vmatprep.subr.bf16.mxu0 %v1788_v9 }
  0x7f   :  { %1054 = vmatpush1.bf16.msra.mxu1 %v1783_v10 }
  0x80   :  { %1156 = vmatpush1.bf16.msra.mxu0 %v1786_v11  ;;  %1542 = vmatprep.subr.bf16.mxu1 %v1797_v12 }
  0x81   :  { %1176 = vmatprep.subr.bf16.mxu0 %v1797_v12 }
  0x82   :  { %1056 = vmatmul.mubr.bf16.vlgmr.msra.gmra.mrb[0].mxu1 %v1789_v13 }
  0x83   :  { %1158 = vmatmul.mubr.bf16.vlgmr.msra.gmra.mrb[0].mxu0 %v1792_v14  ;;  %1550 = vmatpush1.bf16.msra.mxu1 %v1795_v17 }
  0x84   :  { %1177 = vmatpush1.bf16.msra.mxu0 %v1795_v17  ;;  %1543 = vmatprep.subr.bf16.mxu1 %v1800_v18 }
  0x85   :  { %1178 = vmatprep.subr.bf16.mxu0 %v1800_v18  ;;  %1065 = vmatprep.mubr.bf16.mxu1 %v1385_v19 }
  0x86   :  { %1167 = vmatprep.mubr.bf16.mxu0 %v1389_v20 }
  0x87   :  { %1551 = vmatpush1.bf16.msra.mxu1 %v1798_v21 }
  0x88   :  { %1179 = vmatpush1.bf16.msra.mxu0 %v1798_v21  ;;  %1544 = vmatprep.subr.bf16.mxu1 %v1807_v22 }
  0x89   :  { %1180 = vmatprep.subr.bf16.mxu0 %v1807_v22 }
  0x8a   :  { %1066 = vmatmul.mubr.bf16.gmra.mrb[4].mxu1 %v1384_v23 }
  0x8b   :  { %1168 = vmatmul.mubr.bf16.gmra.mrb[4].mxu0 %v1388_v24  ;;  %1552 = vmatpush1.bf16.msra.mxu1 %v1805_v25 }
  0x8c   :  { %1181 = vmatpush1.bf16.msra.mxu0 %v1805_v25  ;;  %1545 = vmatprep.subr.bf16.mxu1 %v1810_v26 }
  0x8d   :  { %1182 = vmatprep.subr.bf16.mxu0 %v1810_v26  ;;  %1208 = vmatprep.mubr.bf16.mxu0 %v1829_v29 }
  0x8e   :  { %1218 = vmatprep.mubr.bf16.mxu1 %v1829_v29 }
  0x8f   :  { %1553 = vmatpush1.bf16.msra.mxu1 %v1808_v27 }
  0x90   :  { %1183 = vmatpush1.bf16.msra.mxu0 %v1808_v27  ;;  %1546 = vmatprep.subr.bf16.mxu1 %v1813_v28 }
  0x91   :  { %1184 = vmatprep.subr.bf16.mxu0 %v1813_v28 }
  0x93   :  { %1554 = vmatpush1.bf16.msra.mxu1 %v1811_v30 }
  0x94   :  { %1185 = vmatpush1.bf16.msra.mxu0 %v1811_v30  ;;  %1547 = vmatprep.subr.bf16.mxu1 %v1816_v31 }
  0x95   :  { %1186 = vmatprep.subr.bf16.mxu0 %v1816_v31 }
  0x97   :  { %1555 = vmatpush1.bf16.msra.mxu1 %v1814_v32 }
  0x98   :  { %1187 = vmatpush1.bf16.msra.mxu0 %v1814_v32  ;;  %1548 = vmatprep.subr.bf16.mxu1 %v1819_v33 }
  0x99   :  { %1188 = vmatprep.subr.bf16.mxu0 %v1819_v33 }
  0x9b   :  { %1556 = vmatpush1.bf16.msra.mxu1 %v1817_v34 }
  0x9c   :  { %1189 = vmatpush1.bf16.msra.mxu0 %v1817_v34  ;;  %1549 = vmatprep.subr.bf16.mxu1 %v1822_v35 }
  0x9d   :  { %1190 = vmatprep.subr.bf16.mxu0 %v1822_v35 }
  0x9f   :  { %1557 = vmatpush1.bf16.msra.mxu1 %v1820_v36 }
  0xa0   :  { %1191 = vmatpush1.bf16.msra.mxu0 %v1820_v36 }
  0xa2   :  { %1219 = vmatmul.mubr.bf16.vlgmr.msra.gmra.mrb[8].mxu1 %v1824_v38 }
  0xa3   :  { %1209 = vmatmul.mubr.bf16.vlgmr.msra.gmra.mrb[0].mxu0 %v1823_v37 }
 0x155   :  { %v1057_v39 = vpop.f32.mrb[0].mxu1 }
 0x156   :  { %v1059_v40 = vpop.f32.mrb[1].mxu1 }
 0x157   :  { %v1061_v41 = vpop.f32.mrb[2].mxu1 }
 0x158   :  { %v1063_v42 = vpop.f32.mrb[3].mxu1 }
 0x15d   :  { %v1067_v43 = vpop.f32.mrb[4].mxu1 }
 0x15e   :  { %v1169_v44 = vpop.f32.mrb[4].mxu0  ;;  %v1069_v46 = vpop.f32.mrb[5].mxu1 }
 0x15f   :  { %v1562_v45 = vadd.f32 %v1169_v44, %v1067_v43  ;;  %v1171_v47 = vpop.f32.mrb[5].mxu0  ;;  %v1071_v49 = vpop.f32.mrb[6].mxu1 }
 0x160   :  { %v1564_v48 = vadd.f32 %v1171_v47, %v1069_v46  ;;  %v1173_v50 = vpop.f32.mrb[6].mxu0  ;;  %v1072_v51 = vpop.f32.mrb[7].mxu1 }
 0x161   :  { %v1174_v52 = vpop.f32.mrb[7].mxu0 }
 0x175   :  { %v1220_v54 = vpop.f32.mrb[8].mxu1 }
 0x176   :  { %v1210_v53 = vpop.f32.mrb[0].mxu0  ;;  %v1563_v56 = vadd.f32 %v1562_v45, %v1220_v54  ;;  %v1222_v58 = vpop.f32.mrb[9].mxu1  ;;  %v1293_v54 = vlaneseq }
 0x177   :  { %v1558_v55 = vadd.f32 %v1210_v53, %v1057_v39  ;;  %v1212_v57 = vpop.f32.mrb[1].mxu0  ;;  %v1565_v60 = vadd.f32 %v1564_v48, %v1222_v58  ;;  %v1224_v62 = vpop.f32.mrb[10].mxu1 }
 0x178   :  { %v1559_v59 = vadd.f32 %v1212_v57, %v1059_v40  ;;  %v1214_v61 = vpop.f32.mrb[2].mxu0  ;;  %v1225_v1 = vpop.f32.mrb[11].mxu1  ;;  %v1229_v4 = vsel %vm1228_vm0, %v1563_v56, 0.0  ;;  %v1294_v58 = vshrl.u32 %v1293_v54, 7 }
 0x179   :  { %v1560_v63 = vadd.f32 %v1214_v61, %v1061_v41  ;;  %v1216_v0 = vpop.f32.mrb[3].mxu0  ;;  %v1238_v6 = vsel %vm1228_vm0, %v1565_v60, 0.0  ;;  %v1535_v62 = vld [vmem:[%s2345_s2 + $0x1] ss:$2 sm:$0x3] }
 0x17a   :  { %v1561_v2 = vadd.f32 %v1216_v0, %v1063_v42  ;;  %v1299_v61 = vsub.s32 1, %v1294_v58 }
 0x17b   :  { %v1227_v3 = vadd.f32 %v1560_v63, %v1558_v55 }
 0x17c   :  { %v1237_v5 = vadd.f32 %v1561_v2, %v1559_v59 }
 0x17d   :  { %v1230_v7 = vadd.f32 %v1229_v4, %v1227_v3 }
 0x17e   :  { %v1239_v8 = vadd.f32 %v1238_v6, %v1237_v5 }
 0x17f   :  { %v1231_v9 = vrot.slane %v1230_v7, 4 }
 0x180   :  { %v1240_v10 = vrot.slane %v1239_v8, 4 }
 0x181   :  { %v1232_v11 = vadd.f32 %v1231_v9, %v1230_v7 }
 0x182   :  { %v1241_v12 = vadd.f32 %v1240_v10, %v1239_v8  ;;  %v1319_v10 = vrot.slane %v1535_v62, %v1299_v61 }
 0x183   :  { %v1233_v13 = vrot.slane %v1232_v11, 2 }
 0x184   :  { %v1242_v14 = vrot.slane %v1241_v12, 2 }
 0x185   :  { %v1234_v15 = vadd.f32 %v1233_v13, %v1232_v11 }
 0x186   :  { %v1243_v16 = vadd.f32 %v1242_v14, %v1241_v12 }
 0x187   :  { %v1235_v17 = vrot.slane %v1234_v15, 1 }
 0x188   :  { %v1244_v18 = vrot.slane %v1243_v16, 1 }
 0x189   :  { %v1236_v19 = vadd.f32 %v1235_v17, %v1234_v15 }
 0x18a   :  { %v1245_v20 = vadd.f32 %v1244_v18, %v1243_v16 }
 0x18b   :  { %v1247_v21 = vmul.f32 0.055555556, %v1236_v19 }
 0x18c   :  { %v1248_v22 = vmul.f32 0.055555556, %v1245_v20 }
 0x18d   :  { %v1249_v23 = vsub.f32 %v1558_v55, %v1247_v21  ;;  %v1251_v24 = vsub.f32 %v1560_v63, %v1247_v21  ;;  %v1253_v25 = vsub.f32 %v1563_v56, %v1247_v21 }
 0x18e   :  { %v1250_v26 = vsub.f32 %v1559_v59, %v1248_v22  ;;  %v1252_v27 = vsub.f32 %v1561_v2, %v1248_v22  ;;  %v1254_v28 = vsub.f32 %v1565_v60, %v1248_v22  ;;  %v1295_v59 = vsub.s32 0, %v1294_v58  ;;  %v1291_v60 = vld [vmem:[%s2345_s2] ss:$2 sm:$0x3] }
 0x18f   :  { %v1255_v29 = vmul.f32 %v1249_v23, %v1249_v23  ;;  %v1257_v30 = vmul.f32 %v1251_v24, %v1251_v24  ;;  %v1259_v31 = vmul.f32 %v1253_v25, %v1253_v25  ;;  %v1300_v1 = vrot.slane %v1291_v60, %v1299_v61 }
 0x190   :  { %v1256_v32 = vmul.f32 %v1250_v26, %v1250_v26  ;;  %v1258_v33 = vmul.f32 %v1252_v27, %v1252_v27  ;;  %v1260_v34 = vmul.f32 %v1254_v28, %v1254_v28  ;;  %v1296_v63 = vrot.slane %v1291_v60, %v1295_v59 }
 0x191   :  { %v1261_v35 = vadd.f32 %v1257_v30, %v1255_v29  ;;  %v1262_v36 = vsel %vm1228_vm0, %v1259_v31, 0.0  ;;  %v1315_v6 = vrot.slane %v1535_v62, %v1295_v59 }
 0x192   :  { %v1270_v37 = vadd.f32 %v1258_v33, %v1256_v32  ;;  %v1271_v38 = vsel %vm1228_vm0, %v1260_v34, 0.0 }
 0x193   :  { %v1263_v39 = vadd.f32 %v1262_v36, %v1261_v35 }
 0x194   :  { %v1272_v40 = vadd.f32 %v1271_v38, %v1270_v37 }
 0x195   :  { %v1264_v41 = vrot.slane %v1263_v39, 4 }
 0x196   :  { %v1273_v42 = vrot.slane %v1272_v40, 4 }
 0x197   :  { %v1265_v43 = vadd.f32 %v1264_v41, %v1263_v39 }
 0x198   :  { %v1274_v44 = vadd.f32 %v1273_v42, %v1272_v40 }
 0x199   :  { %v1266_v45 = vrot.slane %v1265_v43, 2 }
 0x19a   :  { %v1275_v46 = vrot.slane %v1274_v44, 2 }
 0x19b   :  { %v1267_v47 = vadd.f32 %v1266_v45, %v1265_v43 }
 0x19c   :  { %v1276_v48 = vadd.f32 %v1275_v46, %v1274_v44 }
 0x19d   :  { %v1268_v49 = vrot.slane %v1267_v47, 1 }
 0x19e   :  { %v1277_v50 = vrot.slane %v1276_v48, 1 }
 0x19f   :  { %v1269_v51 = vadd.f32 %v1268_v49, %v1267_v47 }
 0x1a0   :  { %v1278_v52 = vadd.f32 %v1277_v50, %v1276_v48 }
 0x1a1   :  { %v1279_v53 = vmul.f32 0.055555556, %v1269_v51 }
 0x1a2   :  { %v1280_v55 = vmul.f32 0.055555556, %v1278_v52 }
 0x1a3   :  { %v1281_v56 = vadd.f32 1e-05, %v1279_v53 }
 0x1a4   :  { %v1282_v57 = vadd.f32 1e-05, %v1280_v55 }
 0x1a5   :  { %1825 = vrsqrt.f32 %v1281_v56 }
 0x1a6   :  { %1827 = vrsqrt.f32 %v1282_v57 }
 0x1af   :  { %v1826_v0 = vpop.eup %1825 }
 0x1b0   :  { %v1828_v2 = vpop.eup %1827  ;;  %v1285_v3 = vmul.f32 %v1826_v0, %v1249_v23  ;;  %v1287_v4 = vmul.f32 %v1826_v0, %v1251_v24  ;;  %v1289_v5 = vmul.f32 %v1826_v0, %v1253_v25 }
 0x1b1   :  { %v1286_v7 = vmul.f32 %v1828_v2, %v1250_v26  ;;  %v1288_v8 = vmul.f32 %v1828_v2, %v1252_v27  ;;  %v1290_v9 = vmul.f32 %v1828_v2, %v1254_v28 }
 0x1b2   :  { %v1303_v11 = vmul.f32 %v1296_v63, %v1285_v3  ;;  %v1305_v12 = vmul.f32 %v1296_v63, %v1287_v4  ;;  %v1307_v13 = vmul.f32 %v1296_v63, %v1289_v5 }
 0x1b3   :  { %v1304_v14 = vmul.f32 %v1300_v1, %v1286_v7  ;;  %v1306_v15 = vmul.f32 %v1300_v1, %v1288_v8  ;;  %v1308_v16 = vmul.f32 %v1300_v1, %v1290_v9 }
 0x1b4   :  { %v1322_v17 = vadd.f32 %v1315_v6, %v1303_v11  ;;  %v1324_v18 = vadd.f32 %v1315_v6, %v1305_v12  ;;  %v1326_v19 = vadd.f32 %v1315_v6, %v1307_v13 }
 0x1b5   :  { %v1323_v20 = vadd.f32 %v1319_v10, %v1304_v14  ;;  %v1325_v21 = vadd.f32 %v1319_v10, %v1306_v15  ;;  %v1327_v22 = vadd.f32 %v1319_v10, %v1308_v16 }
 0x1b6   :  { %vm1328_vm1 = vcmp.ge.f32.partialorder %v1322_v17, 0.0  ;;  %vm1330_vm2 = vcmp.ge.f32.partialorder %v1324_v18, 0.0  ;;  %vm1332_vm3 = vcmp.ge.f32.partialorder %v1326_v19, 0.0  ;;  %v1334_v23 = vmul.f32 0.01, %v1322_v17 }
 0x1b7   :  { %v1336_v24 = vmul.f32 0.01, %v1324_v18  ;;  %v1338_v25 = vmul.f32 0.01, %v1326_v19  ;;  %vm1329_vm4 = vcmp.ge.f32.partialorder %v1323_v20, 0.0  ;;  %vm1331_vm5 = vcmp.ge.f32.partialorder %v1325_v21, 0.0 }
 0x1b8   :  { %v1340_v26 = vsel %vm1328_vm1, %v1322_v17, %v1334_v23  ;;  %vm1333_vm6 = vcmp.ge.f32.partialorder %v1327_v22, 0.0  ;;  %v1335_v27 = vmul.f32 0.01, %v1323_v20  ;;  %v1337_v28 = vmul.f32 0.01, %v1325_v21 }
 0x1b9   :  { %v1342_v29 = vsel %vm1330_vm2, %v1324_v18, %v1336_v24  ;;  %v1344_v30 = vsel %vm1332_vm3, %v1326_v19, %v1338_v25  ;;  %v1339_v31 = vmul.f32 0.01, %v1327_v22 }
 0x1ba   :  { %v1341_v32 = vsel %vm1329_vm4, %v1323_v20, %v1335_v27  ;;  %v1343_v33 = vsel %vm1331_vm5, %v1325_v21, %v1337_v28 }
 0x1bb   :  { %v1345_v34 = vsel %vm1333_vm6, %v1327_v22, %v1339_v31  ;;  %v1539_v35 = vpack.c.bf16 %v1341_v32, %v1340_v26  ;;  %v1540_v36 = vpack.c.bf16 %v1343_v33, %v1342_v29 }
 0x1bc   :  { %v1541_v37 = vpack.c.bf16 %v1345_v34, %v1344_v30 }
 0x1bd   :  { %1366 = vst [vmem:[%s2346_s3] sm:$0xff] %v1539_v35  ;;  %1367 = vst [vmem:[%s2346_s3 + $0x8] sm:$0xff] %v1540_v36 }
 0x1be   :  { %1368 = vst [vmem:[%s2346_s3 + $0x10] sm:$0x11] %v1541_v37 }

// kernel: categorical_vae_forward.11
= control target key start
LH: loop header
LB: loop body
LE: loop exit
PB: predicated region body
PF: predicated region fallthrough
CT: control target
= control target key end

     0   :  { %v322_v9 = vlaneseq  ;;  %v5343_v10 = vmov 1966171168   ;;  %vm2293_vm0 = vcmask 1041408   ;;  %vm2294_vm1 = vcmask 93186   ;;  %s7081_s1 = inlined_call_operand.vmem [shape: bf16[2304,140], index: 1, kind: input, shape index: {}]   ;;  %s7082_s0 = inlined_call_operand.vmem [shape: bf16[2,2304], index: 0, kind: input, shape index: {}]   ;;  %s7083_s4 = inlined_call_operand.vmem [shape: f32[140,140], index: 4, kind: input, shape index: {}]   ;;  %s7084_s3 = inlined_call_operand.vmem [shape: f32[2,140], index: 3, kind: input, shape index: {}]   ;;  %s7085_s2 = inlined_call_operand.vmem [shape: f32[1,140], index: 2, kind: input, shape index: {}]   ;;  %s7086_s7 = inlined_call_operand.vmem [shape: f32[2,140], index: 7, kind: output, shape index: {0}]   ;;  %s7087_s5 = inlined_call_operand.vmem [shape: bf16[140,2304], index: 5, kind: input, shape index: {}]   ;;  %s7088_s6 = inlined_call_operand.vmem [shape: f32[1,2304], index: 6, kind: input, shape index: {}]   ;;  %s7089_s8 = inlined_call_operand.vmem [shape: bf16[2,2304], index: 8, kind: output, shape index: {1}]  }
   0x1   :  { %v4654_v0 = vld [vmem:[%s7081_s1 + $0x204] ss:$8 sps:$4 sm:$0xff]   ;;  %v4656_v1 = vld [vmem:[%s7081_s1 + $0x200] ss:$8 sps:$4 sm:$0xff]   ;;  %v4657_v2 = vld [vmem:[%s7081_s1 + $0x214] ss:$8 sps:$4 sm:$0xff]   ;;  %v337_v11 = vunpack.c.l.s4 %v5343_v10 }
   0x2   :  { %1995 = vmatprep.subr.bf16.mxu0 %v4654_v0  ;;  %v4659_v3 = vld [vmem:[%s7081_s1 + $0x210] ss:$8 sps:$4 sm:$0xff]   ;;  %v4660_v4 = vld [vmem:[%s7081_s1 + $0x224] ss:$8 sps:$4 sm:$0xff]   ;;  %v4662_v5 = vld [vmem:[%s7081_s1 + $0x220] ss:$8 sps:$4 sm:$0xff]  }
   0x3   :  { %1996 = vmatpush1.bf16.msra.mxu0 %v4656_v1  ;;  %v4663_v6 = vld [vmem:[%s7081_s1 + $0x234] ss:$8 sps:$4 sm:$0xff]   ;;  %v4665_v7 = vld [vmem:[%s7081_s1 + $0x230] ss:$8 sps:$4 sm:$0xff]   ;;  %v4666_v8 = vld [vmem:[%s7081_s1 + $0x244] ss:$8 sps:$4 sm:$0xff]   ;;  %v338_v15 = vunpack.c.0.s8 %v337_v11 }
   0x4   :  { %1997 = vmatprep.subr.bf16.mxu0 %v4657_v2  ;;  %v4668_v12 = vld [vmem:[%s7081_s1 + $0x240] ss:$8 sps:$4 sm:$0xff]   ;;  %v4669_v13 = vld [vmem:[%s7081_s1 + $0x254] ss:$8 sps:$4 sm:$0xff]   ;;  %v5424_v14 = vshrl.u32 %v322_v9, 7  ;;  %vm2295_vm2 = vmor %vm2294_vm1, %vm2293_vm0  ;;  %vm2322_vm3 = vcmask 91136  }
   0x5   :  { %v4671_v16 = vld [vmem:[%s7081_s1 + $0x250] ss:$8 sps:$4 sm:$0xff]   ;;  %v4672_v17 = vld [vmem:[%s7081_s1 + $0x264] ss:$8 sps:$4 sm:$0xff]   ;;  %v4674_v21 = vld [vmem:[%s7081_s1 + $0x260] ss:$8 sps:$4 sm:$0xff]  }
   0x6   :  { %v5433_v18 = vsub.s32 %v338_v15, %v5424_v14  ;;  %v5438_v19 = vld [vmem:[%s7082_s0] sm:$0xff]  ;;  %v4675_v22 = vld [vmem:[%s7081_s1 + $0x274] ss:$8 sps:$4 sm:$0xff]   ;;  %v4677_v25 = vld [vmem:[%s7081_s1 + $0x270] ss:$8 sps:$4 sm:$0xff]   ;;  %vm2375_vm4 = vcmask 1043456  }
   0x7   :  { %1998 = vmatpush1.bf16.msra.mxu0 %v4659_v3  ;;  %v335_v20 = vcombine.high %v5438_v19, %v5438_v19  ;;  %v4678_v26 = vld [vmem:[%s7081_s1 + $0x284] ss:$8 sps:$4 sm:$0xff]   ;;  %v4680_v28 = vld [vmem:[%s7081_s1 + $0x280] ss:$8 sps:$4 sm:$0xff]   ;;  %v4681_v29 = vld [vmem:[%s7081_s1 + $0x294] ss:$8 sps:$4 sm:$0xff]  }
   0x8   :  { %1999 = vmatprep.subr.bf16.mxu0 %v4660_v4  ;;  %v4683_v30 = vld [vmem:[%s7081_s1 + $0x290] ss:$8 sps:$4 sm:$0xff]   ;;  %v4684_v31 = vld [vmem:[%s7081_s1 + $0x2a4] ss:$8 sps:$4 sm:$0xff]   ;;  %v4686_v32 = vld [vmem:[%s7081_s1 + $0x2a0] ss:$8 sps:$4 sm:$0xff]  }
   0x9   :  { %v349_v23 = vrot.slane %v335_v20, %v5433_v18  ;;  %v4687_v33 = vld [vmem:[%s7081_s1 + $0x2b4] ss:$8 sps:$4 sm:$0xff]   ;;  %v4689_v34 = vld [vmem:[%s7081_s1 + $0x2b0] ss:$8 sps:$4 sm:$0xff]   ;;  %v4690_v35 = vld [vmem:[%s7081_s1 + $0x2c4] ss:$8 sps:$4 sm:$0xff]  }
   0xa   :  { %v4692_v36 = vld [vmem:[%s7081_s1 + $0x2c0] ss:$8 sps:$4 sm:$0xff]   ;;  %v4693_v37 = vld [vmem:[%s7081_s1 + $0x2d4] ss:$8 sps:$4 sm:$0xff]   ;;  %v4695_v38 = vld [vmem:[%s7081_s1 + $0x2d0] ss:$8 sps:$4 sm:$0xff]  }
   0xb   :  { %2000 = vmatpush1.bf16.msra.mxu0 %v4662_v5  ;;  %v351_v24 = vcombine.high %v349_v23, %v349_v23  ;;  %v4696_v39 = vld [vmem:[%s7081_s1 + $0x2e4] ss:$8 sps:$4 sm:$0xff]   ;;  %v4698_v40 = vld [vmem:[%s7081_s1 + $0x2e0] ss:$8 sps:$4 sm:$0xff]   ;;  %v4699_v41 = vld [vmem:[%s7081_s1 + $0x2f4] ss:$8 sps:$4 sm:$0xff]   ;;  %v5505_v44 = vrot.slane %v349_v23, %v5433_v18 }
   0xc   :  { %2001 = vmatprep.subr.bf16.mxu0 %v4663_v6  ;;  %v4701_v42 = vld [vmem:[%s7081_s1 + $0x2f0] ss:$8 sps:$4 sm:$0xff]   ;;  %v4705_v43 = vld [vmem:[%s7081_s1 + $0x304] ss:$8 sps:$4 sm:$0xff]   ;;  %v4703_v46 = vld [vmem:[%s7081_s1 + $0x300] ss:$8 sps:$4 sm:$0xff]  }
   0xd   :  { %v379_v27 = vrot.slane %v351_v24, %v5433_v18  ;;  %v4708_v47 = vld [vmem:[%s7081_s1 + $0x314] ss:$8 sps:$4 sm:$0xff]   ;;  %v4706_v48 = vld [vmem:[%s7081_s1 + $0x310] ss:$8 sps:$4 sm:$0xff]   ;;  %v4711_v49 = vld [vmem:[%s7081_s1 + $0x324] ss:$8 sps:$4 sm:$0xff]  }
   0xe   :  { %v4709_v50 = vld [vmem:[%s7081_s1 + $0x320] ss:$8 sps:$4 sm:$0xff]   ;;  %v4714_v51 = vld [vmem:[%s7081_s1 + $0x334] ss:$8 sps:$4 sm:$0xff]   ;;  %v4712_v52 = vld [vmem:[%s7081_s1 + $0x330] ss:$8 sps:$4 sm:$0xff]  }
   0xf   :  { %2002 = vmatpush1.bf16.msra.mxu0 %v4665_v7  ;;  %2027 = vmatprep.mubr.bf16.mxu0 %v379_v27  ;;  %v383_v45 = vcombine.high %v379_v27, %v379_v27  ;;  %v4717_v53 = vld [vmem:[%s7081_s1 + $0x344] ss:$8 sps:$4 sm:$0xff]   ;;  %v4715_v54 = vld [vmem:[%s7081_s1 + $0x340] ss:$8 sps:$4 sm:$0xff]   ;;  %v4720_v55 = vld [vmem:[%s7081_s1 + $0x354] ss:$8 sps:$4 sm:$0xff]  }
  0x10   :  { %2003 = vmatprep.subr.bf16.mxu0 %v4666_v8  ;;  %v4718_v56 = vld [vmem:[%s7081_s1 + $0x350] ss:$8 sps:$4 sm:$0xff]   ;;  %v4723_v57 = vld [vmem:[%s7081_s1 + $0x364] ss:$8 sps:$4 sm:$0xff]   ;;  %v4721_v58 = vld [vmem:[%s7081_s1 + $0x360] ss:$8 sps:$4 sm:$0xff]  }
  0x11   :  { %v4726_v59 = vld [vmem:[%s7081_s1 + $0x374] ss:$8 sps:$4 sm:$0xff]   ;;  %v4724_v60 = vld [vmem:[%s7081_s1 + $0x370] ss:$8 sps:$4 sm:$0xff]   ;;  %v4729_v61 = vld [vmem:[%s7081_s1 + $0x384] ss:$8 sps:$4 sm:$0xff]  }
  0x12   :  { %v4727_v62 = vld [vmem:[%s7081_s1 + $0x380] ss:$8 sps:$4 sm:$0xff]   ;;  %v4732_v63 = vld [vmem:[%s7081_s1 + $0x394] ss:$8 sps:$4 sm:$0xff]   ;;  %v4730_v0 = vld [vmem:[%s7081_s1 + $0x390] ss:$8 sps:$4 sm:$0xff]  }
  0x13   :  { %2004 = vmatpush1.bf16.msra.mxu0 %v4668_v12  ;;  %v4735_v1 = vld [vmem:[%s7081_s1 + $0x3a4] ss:$8 sps:$4 sm:$0xff]   ;;  %v4733_v2 = vld [vmem:[%s7081_s1 + $0x3a0] ss:$8 sps:$4 sm:$0xff]   ;;  %v4738_v3 = vld [vmem:[%s7081_s1 + $0x3b4] ss:$8 sps:$4 sm:$0xff]  }
  0x14   :  { %2005 = vmatprep.subr.bf16.mxu0 %v4669_v13  ;;  %v4736_v4 = vld [vmem:[%s7081_s1 + $0x3b0] ss:$8 sps:$4 sm:$0xff]   ;;  %v4741_v5 = vld [vmem:[%s7081_s1 + $0x3c4] ss:$8 sps:$4 sm:$0xff]   ;;  %v4739_v6 = vld [vmem:[%s7081_s1 + $0x3c0] ss:$8 sps:$4 sm:$0xff]  }
  0x15   :  { %v4744_v7 = vld [vmem:[%s7081_s1 + $0x3d4] ss:$8 sps:$4 sm:$0xff]   ;;  %v4742_v8 = vld [vmem:[%s7081_s1 + $0x3d0] ss:$8 sps:$4 sm:$0xff]   ;;  %v4747_v9 = vld [vmem:[%s7081_s1 + $0x3e4] ss:$8 sps:$4 sm:$0xff]  }
  0x16   :  { %v5595_v10 = vld [vmem:[%s7082_s0 + $0x8] sm:$0xff]  ;;  %v4750_v12 = vld [vmem:[%s7081_s1 + $0x3f4] ss:$8 sps:$4 sm:$0xff]   ;;  %v4748_v15 = vld [vmem:[%s7081_s1 + $0x3f0] ss:$8 sps:$4 sm:$0xff]   ;;  %vm5345_vm5 = vmmov 1  }
  0x17   :  { %2006 = vmatpush1.bf16.msra.mxu0 %v4671_v16  ;;  %v4745_v11 = vld [vmem:[%s7081_s1 + $0x3e0] ss:$8 sps:$4 sm:$0xff]   ;;  %v5605_v13 = vrot.slane %v5595_v10, %v5433_v18  ;;  %v4753_v16 = vld [vmem:[%s7081_s1 + $0x404] ss:$8 sps:$4 sm:$0xff]   ;;  %v4756_v24 = vld [vmem:[%s7081_s1 + $0x414] ss:$8 sps:$4 sm:$0xff]  }
  0x18   :  { %2007 = vmatprep.subr.bf16.mxu0 %v4672_v17  ;;  %v4844_v20 = vld [vmem:[%s7081_s1 + $0x4] ss:$8 sps:$4 sm:$0xff]   ;;  %v4751_v23 = vld [vmem:[%s7081_s1 + $0x400] ss:$8 sps:$4 sm:$0xff]   ;;  %v4855_v27 = vld [vmem:[%s7081_s1 + $0x10] ss:$8 sps:$4 sm:$0xff]  }
  0x19   :  { %v399_v17 = vcombine.high %v5605_v13, %v5605_v13  ;;  %1913 = vmatprep.subr.bf16.mxu1 %v4844_v20  ;;  %v4933_v20 = vld [vmem:[%s7081_s1 + $0xe0] ss:$8 sps:$4 sm:$0xff]   ;;  %vm4614_vm6 = vmpackc.low %vm2375_vm4, %vm5345_vm5  ;;  %vm2371_vm7 = vcmask 97280   ;;  %vm3512_vm8 = vcmask 1045504  }
  0x1b   :  { %2008 = vmatpush1.bf16.msra.mxu0 %v4674_v21  ;;  %v4849_v21 = vld [vmem:[%s7081_s1] ss:$8 sps:$4 sm:$0xff]  }
  0x1c   :  { %2009 = vmatprep.subr.bf16.mxu0 %v4675_v22  ;;  %v381_v22 = vcombine.high %v5505_v44, %v5505_v44  ;;  %1914 = vmatpush1.bf16.msra.mxu1 %v4849_v21  ;;  %v4793_v21 = vld [vmem:[%s7081_s1 + $0x4e0] ss:$8 sps:$4 sm:$0xff]  }
  0x1f   :  { %2010 = vmatpush1.bf16.msra.mxu0 %v4677_v25  ;;  %v5630_v25 = vrot.slane %v399_v17, %v5433_v18  ;;  %v4795_v17 = vld [vmem:[%s7081_s1 + $0x4e4] ss:$8 sps:$4 sm:$0xff]  }
  0x20   :  { %2011 = vmatprep.subr.bf16.mxu0 %v4678_v26  ;;  %v4850_v26 = vld [vmem:[%s7081_s1 + $0x14] ss:$8 sps:$4 sm:$0xff]  }
  0x21   :  { %1915 = vmatprep.subr.bf16.mxu1 %v4850_v26  ;;  %v342_v26 = vrot.slane %v5438_v19, %v5433_v18  ;;  %v4940_v19 = vld [vmem:[%s7081_s1 + $0x100] ss:$8 sps:$4 sm:$0xff]  }
  0x22   :  { %1916 = vmatpush1.bf16.msra.mxu1 %v4855_v27 }
  0x23   :  { %2012 = vmatpush1.bf16.msra.mxu0 %v4680_v28  ;;  %v4754_v28 = vld [vmem:[%s7081_s1 + $0x410] ss:$8 sps:$4 sm:$0xff]   ;;  %v350_v27 = vcombine.high %v342_v26, %v342_v26 }
  0x24   :  { %2013 = vmatprep.subr.bf16.mxu0 %v4681_v29  ;;  %v4759_v29 = vld [vmem:[%s7081_s1 + $0x424] ss:$8 sps:$4 sm:$0xff]  }
  0x27   :  { %2014 = vmatpush1.bf16.msra.mxu0 %v4683_v30  ;;  %v4856_v30 = vld [vmem:[%s7081_s1 + $0x24] ss:$8 sps:$4 sm:$0xff]  }
  0x28   :  { %2015 = vmatprep.subr.bf16.mxu0 %v4684_v31  ;;  %v4861_v31 = vld [vmem:[%s7081_s1 + $0x20] ss:$8 sps:$4 sm:$0xff]   ;;  %1917 = vmatprep.subr.bf16.mxu1 %v4856_v30  ;;  %v4801_v30 = vld [vmem:[%s7081_s1 + $0x504] ss:$8 sps:$4 sm:$0xff]  }
  0x29   :  { %1918 = vmatpush1.bf16.msra.mxu1 %v4861_v31  ;;  %v372_v31 = vrot.slane %v350_v27, %v5433_v18  ;;  %v5019_v27 = vld [vmem:[%s7081_s1 + $0x1d0] ss:$8 sps:$4 sm:$0xff]  }
  0x2b   :  { %2016 = vmatpush1.bf16.msra.mxu0 %v4686_v32  ;;  %v4757_v32 = vld [vmem:[%s7081_s1 + $0x420] ss:$8 sps:$4 sm:$0xff]   ;;  %1945 = vmatprep.mubr.bf16.mxu1 %v372_v31 }
  0x2c   :  { %2017 = vmatprep.subr.bf16.mxu0 %v4687_v33  ;;  %v4762_v33 = vld [vmem:[%s7081_s1 + $0x434] ss:$8 sps:$4 sm:$0xff]  }
  0x2f   :  { %2018 = vmatpush1.bf16.msra.mxu0 %v4689_v34  ;;  %v4862_v34 = vld [vmem:[%s7081_s1 + $0x34] ss:$8 sps:$4 sm:$0xff]  }
  0x30   :  { %2019 = vmatprep.subr.bf16.mxu0 %v4690_v35  ;;  %v4867_v35 = vld [vmem:[%s7081_s1 + $0x30] ss:$8 sps:$4 sm:$0xff]   ;;  %1919 = vmatprep.subr.bf16.mxu1 %v4862_v34  ;;  %v382_v34 = vcombine.high %v372_v31, %v372_v31  ;;  %v4843_v31 = vld [vmem:[%s7081_s1 + $0x5e4] ss:$8 sps:$4 sm:$0xff]  }
  0x31   :  { %1920 = vmatpush1.bf16.msra.mxu1 %v4867_v35  ;;  %v4799_v35 = vld [vmem:[%s7081_s1 + $0x500] ss:$8 sps:$4 sm:$0xff]  }
  0x33   :  { %2020 = vmatpush1.bf16.msra.mxu0 %v4692_v36  ;;  %v4760_v36 = vld [vmem:[%s7081_s1 + $0x430] ss:$8 sps:$4 sm:$0xff]  }
  0x34   :  { %2021 = vmatprep.subr.bf16.mxu0 %v4693_v37  ;;  %v4765_v37 = vld [vmem:[%s7081_s1 + $0x444] ss:$8 sps:$4 sm:$0xff]  }
  0x37   :  { %2022 = vmatpush1.bf16.msra.mxu0 %v4695_v38  ;;  %v4868_v38 = vld [vmem:[%s7081_s1 + $0x44] ss:$8 sps:$4 sm:$0xff]  }
  0x38   :  { %2023 = vmatprep.subr.bf16.mxu0 %v4696_v39  ;;  %v4873_v39 = vld [vmem:[%s7081_s1 + $0x40] ss:$8 sps:$4 sm:$0xff]   ;;  %1921 = vmatprep.subr.bf16.mxu1 %v4868_v38  ;;  %v4946_v38 = vld [vmem:[%s7081_s1 + $0x110] ss:$8 sps:$4 sm:$0xff]  }
  0x39   :  { %1922 = vmatpush1.bf16.msra.mxu1 %v4873_v39  ;;  %v4955_v39 = vld [vmem:[%s7081_s1 + $0x124] ss:$8 sps:$4 sm:$0xff]  }
  0x3b   :  { %2024 = vmatpush1.bf16.msra.mxu0 %v4698_v40  ;;  %v4763_v40 = vld [vmem:[%s7081_s1 + $0x440] ss:$8 sps:$4 sm:$0xff]  }
  0x3c   :  { %2025 = vmatprep.subr.bf16.mxu0 %v4699_v41  ;;  %v4768_v41 = vld [vmem:[%s7081_s1 + $0x454] ss:$8 sps:$4 sm:$0xff]  }
  0x3f   :  { %2026 = vmatpush1.bf16.msra.mxu0 %v4701_v42  ;;  %v4874_v42 = vld [vmem:[%s7081_s1 + $0x54] ss:$8 sps:$4 sm:$0xff]  }
  0x40   :  { %2036 = vmatprep.subr.bf16.mxu0 %v4705_v43  ;;  %v4879_v43 = vld [vmem:[%s7081_s1 + $0x50] ss:$8 sps:$4 sm:$0xff]   ;;  %1923 = vmatprep.subr.bf16.mxu1 %v4874_v42  ;;  %v4805_v42 = vld [vmem:[%s7081_s1 + $0x520] ss:$8 sps:$4 sm:$0xff]  }
  0x41   :  { %1924 = vmatpush1.bf16.msra.mxu1 %v4879_v43  ;;  %v4961_v43 = vld [vmem:[%s7081_s1 + $0x134] ss:$8 sps:$4 sm:$0xff]  }
  0x42   :  { %2028 = vmatmul.mubr.bf16.vlgmr.msra.gmra.mrb[0].mxu0 %v5505_v44  ;;  %v4766_v44 = vld [vmem:[%s7081_s1 + $0x450] ss:$8 sps:$4 sm:$0xff]  }
  0x43   :  { %2037 = vmatpush1.bf16.msra.mxu0 %v4703_v46  ;;  %2068 = vmatprep.mubr.bf16.mxu0 %v383_v45  ;;  %v4880_v45 = vld [vmem:[%s7081_s1 + $0x64] ss:$8 sps:$4 sm:$0xff]  }
  0x44   :  { %2038 = vmatprep.subr.bf16.mxu0 %v4708_v47  ;;  %v4771_v46 = vld [vmem:[%s7081_s1 + $0x464] ss:$8 sps:$4 sm:$0xff]   ;;  %v4885_v47 = vld [vmem:[%s7081_s1 + $0x60] ss:$8 sps:$4 sm:$0xff]   ;;  %1925 = vmatprep.subr.bf16.mxu1 %v4880_v45  ;;  %v4959_v45 = vld [vmem:[%s7081_s1 + $0x130] ss:$8 sps:$4 sm:$0xff]  }
  0x45   :  { %1926 = vmatpush1.bf16.msra.mxu1 %v4885_v47  ;;  %v4967_v47 = vld [vmem:[%s7081_s1 + $0x144] ss:$8 sps:$4 sm:$0xff]  }
  0x47   :  { %2039 = vmatpush1.bf16.msra.mxu0 %v4706_v48  ;;  %v4769_v48 = vld [vmem:[%s7081_s1 + $0x460] ss:$8 sps:$4 sm:$0xff]  }
  0x48   :  { %2040 = vmatprep.subr.bf16.mxu0 %v4711_v49  ;;  %v4886_v49 = vld [vmem:[%s7081_s1 + $0x74] ss:$8 sps:$4 sm:$0xff]  }
  0x49   :  { %1927 = vmatprep.subr.bf16.mxu1 %v4886_v49  ;;  %v4965_v49 = vld [vmem:[%s7081_s1 + $0x140] ss:$8 sps:$4 sm:$0xff]  }
  0x4b   :  { %2041 = vmatpush1.bf16.msra.mxu0 %v4709_v50  ;;  %v4774_v50 = vld [vmem:[%s7081_s1 + $0x474] ss:$8 sps:$4 sm:$0xff]  }
  0x4c   :  { %2042 = vmatprep.subr.bf16.mxu0 %v4714_v51  ;;  %v4891_v51 = vld [vmem:[%s7081_s1 + $0x70] ss:$8 sps:$4 sm:$0xff]  }
  0x4d   :  { %1928 = vmatpush1.bf16.msra.mxu1 %v4891_v51  ;;  %v4973_v51 = vld [vmem:[%s7081_s1 + $0x154] ss:$8 sps:$4 sm:$0xff]  }
  0x4f   :  { %2043 = vmatpush1.bf16.msra.mxu0 %v4712_v52  ;;  %v4772_v52 = vld [vmem:[%s7081_s1 + $0x470] ss:$8 sps:$4 sm:$0xff]  }
  0x50   :  { %2044 = vmatprep.subr.bf16.mxu0 %v4717_v53  ;;  %v4892_v53 = vld [vmem:[%s7081_s1 + $0x84] ss:$8 sps:$4 sm:$0xff]  }
  0x51   :  { %1929 = vmatprep.subr.bf16.mxu1 %v4892_v53  ;;  %v4971_v53 = vld [vmem:[%s7081_s1 + $0x150] ss:$8 sps:$4 sm:$0xff]  }
  0x53   :  { %2045 = vmatpush1.bf16.msra.mxu0 %v4715_v54  ;;  %v4777_v54 = vld [vmem:[%s7081_s1 + $0x484] ss:$8 sps:$4 sm:$0xff]  }
  0x54   :  { %2046 = vmatprep.subr.bf16.mxu0 %v4720_v55  ;;  %v4897_v55 = vld [vmem:[%s7081_s1 + $0x80] ss:$8 sps:$4 sm:$0xff]  }
  0x55   :  { %1930 = vmatpush1.bf16.msra.mxu1 %v4897_v55  ;;  %v4979_v55 = vld [vmem:[%s7081_s1 + $0x164] ss:$8 sps:$4 sm:$0xff]  }
  0x57   :  { %2047 = vmatpush1.bf16.msra.mxu0 %v4718_v56  ;;  %v4775_v56 = vld [vmem:[%s7081_s1 + $0x480] ss:$8 sps:$4 sm:$0xff]  }
  0x58   :  { %2048 = vmatprep.subr.bf16.mxu0 %v4723_v57  ;;  %v4898_v57 = vld [vmem:[%s7081_s1 + $0x94] ss:$8 sps:$4 sm:$0xff]  }
  0x59   :  { %1931 = vmatprep.subr.bf16.mxu1 %v4898_v57  ;;  %v4977_v57 = vld [vmem:[%s7081_s1 + $0x160] ss:$8 sps:$4 sm:$0xff]  }
  0x5b   :  { %2049 = vmatpush1.bf16.msra.mxu0 %v4721_v58  ;;  %v4780_v58 = vld [vmem:[%s7081_s1 + $0x494] ss:$8 sps:$4 sm:$0xff]  }
  0x5c   :  { %2050 = vmatprep.subr.bf16.mxu0 %v4726_v59  ;;  %v4903_v59 = vld [vmem:[%s7081_s1 + $0x90] ss:$8 sps:$4 sm:$0xff]  }
  0x5d   :  { %1932 = vmatpush1.bf16.msra.mxu1 %v4903_v59  ;;  %v4985_v59 = vld [vmem:[%s7081_s1 + $0x174] ss:$8 sps:$4 sm:$0xff]  }
  0x5f   :  { %2051 = vmatpush1.bf16.msra.mxu0 %v4724_v60  ;;  %v4778_v60 = vld [vmem:[%s7081_s1 + $0x490] ss:$8 sps:$4 sm:$0xff]  }
  0x60   :  { %2052 = vmatprep.subr.bf16.mxu0 %v4729_v61  ;;  %v4904_v61 = vld [vmem:[%s7081_s1 + $0xa4] ss:$8 sps:$4 sm:$0xff]  }
  0x61   :  { %1933 = vmatprep.subr.bf16.mxu1 %v4904_v61  ;;  %v4983_v61 = vld [vmem:[%s7081_s1 + $0x170] ss:$8 sps:$4 sm:$0xff]  }
  0x63   :  { %2053 = vmatpush1.bf16.msra.mxu0 %v4727_v62  ;;  %v4783_v62 = vld [vmem:[%s7081_s1 + $0x4a4] ss:$8 sps:$4 sm:$0xff]  }
  0x64   :  { %2054 = vmatprep.subr.bf16.mxu0 %v4732_v63  ;;  %v4909_v63 = vld [vmem:[%s7081_s1 + $0xa0] ss:$8 sps:$4 sm:$0xff]  }
  0x65   :  { %1934 = vmatpush1.bf16.msra.mxu1 %v4909_v63  ;;  %v4991_v63 = vld [vmem:[%s7081_s1 + $0x184] ss:$8 sps:$4 sm:$0xff]  }
  0x67   :  { %2055 = vmatpush1.bf16.msra.mxu0 %v4730_v0  ;;  %v4781_v0 = vld [vmem:[%s7081_s1 + $0x4a0] ss:$8 sps:$4 sm:$0xff]  }
  0x68   :  { %2056 = vmatprep.subr.bf16.mxu0 %v4735_v1  ;;  %v4910_v1 = vld [vmem:[%s7081_s1 + $0xb4] ss:$8 sps:$4 sm:$0xff]  }
  0x69   :  { %1935 = vmatprep.subr.bf16.mxu1 %v4910_v1  ;;  %v4989_v1 = vld [vmem:[%s7081_s1 + $0x180] ss:$8 sps:$4 sm:$0xff]  }
  0x6b   :  { %2057 = vmatpush1.bf16.msra.mxu0 %v4733_v2  ;;  %v4786_v2 = vld [vmem:[%s7081_s1 + $0x4b4] ss:$8 sps:$4 sm:$0xff]  }
  0x6c   :  { %2058 = vmatprep.subr.bf16.mxu0 %v4738_v3  ;;  %v4915_v3 = vld [vmem:[%s7081_s1 + $0xb0] ss:$8 sps:$4 sm:$0xff]  }
  0x6d   :  { %1936 = vmatpush1.bf16.msra.mxu1 %v4915_v3  ;;  %v4997_v3 = vld [vmem:[%s7081_s1 + $0x194] ss:$8 sps:$4 sm:$0xff]  }
  0x6f   :  { %2059 = vmatpush1.bf16.msra.mxu0 %v4736_v4  ;;  %v4784_v4 = vld [vmem:[%s7081_s1 + $0x4b0] ss:$8 sps:$4 sm:$0xff]  }
  0x70   :  { %2060 = vmatprep.subr.bf16.mxu0 %v4741_v5  ;;  %v4916_v5 = vld [vmem:[%s7081_s1 + $0xc4] ss:$8 sps:$4 sm:$0xff]  }
  0x71   :  { %1937 = vmatprep.subr.bf16.mxu1 %v4916_v5  ;;  %v4995_v5 = vld [vmem:[%s7081_s1 + $0x190] ss:$8 sps:$4 sm:$0xff]  }
  0x73   :  { %2061 = vmatpush1.bf16.msra.mxu0 %v4739_v6  ;;  %v4789_v6 = vld [vmem:[%s7081_s1 + $0x4c4] ss:$8 sps:$4 sm:$0xff]  }
  0x74   :  { %2062 = vmatprep.subr.bf16.mxu0 %v4744_v7  ;;  %v4921_v7 = vld [vmem:[%s7081_s1 + $0xc0] ss:$8 sps:$4 sm:$0xff]  }
  0x75   :  { %1938 = vmatpush1.bf16.msra.mxu1 %v4921_v7  ;;  %v5003_v7 = vld [vmem:[%s7081_s1 + $0x1a4] ss:$8 sps:$4 sm:$0xff]  }
  0x77   :  { %2063 = vmatpush1.bf16.msra.mxu0 %v4742_v8  ;;  %v4787_v8 = vld [vmem:[%s7081_s1 + $0x4c0] ss:$8 sps:$4 sm:$0xff]  }
  0x78   :  { %2064 = vmatprep.subr.bf16.mxu0 %v4747_v9  ;;  %v4922_v9 = vld [vmem:[%s7081_s1 + $0xd4] ss:$8 sps:$4 sm:$0xff]  }
  0x79   :  { %1939 = vmatprep.subr.bf16.mxu1 %v4922_v9  ;;  %v5001_v9 = vld [vmem:[%s7081_s1 + $0x1a0] ss:$8 sps:$4 sm:$0xff]  }
  0x7b   :  { %2065 = vmatpush1.bf16.msra.mxu0 %v4745_v11  ;;  %v4792_v11 = vld [vmem:[%s7081_s1 + $0x4d4] ss:$8 sps:$4 sm:$0xff]  }
  0x7c   :  { %2066 = vmatprep.subr.bf16.mxu0 %v4750_v12  ;;  %v4927_v12 = vld [vmem:[%s7081_s1 + $0xd0] ss:$8 sps:$4 sm:$0xff]  }
  0x7d   :  { %1940 = vmatpush1.bf16.msra.mxu1 %v4927_v12  ;;  %v5009_v12 = vld [vmem:[%s7081_s1 + $0x1b4] ss:$8 sps:$4 sm:$0xff]  }
  0x7f   :  { %2067 = vmatpush1.bf16.msra.mxu0 %v4748_v15  ;;  %v4790_v15 = vld [vmem:[%s7081_s1 + $0x4d0] ss:$8 sps:$4 sm:$0xff]  }
  0x80   :  { %2077 = vmatprep.subr.bf16.mxu0 %v4753_v16  ;;  %v4928_v16 = vld [vmem:[%s7081_s1 + $0xe4] ss:$8 sps:$4 sm:$0xff]  }
  0x81   :  { %1941 = vmatprep.subr.bf16.mxu1 %v4928_v16  ;;  %v5007_v16 = vld [vmem:[%s7081_s1 + $0x1b0] ss:$8 sps:$4 sm:$0xff]  }
  0x82   :  { %2069 = vmatmul.mubr.bf16.vlgmr.msra.gmra.mrb[0].mxu0 %v381_v22  ;;  %1942 = vmatpush1.bf16.msra.mxu1 %v4933_v20  ;;  %v4934_v22 = vld [vmem:[%s7081_s1 + $0xf4] ss:$8 sps:$4 sm:$0xff]   ;;  %v5015_v20 = vld [vmem:[%s7081_s1 + $0x1c4] ss:$8 sps:$4 sm:$0xff]  }
  0x83   :  { %2078 = vmatpush1.bf16.msra.mxu0 %v4751_v23  ;;  %2109 = vmatprep.mubr.bf16.mxu0 %v5630_v25  ;;  %v4798_v23 = vld [vmem:[%s7081_s1 + $0x4f4] ss:$8 sps:$4 sm:$0xff]  }
  0x84   :  { %2079 = vmatprep.subr.bf16.mxu0 %v4756_v24  ;;  %v4939_v24 = vld [vmem:[%s7081_s1 + $0xf0] ss:$8 sps:$4 sm:$0xff]   ;;  %1943 = vmatprep.subr.bf16.mxu1 %v4934_v22  ;;  %v5013_v22 = vld [vmem:[%s7081_s1 + $0x1c0] ss:$8 sps:$4 sm:$0xff]  }
  0x86   :  { %1944 = vmatpush1.bf16.msra.mxu1 %v4939_v24  ;;  %v5021_v24 = vld [vmem:[%s7081_s1 + $0x1d4] ss:$8 sps:$4 sm:$0xff]  }
  0x87   :  { %2080 = vmatpush1.bf16.msra.mxu0 %v4754_v28  ;;  %v4796_v28 = vld [vmem:[%s7081_s1 + $0x4f0] ss:$8 sps:$4 sm:$0xff]  }
  0x88   :  { %2081 = vmatprep.subr.bf16.mxu0 %v4759_v29  ;;  %v4942_v29 = vld [vmem:[%s7081_s1 + $0x104] ss:$8 sps:$4 sm:$0xff]  }
  0x89   :  { %1954 = vmatprep.subr.bf16.mxu1 %v4942_v29  ;;  %v384_v29 = vcombine.high %v5595_v10, %v5595_v10  ;;  %v4841_v10 = vld [vmem:[%s7081_s1 + $0x5e0] ss:$8 sps:$4 sm:$0xff]  }
  0x8b   :  { %2082 = vmatpush1.bf16.msra.mxu0 %v4757_v32  ;;  %v5823_v32 = vrot.slane %v342_v26, %v5433_v18  ;;  %v4840_v26 = vld [vmem:[%s7081_s1 + $0x5d4] ss:$8 sps:$4 sm:$0xff]  }
  0x8c   :  { %2083 = vmatprep.subr.bf16.mxu0 %v4762_v33  ;;  %v5827_v33 = vrot.slane %v5605_v13, %v5433_v18  ;;  %v4804_v13 = vld [vmem:[%s7081_s1 + $0x514] ss:$8 sps:$4 sm:$0xff]  }
  0x8d   :  { %1946 = vmatmul.mubr.bf16.vlgmr.msra.gmra.mrb[0].mxu1 %v5823_v32 }
  0x8e   :  { %1955 = vmatpush1.bf16.msra.mxu1 %v4940_v19  ;;  %1986 = vmatprep.mubr.bf16.mxu1 %v382_v34  ;;  %v5025_v19 = vld [vmem:[%s7081_s1 + $0x1e0] ss:$8 sps:$4 sm:$0xff]   ;;  %v6007_v34 = vrot.slane %v384_v29, %v5433_v18  ;;  %v4994_v29 = vld [vmem:[%s7081_s1 + $0x774] ss:$8 sps:$4 sm:$0xff]  }
  0x8f   :  { %2084 = vmatpush1.bf16.msra.mxu0 %v4760_v36  ;;  %v431_v36 = vcombine.high %v5630_v25, %v5630_v25  ;;  %v4802_v25 = vld [vmem:[%s7081_s1 + $0x510] ss:$8 sps:$4 sm:$0xff]  }
  0x90   :  { %2085 = vmatprep.subr.bf16.mxu0 %v4765_v37  ;;  %v4948_v37 = vld [vmem:[%s7081_s1 + $0x114] ss:$8 sps:$4 sm:$0xff]  }
  0x91   :  { %1956 = vmatprep.subr.bf16.mxu1 %v4948_v37  ;;  %v5031_v37 = vld [vmem:[%s7081_s1 + $0x1f0] ss:$8 sps:$4 sm:$0xff]  }
  0x92   :  { %1957 = vmatpush1.bf16.msra.mxu1 %v4946_v38  ;;  %v380_v38 = vcombine.high %v5823_v32, %v5823_v32  ;;  %v4860_v32 = vld [vmem:[%s7081_s1 + $0x614] ss:$8 sps:$4 sm:$0xff]  }
  0x93   :  { %2086 = vmatpush1.bf16.msra.mxu0 %v4763_v40  ;;  %v4807_v40 = vld [vmem:[%s7081_s1 + $0x524] ss:$8 sps:$4 sm:$0xff]   ;;  %1958 = vmatprep.subr.bf16.mxu1 %v4955_v39 }
  0x94   :  { %2087 = vmatprep.subr.bf16.mxu0 %v4768_v41  ;;  %v4953_v41 = vld [vmem:[%s7081_s1 + $0x120] ss:$8 sps:$4 sm:$0xff]   ;;  %v4854_v39 = vld [vmem:[%s7081_s1 + $0x604] ss:$8 sps:$4 sm:$0xff]  }
  0x96   :  { %1959 = vmatpush1.bf16.msra.mxu1 %v4953_v41  ;;  %v4852_v41 = vld [vmem:[%s7081_s1 + $0x600] ss:$8 sps:$4 sm:$0xff]  }
  0x97   :  { %2088 = vmatpush1.bf16.msra.mxu0 %v4766_v44  ;;  %v4810_v44 = vld [vmem:[%s7081_s1 + $0x534] ss:$8 sps:$4 sm:$0xff]   ;;  %1960 = vmatprep.subr.bf16.mxu1 %v4961_v43  ;;  %v4866_v43 = vld [vmem:[%s7081_s1 + $0x624] ss:$8 sps:$4 sm:$0xff]  }
  0x98   :  { %2089 = vmatprep.subr.bf16.mxu0 %v4771_v46  ;;  %v4808_v46 = vld [vmem:[%s7081_s1 + $0x530] ss:$8 sps:$4 sm:$0xff]  }
  0x9a   :  { %1961 = vmatpush1.bf16.msra.mxu1 %v4959_v45  ;;  %v4872_v45 = vld [vmem:[%s7081_s1 + $0x634] ss:$8 sps:$4 sm:$0xff]  }
  0x9b   :  { %2090 = vmatpush1.bf16.msra.mxu0 %v4769_v48  ;;  %v4813_v48 = vld [vmem:[%s7081_s1 + $0x544] ss:$8 sps:$4 sm:$0xff]   ;;  %1962 = vmatprep.subr.bf16.mxu1 %v4967_v47 }
  0x9c   :  { %2091 = vmatprep.subr.bf16.mxu0 %v4774_v50  ;;  %v4811_v50 = vld [vmem:[%s7081_s1 + $0x540] ss:$8 sps:$4 sm:$0xff]   ;;  %v4878_v47 = vld [vmem:[%s7081_s1 + $0x644] ss:$8 sps:$4 sm:$0xff]  }
  0x9e   :  { %1963 = vmatpush1.bf16.msra.mxu1 %v4965_v49  ;;  %v4884_v49 = vld [vmem:[%s7081_s1 + $0x654] ss:$8 sps:$4 sm:$0xff]  }
  0x9f   :  { %2092 = vmatpush1.bf16.msra.mxu0 %v4772_v52  ;;  %v4816_v52 = vld [vmem:[%s7081_s1 + $0x554] ss:$8 sps:$4 sm:$0xff]   ;;  %1964 = vmatprep.subr.bf16.mxu1 %v4973_v51  ;;  %v4890_v51 = vld [vmem:[%s7081_s1 + $0x664] ss:$8 sps:$4 sm:$0xff]  }
  0xa0   :  { %2093 = vmatprep.subr.bf16.mxu0 %v4777_v54  ;;  %v4814_v54 = vld [vmem:[%s7081_s1 + $0x550] ss:$8 sps:$4 sm:$0xff]  }
  0xa2   :  { %1965 = vmatpush1.bf16.msra.mxu1 %v4971_v53  ;;  %v4896_v53 = vld [vmem:[%s7081_s1 + $0x674] ss:$8 sps:$4 sm:$0xff]  }
  0xa3   :  { %2094 = vmatpush1.bf16.msra.mxu0 %v4775_v56  ;;  %v4819_v56 = vld [vmem:[%s7081_s1 + $0x564] ss:$8 sps:$4 sm:$0xff]   ;;  %1966 = vmatprep.subr.bf16.mxu1 %v4979_v55 }
  0xa4   :  { %2095 = vmatprep.subr.bf16.mxu0 %v4780_v58  ;;  %v4817_v58 = vld [vmem:[%s7081_s1 + $0x560] ss:$8 sps:$4 sm:$0xff]   ;;  %v4902_v55 = vld [vmem:[%s7081_s1 + $0x684] ss:$8 sps:$4 sm:$0xff]  }
  0xa6   :  { %1967 = vmatpush1.bf16.msra.mxu1 %v4977_v57  ;;  %v4908_v57 = vld [vmem:[%s7081_s1 + $0x694] ss:$8 sps:$4 sm:$0xff]  }
  0xa7   :  { %2096 = vmatpush1.bf16.msra.mxu0 %v4778_v60  ;;  %v4822_v60 = vld [vmem:[%s7081_s1 + $0x574] ss:$8 sps:$4 sm:$0xff]   ;;  %1968 = vmatprep.subr.bf16.mxu1 %v4985_v59  ;;  %v4914_v59 = vld [vmem:[%s7081_s1 + $0x6a4] ss:$8 sps:$4 sm:$0xff]  }
  0xa8   :  { %2097 = vmatprep.subr.bf16.mxu0 %v4783_v62  ;;  %v4820_v62 = vld [vmem:[%s7081_s1 + $0x570] ss:$8 sps:$4 sm:$0xff]  }
  0xaa   :  { %1969 = vmatpush1.bf16.msra.mxu1 %v4983_v61  ;;  %v4920_v61 = vld [vmem:[%s7081_s1 + $0x6b4] ss:$8 sps:$4 sm:$0xff]  }
  0xab   :  { %2098 = vmatpush1.bf16.msra.mxu0 %v4781_v0  ;;  %v4825_v0 = vld [vmem:[%s7081_s1 + $0x584] ss:$8 sps:$4 sm:$0xff]   ;;  %1970 = vmatprep.subr.bf16.mxu1 %v4991_v63 }
  0xac   :  { %2099 = vmatprep.subr.bf16.mxu0 %v4786_v2  ;;  %v4823_v2 = vld [vmem:[%s7081_s1 + $0x580] ss:$8 sps:$4 sm:$0xff]   ;;  %v4926_v63 = vld [vmem:[%s7081_s1 + $0x6c4] ss:$8 sps:$4 sm:$0xff]  }
  0xae   :  { %1971 = vmatpush1.bf16.msra.mxu1 %v4989_v1  ;;  %v4932_v1 = vld [vmem:[%s7081_s1 + $0x6d4] ss:$8 sps:$4 sm:$0xff]  }
  0xaf   :  { %2100 = vmatpush1.bf16.msra.mxu0 %v4784_v4  ;;  %v4828_v4 = vld [vmem:[%s7081_s1 + $0x594] ss:$8 sps:$4 sm:$0xff]   ;;  %1972 = vmatprep.subr.bf16.mxu1 %v4997_v3  ;;  %v4938_v3 = vld [vmem:[%s7081_s1 + $0x6e4] ss:$8 sps:$4 sm:$0xff]  }
  0xb0   :  { %2101 = vmatprep.subr.bf16.mxu0 %v4789_v6  ;;  %v4826_v6 = vld [vmem:[%s7081_s1 + $0x590] ss:$8 sps:$4 sm:$0xff]  }
  0xb2   :  { %1973 = vmatpush1.bf16.msra.mxu1 %v4995_v5  ;;  %v4945_v5 = vld [vmem:[%s7081_s1 + $0x6f4] ss:$8 sps:$4 sm:$0xff]  }
  0xb3   :  { %2102 = vmatpush1.bf16.msra.mxu0 %v4787_v8  ;;  %v4831_v8 = vld [vmem:[%s7081_s1 + $0x5a4] ss:$8 sps:$4 sm:$0xff]   ;;  %1974 = vmatprep.subr.bf16.mxu1 %v5003_v7 }
  0xb4   :  { %2103 = vmatprep.subr.bf16.mxu0 %v4792_v11  ;;  %v4829_v11 = vld [vmem:[%s7081_s1 + $0x5a0] ss:$8 sps:$4 sm:$0xff]   ;;  %v4952_v7 = vld [vmem:[%s7081_s1 + $0x704] ss:$8 sps:$4 sm:$0xff]  }
  0xb6   :  { %1975 = vmatpush1.bf16.msra.mxu1 %v5001_v9  ;;  %v4950_v9 = vld [vmem:[%s7081_s1 + $0x700] ss:$8 sps:$4 sm:$0xff]  }
  0xb7   :  { %2104 = vmatpush1.bf16.msra.mxu0 %v4790_v15  ;;  %v4834_v15 = vld [vmem:[%s7081_s1 + $0x5b4] ss:$8 sps:$4 sm:$0xff]   ;;  %1976 = vmatprep.subr.bf16.mxu1 %v5009_v12 }
  0xb8   :  { %2105 = vmatprep.subr.bf16.mxu0 %v4795_v17  ;;  %v4832_v17 = vld [vmem:[%s7081_s1 + $0x5b0] ss:$8 sps:$4 sm:$0xff]   ;;  %v4958_v12 = vld [vmem:[%s7081_s1 + $0x714] ss:$8 sps:$4 sm:$0xff]  }
  0xba   :  { %1977 = vmatpush1.bf16.msra.mxu1 %v5007_v16  ;;  %v4964_v16 = vld [vmem:[%s7081_s1 + $0x724] ss:$8 sps:$4 sm:$0xff]  }
  0xbb   :  { %2106 = vmatpush1.bf16.msra.mxu0 %v4793_v21  ;;  %v4837_v21 = vld [vmem:[%s7081_s1 + $0x5c4] ss:$8 sps:$4 sm:$0xff]   ;;  %1978 = vmatprep.subr.bf16.mxu1 %v5015_v20  ;;  %v4970_v20 = vld [vmem:[%s7081_s1 + $0x734] ss:$8 sps:$4 sm:$0xff]  }
  0xbc   :  { %2107 = vmatprep.subr.bf16.mxu0 %v4798_v23  ;;  %v4835_v23 = vld [vmem:[%s7081_s1 + $0x5c0] ss:$8 sps:$4 sm:$0xff]  }
  0xbe   :  { %1979 = vmatpush1.bf16.msra.mxu1 %v5013_v22  ;;  %v4976_v22 = vld [vmem:[%s7081_s1 + $0x744] ss:$8 sps:$4 sm:$0xff]  }
  0xbf   :  { %2108 = vmatpush1.bf16.msra.mxu0 %v4796_v28  ;;  %1980 = vmatprep.subr.bf16.mxu1 %v5021_v24  ;;  %v4838_v28 = vld [vmem:[%s7081_s1 + $0x5d0] ss:$8 sps:$4 sm:$0xff]   ;;  %v4982_v24 = vld [vmem:[%s7081_s1 + $0x754] ss:$8 sps:$4 sm:$0xff]  }
  0xc0   :  { %2118 = vmatprep.subr.bf16.mxu0 %v4801_v30  ;;  %v5027_v30 = vld [vmem:[%s7081_s1 + $0x1e4] ss:$8 sps:$4 sm:$0xff]  }
  0xc2   :  { %2110 = vmatmul.mubr.bf16.vlgmr.msra.gmra.mrb[0].mxu0 %v5827_v33  ;;  %1981 = vmatpush1.bf16.msra.mxu1 %v5019_v27  ;;  %v4988_v27 = vld [vmem:[%s7081_s1 + $0x764] ss:$8 sps:$4 sm:$0xff]  }
  0xc3   :  { %2119 = vmatpush1.bf16.msra.mxu0 %v4799_v35  ;;  %2150 = vmatprep.mubr.bf16.mxu0 %v431_v36  ;;  %v5033_v35 = vld [vmem:[%s7081_s1 + $0x1f4] ss:$8 sps:$4 sm:$0xff]  }
  0xc4   :  { %2120 = vmatprep.subr.bf16.mxu0 %v4804_v13  ;;  %1982 = vmatprep.subr.bf16.mxu1 %v5027_v30  ;;  %v4848_v36 = vld [vmem:[%s7081_s1 + $0x5f4] ss:$8 sps:$4 sm:$0xff]   ;;  %v4846_v13 = vld [vmem:[%s7081_s1 + $0x5f0] ss:$8 sps:$4 sm:$0xff]  }
  0xc5   :  { %v4992_v30 = vld [vmem:[%s7081_s1 + $0x770] ss:$8 sps:$4 sm:$0xff]  }
  0xc6   :  { %1983 = vmatpush1.bf16.msra.mxu1 %v5025_v19  ;;  %v4998_v19 = vld [vmem:[%s7081_s1 + $0x780] ss:$8 sps:$4 sm:$0xff]  }
  0xc7   :  { %2121 = vmatpush1.bf16.msra.mxu0 %v4802_v25  ;;  %1984 = vmatprep.subr.bf16.mxu1 %v5033_v35  ;;  %v400_v25 = vcombine.high %v6007_v34, %v6007_v34  ;;  %v5012_v35 = vld [vmem:[%s7081_s1 + $0x7a4] ss:$8 sps:$4 sm:$0xff]  }
  0xc8   :  { %2122 = vmatprep.subr.bf16.mxu0 %v4807_v40  ;;  %v429_v40 = vcombine.high %v5827_v33, %v5827_v33  ;;  %v4858_v33 = vld [vmem:[%s7081_s1 + $0x610] ss:$8 sps:$4 sm:$0xff]  }
  0xca   :  { %1985 = vmatpush1.bf16.msra.mxu1 %v5031_v37  ;;  %v5018_v37 = vld [vmem:[%s7081_s1 + $0x7b4] ss:$8 sps:$4 sm:$0xff]  }
  0xcb   :  { %2123 = vmatpush1.bf16.msra.mxu0 %v4805_v42  ;;  %v6034_v42 = vrot.slane %v400_v25, %v5433_v18  ;;  %v5022_v25 = vld [vmem:[%s7081_s1 + $0x7c0] ss:$8 sps:$4 sm:$0xff]  }
  0xcc   :  { %2124 = vmatprep.subr.bf16.mxu0 %v4810_v44  ;;  %v4864_v44 = vld [vmem:[%s7081_s1 + $0x620] ss:$8 sps:$4 sm:$0xff]  }
  0xcd   :  { %1987 = vmatmul.mubr.bf16.vlgmr.msra.gmra.mrb[0].mxu1 %v380_v38  ;;  %v5024_v38 = vld [vmem:[%s7081_s1 + $0x7c4] ss:$8 sps:$4 sm:$0xff]  }
  0xcf   :  { %2125 = vmatpush1.bf16.msra.mxu0 %v4808_v46  ;;  %v4870_v46 = vld [vmem:[%s7081_s1 + $0x630] ss:$8 sps:$4 sm:$0xff]  }
  0xd0   :  { %2126 = vmatprep.subr.bf16.mxu0 %v4813_v48  ;;  %v4876_v48 = vld [vmem:[%s7081_s1 + $0x640] ss:$8 sps:$4 sm:$0xff]  }
  0xd3   :  { %2127 = vmatpush1.bf16.msra.mxu0 %v4811_v50  ;;  %v4882_v50 = vld [vmem:[%s7081_s1 + $0x650] ss:$8 sps:$4 sm:$0xff]  }
  0xd4   :  { %2128 = vmatprep.subr.bf16.mxu0 %v4816_v52  ;;  %v4888_v52 = vld [vmem:[%s7081_s1 + $0x660] ss:$8 sps:$4 sm:$0xff]  }
  0xd7   :  { %2129 = vmatpush1.bf16.msra.mxu0 %v4814_v54  ;;  %v4894_v54 = vld [vmem:[%s7081_s1 + $0x670] ss:$8 sps:$4 sm:$0xff]  }
  0xd8   :  { %2130 = vmatprep.subr.bf16.mxu0 %v4819_v56  ;;  %v4900_v56 = vld [vmem:[%s7081_s1 + $0x680] ss:$8 sps:$4 sm:$0xff]  }
  0xdb   :  { %2131 = vmatpush1.bf16.msra.mxu0 %v4817_v58  ;;  %v4906_v58 = vld [vmem:[%s7081_s1 + $0x690] ss:$8 sps:$4 sm:$0xff]  }
  0xdc   :  { %2132 = vmatprep.subr.bf16.mxu0 %v4822_v60  ;;  %v4912_v60 = vld [vmem:[%s7081_s1 + $0x6a0] ss:$8 sps:$4 sm:$0xff]  }
  0xdf   :  { %2133 = vmatpush1.bf16.msra.mxu0 %v4820_v62  ;;  %v4918_v62 = vld [vmem:[%s7081_s1 + $0x6b0] ss:$8 sps:$4 sm:$0xff]  }
  0xe0   :  { %2134 = vmatprep.subr.bf16.mxu0 %v4825_v0  ;;  %v4924_v0 = vld [vmem:[%s7081_s1 + $0x6c0] ss:$8 sps:$4 sm:$0xff]  }
  0xe3   :  { %2135 = vmatpush1.bf16.msra.mxu0 %v4823_v2  ;;  %v4930_v2 = vld [vmem:[%s7081_s1 + $0x6d0] ss:$8 sps:$4 sm:$0xff]  }
  0xe4   :  { %2136 = vmatprep.subr.bf16.mxu0 %v4828_v4  ;;  %v4936_v4 = vld [vmem:[%s7081_s1 + $0x6e0] ss:$8 sps:$4 sm:$0xff]  }
  0xe7   :  { %2137 = vmatpush1.bf16.msra.mxu0 %v4826_v6  ;;  %v4943_v6 = vld [vmem:[%s7081_s1 + $0x6f0] ss:$8 sps:$4 sm:$0xff]  }
  0xe8   :  { %2138 = vmatprep.subr.bf16.mxu0 %v4831_v8  ;;  %v6132_v8 = vrot.slane %v6007_v34, %v5433_v18  ;;  %v5004_v34 = vld [vmem:[%s7081_s1 + $0x790] ss:$8 sps:$4 sm:$0xff]  }
  0xeb   :  { %2139 = vmatpush1.bf16.msra.mxu0 %v4829_v11  ;;  %v432_v11 = vcombine.high %v6034_v42, %v6034_v42 }
  0xec   :  { %2140 = vmatprep.subr.bf16.mxu0 %v4834_v15  ;;  %v4956_v15 = vld [vmem:[%s7081_s1 + $0x710] ss:$8 sps:$4 sm:$0xff]  }
  0xef   :  { %2141 = vmatpush1.bf16.msra.mxu0 %v4832_v17  ;;  %v4962_v17 = vld [vmem:[%s7081_s1 + $0x720] ss:$8 sps:$4 sm:$0xff]  }
  0xf0   :  { %2142 = vmatprep.subr.bf16.mxu0 %v4837_v21  ;;  %v4968_v21 = vld [vmem:[%s7081_s1 + $0x730] ss:$8 sps:$4 sm:$0xff]  }
  0xf3   :  { %2143 = vmatpush1.bf16.msra.mxu0 %v4835_v23  ;;  %v4974_v23 = vld [vmem:[%s7081_s1 + $0x740] ss:$8 sps:$4 sm:$0xff]  }
  0xf4   :  { %2144 = vmatprep.subr.bf16.mxu0 %v4840_v26  ;;  %v4980_v26 = vld [vmem:[%s7081_s1 + $0x750] ss:$8 sps:$4 sm:$0xff]  }
  0xf7   :  { %2145 = vmatpush1.bf16.msra.mxu0 %v4838_v28  ;;  %v4986_v28 = vld [vmem:[%s7081_s1 + $0x760] ss:$8 sps:$4 sm:$0xff]  }
  0xf8   :  { %2146 = vmatprep.subr.bf16.mxu0 %v4843_v31  ;;  %v5000_v31 = vld [vmem:[%s7081_s1 + $0x784] ss:$8 sps:$4 sm:$0xff]  }
  0xfb   :  { %2147 = vmatpush1.bf16.msra.mxu0 %v4841_v10  ;;  %v5006_v10 = vld [vmem:[%s7081_s1 + $0x794] ss:$8 sps:$4 sm:$0xff]  }
  0xfc   :  { %2148 = vmatprep.subr.bf16.mxu0 %v4848_v36  ;;  %v5010_v36 = vld [vmem:[%s7081_s1 + $0x7a0] ss:$8 sps:$4 sm:$0xff]  }
  0xff   :  { %2149 = vmatpush1.bf16.msra.mxu0 %v4846_v13  ;;  %v5016_v13 = vld [vmem:[%s7081_s1 + $0x7b0] ss:$8 sps:$4 sm:$0xff]  }
 0x100   :  { %2159 = vmatprep.subr.bf16.mxu0 %v4854_v39  ;;  %v5030_v39 = vld [vmem:[%s7081_s1 + $0x7d4] ss:$8 sps:$4 sm:$0xff]  }
 0x102   :  { %2151 = vmatmul.mubr.bf16.vlgmr.msra.gmra.mrb[0].mxu0 %v429_v40  ;;  %v5028_v40 = vld [vmem:[%s7081_s1 + $0x7d0] ss:$8 sps:$4 sm:$0xff]  }
 0x103   :  { %2160 = vmatpush1.bf16.msra.mxu0 %v4852_v41  ;;  %2191 = vmatprep.mubr.bf16.mxu0 %v6034_v42  ;;  %v5036_v41 = vld [vmem:[%s7081_s1 + $0x7e4] ss:$8 sps:$4 sm:$0xff]   ;;  %v5034_v42 = vld [vmem:[%s7081_s1 + $0x7e0] ss:$8 sps:$4 sm:$0xff]  }
 0x104   :  { %2161 = vmatprep.subr.bf16.mxu0 %v4860_v32  ;;  %v5039_v32 = vld [vmem:[%s7081_s1 + $0x7f4] ss:$8 sps:$4 sm:$0xff]  }
 0x107   :  { %2162 = vmatpush1.bf16.msra.mxu0 %v4858_v33  ;;  %v6230_v33 = vld.sshfl [vmem:[%s7082_s0 + $0x10] sm:$0x11 pattern:$0x75316420] }
 0x108   :  { %2163 = vmatprep.subr.bf16.mxu0 %v4866_v43  ;;  %v5037_v43 = vld [vmem:[%s7081_s1 + $0x7f0] ss:$8 sps:$4 sm:$0xff]  }
 0x10b   :  { %2164 = vmatpush1.bf16.msra.mxu0 %v4864_v44  ;;  %v440_v44 = vcombine.high %v6230_v33, %v6230_v33 }
 0x10c   :  { %2165 = vmatprep.subr.bf16.mxu0 %v4872_v45  ;;  %v5042_v45 = vld [vmem:[%s7081_s1 + $0x804] ss:$8 sps:$4 sm:$0xff]  }
 0x10f   :  { %2166 = vmatpush1.bf16.msra.mxu0 %v4870_v46  ;;  %v430_v46 = vcombine.high %v6132_v8, %v6132_v8 }
 0x110   :  { %2167 = vmatprep.subr.bf16.mxu0 %v4878_v47  ;;  %v5040_v47 = vld [vmem:[%s7081_s1 + $0x800] ss:$8 sps:$4 sm:$0xff]  }
 0x113   :  { %2168 = vmatpush1.bf16.msra.mxu0 %v4876_v48  ;;  %v454_v48 = vrot.slane %v440_v44, %v5433_v18  ;;  %v2349_v44 = vld [vmem:[%s7083_s4 + $0x70] sm:$0xff] }
 0x114   :  { %2169 = vmatprep.subr.bf16.mxu0 %v4884_v49  ;;  %v5045_v49 = vld [vmem:[%s7081_s1 + $0x814] ss:$8 sps:$4 sm:$0xff]  }
 0x117   :  { %2170 = vmatpush1.bf16.msra.mxu0 %v4882_v50  ;;  %v5043_v50 = vld [vmem:[%s7081_s1 + $0x810] ss:$8 sps:$4 sm:$0xff]  }
 0x118   :  { %2171 = vmatprep.subr.bf16.mxu0 %v4890_v51  ;;  %v5048_v51 = vld [vmem:[%s7081_s1 + $0x824] ss:$8 sps:$4 sm:$0xff]  }
 0x11b   :  { %2172 = vmatpush1.bf16.msra.mxu0 %v4888_v52  ;;  %v5046_v52 = vld [vmem:[%s7081_s1 + $0x820] ss:$8 sps:$4 sm:$0xff]  }
 0x11c   :  { %2173 = vmatprep.subr.bf16.mxu0 %v4896_v53  ;;  %v5051_v53 = vld [vmem:[%s7081_s1 + $0x834] ss:$8 sps:$4 sm:$0xff]  }
 0x11f   :  { %2174 = vmatpush1.bf16.msra.mxu0 %v4894_v54  ;;  %v5049_v54 = vld [vmem:[%s7081_s1 + $0x830] ss:$8 sps:$4 sm:$0xff]  }
 0x120   :  { %2175 = vmatprep.subr.bf16.mxu0 %v4902_v55  ;;  %v5054_v55 = vld [vmem:[%s7081_s1 + $0x844] ss:$8 sps:$4 sm:$0xff]  }
 0x123   :  { %2176 = vmatpush1.bf16.msra.mxu0 %v4900_v56  ;;  %v5052_v56 = vld [vmem:[%s7081_s1 + $0x840] ss:$8 sps:$4 sm:$0xff]  }
 0x124   :  { %2177 = vmatprep.subr.bf16.mxu0 %v4908_v57  ;;  %v5057_v57 = vld [vmem:[%s7081_s1 + $0x854] ss:$8 sps:$4 sm:$0xff]  }
 0x127   :  { %2178 = vmatpush1.bf16.msra.mxu0 %v4906_v58  ;;  %v5055_v58 = vld [vmem:[%s7081_s1 + $0x850] ss:$8 sps:$4 sm:$0xff]  }
 0x128   :  { %2179 = vmatprep.subr.bf16.mxu0 %v4914_v59  ;;  %v5060_v59 = vld [vmem:[%s7081_s1 + $0x864] ss:$8 sps:$4 sm:$0xff]  }
 0x12b   :  { %2180 = vmatpush1.bf16.msra.mxu0 %v4912_v60  ;;  %v5058_v60 = vld [vmem:[%s7081_s1 + $0x860] ss:$8 sps:$4 sm:$0xff]  }
 0x12c   :  { %2181 = vmatprep.subr.bf16.mxu0 %v4920_v61  ;;  %v5063_v61 = vld [vmem:[%s7081_s1 + $0x874] ss:$8 sps:$4 sm:$0xff]  }
 0x12f   :  { %2182 = vmatpush1.bf16.msra.mxu0 %v4918_v62  ;;  %v5061_v62 = vld [vmem:[%s7081_s1 + $0x870] ss:$8 sps:$4 sm:$0xff]  }
 0x130   :  { %2183 = vmatprep.subr.bf16.mxu0 %v4926_v63  ;;  %v5066_v63 = vld [vmem:[%s7081_s1 + $0x884] ss:$8 sps:$4 sm:$0xff]  }
 0x133   :  { %2184 = vmatpush1.bf16.msra.mxu0 %v4924_v0  ;;  %v5064_v0 = vld [vmem:[%s7081_s1 + $0x880] ss:$8 sps:$4 sm:$0xff]  }
 0x134   :  { %2185 = vmatprep.subr.bf16.mxu0 %v4932_v1  ;;  %v5069_v1 = vld [vmem:[%s7081_s1 + $0x894] ss:$8 sps:$4 sm:$0xff]  }
 0x137   :  { %2186 = vmatpush1.bf16.msra.mxu0 %v4930_v2  ;;  %v5067_v2 = vld [vmem:[%s7081_s1 + $0x890] ss:$8 sps:$4 sm:$0xff]  }
 0x138   :  { %2187 = vmatprep.subr.bf16.mxu0 %v4938_v3  ;;  %v5072_v3 = vld [vmem:[%s7081_s1 + $0x8a4] ss:$8 sps:$4 sm:$0xff]  }
 0x13b   :  { %2188 = vmatpush1.bf16.msra.mxu0 %v4936_v4  ;;  %v5070_v4 = vld [vmem:[%s7081_s1 + $0x8a0] ss:$8 sps:$4 sm:$0xff]  }
 0x13c   :  { %2189 = vmatprep.subr.bf16.mxu0 %v4945_v5  ;;  %v5075_v5 = vld [vmem:[%s7081_s1 + $0x8b4] ss:$8 sps:$4 sm:$0xff]  }
 0x13f   :  { %2190 = vmatpush1.bf16.msra.mxu0 %v4943_v6  ;;  %v5073_v6 = vld [vmem:[%s7081_s1 + $0x8b0] ss:$8 sps:$4 sm:$0xff]  }
 0x140   :  { %2200 = vmatprep.subr.bf16.mxu0 %v4952_v7  ;;  %v5078_v7 = vld [vmem:[%s7081_s1 + $0x8c4] ss:$8 sps:$4 sm:$0xff]  }
 0x142   :  { %2192 = vmatmul.mubr.bf16.vlgmr.msra.gmra.mrb[0].mxu0 %v6132_v8  ;;  %v5076_v8 = vld [vmem:[%s7081_s1 + $0x8c0] ss:$8 sps:$4 sm:$0xff]  }
 0x143   :  { %2201 = vmatpush1.bf16.msra.mxu0 %v4950_v9  ;;  %2232 = vmatprep.mubr.bf16.mxu0 %v432_v11  ;;  %v5081_v9 = vld [vmem:[%s7081_s1 + $0x8d4] ss:$8 sps:$4 sm:$0xff]   ;;  %v5079_v11 = vld [vmem:[%s7081_s1 + $0x8d0] ss:$8 sps:$4 sm:$0xff]  }
 0x144   :  { %2202 = vmatprep.subr.bf16.mxu0 %v4958_v12  ;;  %v5084_v12 = vld [vmem:[%s7081_s1 + $0x8e4] ss:$8 sps:$4 sm:$0xff]  }
 0x147   :  { %2203 = vmatpush1.bf16.msra.mxu0 %v4956_v15  ;;  %v5082_v15 = vld [vmem:[%s7081_s1 + $0x8e0] ss:$8 sps:$4 sm:$0xff]  }
 0x148   :  { %2204 = vmatprep.subr.bf16.mxu0 %v4964_v16  ;;  %v5087_v16 = vld [vmem:[%s7081_s1 + $0x8f4] ss:$8 sps:$4 sm:$0xff]  }
 0x14b   :  { %2205 = vmatpush1.bf16.msra.mxu0 %v4962_v17  ;;  %v5085_v17 = vld [vmem:[%s7081_s1 + $0x8f0] ss:$8 sps:$4 sm:$0xff]  }
 0x14c   :  { %2206 = vmatprep.subr.bf16.mxu0 %v4970_v20  ;;  %v447_v20 = vrot.slane %v6230_v33, %v5433_v18 }
 0x14f   :  { %2207 = vmatpush1.bf16.msra.mxu0 %v4968_v21 }
 0x150   :  { %2208 = vmatprep.subr.bf16.mxu0 %v4976_v22 }
 0x153   :  { %2209 = vmatpush1.bf16.msra.mxu0 %v4974_v23 }
 0x154   :  { %2210 = vmatprep.subr.bf16.mxu0 %v4982_v24 }
 0x157   :  { %2211 = vmatpush1.bf16.msra.mxu0 %v4980_v26  ;;  %v2336_v26 = vld [vmem:[%s7083_s4 + $0x8] sm:$0xff] }
 0x158   :  { %2212 = vmatprep.subr.bf16.mxu0 %v4988_v27  ;;  %v2338_v27 = vld [vmem:[%s7083_s4 + $0x18] sm:$0xff] }
 0x15b   :  { %2213 = vmatpush1.bf16.msra.mxu0 %v4986_v28  ;;  %v2335_v28 = vld [vmem:[%s7083_s4] sm:$0xff] }
 0x15c   :  { %2214 = vmatprep.subr.bf16.mxu0 %v4994_v29  ;;  %v4581_v29 = vpack.c.bf16 %v2338_v27, %v2336_v26 }
 0x15f   :  { %2215 = vmatpush1.bf16.msra.mxu0 %v4992_v30  ;;  %v2337_v30 = vld [vmem:[%s7083_s4 + $0x10] sm:$0xff] }
 0x160   :  { %2216 = vmatprep.subr.bf16.mxu0 %v5000_v31  ;;  %v2340_v31 = vld [vmem:[%s7083_s4 + $0x28] sm:$0xff] }
 0x163   :  { %2217 = vmatpush1.bf16.msra.mxu0 %v4998_v19  ;;  %v2342_v19 = vld [vmem:[%s7083_s4 + $0x38] sm:$0xff] }
 0x164   :  { %2218 = vmatprep.subr.bf16.mxu0 %v5006_v10  ;;  %v4583_v10 = vpack.c.bf16 %v2337_v30, %v2335_v28  ;;  %v2351_v28 = vld [vmem:[%s7083_s4 + $0x80] sm:$0xff] }
 0x167   :  { %2219 = vmatpush1.bf16.msra.mxu0 %v5004_v34  ;;  %v4585_v34 = vpack.c.bf16 %v2342_v19, %v2340_v31  ;;  %v2356_v31 = vld [vmem:[%s7083_s4 + $0xa8] sm:$0xff]  ;;  %v2358_v19 = vld [vmem:[%s7083_s4 + $0xb8] sm:$0xff] }
 0x168   :  { %2220 = vmatprep.subr.bf16.mxu0 %v5012_v35  ;;  %v2339_v35 = vld [vmem:[%s7083_s4 + $0x20] sm:$0xff] }
 0x16b   :  { %2221 = vmatpush1.bf16.msra.mxu0 %v5010_v36  ;;  %v2341_v36 = vld [vmem:[%s7083_s4 + $0x30] sm:$0xff] }
 0x16c   :  { %2222 = vmatprep.subr.bf16.mxu0 %v5018_v37  ;;  %v2344_v37 = vld [vmem:[%s7083_s4 + $0x48] sm:$0xff] }
 0x16f   :  { %2223 = vmatpush1.bf16.msra.mxu0 %v5016_v13  ;;  %v2346_v13 = vld [vmem:[%s7083_s4 + $0x58] sm:$0xff] }
 0x170   :  { %2224 = vmatprep.subr.bf16.mxu0 %v5024_v38  ;;  %v4587_v38 = vpack.c.bf16 %v2341_v36, %v2339_v35  ;;  %v2357_v35 = vld [vmem:[%s7083_s4 + $0xb0] sm:$0xff] }
 0x173   :  { %2225 = vmatpush1.bf16.msra.mxu0 %v5022_v25  ;;  %v4589_v25 = vpack.c.bf16 %v2346_v13, %v2344_v37  ;;  %v2360_v37 = vld [vmem:[%s7083_s4 + $0xc8] sm:$0xff]  ;;  %v2362_v13 = vld [vmem:[%s7083_s4 + $0xd8] sm:$0xff] }
 0x174   :  { %2226 = vmatprep.subr.bf16.mxu0 %v5030_v39  ;;  %v2343_v39 = vld [vmem:[%s7083_s4 + $0x40] sm:$0xff] }
 0x177   :  { %2227 = vmatpush1.bf16.msra.mxu0 %v5028_v40  ;;  %v2345_v40 = vld [vmem:[%s7083_s4 + $0x50] sm:$0xff] }
 0x178   :  { %2228 = vmatprep.subr.bf16.mxu0 %v5036_v41  ;;  %v2348_v41 = vld [vmem:[%s7083_s4 + $0x68] sm:$0xff] }
 0x17b   :  { %2229 = vmatpush1.bf16.msra.mxu0 %v5034_v42  ;;  %v2350_v42 = vld [vmem:[%s7083_s4 + $0x78] sm:$0xff] }
 0x17c   :  { %2230 = vmatprep.subr.bf16.mxu0 %v5039_v32  ;;  %v4591_v32 = vpack.c.bf16 %v2345_v40, %v2343_v39  ;;  %v4593_v33 = vpack.c.bf16 %v2350_v42, %v2348_v41  ;;  %v2361_v39 = vld [vmem:[%s7083_s4 + $0xd0] sm:$0xff]  ;;  %v2364_v41 = vld [vmem:[%s7083_s4 + $0xe8] sm:$0xff]  ;;  %v2366_v42 = vld [vmem:[%s7083_s4 + $0xf8] sm:$0xff] }
 0x17f   :  { %2231 = vmatpush1.bf16.msra.mxu0 %v5037_v43  ;;  %v2347_v43 = vld [vmem:[%s7083_s4 + $0x60] sm:$0xff] }
 0x180   :  { %2241 = vmatprep.subr.bf16.mxu0 %v5042_v45  ;;  %v2352_v45 = vld [vmem:[%s7083_s4 + $0x88] sm:$0xff] }
 0x182   :  { %2233 = vmatmul.mubr.bf16.vlgmr.msra.gmra.mrb[0].mxu0 %v430_v46  ;;  %v2354_v46 = vld [vmem:[%s7083_s4 + $0x98] sm:$0xff] }
 0x183   :  { %2242 = vmatpush1.bf16.msra.mxu0 %v5040_v47  ;;  %2273 = vmatprep.mubr.bf16.mxu0 %v454_v48  ;;  %v4595_v47 = vpack.c.bf16 %v2349_v44, %v2347_v43  ;;  %v4597_v48 = vpack.c.bf16 %v2354_v46, %v2352_v45  ;;  %v2365_v43 = vld [vmem:[%s7083_s4 + $0xf0] sm:$0xff]  ;;  %v2368_v44 = vld [vmem:[%s7083_s4 + $0x108] sm:$0xff]  ;;  %v2370_v45 = vld [vmem:[%s7083_s4 + $0x118] sm:$0xf] }
 0x184   :  { %2243 = vmatprep.subr.bf16.mxu0 %v5045_v49  ;;  %v2297_v49 = vld [vmem:[%s7084_s3] sm:$0xf] }
 0x187   :  { %2244 = vmatpush1.bf16.msra.mxu0 %v5043_v50  ;;  %v2298_v50 = vadd.f32 1e-07, %v2297_v49  ;;  %v2369_v49 = vld [vmem:[%s7083_s4 + $0x110] sm:$0xf] }
 0x188   :  { %2245 = vmatprep.subr.bf16.mxu0 %v5048_v51 }
 0x189   :  { %5331 = vlog2.f32 %v2298_v50 }
 0x18b   :  { %2246 = vmatpush1.bf16.msra.mxu0 %v5046_v52 }
 0x18c   :  { %2247 = vmatprep.subr.bf16.mxu0 %v5051_v53 }
 0x18f   :  { %2248 = vmatpush1.bf16.msra.mxu0 %v5049_v54 }
 0x190   :  { %2249 = vmatprep.subr.bf16.mxu0 %v5054_v55  ;;  %v5344_v55 = vmov 1983009808  }
 0x193   :  { %2250 = vmatpush1.bf16.msra.mxu0 %v5052_v56  ;;  %v5332_v51 = vpop.eup %5331  ;;  %v2286_v56 = vunpack.c.l.s4 %v5344_v55  ;;  %v5096_v55 = vld [vmem:[%s7087_s5 + $0x124] ss:$72 sps:$4 sm:$0xff]  }
 0x194   :  { %2251 = vmatprep.subr.bf16.mxu0 %v5057_v57  ;;  %v2300_v52 = vmul.f32 0.6931472, %v5332_v51  ;;  %v5088_v51 = vld [vmem:[%s7087_s5] ss:$72 sps:$4 sm:$0xff]  }
 0x196   :  { %v2301_v53 = vsub.f32 0.0, %v2300_v52  ;;  %v5090_v52 = vld [vmem:[%s7087_s5 + $0x4] ss:$72 sps:$4 sm:$0xff]  }
 0x197   :  { %2252 = vmatpush1.bf16.msra.mxu0 %v5055_v58  ;;  %v2287_v58 = vunpack.c.0.s8 %v2286_v56  ;;  %3567 = vmatprep.subr.bf16.mxu1 %v5090_v52  ;;  %v5094_v56 = vld [vmem:[%s7087_s5 + $0x120] ss:$72 sps:$4 sm:$0xff]   ;;  %v5153_v52 = vld [vmem:[%s7087_s5 + $0x1c4] ss:$72 sps:$4 sm:$0xff]  }
 0x198   :  { %2253 = vmatprep.subr.bf16.mxu0 %v5060_v59  ;;  %v2302_v54 = vadd.f32 1e-07, %v2301_v53  ;;  %v5093_v53 = vld [vmem:[%s7087_s5 + $0x94] ss:$72 sps:$4 sm:$0xff]   ;;  %3568 = vmatpush1.bf16.msra.mxu1 %v5088_v51  ;;  %v5148_v51 = vld [vmem:[%s7087_s5 + $0x130] ss:$72 sps:$4 sm:$0xff]  }
 0x199   :  { %3569 = vmatprep.subr.bf16.mxu1 %v5093_v53  ;;  %v5151_v53 = vld [vmem:[%s7087_s5 + $0x1c0] ss:$72 sps:$4 sm:$0xff]  }
 0x19a   :  { %5333 = vlog2.f32 %v2302_v54  ;;  %v5091_v54 = vld [vmem:[%s7087_s5 + $0x90] ss:$72 sps:$4 sm:$0xff]  }
 0x19b   :  { %2254 = vmatpush1.bf16.msra.mxu0 %v5058_v60  ;;  %v6400_v60 = vsub.s32 0, %v5424_v14 }
 0x19c   :  { %2255 = vmatprep.subr.bf16.mxu0 %v5063_v61  ;;  %v320_v61 = vld [vmem:[%s7085_s2] sm:$0x3]  ;;  %3570 = vmatpush1.bf16.msra.mxu1 %v5091_v54  ;;  %v5156_v54 = vld [vmem:[%s7087_s5 + $0x254] ss:$72 sps:$4 sm:$0xff]  }
 0x19d   :  { %3571 = vmatprep.subr.bf16.mxu1 %v5096_v55  ;;  %v5154_v55 = vld [vmem:[%s7087_s5 + $0x250] ss:$72 sps:$4 sm:$0xff]  }
 0x19f   :  { %2256 = vmatpush1.bf16.msra.mxu0 %v5061_v62  ;;  %v6406_v62 = vsub.s32 1, %v5424_v14 }
 0x1a0   :  { %2257 = vmatprep.subr.bf16.mxu0 %v5066_v63  ;;  %v6338_v21 = vpop.f32.mrb[0].mxu1  ;;  %v2290_v63 = vsub.s32 %v2287_v58, %v5424_v14  ;;  %v5097_v58 = vld [vmem:[%s7087_s5 + $0x1b0] ss:$72 sps:$4 sm:$0xff]   ;;  %3572 = vmatpush1.bf16.msra.mxu1 %v5094_v56  ;;  %v5159_v56 = vld [vmem:[%s7087_s5 + $0x2e4] ss:$72 sps:$4 sm:$0xff]  }
 0x1a1   :  { %v6340_v22 = vpop.f32.mrb[1].mxu1 }
 0x1a2   :  { %v1992_v23 = vpop.f32.mrb[2].mxu1 }
 0x1a3   :  { %2258 = vmatpush1.bf16.msra.mxu0 %v5064_v0  ;;  %v1993_v24 = vpop.f32.mrb[3].mxu1 }
 0x1a4   :  { %2259 = vmatprep.subr.bf16.mxu0 %v5069_v1  ;;  %v5334_v57 = vpop.eup %5333  ;;  %v325_v1 = vrot.slane %v320_v61, %v6400_v60 }
 0x1a5   :  { %v2304_v59 = vmul.f32 0.6931472, %v5334_v57  ;;  %v5099_v57 = vld [vmem:[%s7087_s5 + $0x1b4] ss:$72 sps:$4 sm:$0xff]  }
 0x1a6   :  { %3573 = vmatprep.subr.bf16.mxu1 %v5099_v57  ;;  %v5157_v57 = vld [vmem:[%s7087_s5 + $0x2e0] ss:$72 sps:$4 sm:$0xff]  }
 0x1a7   :  { %2260 = vmatpush1.bf16.msra.mxu0 %v5067_v2  ;;  %v2305_v0 = vsub.f32 0.0, %v2304_v59  ;;  %v329_v2 = vrot.slane %v320_v61, %v6406_v62  ;;  %v5102_v59 = vld [vmem:[%s7087_s5 + $0x244] ss:$72 sps:$4 sm:$0xff]   ;;  %v5100_v61 = vld [vmem:[%s7087_s5 + $0x240] ss:$72 sps:$4 sm:$0xff]   ;;  %3574 = vmatpush1.bf16.msra.mxu1 %v5097_v58 }
 0x1a8   :  { %2261 = vmatprep.subr.bf16.mxu0 %v5072_v3  ;;  %3575 = vmatprep.subr.bf16.mxu1 %v5102_v59  ;;  %v5162_v58 = vld [vmem:[%s7087_s5 + $0x374] ss:$72 sps:$4 sm:$0xff]   ;;  %v5160_v59 = vld [vmem:[%s7087_s5 + $0x370] ss:$72 sps:$4 sm:$0xff]  }
 0x1a9   :  { %v2313_v3 = vrot.slane %v2305_v0, %v2290_v63 }
 0x1ab   :  { %2262 = vmatpush1.bf16.msra.mxu0 %v5070_v4  ;;  %v4619_v4 = vadd.f32 %v6338_v21, %v325_v1  ;;  %3576 = vmatpush1.bf16.msra.mxu1 %v5100_v61  ;;  %v5165_v61 = vld [vmem:[%s7087_s5 + $0x404] ss:$72 sps:$4 sm:$0xff]  }
 0x1ac   :  { %2263 = vmatprep.subr.bf16.mxu0 %v5075_v5  ;;  %v4621_v5 = vadd.f32 %v6340_v22, %v329_v2 }
 0x1af   :  { %2264 = vmatpush1.bf16.msra.mxu0 %v5073_v6 }
 0x1b0   :  { %2265 = vmatprep.subr.bf16.mxu0 %v5078_v7  ;;  %v2314_v7 = vcombine.high %v2313_v3, %v2313_v3 }
 0x1b3   :  { %2266 = vmatpush1.bf16.msra.mxu0 %v5076_v8 }
 0x1b4   :  { %2267 = vmatprep.subr.bf16.mxu0 %v5081_v9 }
 0x1b7   :  { %2268 = vmatpush1.bf16.msra.mxu0 %v5079_v11 }
 0x1b8   :  { %2269 = vmatprep.subr.bf16.mxu0 %v5084_v12 }
 0x1bb   :  { %2270 = vmatpush1.bf16.msra.mxu0 %v5082_v15 }
 0x1bc   :  { %2271 = vmatprep.subr.bf16.mxu0 %v5087_v16 }
 0x1bf   :  { %2272 = vmatpush1.bf16.msra.mxu0 %v5085_v17 }
 0x1c0   :  { %4582 = vmatprep.subr.bf16.mxu0 %v4581_v29  ;;  %v2353_v29 = vld [vmem:[%s7083_s4 + $0x90] sm:$0xff] }
 0x1c1   :  { %v4599_v30 = vpack.c.bf16 %v2353_v29, %v2351_v28 }
 0x1c2   :  { %2274 = vmatmul.mubr.bf16.vlgmr.msra.gmra.mrb[0].mxu0 %v447_v20 }
 0x1c3   :  { %4584 = vmatpush1.bf16.msra.mxu0 %v4583_v10  ;;  %v4601_v10 = vpack.c.bf16 %v2358_v19, %v2356_v31  ;;  %v5115_v31 = vld [vmem:[%s7087_s5 + $0x8] ss:$72 sps:$4 sm:$0xff]  }
 0x1c4   :  { %4586 = vmatprep.subr.bf16.mxu0 %v4585_v34  ;;  %v2355_v34 = vld [vmem:[%s7083_s4 + $0xa0] sm:$0xff] }
 0x1c5   :  { %v4603_v36 = vpack.c.bf16 %v2357_v35, %v2355_v34  ;;  %v5118_v34 = vld [vmem:[%s7087_s5 + $0x98] ss:$72 sps:$4 sm:$0xff]   ;;  %v5123_v35 = vld [vmem:[%s7087_s5 + $0x12c] ss:$72 sps:$4 sm:$0xff]  }
 0x1c7   :  { %4588 = vmatpush1.bf16.msra.mxu0 %v4587_v38  ;;  %v4605_v38 = vpack.c.bf16 %v2362_v13, %v2360_v37  ;;  %v5126_v37 = vld [vmem:[%s7087_s5 + $0x1bc] ss:$72 sps:$4 sm:$0xff]   ;;  %v5124_v13 = vld [vmem:[%s7087_s5 + $0x1b8] ss:$72 sps:$4 sm:$0xff]  }
 0x1c8   :  { %4590 = vmatprep.subr.bf16.mxu0 %v4589_v25  ;;  %v2359_v25 = vld [vmem:[%s7083_s4 + $0xc0] sm:$0xff] }
 0x1c9   :  { %v4607_v40 = vpack.c.bf16 %v2361_v39, %v2359_v25  ;;  %v5127_v25 = vld [vmem:[%s7087_s5 + $0x248] ss:$72 sps:$4 sm:$0xff]   ;;  %v5132_v39 = vld [vmem:[%s7087_s5 + $0x2dc] ss:$72 sps:$4 sm:$0xff]  }
 0x1cb   :  { %4592 = vmatpush1.bf16.msra.mxu0 %v4591_v32  ;;  %v2363_v32 = vld [vmem:[%s7083_s4 + $0xe0] sm:$0xff] }
 0x1cc   :  { %4594 = vmatprep.subr.bf16.mxu0 %v4593_v33  ;;  %v4609_v33 = vpack.c.bf16 %v2366_v42, %v2364_v41  ;;  %v4611_v46 = vpack.c.bf16 %v2365_v43, %v2363_v32  ;;  %v5135_v41 = vld [vmem:[%s7087_s5 + $0x36c] ss:$72 sps:$4 sm:$0xff]   ;;  %v5133_v42 = vld [vmem:[%s7087_s5 + $0x368] ss:$72 sps:$4 sm:$0xff]   ;;  %v5138_v32 = vld [vmem:[%s7087_s5 + $0x3fc] ss:$72 sps:$4 sm:$0xff]  }
 0x1cd   :  { %v5139_v43 = vld [vmem:[%s7087_s5 + $0x48c] ss:$72 sps:$4 sm:$0x3f]  }
 0x1cf   :  { %4596 = vmatpush1.bf16.msra.mxu0 %v4595_v47  ;;  %v4613_v47 = vpack.c.bf16 %v2370_v45, %v2368_v44  ;;  %v5141_v44 = vld [vmem:[%s7087_s5 + $0x488] ss:$72 sps:$4 sm:$0x3f]  }
 0x1d0   :  { %4598 = vmatprep.subr.bf16.mxu0 %v4597_v48  ;;  %v2367_v48 = vld [vmem:[%s7083_s4 + $0x100] sm:$0xff]  ;;  %v3520_v45 = vsel %vm3512_vm8, %v5141_v44, 0 }
 0x1d1   :  { %v4616_v50 = vpack.c.bf16 %v2369_v49, %v2367_v48  ;;  %v5147_v48 = vld [vmem:[%s7087_s5 + $0xa4] ss:$72 sps:$4 sm:$0xff]   ;;  %v5145_v49 = vld [vmem:[%s7087_s5 + $0xa0] ss:$72 sps:$4 sm:$0xff]  }
 0x1d3   :  { %4600 = vmatpush1.bf16.msra.mxu0 %v4599_v30 }
 0x1d4   :  { %4602 = vmatprep.subr.bf16.mxu0 %v4601_v10  ;;  %v5120_v10 = vld [vmem:[%s7087_s5 + $0x9c] ss:$72 sps:$4 sm:$0xff]  }
 0x1d7   :  { %4604 = vmatpush1.bf16.msra.mxu0 %v4603_v36  ;;  %v5121_v36 = vld [vmem:[%s7087_s5 + $0x128] ss:$72 sps:$4 sm:$0xff]  }
 0x1d8   :  { %4606 = vmatprep.subr.bf16.mxu0 %v4605_v38  ;;  %v5129_v38 = vld [vmem:[%s7087_s5 + $0x24c] ss:$72 sps:$4 sm:$0xff]  }
 0x1db   :  { %4608 = vmatpush1.bf16.msra.mxu0 %v4607_v40  ;;  %v5130_v40 = vld [vmem:[%s7087_s5 + $0x2d8] ss:$72 sps:$4 sm:$0xff]  }
 0x1dc   :  { %4610 = vmatprep.subr.bf16.mxu0 %v4609_v33  ;;  %v5136_v33 = vld [vmem:[%s7087_s5 + $0x3f8] ss:$72 sps:$4 sm:$0xff]  }
 0x1df   :  { %4612 = vmatpush1.bf16.msra.mxu0 %v4611_v46  ;;  %v5144_v46 = vld [vmem:[%s7087_s5 + $0x14] ss:$72 sps:$4 sm:$0xff]  }
 0x1e0   :  { %4615 = vmatprep.subr.msk.bf16.mxu0 %vm4614_vm6, %v4613_v47  ;;  %v5142_v47 = vld [vmem:[%s7087_s5 + $0x10] ss:$72 sps:$4 sm:$0xff]  }
 0x1e3   :  { %4618 = vmatpush1.bf16.msk.msra.mxu0 %vm4614_vm6, %v4616_v50  ;;  %v5150_v50 = vld [vmem:[%s7087_s5 + $0x134] ss:$72 sps:$4 sm:$0xff]  }
 0x295   :  { %v2275_v6 = vpop.f32.mrb[0].mxu0 }
 0x296   :  { %v4620_v8 = vadd.f32 %v4619_v4, %v2275_v6  ;;  %v2277_v9 = vpop.f32.mrb[1].mxu0 }
 0x297   :  { %v4622_v11 = vadd.f32 %v4621_v5, %v2277_v9  ;;  %v2279_v12 = vpop.f32.mrb[2].mxu0  ;;  %v5103_v9 = vld [vmem:[%s7087_s5 + $0x2d0] ss:$72 sps:$4 sm:$0xff]  }
 0x298   :  { %v2317_v15 = vadd.f32 %v4620_v8, %v2313_v3  ;;  %v2280_v16 = vpop.f32.mrb[3].mxu0  ;;  %v5106_v12 = vld [vmem:[%s7087_s5 + $0x360] ss:$72 sps:$4 sm:$0xff]  }
 0x299   :  { %v2284_v17 = vcombine.low %v4620_v8, %v4622_v11  ;;  %v2318_v20 = vadd.f32 %v4622_v11, %v2314_v7  ;;  %v5105_v8 = vld [vmem:[%s7087_s5 + $0x2d4] ss:$72 sps:$4 sm:$0xff]   ;;  %v5108_v11 = vld [vmem:[%s7087_s5 + $0x364] ss:$72 sps:$4 sm:$0xff]   ;;  %v5109_v16 = vld [vmem:[%s7087_s5 + $0x3f0] ss:$72 sps:$4 sm:$0xff]  }
 0x29a   :  { %v6413_v23 = vmul.f32 2.0, %v2317_v15  ;;  %3577 = vmatprep.subr.bf16.mxu1 %v5105_v8  ;;  %v5111_v15 = vld [vmem:[%s7087_s5 + $0x3f4] ss:$72 sps:$4 sm:$0xff]   ;;  %v5175_v8 = vld [vmem:[%s7087_s5 + $0x138] ss:$72 sps:$4 sm:$0xff]  }
 0x29b   :  { %v2291_v24 = vrot.slane %v2284_v17, %v2290_v63  ;;  %v6415_v21 = vmul.f32 2.0, %v2318_v20  ;;  %3578 = vmatpush1.bf16.msra.mxu1 %v5103_v9  ;;  %v5112_v17 = vld [vmem:[%s7087_s5 + $0x484] ss:$72 sps:$4 sm:$0x3f]  }
 0x29c   :  { %v2321_v22 = vsel %vm2293_vm0, %v6413_v23, -inf  ;;  %3579 = vmatprep.subr.bf16.mxu1 %v5108_v11  ;;  %v5114_v20 = vld [vmem:[%s7087_s5 + $0x480] ss:$72 sps:$4 sm:$0x3f]   ;;  %v5180_v9 = vld [vmem:[%s7087_s5 + $0x1cc] ss:$72 sps:$4 sm:$0xff]  }
 0x29d   :  { %2296 = vst.msk [vmem:[%s7086_s7] sm:$0xf] %vm2295_vm2, %v2291_v24  ;;  %v2323_v26 = vsel %vm2322_vm3, %v6415_v21, -inf  ;;  %v5117_v24 = vld [vmem:[%s7087_s5 + $0xc] ss:$72 sps:$4 sm:$0xff]  }
 0x29e   :  { %v2324_v27 = vmax.f32 %v2321_v22, %v2323_v26  ;;  %v5178_v11 = vld [vmem:[%s7087_s5 + $0x1c8] ss:$72 sps:$4 sm:$0xff]  }
 0x29f   :  { %3580 = vmatpush1.bf16.msra.mxu1 %v5106_v12  ;;  %v5183_v12 = vld [vmem:[%s7087_s5 + $0x25c] ss:$72 sps:$4 sm:$0xff]  }
 0x2a0   :  { %2325 = vmax.xlane.f32.xlu0 %v2324_v27  ;;  %3581 = vmatprep.subr.bf16.mxu1 %v5111_v15  ;;  %v5181_v15 = vld [vmem:[%s7087_s5 + $0x258] ss:$72 sps:$4 sm:$0xff]  }
 0x2a3   :  { %3582 = vmatpush1.bf16.msra.mxu1 %v5109_v16  ;;  %v5186_v16 = vld [vmem:[%s7087_s5 + $0x2ec] ss:$72 sps:$4 sm:$0xff]  }
 0x2a4   :  { %4553 = vmatprep.subr.msk.bf16.mxu1 %vm3512_vm8, %v5112_v17  ;;  %v5184_v17 = vld [vmem:[%s7087_s5 + $0x2e8] ss:$72 sps:$4 sm:$0xff]  }
 0x32d   :  { %v2326_v63 = vpop.xlane.xlu0 %2325 }
 0x32e   :  { %v2327_v0 = vsub.f32 %v6413_v23, %v2326_v63  ;;  %v2328_v1 = vsub.f32 %v6415_v21, %v2326_v63  ;;  %v3514_v23 = vsel %vm3512_vm8, %v5114_v20, 0  ;;  %v5163_v63 = vld [vmem:[%s7087_s5 + $0x400] ss:$72 sps:$4 sm:$0xff]   ;;  %v5189_v20 = vld [vmem:[%s7087_s5 + $0x37c] ss:$72 sps:$4 sm:$0xff]  }
 0x32f   :  { %3584 = vmatpush1.bf16.msra.mxu1 %v3514_v23  ;;  %v5187_v23 = vld [vmem:[%s7087_s5 + $0x378] ss:$72 sps:$4 sm:$0xff]  }
 0x330   :  { %v2329_v2 = vmax.f32 %v2327_v0, -75.0  ;;  %v2330_v3 = vmax.f32 %v2328_v1, -75.0  ;;  %3608 = vmatprep.subr.bf16.mxu1 %v5117_v24  ;;  %v5166_v0 = vld [vmem:[%s7087_s5 + $0x494] ss:$72 sps:$4 sm:$0x3f]  }
 0x331   :  { %v5168_v1 = vld [vmem:[%s7087_s5 + $0x490] ss:$72 sps:$4 sm:$0x3f]   ;;  %v5192_v24 = vld [vmem:[%s7087_s5 + $0x40c] ss:$72 sps:$4 sm:$0xff]  }
 0x332   :  { %v2331_v4 = vmul.f32 1.442695, %v2329_v2  ;;  %v2333_v5 = vmul.f32 1.442695, %v2330_v3  ;;  %v3526_v2 = vsel %vm3512_vm8, %v5168_v1, 0 }
 0x333   :  { %v5171_v3 = vld [vmem:[%s7087_s5 + $0x1c] ss:$72 sps:$4 sm:$0xff]  }
 0x334   :  { %5335 = vpow2.f32 %v2331_v4  ;;  %v5169_v4 = vld [vmem:[%s7087_s5 + $0x18] ss:$72 sps:$4 sm:$0xff]  }
 0x335   :  { %5337 = vpow2.f32 %v2333_v5  ;;  %v5174_v5 = vld [vmem:[%s7087_s5 + $0xac] ss:$72 sps:$4 sm:$0xff]  }
 0x33e   :  { %v5336_v6 = vpop.eup %5335 }
 0x33f   :  { %v5338_v7 = vpop.eup %5337 }
 0x340   :  { %4390 = vmatprep.mubr.msk.f32.mxu0 %vm2371_vm7, %v5338_v7 }
 0x341   :  { %2447 = vmatmul.mubr.f32.vlgmr.msra.gmra.mrb[4].mxu0 %v5336_v6 }
 0x414   :  { %v2448_v21 = vpop.f32.mrb[4].mxu0 }
 0x415   :  { %5339 = vrcp.f32 %v2448_v21  ;;  %v2450_v22 = vpop.f32.mrb[5].mxu0  ;;  %v5190_v21 = vld [vmem:[%s7087_s5 + $0x408] ss:$72 sps:$4 sm:$0xff]  }
 0x416   :  { %5341 = vrcp.f32 %v2450_v22  ;;  %v5193_v22 = vld [vmem:[%s7087_s5 + $0x49c] ss:$72 sps:$4 sm:$0x3f]  }
 0x41f   :  { %v5340_v26 = vpop.eup %5339 }
 0x420   :  { %v5342_v27 = vpop.eup %5341  ;;  %v2455_v28 = vmul.f32 %v5340_v26, %v5336_v6  ;;  %v5172_v6 = vld [vmem:[%s7087_s5 + $0xa8] ss:$72 sps:$4 sm:$0xff]   ;;  %v5195_v26 = vld [vmem:[%s7087_s5 + $0x498] ss:$72 sps:$4 sm:$0x3f]  }
 0x421   :  { %v2456_v29 = vmul.f32 %v5342_v27, %v5338_v7  ;;  %v5177_v7 = vld [vmem:[%s7087_s5 + $0x13c] ss:$72 sps:$4 sm:$0xff]   ;;  %v3532_v27 = vsel %vm3512_vm8, %v5195_v26, 0  ;;  %v5276_v26 = vld [vmem:[%s7087_s5 + $0x4b0] ss:$72 sps:$4 sm:$0x3f]  }
 0x422   :  { %v6543_v19 = vpack.c.bf16 %v2455_v28, %v2455_v28  ;;  %v5198_v28 = vld [vmem:[%s7087_s5 + $0x24] ss:$72 sps:$4 sm:$0xff]  }
 0x423   :  { %v6538_v30 = vpack.c.bf16 %v2456_v29, %v2456_v29  ;;  %v5196_v29 = vld [vmem:[%s7087_s5 + $0x20] ss:$72 sps:$4 sm:$0xff]  }
 0x425   :  { %4554 = vmatprep.mubr.msk.bf16.mxu1 %vm2371_vm7, %v6538_v30 }
 0x426   :  { %3600 = vmatmul.mubr.bf16.vlgmr.msra.gmra.mrb[4].mxu1 %v6543_v19 }
 0x427   :  { %3609 = vmatpush1.bf16.msra.mxu1 %v5115_v31  ;;  %4556 = vmatprep.mubr.msk.bf16.mxu1 %vm2371_vm7, %v6538_v30  ;;  %v5201_v31 = vld [vmem:[%s7087_s5 + $0xb4] ss:$72 sps:$4 sm:$0xff]  }
 0x428   :  { %3610 = vmatprep.subr.bf16.mxu1 %v5120_v10  ;;  %v5199_v10 = vld [vmem:[%s7087_s5 + $0xb0] ss:$72 sps:$4 sm:$0xff]  }
 0x42b   :  { %3611 = vmatpush1.bf16.msra.mxu1 %v5118_v34  ;;  %v5204_v34 = vld [vmem:[%s7087_s5 + $0x144] ss:$72 sps:$4 sm:$0xff]  }
 0x42c   :  { %3612 = vmatprep.subr.bf16.mxu1 %v5123_v35  ;;  %v5202_v35 = vld [vmem:[%s7087_s5 + $0x140] ss:$72 sps:$4 sm:$0xff]  }
 0x42f   :  { %3613 = vmatpush1.bf16.msra.mxu1 %v5121_v36  ;;  %v5207_v36 = vld [vmem:[%s7087_s5 + $0x1d4] ss:$72 sps:$4 sm:$0xff]  }
 0x430   :  { %3614 = vmatprep.subr.bf16.mxu1 %v5126_v37  ;;  %v5205_v37 = vld [vmem:[%s7087_s5 + $0x1d0] ss:$72 sps:$4 sm:$0xff]  }
 0x433   :  { %3615 = vmatpush1.bf16.msra.mxu1 %v5124_v13  ;;  %v5210_v13 = vld [vmem:[%s7087_s5 + $0x264] ss:$72 sps:$4 sm:$0xff]  }
 0x434   :  { %3616 = vmatprep.subr.bf16.mxu1 %v5129_v38  ;;  %v5208_v38 = vld [vmem:[%s7087_s5 + $0x260] ss:$72 sps:$4 sm:$0xff]  }
 0x437   :  { %3617 = vmatpush1.bf16.msra.mxu1 %v5127_v25  ;;  %v5213_v25 = vld [vmem:[%s7087_s5 + $0x2f4] ss:$72 sps:$4 sm:$0xff]  }
 0x438   :  { %3618 = vmatprep.subr.bf16.mxu1 %v5132_v39  ;;  %v5211_v39 = vld [vmem:[%s7087_s5 + $0x2f0] ss:$72 sps:$4 sm:$0xff]  }
 0x43b   :  { %3619 = vmatpush1.bf16.msra.mxu1 %v5130_v40  ;;  %v5216_v40 = vld [vmem:[%s7087_s5 + $0x384] ss:$72 sps:$4 sm:$0xff]  }
 0x43c   :  { %3620 = vmatprep.subr.bf16.mxu1 %v5135_v41  ;;  %v5214_v41 = vld [vmem:[%s7087_s5 + $0x380] ss:$72 sps:$4 sm:$0xff]  }
 0x43f   :  { %3621 = vmatpush1.bf16.msra.mxu1 %v5133_v42  ;;  %v5219_v42 = vld [vmem:[%s7087_s5 + $0x414] ss:$72 sps:$4 sm:$0xff]  }
 0x440   :  { %3622 = vmatprep.subr.bf16.mxu1 %v5138_v32  ;;  %v5217_v32 = vld [vmem:[%s7087_s5 + $0x410] ss:$72 sps:$4 sm:$0xff]  }
 0x443   :  { %3623 = vmatpush1.bf16.msra.mxu1 %v5136_v33  ;;  %v5220_v33 = vld [vmem:[%s7087_s5 + $0x4a4] ss:$72 sps:$4 sm:$0x3f]  }
 0x444   :  { %4555 = vmatprep.subr.msk.bf16.mxu1 %vm3512_vm8, %v5139_v43  ;;  %v5222_v43 = vld [vmem:[%s7087_s5 + $0x4a0] ss:$72 sps:$4 sm:$0x3f]  }
 0x445   :  { %v3538_v44 = vsel %vm3512_vm8, %v5222_v43, 0  ;;  %v5291_v43 = vld [vmem:[%s7087_s5 + $0x27c] ss:$72 sps:$4 sm:$0xff]  }
 0x447   :  { %3625 = vmatpush1.bf16.msra.mxu1 %v3520_v45  ;;  %v5225_v45 = vld [vmem:[%s7087_s5 + $0x2c] ss:$72 sps:$4 sm:$0xff]  }
 0x448   :  { %3649 = vmatprep.subr.bf16.mxu1 %v5144_v46  ;;  %v5223_v46 = vld [vmem:[%s7087_s5 + $0x28] ss:$72 sps:$4 sm:$0xff]  }
 0x44a   :  { %3641 = vmatmul.mubr.bf16.vlgmr.msra.gmra.mrb[8].mxu1 %v6543_v19 }
 0x44b   :  { %3650 = vmatpush1.bf16.msra.mxu1 %v5142_v47  ;;  %4558 = vmatprep.mubr.msk.bf16.mxu1 %vm2371_vm7, %v6538_v30  ;;  %v5228_v47 = vld [vmem:[%s7087_s5 + $0xbc] ss:$72 sps:$4 sm:$0xff]  }
 0x44c   :  { %3651 = vmatprep.subr.bf16.mxu1 %v5147_v48  ;;  %v5226_v48 = vld [vmem:[%s7087_s5 + $0xb8] ss:$72 sps:$4 sm:$0xff]  }
 0x44f   :  { %3652 = vmatpush1.bf16.msra.mxu1 %v5145_v49  ;;  %v5231_v49 = vld [vmem:[%s7087_s5 + $0x14c] ss:$72 sps:$4 sm:$0xff]  }
 0x450   :  { %3653 = vmatprep.subr.bf16.mxu1 %v5150_v50  ;;  %v5229_v50 = vld [vmem:[%s7087_s5 + $0x148] ss:$72 sps:$4 sm:$0xff]  }
 0x453   :  { %3654 = vmatpush1.bf16.msra.mxu1 %v5148_v51  ;;  %v5234_v51 = vld [vmem:[%s7087_s5 + $0x1dc] ss:$72 sps:$4 sm:$0xff]  }
 0x454   :  { %3655 = vmatprep.subr.bf16.mxu1 %v5153_v52  ;;  %v5232_v52 = vld [vmem:[%s7087_s5 + $0x1d8] ss:$72 sps:$4 sm:$0xff]  }
 0x457   :  { %3656 = vmatpush1.bf16.msra.mxu1 %v5151_v53  ;;  %v5237_v53 = vld [vmem:[%s7087_s5 + $0x26c] ss:$72 sps:$4 sm:$0xff]  }
 0x458   :  { %3657 = vmatprep.subr.bf16.mxu1 %v5156_v54  ;;  %v5235_v54 = vld [vmem:[%s7087_s5 + $0x268] ss:$72 sps:$4 sm:$0xff]  }
 0x45b   :  { %3658 = vmatpush1.bf16.msra.mxu1 %v5154_v55  ;;  %v5240_v55 = vld [vmem:[%s7087_s5 + $0x2fc] ss:$72 sps:$4 sm:$0xff]  }
 0x45c   :  { %3659 = vmatprep.subr.bf16.mxu1 %v5159_v56  ;;  %v5238_v56 = vld [vmem:[%s7087_s5 + $0x2f8] ss:$72 sps:$4 sm:$0xff]  }
 0x45f   :  { %3660 = vmatpush1.bf16.msra.mxu1 %v5157_v57  ;;  %v5243_v57 = vld [vmem:[%s7087_s5 + $0x38c] ss:$72 sps:$4 sm:$0xff]  }
 0x460   :  { %3661 = vmatprep.subr.bf16.mxu1 %v5162_v58  ;;  %v5241_v58 = vld [vmem:[%s7087_s5 + $0x388] ss:$72 sps:$4 sm:$0xff]  }
 0x463   :  { %3662 = vmatpush1.bf16.msra.mxu1 %v5160_v59  ;;  %v5246_v59 = vld [vmem:[%s7087_s5 + $0x41c] ss:$72 sps:$4 sm:$0xff]  }
 0x464   :  { %3663 = vmatprep.subr.bf16.mxu1 %v5165_v61  ;;  %v5244_v61 = vld [vmem:[%s7087_s5 + $0x418] ss:$72 sps:$4 sm:$0xff]  }
 0x467   :  { %3664 = vmatpush1.bf16.msra.mxu1 %v5163_v63  ;;  %v5247_v63 = vld [vmem:[%s7087_s5 + $0x4ac] ss:$72 sps:$4 sm:$0x3f]  }
 0x468   :  { %4557 = vmatprep.subr.msk.bf16.mxu1 %vm3512_vm8, %v5166_v0  ;;  %v5249_v0 = vld [vmem:[%s7087_s5 + $0x4a8] ss:$72 sps:$4 sm:$0x3f]  }
 0x469   :  { %v3544_v1 = vsel %vm3512_vm8, %v5249_v0, 0 }
 0x46b   :  { %3666 = vmatpush1.bf16.msra.mxu1 %v3526_v2  ;;  %v5252_v2 = vld [vmem:[%s7087_s5 + $0x34] ss:$72 sps:$4 sm:$0xff]  }
 0x46c   :  { %3690 = vmatprep.subr.bf16.mxu1 %v5171_v3  ;;  %v5250_v3 = vld [vmem:[%s7087_s5 + $0x30] ss:$72 sps:$4 sm:$0xff]  }
 0x46e   :  { %3682 = vmatmul.mubr.bf16.vlgmr.msra.gmra.mrb[12].mxu1 %v6543_v19 }
 0x46f   :  { %3691 = vmatpush1.bf16.msra.mxu1 %v5169_v4  ;;  %4560 = vmatprep.mubr.msk.bf16.mxu1 %vm2371_vm7, %v6538_v30  ;;  %v5255_v4 = vld [vmem:[%s7087_s5 + $0xc4] ss:$72 sps:$4 sm:$0xff]  }
 0x470   :  { %3692 = vmatprep.subr.bf16.mxu1 %v5174_v5  ;;  %v5253_v5 = vld [vmem:[%s7087_s5 + $0xc0] ss:$72 sps:$4 sm:$0xff]  }
 0x473   :  { %3693 = vmatpush1.bf16.msra.mxu1 %v5172_v6  ;;  %v5258_v6 = vld [vmem:[%s7087_s5 + $0x154] ss:$72 sps:$4 sm:$0xff]  }
 0x474   :  { %3694 = vmatprep.subr.bf16.mxu1 %v5177_v7  ;;  %v5256_v7 = vld [vmem:[%s7087_s5 + $0x150] ss:$72 sps:$4 sm:$0xff]  }
 0x477   :  { %3695 = vmatpush1.bf16.msra.mxu1 %v5175_v8  ;;  %v5261_v8 = vld [vmem:[%s7087_s5 + $0x1e4] ss:$72 sps:$4 sm:$0xff]  }
 0x478   :  { %3696 = vmatprep.subr.bf16.mxu1 %v5180_v9  ;;  %v5259_v9 = vld [vmem:[%s7087_s5 + $0x1e0] ss:$72 sps:$4 sm:$0xff]  }
 0x47b   :  { %3697 = vmatpush1.bf16.msra.mxu1 %v5178_v11  ;;  %v5264_v11 = vld [vmem:[%s7087_s5 + $0x274] ss:$72 sps:$4 sm:$0xff]  }
 0x47c   :  { %3698 = vmatprep.subr.bf16.mxu1 %v5183_v12  ;;  %v5262_v12 = vld [vmem:[%s7087_s5 + $0x270] ss:$72 sps:$4 sm:$0xff]  }
 0x47f   :  { %3699 = vmatpush1.bf16.msra.mxu1 %v5181_v15  ;;  %v5267_v15 = vld [vmem:[%s7087_s5 + $0x304] ss:$72 sps:$4 sm:$0xff]  }
 0x480   :  { %3700 = vmatprep.subr.bf16.mxu1 %v5186_v16  ;;  %v5265_v16 = vld [vmem:[%s7087_s5 + $0x300] ss:$72 sps:$4 sm:$0xff]  }
 0x483   :  { %3701 = vmatpush1.bf16.msra.mxu1 %v5184_v17  ;;  %v5270_v17 = vld [vmem:[%s7087_s5 + $0x394] ss:$72 sps:$4 sm:$0xff]  }
 0x484   :  { %3702 = vmatprep.subr.bf16.mxu1 %v5189_v20  ;;  %v5268_v20 = vld [vmem:[%s7087_s5 + $0x390] ss:$72 sps:$4 sm:$0xff]  }
 0x487   :  { %3703 = vmatpush1.bf16.msra.mxu1 %v5187_v23  ;;  %v5273_v23 = vld [vmem:[%s7087_s5 + $0x424] ss:$72 sps:$4 sm:$0xff]  }
 0x488   :  { %3704 = vmatprep.subr.bf16.mxu1 %v5192_v24  ;;  %v5271_v24 = vld [vmem:[%s7087_s5 + $0x420] ss:$72 sps:$4 sm:$0xff]  }
 0x48b   :  { %3705 = vmatpush1.bf16.msra.mxu1 %v5190_v21  ;;  %v6890_v21 = vld [vmem:[%s7088_s6] sm:$0xff] }
 0x48c   :  { %4559 = vmatprep.subr.msk.bf16.mxu1 %vm3512_vm8, %v5193_v22  ;;  %v5274_v22 = vld [vmem:[%s7087_s5 + $0x4b4] ss:$72 sps:$4 sm:$0x3f]  }
 0x48f   :  { %3707 = vmatpush1.bf16.msra.mxu1 %v3532_v27  ;;  %v2630_v27 = vrot.slane %v6890_v21, %v6400_v60 }
 0x490   :  { %3731 = vmatprep.subr.bf16.mxu1 %v5198_v28  ;;  %v2634_v28 = vrot.slane %v6890_v21, %v6406_v62 }
 0x492   :  { %3723 = vmatmul.mubr.bf16.vlgmr.msra.gmra.mrb[16].mxu1 %v6543_v19 }
 0x493   :  { %3732 = vmatpush1.bf16.msra.mxu1 %v5196_v29  ;;  %4562 = vmatprep.mubr.msk.bf16.mxu1 %vm2371_vm7, %v6538_v30  ;;  %v3550_v29 = vsel %vm3512_vm8, %v5276_v26, 0  ;;  %v5327_v26 = vld [vmem:[%s7087_s5 + $0x434] ss:$72 sps:$4 sm:$0xff]  }
 0x494   :  { %3733 = vmatprep.subr.bf16.mxu1 %v5201_v31  ;;  %v5279_v31 = vld [vmem:[%s7087_s5 + $0x3c] ss:$72 sps:$4 sm:$0xff]  }
 0x497   :  { %3734 = vmatpush1.bf16.msra.mxu1 %v5199_v10 }
 0x498   :  { %3735 = vmatprep.subr.bf16.mxu1 %v5204_v34 }
 0x49b   :  { %3736 = vmatpush1.bf16.msra.mxu1 %v5202_v35 }
 0x49c   :  { %3737 = vmatprep.subr.bf16.mxu1 %v5207_v36 }
 0x49f   :  { %3738 = vmatpush1.bf16.msra.mxu1 %v5205_v37 }
 0x4a0   :  { %3739 = vmatprep.subr.bf16.mxu1 %v5210_v13  ;;  %v5277_v13 = vld [vmem:[%s7087_s5 + $0x38] ss:$72 sps:$4 sm:$0xff]  }
 0x4a3   :  { %3740 = vmatpush1.bf16.msra.mxu1 %v5208_v38 }
 0x4a4   :  { %3741 = vmatprep.subr.bf16.mxu1 %v5213_v25  ;;  %v5282_v25 = vld [vmem:[%s7087_s5 + $0xcc] ss:$72 sps:$4 sm:$0xff]  }
 0x4a7   :  { %3742 = vmatpush1.bf16.msra.mxu1 %v5211_v39 }
 0x4a8   :  { %3743 = vmatprep.subr.bf16.mxu1 %v5216_v40  ;;  %v5280_v40 = vld [vmem:[%s7087_s5 + $0xc8] ss:$72 sps:$4 sm:$0xff]  }
 0x4ab   :  { %3744 = vmatpush1.bf16.msra.mxu1 %v5214_v41  ;;  %v5285_v41 = vld [vmem:[%s7087_s5 + $0x15c] ss:$72 sps:$4 sm:$0xff]  }
 0x4ac   :  { %3745 = vmatprep.subr.bf16.mxu1 %v5219_v42  ;;  %v5283_v42 = vld [vmem:[%s7087_s5 + $0x158] ss:$72 sps:$4 sm:$0xff]  }
 0x4af   :  { %3746 = vmatpush1.bf16.msra.mxu1 %v5217_v32  ;;  %v5288_v32 = vld [vmem:[%s7087_s5 + $0x1ec] ss:$72 sps:$4 sm:$0xff]  }
 0x4b0   :  { %4561 = vmatprep.subr.msk.bf16.mxu1 %vm3512_vm8, %v5220_v33  ;;  %v5286_v33 = vld [vmem:[%s7087_s5 + $0x1e8] ss:$72 sps:$4 sm:$0xff]  }
 0x4b3   :  { %3748 = vmatpush1.bf16.msra.mxu1 %v3538_v44  ;;  %v5289_v44 = vld [vmem:[%s7087_s5 + $0x278] ss:$72 sps:$4 sm:$0xff]  }
 0x4b4   :  { %3772 = vmatprep.subr.bf16.mxu1 %v5225_v45  ;;  %v5294_v45 = vld [vmem:[%s7087_s5 + $0x30c] ss:$72 sps:$4 sm:$0xff]  }
 0x4b6   :  { %3764 = vmatmul.mubr.bf16.vlgmr.msra.gmra.mrb[20].mxu1 %v6543_v19 }
 0x4b7   :  { %3773 = vmatpush1.bf16.msra.mxu1 %v5223_v46  ;;  %4564 = vmatprep.mubr.msk.bf16.mxu1 %vm2371_vm7, %v6538_v30  ;;  %v5292_v46 = vld [vmem:[%s7087_s5 + $0x308] ss:$72 sps:$4 sm:$0xff]  }
 0x4b8   :  { %3774 = vmatprep.subr.bf16.mxu1 %v5228_v47  ;;  %v5297_v47 = vld [vmem:[%s7087_s5 + $0x39c] ss:$72 sps:$4 sm:$0xff]  }
 0x4bb   :  { %3775 = vmatpush1.bf16.msra.mxu1 %v5226_v48  ;;  %v5295_v48 = vld [vmem:[%s7087_s5 + $0x398] ss:$72 sps:$4 sm:$0xff]  }
 0x4bc   :  { %3776 = vmatprep.subr.bf16.mxu1 %v5231_v49  ;;  %v5300_v49 = vld [vmem:[%s7087_s5 + $0x42c] ss:$72 sps:$4 sm:$0xff]  }
 0x4bf   :  { %3777 = vmatpush1.bf16.msra.mxu1 %v5229_v50  ;;  %v2637_v50 = vsub.s32 2, %v5424_v14 }
 0x4c0   :  { %3778 = vmatprep.subr.bf16.mxu1 %v5234_v51  ;;  %v5298_v51 = vld [vmem:[%s7087_s5 + $0x428] ss:$72 sps:$4 sm:$0xff]  }
 0x4c3   :  { %3779 = vmatpush1.bf16.msra.mxu1 %v5232_v52  ;;  %v2641_v52 = vsub.s32 3, %v5424_v14 }
 0x4c4   :  { %3780 = vmatprep.subr.bf16.mxu1 %v5237_v53  ;;  %v5301_v53 = vld [vmem:[%s7087_s5 + $0x4bc] ss:$72 sps:$4 sm:$0x3f]  }
 0x4c7   :  { %3781 = vmatpush1.bf16.msra.mxu1 %v5235_v54  ;;  %v5303_v54 = vld [vmem:[%s7087_s5 + $0x4b8] ss:$72 sps:$4 sm:$0x3f]  }
 0x4c8   :  { %3782 = vmatprep.subr.bf16.mxu1 %v5240_v55  ;;  %v2638_v55 = vrot.slane %v6890_v21, %v2637_v50 }
 0x4cb   :  { %3783 = vmatpush1.bf16.msra.mxu1 %v5238_v56  ;;  %v2642_v56 = vrot.slane %v6890_v21, %v2641_v52 }
 0x4cc   :  { %3784 = vmatprep.subr.bf16.mxu1 %v5243_v57  ;;  %v3556_v57 = vsel %vm3512_vm8, %v5303_v54, 0 }
 0x4cf   :  { %3785 = vmatpush1.bf16.msra.mxu1 %v5241_v58  ;;  %v5306_v58 = vld [vmem:[%s7087_s5 + $0x44] ss:$72 sps:$4 sm:$0xff]  }
 0x4d0   :  { %3786 = vmatprep.subr.bf16.mxu1 %v5246_v59 }
 0x4d3   :  { %3787 = vmatpush1.bf16.msra.mxu1 %v5244_v61 }
 0x4d4   :  { %4563 = vmatprep.subr.msk.bf16.mxu1 %vm3512_vm8, %v5247_v63 }
 0x4d7   :  { %3789 = vmatpush1.bf16.msra.mxu1 %v3544_v1 }
 0x4d8   :  { %3813 = vmatprep.subr.bf16.mxu1 %v5252_v2  ;;  %v5304_v2 = vld [vmem:[%s7087_s5 + $0x40] ss:$72 sps:$4 sm:$0xff]  }
 0x4da   :  { %3805 = vmatmul.mubr.bf16.vlgmr.msra.gmra.mrb[24].mxu1 %v6543_v19 }
 0x4db   :  { %3814 = vmatpush1.bf16.msra.mxu1 %v5250_v3  ;;  %4566 = vmatprep.mubr.msk.bf16.mxu1 %vm2371_vm7, %v6538_v30 }
 0x4dc   :  { %3815 = vmatprep.subr.bf16.mxu1 %v5255_v4  ;;  %v5309_v4 = vld [vmem:[%s7087_s5 + $0xd4] ss:$72 sps:$4 sm:$0xff]  }
 0x4df   :  { %3816 = vmatpush1.bf16.msra.mxu1 %v5253_v5 }
 0x4e0   :  { %3817 = vmatprep.subr.bf16.mxu1 %v5258_v6 }
 0x4e3   :  { %3818 = vmatpush1.bf16.msra.mxu1 %v5256_v7 }
 0x4e4   :  { %3819 = vmatprep.subr.bf16.mxu1 %v5261_v8  ;;  %v5307_v8 = vld [vmem:[%s7087_s5 + $0xd0] ss:$72 sps:$4 sm:$0xff]  }
 0x4e7   :  { %3820 = vmatpush1.bf16.msra.mxu1 %v5259_v9  ;;  %v5312_v9 = vld [vmem:[%s7087_s5 + $0x164] ss:$72 sps:$4 sm:$0xff]  }
 0x4e8   :  { %3821 = vmatprep.subr.bf16.mxu1 %v5264_v11 }
 0x4eb   :  { %3822 = vmatpush1.bf16.msra.mxu1 %v5262_v12  ;;  %v5310_v12 = vld [vmem:[%s7087_s5 + $0x160] ss:$72 sps:$4 sm:$0xff]  }
 0x4ec   :  { %3823 = vmatprep.subr.bf16.mxu1 %v5267_v15  ;;  %v5313_v15 = vld [vmem:[%s7087_s5 + $0x1f0] ss:$72 sps:$4 sm:$0xff]  }
 0x4ef   :  { %3824 = vmatpush1.bf16.msra.mxu1 %v5265_v16  ;;  %v5318_v16 = vld [vmem:[%s7087_s5 + $0x284] ss:$72 sps:$4 sm:$0xff]  }
 0x4f0   :  { %3825 = vmatprep.subr.bf16.mxu1 %v5270_v17  ;;  %v5316_v17 = vld [vmem:[%s7087_s5 + $0x280] ss:$72 sps:$4 sm:$0xff]  }
 0x4f3   :  { %3826 = vmatpush1.bf16.msra.mxu1 %v5268_v20  ;;  %v5321_v20 = vld [vmem:[%s7087_s5 + $0x314] ss:$72 sps:$4 sm:$0xff]  }
 0x4f4   :  { %3827 = vmatprep.subr.bf16.mxu1 %v5273_v23  ;;  %v5319_v23 = vld [vmem:[%s7087_s5 + $0x310] ss:$72 sps:$4 sm:$0xff]  }
 0x4f7   :  { %3828 = vmatpush1.bf16.msra.mxu1 %v5271_v24  ;;  %v5324_v24 = vld [vmem:[%s7087_s5 + $0x3a4] ss:$72 sps:$4 sm:$0xff]  }
 0x4f8   :  { %4565 = vmatprep.subr.msk.bf16.mxu1 %vm3512_vm8, %v5274_v22  ;;  %v5322_v22 = vld [vmem:[%s7087_s5 + $0x3a0] ss:$72 sps:$4 sm:$0xff]  }
 0x4f9   :  { %v3601_v10 = vpop.f32.mrb[4].mxu1 }
 0x4fa   :  { %v3602_v34 = vadd.f32 %v3601_v10, %v2630_v27  ;;  %v3603_v35 = vpop.f32.mrb[5].mxu1  ;;  %v2645_v27 = vsub.s32 4, %v5424_v14  ;;  %v5330_v10 = vld [vmem:[%s7087_s5 + $0x4c0] ss:$72 sps:$4 sm:$0x3f]  }
 0x4fb   :  { %v3604_v36 = vadd.f32 %v3603_v35, %v2634_v28  ;;  %3830 = vmatpush1.bf16.msra.mxu1 %v3550_v29  ;;  %v3605_v37 = vpop.f32.mrb[6].mxu1  ;;  %v5325_v28 = vld [vmem:[%s7087_s5 + $0x430] ss:$72 sps:$4 sm:$0xff]   ;;  %v2649_v29 = vsub.s32 5, %v5424_v14 }
 0x4fc   :  { %v3606_v38 = vpop.f32.mrb[7].mxu1  ;;  %3854 = vmatprep.subr.bf16.mxu1 %v5279_v31  ;;  %v5328_v31 = vld [vmem:[%s7087_s5 + $0x4c4] ss:$72 sps:$4 sm:$0x3f]  }
 0x4fd   :  { %v4571_v39 = vpack.c.bf16 %v3604_v36, %v3602_v34  ;;  %v2646_v34 = vrot.slane %v6890_v21, %v2645_v27  ;;  %v2650_v35 = vrot.slane %v6890_v21, %v2649_v29  ;;  %v3562_v36 = vsel %vm3512_vm8, %v5330_v10, 0 }
 0x4fe   :  { %3846 = vmatmul.mubr.bf16.vlgmr.msra.gmra.mrb[28].mxu1 %v6543_v19 }
 0x4ff   :  { %3855 = vmatpush1.bf16.msra.mxu1 %v5277_v13  ;;  %4568 = vmatprep.mubr.msk.bf16.mxu1 %vm2371_vm7, %v6538_v30  ;;  %v6982_v6 = vrot.slane %v4571_v39, %v5433_v18 }
 0x500   :  { %3856 = vmatprep.subr.bf16.mxu1 %v5282_v25 }
 0x503   :  { %3857 = vmatpush1.bf16.msra.mxu1 %v5280_v40 }
 0x504   :  { %3858 = vmatprep.subr.bf16.mxu1 %v5285_v41 }
 0x507   :  { %3859 = vmatpush1.bf16.msra.mxu1 %v5283_v42  ;;  %v2653_v42 = vsub.s32 6, %v5424_v14 }
 0x508   :  { %3860 = vmatprep.subr.bf16.mxu1 %v5288_v32  ;;  %v2657_v32 = vsub.s32 7, %v5424_v14 }
 0x50b   :  { %3861 = vmatpush1.bf16.msra.mxu1 %v5286_v33  ;;  %v2654_v33 = vrot.slane %v6890_v21, %v2653_v42 }
 0x50c   :  { %3862 = vmatprep.subr.bf16.mxu1 %v5291_v43  ;;  %v2658_v43 = vrot.slane %v6890_v21, %v2657_v32  ;;  %v2622_v21 = vld [vmem:[%s7088_s6 + $0x8] sm:$0xff] }
 0x50d   :  { %v2686_v10 = vrot.slane %v2622_v21, %v2653_v42  ;;  %v2623_v42 = vld [vmem:[%s7088_s6 + $0x10] sm:$0x3] }
 0x50f   :  { %3863 = vmatpush1.bf16.msra.mxu1 %v5289_v44 }
 0x510   :  { %3864 = vmatprep.subr.bf16.mxu1 %v5294_v45 }
 0x513   :  { %3865 = vmatpush1.bf16.msra.mxu1 %v5292_v46 }
 0x514   :  { %3866 = vmatprep.subr.bf16.mxu1 %v5297_v47 }
 0x517   :  { %3867 = vmatpush1.bf16.msra.mxu1 %v5295_v48 }
 0x518   :  { %3868 = vmatprep.subr.bf16.mxu1 %v5300_v49 }
 0x51b   :  { %3869 = vmatpush1.bf16.msra.mxu1 %v5298_v51 }
 0x51c   :  { %4567 = vmatprep.subr.msk.bf16.mxu1 %vm3512_vm8, %v5301_v53 }
 0x51d   :  { %v3642_v59 = vpop.f32.mrb[8].mxu1 }
 0x51e   :  { %v3643_v61 = vadd.f32 %v3642_v59, %v2638_v55  ;;  %v3644_v63 = vpop.f32.mrb[9].mxu1  ;;  %v2666_v59 = vrot.slane %v2622_v21, %v6406_v62 }
 0x51f   :  { %v3645_v0 = vadd.f32 %v3644_v63, %v2642_v56  ;;  %v3646_v1 = vpop.f32.mrb[10].mxu1  ;;  %3871 = vmatpush1.bf16.msra.mxu1 %v3556_v57 }
 0x520   :  { %v3647_v3 = vpop.f32.mrb[11].mxu1  ;;  %3895 = vmatprep.subr.bf16.mxu1 %v5306_v58  ;;  %v2662_v58 = vrot.slane %v2622_v21, %v6400_v60 }
 0x521   :  { %v4572_v5 = vpack.c.bf16 %v3645_v0, %v3643_v61 }
 0x522   :  { %3887 = vmatmul.mubr.bf16.vlgmr.msra.gmra.mrb[32].mxu1 %v6543_v19 }
 0x523   :  { %v6985_v7 = vrot.slane %v4572_v5, %v5433_v18  ;;  %3896 = vmatpush1.bf16.msra.mxu1 %v5304_v2  ;;  %4570 = vmatprep.mubr.msk.bf16.mxu1 %vm2371_vm7, %v6538_v30  ;;  %v5315_v30 = vld [vmem:[%s7087_s5 + $0x1f4] ss:$72 sps:$4 sm:$0xff]   ;;  %v2670_v5 = vrot.slane %v2622_v21, %v2637_v50 }
 0x524   :  { %3897 = vmatprep.subr.bf16.mxu1 %v5309_v4 }
 0x525   :  { %v4004_v11 = vcombine.low %v6982_v6, %v6985_v7  ;;  %v2674_v6 = vrot.slane %v2622_v21, %v2641_v52 }
 0x527   :  { %3898 = vmatpush1.bf16.msra.mxu1 %v5307_v8  ;;  %v4012_v55 = vrot.slane %v4004_v11, %v5433_v18 }
 0x528   :  { %3899 = vmatprep.subr.bf16.mxu1 %v5312_v9 }
 0x52b   :  { %3900 = vmatpush1.bf16.msra.mxu1 %v5310_v12 }
 0x52c   :  { %3901 = vmatprep.subr.bf16.mxu1 %v5315_v30 }
 0x52f   :  { %3902 = vmatpush1.bf16.msra.mxu1 %v5313_v15 }
 0x530   :  { %3903 = vmatprep.subr.bf16.mxu1 %v5318_v16 }
 0x533   :  { %3904 = vmatpush1.bf16.msra.mxu1 %v5316_v17 }
 0x534   :  { %3905 = vmatprep.subr.bf16.mxu1 %v5321_v20 }
 0x537   :  { %3906 = vmatpush1.bf16.msra.mxu1 %v5319_v23  ;;  %v2678_v23 = vrot.slane %v2622_v21, %v2645_v27 }
 0x538   :  { %3907 = vmatprep.subr.bf16.mxu1 %v5324_v24  ;;  %v2682_v24 = vrot.slane %v2622_v21, %v2649_v29 }
 0x53b   :  { %3908 = vmatpush1.bf16.msra.mxu1 %v5322_v22 }
 0x53c   :  { %3909 = vmatprep.subr.bf16.mxu1 %v5327_v26 }
 0x53f   :  { %3910 = vmatpush1.bf16.msra.mxu1 %v5325_v28 }
 0x540   :  { %4569 = vmatprep.subr.msk.bf16.mxu1 %vm3512_vm8, %v5328_v31 }
 0x541   :  { %v3683_v37 = vpop.f32.mrb[12].mxu1 }
 0x542   :  { %v3684_v13 = vadd.f32 %v3683_v37, %v2646_v34  ;;  %v3685_v38 = vpop.f32.mrb[13].mxu1  ;;  %v2690_v34 = vrot.slane %v2622_v21, %v2657_v32  ;;  %v2694_v32 = vrot.slane %v2623_v42, %v6400_v60 }
 0x543   :  { %v3686_v25 = vadd.f32 %v3685_v38, %v2650_v35  ;;  %v3687_v39 = vpop.f32.mrb[14].mxu1  ;;  %3912 = vmatpush1.bf16.msra.mxu1 %v3562_v36 }
 0x544   :  { %v3688_v40 = vpop.f32.mrb[15].mxu1 }
 0x545   :  { %v4573_v41 = vpack.c.bf16 %v3686_v25, %v3684_v13 }
 0x546   :  { %3928 = vmatmul.mubr.bf16.vlgmr.msra.gmra.mrb[36].mxu1 %v6543_v19 }
 0x547   :  { %v3996_v53 = vrot.slane %v4573_v41, %v5433_v18 }
 0x565   :  { %v3724_v44 = vpop.f32.mrb[16].mxu1 }
 0x566   :  { %v3725_v45 = vadd.f32 %v3724_v44, %v2654_v33  ;;  %v3726_v46 = vpop.f32.mrb[17].mxu1  ;;  %v2698_v44 = vrot.slane %v2623_v42, %v6406_v62 }
 0x567   :  { %v3727_v47 = vadd.f32 %v3726_v46, %v2658_v43  ;;  %v3728_v48 = vpop.f32.mrb[18].mxu1 }
 0x568   :  { %v3729_v49 = vpop.f32.mrb[19].mxu1 }
 0x569   :  { %v4574_v51 = vpack.c.bf16 %v3727_v47, %v3725_v45 }
 0x56b   :  { %v4003_v54 = vrot.slane %v4574_v51, %v5433_v18 }
 0x56d   :  { %v4005_v19 = vcombine.low %v3996_v53, %v4003_v54 }
 0x56f   :  { %v4019_v56 = vrot.slane %v4005_v19, %v5433_v18 }
 0x571   :  { %v4020_v57 = vcombine.low %v4012_v55, %v4019_v56 }
 0x573   :  { %4088 = vst [vmem:[%s7089_s8] sm:$0xff] %v4020_v57 }
 0x589   :  { %v3765_v61 = vpop.f32.mrb[20].mxu1 }
 0x58a   :  { %v3766_v63 = vadd.f32 %v3765_v61, %v2662_v58  ;;  %v3767_v0 = vpop.f32.mrb[21].mxu1 }
 0x58b   :  { %v3768_v1 = vadd.f32 %v3767_v0, %v2666_v59  ;;  %v3769_v2 = vpop.f32.mrb[22].mxu1 }
 0x58c   :  { %v3770_v3 = vpop.f32.mrb[23].mxu1 }
 0x58d   :  { %v4575_v4 = vpack.c.bf16 %v3768_v1, %v3766_v63 }
 0x58f   :  { %v4031_v16 = vrot.slane %v4575_v4, %v5433_v18 }
 0x5ad   :  { %v3806_v7 = vpop.f32.mrb[24].mxu1 }
 0x5ae   :  { %v3807_v8 = vadd.f32 %v3806_v7, %v2670_v5  ;;  %v3808_v9 = vpop.f32.mrb[25].mxu1 }
 0x5af   :  { %v3809_v11 = vadd.f32 %v3808_v9, %v2674_v6  ;;  %v3810_v12 = vpop.f32.mrb[26].mxu1 }
 0x5b0   :  { %v3811_v30 = vpop.f32.mrb[27].mxu1 }
 0x5b1   :  { %v4576_v15 = vpack.c.bf16 %v3809_v11, %v3807_v8 }
 0x5b3   :  { %v4038_v17 = vrot.slane %v4576_v15, %v5433_v18 }
 0x5b5   :  { %v4053_v20 = vcombine.low %v4031_v16, %v4038_v17 }
 0x5b7   :  { %v4061_v41 = vrot.slane %v4053_v20, %v5433_v18 }
 0x5d1   :  { %v3847_v22 = vpop.f32.mrb[28].mxu1 }
 0x5d2   :  { %v3848_v26 = vadd.f32 %v3847_v22, %v2678_v23  ;;  %v3849_v50 = vpop.f32.mrb[29].mxu1 }
 0x5d3   :  { %v3850_v28 = vadd.f32 %v3849_v50, %v2682_v24  ;;  %v3851_v14 = vpop.f32.mrb[30].mxu1 }
 0x5d4   :  { %v3852_v52 = vpop.f32.mrb[31].mxu1 }
 0x5d5   :  { %v4577_v31 = vpack.c.bf16 %v3850_v28, %v3848_v26 }
 0x5d7   :  { %v4045_v40 = vrot.slane %v4577_v31, %v5433_v18 }
 0x5f5   :  { %v3888_v35 = vpop.f32.mrb[32].mxu1 }
 0x5f6   :  { %v3889_v36 = vadd.f32 %v3888_v35, %v2686_v10  ;;  %v3890_v37 = vpop.f32.mrb[33].mxu1 }
 0x5f7   :  { %v3891_v13 = vadd.f32 %v3890_v37, %v2690_v34  ;;  %v3892_v38 = vpop.f32.mrb[34].mxu1 }
 0x5f8   :  { %v3893_v25 = vpop.f32.mrb[35].mxu1 }
 0x5f9   :  { %v4578_v39 = vpack.c.bf16 %v3891_v13, %v3889_v36 }
 0x5fb   :  { %v4052_v27 = vrot.slane %v4578_v39, %v5433_v18 }
 0x5fd   :  { %v4054_v29 = vcombine.low %v4045_v40, %v4052_v27 }
 0x5ff   :  { %v4068_v33 = vrot.slane %v4054_v29, %v5433_v18 }
 0x601   :  { %v4069_v43 = vcombine.low %v4061_v41, %v4068_v33 }
 0x603   :  { %4089 = vst [vmem:[%s7089_s8 + $0x8] sm:$0xff] %v4069_v43 }
 0x619   :  { %v3929_v45 = vpop.f32.mrb[36].mxu1 }
 0x61a   :  { %v3930_v46 = vadd.f32 %v3929_v45, %v2694_v32  ;;  %v3931_v47 = vpop.f32.mrb[37].mxu1 }
 0x61b   :  { %v3932_v48 = vadd.f32 %v3931_v47, %v2698_v44  ;;  %v3933_v49 = vpop.f32.mrb[38].mxu1 }
 0x61c   :  { %v3934_v51 = vpop.f32.mrb[39].mxu1 }
 0x61d   :  { %v4579_v53 = vpack.c.bf16 %v3932_v48, %v3930_v46 }
 0x61f   :  { %v4077_v54 = vrot.slane %v4579_v53, %v5433_v18 }
 0x621   :  { %4580 = vst.sshfl [vmem:[%s7089_s8 + $0x10] sm:$0x5 pattern:$0x73625140] %v4077_v54 }

// kernel: categorical_vae_forward.12
= control target key start
LH: loop header
LB: loop body
LE: loop exit
PB: predicated region body
PF: predicated region fallthrough
CT: control target
= control target key end

     0   :  { %vm2039_vm0 = vcmask 1041408   ;;  %s4125_s1 = inlined_call_operand.vmem [shape: bf16[1024,512], index: 1, kind: input, shape index: {}]   ;;  %s4126_s0 = inlined_call_operand.vmem [shape: bf16[18,1024], index: 0, kind: input, shape index: {}]   ;;  %s4127_s2 = inlined_call_operand.vmem [shape: f32[2,512], index: 2, kind: input, shape index: {}]   ;;  %s4128_s3 = inlined_call_operand.vmem [shape: bf16[18,512], index: 3, kind: output, shape index: {}]  }
   0x1   :  { %v2707_v0 = vld [vmem:[%s4125_s1 + $0x4] ss:$16 sps:$4 sm:$0xff]   ;;  %v2709_v1 = vld [vmem:[%s4125_s1 + $0xc] ss:$16 sps:$4 sm:$0xff]   ;;  %v2711_v2 = vld [vmem:[%s4125_s1] ss:$16 sps:$4 sm:$0xff]  }
   0x2   :  { %1630 = vmatprep.subr.bf16.mxu0 %v2707_v0  ;;  %v2712_v3 = vld [vmem:[%s4125_s1 + $0x8] ss:$16 sps:$4 sm:$0xff]   ;;  %1834 = vmatprep.subr.bf16.mxu1 %v2709_v1  ;;  %v2713_v4 = vld [vmem:[%s4125_s1 + $0x24] ss:$16 sps:$4 sm:$0xff]   ;;  %v2715_v5 = vld [vmem:[%s4125_s1 + $0x2c] ss:$16 sps:$4 sm:$0xff]  }
   0x3   :  { %1631 = vmatpush1.bf16.msra.mxu0 %v2711_v2  ;;  %1835 = vmatpush1.bf16.msra.mxu1 %v2712_v3  ;;  %v2717_v6 = vld [vmem:[%s4125_s1 + $0x20] ss:$16 sps:$4 sm:$0xff]   ;;  %v2718_v7 = vld [vmem:[%s4125_s1 + $0x28] ss:$16 sps:$4 sm:$0xff]   ;;  %v2719_v8 = vld [vmem:[%s4125_s1 + $0x44] ss:$16 sps:$4 sm:$0xff]  }
   0x4   :  { %1632 = vmatprep.subr.bf16.mxu0 %v2713_v4  ;;  %1836 = vmatprep.subr.bf16.mxu1 %v2715_v5  ;;  %v2721_v9 = vld [vmem:[%s4125_s1 + $0x4c] ss:$16 sps:$4 sm:$0xff]   ;;  %v2723_v10 = vld [vmem:[%s4125_s1 + $0x40] ss:$16 sps:$4 sm:$0xff]   ;;  %v2724_v11 = vld [vmem:[%s4125_s1 + $0x48] ss:$16 sps:$4 sm:$0xff]  }
   0x5   :  { %v2725_v12 = vld [vmem:[%s4125_s1 + $0x64] ss:$16 sps:$4 sm:$0xff]   ;;  %v2727_v13 = vld [vmem:[%s4125_s1 + $0x6c] ss:$16 sps:$4 sm:$0xff]   ;;  %v2729_v14 = vld [vmem:[%s4125_s1 + $0x60] ss:$16 sps:$4 sm:$0xff]  }
   0x6   :  { %v2730_v15 = vld [vmem:[%s4125_s1 + $0x68] ss:$16 sps:$4 sm:$0xff]   ;;  %v2731_v16 = vld [vmem:[%s4125_s1 + $0x84] ss:$16 sps:$4 sm:$0xff]   ;;  %v2733_v17 = vld [vmem:[%s4125_s1 + $0x8c] ss:$16 sps:$4 sm:$0xff]  }
   0x7   :  { %1633 = vmatpush1.bf16.msra.mxu0 %v2717_v6  ;;  %1837 = vmatpush1.bf16.msra.mxu1 %v2718_v7  ;;  %v2735_v18 = vld [vmem:[%s4125_s1 + $0x80] ss:$16 sps:$4 sm:$0xff]   ;;  %v2736_v19 = vld [vmem:[%s4125_s1 + $0x88] ss:$16 sps:$4 sm:$0xff]   ;;  %v2737_v20 = vld [vmem:[%s4125_s1 + $0xa4] ss:$16 sps:$4 sm:$0xff]  }
   0x8   :  { %1634 = vmatprep.subr.bf16.mxu0 %v2719_v8  ;;  %1838 = vmatprep.subr.bf16.mxu1 %v2721_v9  ;;  %v2739_v21 = vld [vmem:[%s4125_s1 + $0xac] ss:$16 sps:$4 sm:$0xff]   ;;  %v2741_v22 = vld [vmem:[%s4125_s1 + $0xa0] ss:$16 sps:$4 sm:$0xff]   ;;  %v2742_v23 = vld [vmem:[%s4125_s1 + $0xa8] ss:$16 sps:$4 sm:$0xff]  }
   0x9   :  { %v2743_v24 = vld [vmem:[%s4125_s1 + $0xc4] ss:$16 sps:$4 sm:$0xff]   ;;  %v2745_v25 = vld [vmem:[%s4125_s1 + $0xcc] ss:$16 sps:$4 sm:$0xff]   ;;  %v2747_v26 = vld [vmem:[%s4125_s1 + $0xc0] ss:$16 sps:$4 sm:$0xff]  }
   0xa   :  { %v2748_v27 = vld [vmem:[%s4125_s1 + $0xc8] ss:$16 sps:$4 sm:$0xff]   ;;  %v2749_v28 = vld [vmem:[%s4125_s1 + $0xe4] ss:$16 sps:$4 sm:$0xff]   ;;  %v2751_v29 = vld [vmem:[%s4125_s1 + $0xec] ss:$16 sps:$4 sm:$0xff]  }
   0xb   :  { %1635 = vmatpush1.bf16.msra.mxu0 %v2723_v10  ;;  %1839 = vmatpush1.bf16.msra.mxu1 %v2724_v11  ;;  %v2753_v30 = vld [vmem:[%s4125_s1 + $0xe0] ss:$16 sps:$4 sm:$0xff]   ;;  %v2754_v31 = vld [vmem:[%s4125_s1 + $0xe8] ss:$16 sps:$4 sm:$0xff]   ;;  %v2755_v32 = vld [vmem:[%s4125_s1 + $0x104] ss:$16 sps:$4 sm:$0xff]  }
   0xc   :  { %1636 = vmatprep.subr.bf16.mxu0 %v2725_v12  ;;  %1840 = vmatprep.subr.bf16.mxu1 %v2727_v13  ;;  %v2757_v33 = vld [vmem:[%s4125_s1 + $0x10c] ss:$16 sps:$4 sm:$0xff]   ;;  %v2759_v34 = vld [vmem:[%s4125_s1 + $0x100] ss:$16 sps:$4 sm:$0xff]   ;;  %v2760_v35 = vld [vmem:[%s4125_s1 + $0x108] ss:$16 sps:$4 sm:$0xff]  }
   0xd   :  { %v2761_v36 = vld [vmem:[%s4125_s1 + $0x124] ss:$16 sps:$4 sm:$0xff]   ;;  %v2763_v37 = vld [vmem:[%s4125_s1 + $0x12c] ss:$16 sps:$4 sm:$0xff]   ;;  %v2765_v38 = vld [vmem:[%s4125_s1 + $0x120] ss:$16 sps:$4 sm:$0xff]  }
   0xe   :  { %v2766_v39 = vld [vmem:[%s4125_s1 + $0x128] ss:$16 sps:$4 sm:$0xff]   ;;  %v2767_v40 = vld [vmem:[%s4125_s1 + $0x144] ss:$16 sps:$4 sm:$0xff]   ;;  %v2769_v41 = vld [vmem:[%s4125_s1 + $0x14c] ss:$16 sps:$4 sm:$0xff]  }
   0xf   :  { %1637 = vmatpush1.bf16.msra.mxu0 %v2729_v14  ;;  %1841 = vmatpush1.bf16.msra.mxu1 %v2730_v15  ;;  %v2771_v42 = vld [vmem:[%s4125_s1 + $0x140] ss:$16 sps:$4 sm:$0xff]   ;;  %v2772_v43 = vld [vmem:[%s4125_s1 + $0x148] ss:$16 sps:$4 sm:$0xff]   ;;  %v2773_v44 = vld [vmem:[%s4125_s1 + $0x164] ss:$16 sps:$4 sm:$0xff]  }
  0x10   :  { %1638 = vmatprep.subr.bf16.mxu0 %v2731_v16  ;;  %1842 = vmatprep.subr.bf16.mxu1 %v2733_v17  ;;  %v2775_v45 = vld [vmem:[%s4125_s1 + $0x16c] ss:$16 sps:$4 sm:$0xff]   ;;  %v14_v46 = vld [vmem:[%s4126_s0] sm:$0xff]  ;;  %v2778_v49 = vld [vmem:[%s4125_s1 + $0x168] ss:$16 sps:$4 sm:$0xff]  }
  0x11   :  { %v18_v47 = vld [vmem:[%s4126_s0 + $0x20] sm:$0xff]  ;;  %v2781_v52 = vld [vmem:[%s4125_s1 + $0x18c] ss:$16 sps:$4 sm:$0xff]   ;;  %v2784_v54 = vld [vmem:[%s4125_s1 + $0x188] ss:$16 sps:$4 sm:$0xff]  }
  0x12   :  { %v2777_v48 = vld [vmem:[%s4125_s1 + $0x160] ss:$16 sps:$4 sm:$0xff]   ;;  %v2375_v50 = vcombine.high %v14_v46, %v18_v47  ;;  %v2779_v51 = vld [vmem:[%s4125_s1 + $0x184] ss:$16 sps:$4 sm:$0xff]   ;;  %v2787_v56 = vld [vmem:[%s4125_s1 + $0x1ac] ss:$16 sps:$4 sm:$0xff]   ;;  %v2374_v5 = vcombine.low %v14_v46, %v18_v47 }
  0x13   :  { %1639 = vmatpush1.bf16.msra.mxu0 %v2735_v18  ;;  %1843 = vmatpush1.bf16.msra.mxu1 %v2736_v19  ;;  %v2783_v53 = vld [vmem:[%s4125_s1 + $0x180] ss:$16 sps:$4 sm:$0xff]   ;;  %v2785_v55 = vld [vmem:[%s4125_s1 + $0x1a4] ss:$16 sps:$4 sm:$0xff]   ;;  %v2790_v58 = vld [vmem:[%s4125_s1 + $0x1a8] ss:$16 sps:$4 sm:$0xff]  }
  0x14   :  { %1640 = vmatprep.subr.bf16.mxu0 %v2737_v20  ;;  %1844 = vmatprep.subr.bf16.mxu1 %v2739_v21  ;;  %v2789_v57 = vld [vmem:[%s4125_s1 + $0x1a0] ss:$16 sps:$4 sm:$0xff]   ;;  %v2791_v59 = vld [vmem:[%s4125_s1 + $0x1c4] ss:$16 sps:$4 sm:$0xff]   ;;  %v2793_v60 = vld [vmem:[%s4125_s1 + $0x1cc] ss:$16 sps:$4 sm:$0xff]  }
  0x15   :  { %1662 = vmatprep.mubr.bf16.mxu0 %v2375_v50  ;;  %1866 = vmatprep.mubr.bf16.mxu1 %v2375_v50  ;;  %v2795_v61 = vld [vmem:[%s4125_s1 + $0x1c0] ss:$16 sps:$4 sm:$0xff]   ;;  %v2796_v62 = vld [vmem:[%s4125_s1 + $0x1c8] ss:$16 sps:$4 sm:$0xff]   ;;  %v2797_v63 = vld [vmem:[%s4125_s1 + $0x1e4] ss:$16 sps:$4 sm:$0xff]  }
  0x16   :  { %v2799_v0 = vld [vmem:[%s4125_s1 + $0x1ec] ss:$16 sps:$4 sm:$0xff]   ;;  %v2801_v1 = vld [vmem:[%s4125_s1 + $0x1e0] ss:$16 sps:$4 sm:$0xff]   ;;  %v2802_v2 = vld [vmem:[%s4125_s1 + $0x1e8] ss:$16 sps:$4 sm:$0xff]  }
  0x17   :  { %1641 = vmatpush1.bf16.msra.mxu0 %v2741_v22  ;;  %1845 = vmatpush1.bf16.msra.mxu1 %v2742_v23  ;;  %v2805_v3 = vld [vmem:[%s4125_s1 + $0x204] ss:$16 sps:$4 sm:$0xff]   ;;  %v2808_v4 = vld [vmem:[%s4125_s1 + $0x20c] ss:$16 sps:$4 sm:$0xff]   ;;  %v2803_v6 = vld [vmem:[%s4125_s1 + $0x200] ss:$16 sps:$4 sm:$0xff]  }
  0x18   :  { %1642 = vmatprep.subr.bf16.mxu0 %v2743_v24  ;;  %1846 = vmatprep.subr.bf16.mxu1 %v2745_v25  ;;  %v2806_v7 = vld [vmem:[%s4125_s1 + $0x208] ss:$16 sps:$4 sm:$0xff]   ;;  %v2811_v8 = vld [vmem:[%s4125_s1 + $0x224] ss:$16 sps:$4 sm:$0xff]   ;;  %v2814_v9 = vld [vmem:[%s4125_s1 + $0x22c] ss:$16 sps:$4 sm:$0xff]  }
  0x19   :  { %v2809_v10 = vld [vmem:[%s4125_s1 + $0x220] ss:$16 sps:$4 sm:$0xff]   ;;  %v2812_v11 = vld [vmem:[%s4125_s1 + $0x228] ss:$16 sps:$4 sm:$0xff]   ;;  %v2817_v12 = vld [vmem:[%s4125_s1 + $0x244] ss:$16 sps:$4 sm:$0xff]  }
  0x1a   :  { %v2820_v13 = vld [vmem:[%s4125_s1 + $0x24c] ss:$16 sps:$4 sm:$0xff]   ;;  %v2815_v14 = vld [vmem:[%s4125_s1 + $0x240] ss:$16 sps:$4 sm:$0xff]   ;;  %v2818_v15 = vld [vmem:[%s4125_s1 + $0x248] ss:$16 sps:$4 sm:$0xff]  }
  0x1b   :  { %1643 = vmatpush1.bf16.msra.mxu0 %v2747_v26  ;;  %1847 = vmatpush1.bf16.msra.mxu1 %v2748_v27  ;;  %v2823_v16 = vld [vmem:[%s4125_s1 + $0x264] ss:$16 sps:$4 sm:$0xff]   ;;  %v2826_v17 = vld [vmem:[%s4125_s1 + $0x26c] ss:$16 sps:$4 sm:$0xff]   ;;  %v2821_v18 = vld [vmem:[%s4125_s1 + $0x260] ss:$16 sps:$4 sm:$0xff]  }
  0x1c   :  { %1644 = vmatprep.subr.bf16.mxu0 %v2749_v28  ;;  %1848 = vmatprep.subr.bf16.mxu1 %v2751_v29  ;;  %v2824_v19 = vld [vmem:[%s4125_s1 + $0x268] ss:$16 sps:$4 sm:$0xff]   ;;  %v2829_v20 = vld [vmem:[%s4125_s1 + $0x284] ss:$16 sps:$4 sm:$0xff]   ;;  %v2832_v21 = vld [vmem:[%s4125_s1 + $0x28c] ss:$16 sps:$4 sm:$0xff]  }
  0x1d   :  { %v2827_v22 = vld [vmem:[%s4125_s1 + $0x280] ss:$16 sps:$4 sm:$0xff]   ;;  %v2830_v23 = vld [vmem:[%s4125_s1 + $0x288] ss:$16 sps:$4 sm:$0xff]   ;;  %v2835_v24 = vld [vmem:[%s4125_s1 + $0x2a4] ss:$16 sps:$4 sm:$0xff]  }
  0x1e   :  { %v22_v25 = vld [vmem:[%s4126_s0 + $0x40] sm:$0x11]  ;;  %v2838_v26 = vld [vmem:[%s4125_s1 + $0x2ac] ss:$16 sps:$4 sm:$0xff]  }
  0x1f   :  { %1645 = vmatpush1.bf16.msra.mxu0 %v2753_v30  ;;  %1849 = vmatpush1.bf16.msra.mxu1 %v2754_v31  ;;  %v2383_v27 = vcombine.high %v22_v25, %v22_v25  ;;  %v2382_v28 = vcombine.low %v22_v25, %v22_v25  ;;  %v2833_v29 = vld [vmem:[%s4125_s1 + $0x2a0] ss:$16 sps:$4 sm:$0xff]   ;;  %v2836_v30 = vld [vmem:[%s4125_s1 + $0x2a8] ss:$16 sps:$4 sm:$0xff]   ;;  %v2841_v31 = vld [vmem:[%s4125_s1 + $0x2c4] ss:$16 sps:$4 sm:$0xff]  }
  0x20   :  { %1646 = vmatprep.subr.bf16.mxu0 %v2755_v32  ;;  %1850 = vmatprep.subr.bf16.mxu1 %v2757_v33  ;;  %v2844_v32 = vld [vmem:[%s4125_s1 + $0x2cc] ss:$16 sps:$4 sm:$0xff]   ;;  %v2859_v46 = vld [vmem:[%s4125_s1 + $0x324] ss:$16 sps:$4 sm:$0xff]  }
  0x21   :  { %v3409_v33 = vld [vmem:[%s4126_s0 + $0x8] sm:$0xff]  ;;  %v2865_v50 = vld [vmem:[%s4125_s1 + $0x344] ss:$16 sps:$4 sm:$0xff]  }
  0x22   :  { %v2862_v47 = vld [vmem:[%s4125_s1 + $0x32c] ss:$16 sps:$4 sm:$0xff]  }
  0x23   :  { %1647 = vmatpush1.bf16.msra.mxu0 %v2759_v34  ;;  %1851 = vmatpush1.bf16.msra.mxu1 %v2760_v35  ;;  %v3414_v34 = vld [vmem:[%s4126_s0 + $0x28] sm:$0xff]  ;;  %v2839_v35 = vld [vmem:[%s4125_s1 + $0x2c0] ss:$16 sps:$4 sm:$0xff]  }
  0x24   :  { %1648 = vmatprep.subr.bf16.mxu0 %v2761_v36  ;;  %1852 = vmatprep.subr.bf16.mxu1 %v2763_v37  ;;  %v2377_v36 = vcombine.high %v3409_v33, %v3414_v34  ;;  %v2842_v37 = vld [vmem:[%s4125_s1 + $0x2c8] ss:$16 sps:$4 sm:$0xff]  }
  0x27   :  { %1649 = vmatpush1.bf16.msra.mxu0 %v2765_v38  ;;  %1853 = vmatpush1.bf16.msra.mxu1 %v2766_v39  ;;  %v2847_v38 = vld [vmem:[%s4125_s1 + $0x2e4] ss:$16 sps:$4 sm:$0xff]   ;;  %v2850_v39 = vld [vmem:[%s4125_s1 + $0x2ec] ss:$16 sps:$4 sm:$0xff]  }
  0x28   :  { %1650 = vmatprep.subr.bf16.mxu0 %v2767_v40  ;;  %1854 = vmatprep.subr.bf16.mxu1 %v2769_v41  ;;  %v2845_v40 = vld [vmem:[%s4125_s1 + $0x2e0] ss:$16 sps:$4 sm:$0xff]   ;;  %v2848_v41 = vld [vmem:[%s4125_s1 + $0x2e8] ss:$16 sps:$4 sm:$0xff]  }
  0x2b   :  { %1651 = vmatpush1.bf16.msra.mxu0 %v2771_v42  ;;  %1855 = vmatpush1.bf16.msra.mxu1 %v2772_v43  ;;  %v2853_v42 = vld [vmem:[%s4125_s1 + $0x304] ss:$16 sps:$4 sm:$0xff]   ;;  %v2856_v43 = vld [vmem:[%s4125_s1 + $0x30c] ss:$16 sps:$4 sm:$0xff]  }
  0x2c   :  { %1652 = vmatprep.subr.bf16.mxu0 %v2773_v44  ;;  %1856 = vmatprep.subr.bf16.mxu1 %v2775_v45  ;;  %v2851_v44 = vld [vmem:[%s4125_s1 + $0x300] ss:$16 sps:$4 sm:$0xff]   ;;  %v2854_v45 = vld [vmem:[%s4125_s1 + $0x308] ss:$16 sps:$4 sm:$0xff]  }
  0x2f   :  { %1653 = vmatpush1.bf16.msra.mxu0 %v2777_v48  ;;  %1857 = vmatpush1.bf16.msra.mxu1 %v2778_v49  ;;  %v2857_v48 = vld [vmem:[%s4125_s1 + $0x320] ss:$16 sps:$4 sm:$0xff]   ;;  %v2860_v49 = vld [vmem:[%s4125_s1 + $0x328] ss:$16 sps:$4 sm:$0xff]  }
  0x30   :  { %1654 = vmatprep.subr.bf16.mxu0 %v2779_v51  ;;  %1858 = vmatprep.subr.bf16.mxu1 %v2781_v52  ;;  %v2868_v51 = vld [vmem:[%s4125_s1 + $0x34c] ss:$16 sps:$4 sm:$0xff]   ;;  %v2863_v52 = vld [vmem:[%s4125_s1 + $0x340] ss:$16 sps:$4 sm:$0xff]  }
  0x33   :  { %1655 = vmatpush1.bf16.msra.mxu0 %v2783_v53  ;;  %1859 = vmatpush1.bf16.msra.mxu1 %v2784_v54  ;;  %v2866_v53 = vld [vmem:[%s4125_s1 + $0x348] ss:$16 sps:$4 sm:$0xff]   ;;  %v2871_v54 = vld [vmem:[%s4125_s1 + $0x364] ss:$16 sps:$4 sm:$0xff]  }
  0x34   :  { %1656 = vmatprep.subr.bf16.mxu0 %v2785_v55  ;;  %1860 = vmatprep.subr.bf16.mxu1 %v2787_v56  ;;  %v2874_v55 = vld [vmem:[%s4125_s1 + $0x36c] ss:$16 sps:$4 sm:$0xff]   ;;  %v2869_v56 = vld [vmem:[%s4125_s1 + $0x360] ss:$16 sps:$4 sm:$0xff]  }
  0x37   :  { %1657 = vmatpush1.bf16.msra.mxu0 %v2789_v57  ;;  %1861 = vmatpush1.bf16.msra.mxu1 %v2790_v58  ;;  %v2872_v57 = vld [vmem:[%s4125_s1 + $0x368] ss:$16 sps:$4 sm:$0xff]   ;;  %v2877_v58 = vld [vmem:[%s4125_s1 + $0x384] ss:$16 sps:$4 sm:$0xff]  }
  0x38   :  { %1658 = vmatprep.subr.bf16.mxu0 %v2791_v59  ;;  %1862 = vmatprep.subr.bf16.mxu1 %v2793_v60  ;;  %v2880_v59 = vld [vmem:[%s4125_s1 + $0x38c] ss:$16 sps:$4 sm:$0xff]   ;;  %v2875_v60 = vld [vmem:[%s4125_s1 + $0x380] ss:$16 sps:$4 sm:$0xff]  }
  0x3b   :  { %1659 = vmatpush1.bf16.msra.mxu0 %v2795_v61  ;;  %1863 = vmatpush1.bf16.msra.mxu1 %v2796_v62  ;;  %v2878_v61 = vld [vmem:[%s4125_s1 + $0x388] ss:$16 sps:$4 sm:$0xff]   ;;  %v2883_v62 = vld [vmem:[%s4125_s1 + $0x3a4] ss:$16 sps:$4 sm:$0xff]  }
  0x3c   :  { %1660 = vmatprep.subr.bf16.mxu0 %v2797_v63  ;;  %1864 = vmatprep.subr.bf16.mxu1 %v2799_v0  ;;  %v2886_v63 = vld [vmem:[%s4125_s1 + $0x3ac] ss:$16 sps:$4 sm:$0xff]   ;;  %v2881_v0 = vld [vmem:[%s4125_s1 + $0x3a0] ss:$16 sps:$4 sm:$0xff]  }
  0x3f   :  { %1661 = vmatpush1.bf16.msra.mxu0 %v2801_v1  ;;  %1865 = vmatpush1.bf16.msra.mxu1 %v2802_v2  ;;  %v2884_v1 = vld [vmem:[%s4125_s1 + $0x3a8] ss:$16 sps:$4 sm:$0xff]   ;;  %v2890_v2 = vld [vmem:[%s4125_s1 + $0x3c4] ss:$16 sps:$4 sm:$0xff]  }
  0x40   :  { %1681 = vmatprep.subr.bf16.mxu0 %v2805_v3  ;;  %1885 = vmatprep.subr.bf16.mxu1 %v2808_v4  ;;  %v2893_v3 = vld [vmem:[%s4125_s1 + $0x3cc] ss:$16 sps:$4 sm:$0xff]   ;;  %v2888_v4 = vld [vmem:[%s4125_s1 + $0x3c0] ss:$16 sps:$4 sm:$0xff]  }
  0x42   :  { %1663 = vmatmul.mubr.bf16.vlgmr.msra.gmra.mrb[0].mxu0 %v2374_v5  ;;  %1867 = vmatmul.mubr.bf16.vlgmr.msra.gmra.mrb[0].mxu1 %v2374_v5  ;;  %v2891_v5 = vld [vmem:[%s4125_s1 + $0x3c8] ss:$16 sps:$4 sm:$0xff]  }
  0x43   :  { %1682 = vmatpush1.bf16.msra.mxu0 %v2803_v6  ;;  %1886 = vmatpush1.bf16.msra.mxu1 %v2806_v7  ;;  %v2897_v6 = vld [vmem:[%s4125_s1 + $0x3e4] ss:$16 sps:$4 sm:$0xff]   ;;  %v2900_v7 = vld [vmem:[%s4125_s1 + $0x3ec] ss:$16 sps:$4 sm:$0xff]  }
  0x44   :  { %1683 = vmatprep.subr.bf16.mxu0 %v2811_v8  ;;  %1887 = vmatprep.subr.bf16.mxu1 %v2814_v9  ;;  %v2895_v8 = vld [vmem:[%s4125_s1 + $0x3e0] ss:$16 sps:$4 sm:$0xff]   ;;  %v2898_v9 = vld [vmem:[%s4125_s1 + $0x3e8] ss:$16 sps:$4 sm:$0xff]  }
  0x45   :  { %1672 = vmatprep.mubr.bf16.mxu0 %v2383_v27  ;;  %1876 = vmatprep.mubr.bf16.mxu1 %v2383_v27  ;;  %v3581_v27 = vld [vmem:[%s4126_s0 + $0x30] sm:$0xff] }
  0x47   :  { %1684 = vmatpush1.bf16.msra.mxu0 %v2809_v10  ;;  %1888 = vmatpush1.bf16.msra.mxu1 %v2812_v11  ;;  %v2903_v10 = vld [vmem:[%s4125_s1 + $0x404] ss:$16 sps:$4 sm:$0xff]   ;;  %v2906_v11 = vld [vmem:[%s4125_s1 + $0x40c] ss:$16 sps:$4 sm:$0xff]  }
  0x48   :  { %1685 = vmatprep.subr.bf16.mxu0 %v2817_v12  ;;  %1889 = vmatprep.subr.bf16.mxu1 %v2820_v13  ;;  %v2376_v12 = vcombine.low %v3409_v33, %v3414_v34  ;;  %v23_v13 = vld [vmem:[%s4126_s0 + $0x48] sm:$0x11]  ;;  %v2927_v33 = vld [vmem:[%s4125_s1 + $0x484] ss:$16 sps:$4 sm:$0xff]  }
  0x49   :  { %v2384_v25 = vcombine.low %v23_v13, %v23_v13  ;;  %v2930_v34 = vld [vmem:[%s4125_s1 + $0x48c] ss:$16 sps:$4 sm:$0xff]  }
  0x4a   :  { %1673 = vmatmul.mubr.bf16.gmra.mrb[4].mxu0 %v2382_v28  ;;  %1877 = vmatmul.mubr.bf16.gmra.mrb[4].mxu1 %v2382_v28  ;;  %v2921_v28 = vld [vmem:[%s4125_s1 + $0x464] ss:$16 sps:$4 sm:$0xff]  }
  0x4b   :  { %1686 = vmatpush1.bf16.msra.mxu0 %v2815_v14  ;;  %1890 = vmatpush1.bf16.msra.mxu1 %v2818_v15  ;;  %v2901_v14 = vld [vmem:[%s4125_s1 + $0x400] ss:$16 sps:$4 sm:$0xff]   ;;  %v2904_v15 = vld [vmem:[%s4125_s1 + $0x408] ss:$16 sps:$4 sm:$0xff]  }
  0x4c   :  { %1687 = vmatprep.subr.bf16.mxu0 %v2823_v16  ;;  %1891 = vmatprep.subr.bf16.mxu1 %v2826_v17  ;;  %v2909_v16 = vld [vmem:[%s4125_s1 + $0x424] ss:$16 sps:$4 sm:$0xff]   ;;  %v2912_v17 = vld [vmem:[%s4125_s1 + $0x42c] ss:$16 sps:$4 sm:$0xff]  }
  0x4d   :  { %1713 = vmatprep.mubr.bf16.mxu0 %v2377_v36  ;;  %1917 = vmatprep.mubr.bf16.mxu1 %v2377_v36  ;;  %v2928_v36 = vld [vmem:[%s4125_s1 + $0x488] ss:$16 sps:$4 sm:$0xff]  }
  0x4f   :  { %1688 = vmatpush1.bf16.msra.mxu0 %v2821_v18  ;;  %1892 = vmatpush1.bf16.msra.mxu1 %v2824_v19  ;;  %v2385_v18 = vcombine.high %v23_v13, %v23_v13  ;;  %v2907_v19 = vld [vmem:[%s4125_s1 + $0x420] ss:$16 sps:$4 sm:$0xff]   ;;  %v2995_v13 = vld [vmem:[%s4125_s1 + $0x5e4] ss:$16 sps:$4 sm:$0xff]  }
  0x50   :  { %1689 = vmatprep.subr.bf16.mxu0 %v2829_v20  ;;  %1893 = vmatprep.subr.bf16.mxu1 %v2832_v21  ;;  %v2910_v20 = vld [vmem:[%s4125_s1 + $0x428] ss:$16 sps:$4 sm:$0xff]   ;;  %v2915_v21 = vld [vmem:[%s4125_s1 + $0x444] ss:$16 sps:$4 sm:$0xff]  }
  0x53   :  { %1690 = vmatpush1.bf16.msra.mxu0 %v2827_v22  ;;  %1894 = vmatpush1.bf16.msra.mxu1 %v2830_v23  ;;  %v2918_v22 = vld [vmem:[%s4125_s1 + $0x44c] ss:$16 sps:$4 sm:$0xff]   ;;  %v2913_v23 = vld [vmem:[%s4125_s1 + $0x440] ss:$16 sps:$4 sm:$0xff]  }
  0x54   :  { %1691 = vmatprep.subr.bf16.mxu0 %v2835_v24  ;;  %1895 = vmatprep.subr.bf16.mxu1 %v2838_v26  ;;  %v2916_v24 = vld [vmem:[%s4125_s1 + $0x448] ss:$16 sps:$4 sm:$0xff]   ;;  %v3576_v26 = vld [vmem:[%s4126_s0 + $0x10] sm:$0xff] }
  0x57   :  { %1692 = vmatpush1.bf16.msra.mxu0 %v2833_v29  ;;  %1896 = vmatpush1.bf16.msra.mxu1 %v2836_v30  ;;  %v2924_v29 = vld [vmem:[%s4125_s1 + $0x46c] ss:$16 sps:$4 sm:$0xff]   ;;  %v2379_v30 = vcombine.high %v3576_v26, %v3581_v27 }
  0x58   :  { %1693 = vmatprep.subr.bf16.mxu0 %v2841_v31  ;;  %1897 = vmatprep.subr.bf16.mxu1 %v2844_v32  ;;  %v2919_v31 = vld [vmem:[%s4125_s1 + $0x460] ss:$16 sps:$4 sm:$0xff]   ;;  %v2922_v32 = vld [vmem:[%s4125_s1 + $0x468] ss:$16 sps:$4 sm:$0xff]  }
  0x5b   :  { %1694 = vmatpush1.bf16.msra.mxu0 %v2839_v35  ;;  %1898 = vmatpush1.bf16.msra.mxu1 %v2842_v37  ;;  %v2925_v35 = vld [vmem:[%s4125_s1 + $0x480] ss:$16 sps:$4 sm:$0xff]   ;;  %v2933_v37 = vld [vmem:[%s4125_s1 + $0x4a4] ss:$16 sps:$4 sm:$0xff]  }
  0x5c   :  { %1695 = vmatprep.subr.bf16.mxu0 %v2847_v38  ;;  %1899 = vmatprep.subr.bf16.mxu1 %v2850_v39  ;;  %v2936_v38 = vld [vmem:[%s4125_s1 + $0x4ac] ss:$16 sps:$4 sm:$0xff]   ;;  %v2931_v39 = vld [vmem:[%s4125_s1 + $0x4a0] ss:$16 sps:$4 sm:$0xff]  }
  0x5f   :  { %1696 = vmatpush1.bf16.msra.mxu0 %v2845_v40  ;;  %1900 = vmatpush1.bf16.msra.mxu1 %v2848_v41  ;;  %v2934_v40 = vld [vmem:[%s4125_s1 + $0x4a8] ss:$16 sps:$4 sm:$0xff]   ;;  %v2939_v41 = vld [vmem:[%s4125_s1 + $0x4c4] ss:$16 sps:$4 sm:$0xff]  }
  0x60   :  { %1697 = vmatprep.subr.bf16.mxu0 %v2853_v42  ;;  %1901 = vmatprep.subr.bf16.mxu1 %v2856_v43  ;;  %v2942_v42 = vld [vmem:[%s4125_s1 + $0x4cc] ss:$16 sps:$4 sm:$0xff]   ;;  %v2937_v43 = vld [vmem:[%s4125_s1 + $0x4c0] ss:$16 sps:$4 sm:$0xff]  }
  0x63   :  { %1698 = vmatpush1.bf16.msra.mxu0 %v2851_v44  ;;  %1902 = vmatpush1.bf16.msra.mxu1 %v2854_v45  ;;  %v2940_v44 = vld [vmem:[%s4125_s1 + $0x4c8] ss:$16 sps:$4 sm:$0xff]   ;;  %v2945_v45 = vld [vmem:[%s4125_s1 + $0x4e4] ss:$16 sps:$4 sm:$0xff]  }
  0x64   :  { %1699 = vmatprep.subr.bf16.mxu0 %v2859_v46  ;;  %1903 = vmatprep.subr.bf16.mxu1 %v2862_v47  ;;  %v2948_v46 = vld [vmem:[%s4125_s1 + $0x4ec] ss:$16 sps:$4 sm:$0xff]   ;;  %v2943_v47 = vld [vmem:[%s4125_s1 + $0x4e0] ss:$16 sps:$4 sm:$0xff]  }
  0x67   :  { %1700 = vmatpush1.bf16.msra.mxu0 %v2857_v48  ;;  %1904 = vmatpush1.bf16.msra.mxu1 %v2860_v49  ;;  %v2946_v48 = vld [vmem:[%s4125_s1 + $0x4e8] ss:$16 sps:$4 sm:$0xff]   ;;  %v2951_v49 = vld [vmem:[%s4125_s1 + $0x504] ss:$16 sps:$4 sm:$0xff]  }
  0x68   :  { %1701 = vmatprep.subr.bf16.mxu0 %v2865_v50  ;;  %1905 = vmatprep.subr.bf16.mxu1 %v2868_v51  ;;  %v2954_v50 = vld [vmem:[%s4125_s1 + $0x50c] ss:$16 sps:$4 sm:$0xff]   ;;  %v2949_v51 = vld [vmem:[%s4125_s1 + $0x500] ss:$16 sps:$4 sm:$0xff]  }
  0x6b   :  { %1702 = vmatpush1.bf16.msra.mxu0 %v2863_v52  ;;  %1906 = vmatpush1.bf16.msra.mxu1 %v2866_v53  ;;  %v2952_v52 = vld [vmem:[%s4125_s1 + $0x508] ss:$16 sps:$4 sm:$0xff]   ;;  %v2957_v53 = vld [vmem:[%s4125_s1 + $0x524] ss:$16 sps:$4 sm:$0xff]  }
  0x6c   :  { %1703 = vmatprep.subr.bf16.mxu0 %v2871_v54  ;;  %1907 = vmatprep.subr.bf16.mxu1 %v2874_v55  ;;  %v2960_v54 = vld [vmem:[%s4125_s1 + $0x52c] ss:$16 sps:$4 sm:$0xff]   ;;  %v2955_v55 = vld [vmem:[%s4125_s1 + $0x520] ss:$16 sps:$4 sm:$0xff]  }
  0x6f   :  { %1704 = vmatpush1.bf16.msra.mxu0 %v2869_v56  ;;  %1908 = vmatpush1.bf16.msra.mxu1 %v2872_v57  ;;  %v2958_v56 = vld [vmem:[%s4125_s1 + $0x528] ss:$16 sps:$4 sm:$0xff]   ;;  %v2963_v57 = vld [vmem:[%s4125_s1 + $0x544] ss:$16 sps:$4 sm:$0xff]  }
  0x70   :  { %1705 = vmatprep.subr.bf16.mxu0 %v2877_v58  ;;  %1909 = vmatprep.subr.bf16.mxu1 %v2880_v59  ;;  %v2966_v58 = vld [vmem:[%s4125_s1 + $0x54c] ss:$16 sps:$4 sm:$0xff]   ;;  %v2961_v59 = vld [vmem:[%s4125_s1 + $0x540] ss:$16 sps:$4 sm:$0xff]  }
  0x73   :  { %1706 = vmatpush1.bf16.msra.mxu0 %v2875_v60  ;;  %1910 = vmatpush1.bf16.msra.mxu1 %v2878_v61  ;;  %v2964_v60 = vld [vmem:[%s4125_s1 + $0x548] ss:$16 sps:$4 sm:$0xff]   ;;  %v2969_v61 = vld [vmem:[%s4125_s1 + $0x564] ss:$16 sps:$4 sm:$0xff]  }
  0x74   :  { %1707 = vmatprep.subr.bf16.mxu0 %v2883_v62  ;;  %1911 = vmatprep.subr.bf16.mxu1 %v2886_v63  ;;  %v2972_v62 = vld [vmem:[%s4125_s1 + $0x56c] ss:$16 sps:$4 sm:$0xff]   ;;  %v2967_v63 = vld [vmem:[%s4125_s1 + $0x560] ss:$16 sps:$4 sm:$0xff]  }
  0x77   :  { %1708 = vmatpush1.bf16.msra.mxu0 %v2881_v0  ;;  %1912 = vmatpush1.bf16.msra.mxu1 %v2884_v1  ;;  %v2970_v0 = vld [vmem:[%s4125_s1 + $0x568] ss:$16 sps:$4 sm:$0xff]   ;;  %v2975_v1 = vld [vmem:[%s4125_s1 + $0x584] ss:$16 sps:$4 sm:$0xff]  }
  0x78   :  { %1709 = vmatprep.subr.bf16.mxu0 %v2890_v2  ;;  %1913 = vmatprep.subr.bf16.mxu1 %v2893_v3  ;;  %v2978_v2 = vld [vmem:[%s4125_s1 + $0x58c] ss:$16 sps:$4 sm:$0xff]   ;;  %v2973_v3 = vld [vmem:[%s4125_s1 + $0x580] ss:$16 sps:$4 sm:$0xff]  }
  0x7b   :  { %1710 = vmatpush1.bf16.msra.mxu0 %v2888_v4  ;;  %1914 = vmatpush1.bf16.msra.mxu1 %v2891_v5  ;;  %v2976_v4 = vld [vmem:[%s4125_s1 + $0x588] ss:$16 sps:$4 sm:$0xff]   ;;  %v2981_v5 = vld [vmem:[%s4125_s1 + $0x5a4] ss:$16 sps:$4 sm:$0xff]  }
  0x7c   :  { %1711 = vmatprep.subr.bf16.mxu0 %v2897_v6  ;;  %1915 = vmatprep.subr.bf16.mxu1 %v2900_v7  ;;  %v2984_v6 = vld [vmem:[%s4125_s1 + $0x5ac] ss:$16 sps:$4 sm:$0xff]   ;;  %v2979_v7 = vld [vmem:[%s4125_s1 + $0x5a0] ss:$16 sps:$4 sm:$0xff]  }
  0x7f   :  { %1712 = vmatpush1.bf16.msra.mxu0 %v2895_v8  ;;  %1916 = vmatpush1.bf16.msra.mxu1 %v2898_v9  ;;  %v2982_v8 = vld [vmem:[%s4125_s1 + $0x5a8] ss:$16 sps:$4 sm:$0xff]   ;;  %v2988_v9 = vld [vmem:[%s4125_s1 + $0x5c4] ss:$16 sps:$4 sm:$0xff]  }
  0x80   :  { %1732 = vmatprep.subr.bf16.mxu0 %v2903_v10  ;;  %1936 = vmatprep.subr.bf16.mxu1 %v2906_v11  ;;  %v2991_v10 = vld [vmem:[%s4125_s1 + $0x5cc] ss:$16 sps:$4 sm:$0xff]   ;;  %v2986_v11 = vld [vmem:[%s4125_s1 + $0x5c0] ss:$16 sps:$4 sm:$0xff]  }
  0x82   :  { %1714 = vmatmul.mubr.bf16.vlgmr.msra.gmra.mrb[0].mxu0 %v2376_v12  ;;  %1918 = vmatmul.mubr.bf16.vlgmr.msra.gmra.mrb[0].mxu1 %v2376_v12  ;;  %v2989_v12 = vld [vmem:[%s4125_s1 + $0x5c8] ss:$16 sps:$4 sm:$0xff]  }
  0x83   :  { %1733 = vmatpush1.bf16.msra.mxu0 %v2901_v14  ;;  %1937 = vmatpush1.bf16.msra.mxu1 %v2904_v15  ;;  %v2998_v14 = vld [vmem:[%s4125_s1 + $0x5ec] ss:$16 sps:$4 sm:$0xff]   ;;  %v2993_v15 = vld [vmem:[%s4125_s1 + $0x5e0] ss:$16 sps:$4 sm:$0xff]  }
  0x84   :  { %1734 = vmatprep.subr.bf16.mxu0 %v2909_v16  ;;  %1938 = vmatprep.subr.bf16.mxu1 %v2912_v17  ;;  %v2996_v16 = vld [vmem:[%s4125_s1 + $0x5e8] ss:$16 sps:$4 sm:$0xff]   ;;  %v3001_v17 = vld [vmem:[%s4125_s1 + $0x604] ss:$16 sps:$4 sm:$0xff]  }
  0x85   :  { %1723 = vmatprep.mubr.bf16.mxu0 %v2385_v18  ;;  %1927 = vmatprep.mubr.bf16.mxu1 %v2385_v18  ;;  %v3004_v18 = vld [vmem:[%s4125_s1 + $0x60c] ss:$16 sps:$4 sm:$0xff]  }
  0x87   :  { %1735 = vmatpush1.bf16.msra.mxu0 %v2907_v19  ;;  %1939 = vmatpush1.bf16.msra.mxu1 %v2910_v20  ;;  %v2378_v19 = vcombine.low %v3576_v26, %v3581_v27  ;;  %v24_v20 = vld [vmem:[%s4126_s0 + $0x50] sm:$0x11]  ;;  %v3008_v27 = vld [vmem:[%s4125_s1 + $0x628] ss:$16 sps:$4 sm:$0xff]  }
  0x88   :  { %1736 = vmatprep.subr.bf16.mxu0 %v2915_v21  ;;  %1940 = vmatprep.subr.bf16.mxu1 %v2918_v22  ;;  %v2999_v21 = vld [vmem:[%s4125_s1 + $0x600] ss:$16 sps:$4 sm:$0xff]   ;;  %v3002_v22 = vld [vmem:[%s4125_s1 + $0x608] ss:$16 sps:$4 sm:$0xff]  }
  0x89   :  { %v3005_v26 = vld [vmem:[%s4125_s1 + $0x620] ss:$16 sps:$4 sm:$0xff]  }
  0x8a   :  { %1724 = vmatmul.mubr.bf16.gmra.mrb[4].mxu0 %v2384_v25  ;;  %1928 = vmatmul.mubr.bf16.gmra.mrb[4].mxu1 %v2384_v25  ;;  %v2387_v25 = vcombine.high %v24_v20, %v24_v20 }
  0x8b   :  { %1737 = vmatpush1.bf16.msra.mxu0 %v2913_v23  ;;  %1941 = vmatpush1.bf16.msra.mxu1 %v2916_v24  ;;  %v3007_v23 = vld [vmem:[%s4125_s1 + $0x624] ss:$16 sps:$4 sm:$0xff]   ;;  %v3010_v24 = vld [vmem:[%s4125_s1 + $0x62c] ss:$16 sps:$4 sm:$0xff]  }
  0x8c   :  { %1738 = vmatprep.subr.bf16.mxu0 %v2921_v28  ;;  %1942 = vmatprep.subr.bf16.mxu1 %v2924_v29  ;;  %v3013_v28 = vld [vmem:[%s4125_s1 + $0x644] ss:$16 sps:$4 sm:$0xff]   ;;  %v3016_v29 = vld [vmem:[%s4125_s1 + $0x64c] ss:$16 sps:$4 sm:$0xff]  }
  0x8d   :  { %1764 = vmatprep.mubr.bf16.mxu0 %v2379_v30  ;;  %1968 = vmatprep.mubr.bf16.mxu1 %v2379_v30  ;;  %v2386_v30 = vcombine.low %v24_v20, %v24_v20  ;;  %v3093_v20 = vld [vmem:[%s4125_s1 + $0x7e4] ss:$16 sps:$4 sm:$0xff]  }
  0x8f   :  { %1739 = vmatpush1.bf16.msra.mxu0 %v2919_v31  ;;  %1943 = vmatpush1.bf16.msra.mxu1 %v2922_v32  ;;  %v3779_v31 = vld [vmem:[%s4126_s0 + $0x18] sm:$0xff] }
  0x90   :  { %1740 = vmatprep.subr.bf16.mxu0 %v2927_v33  ;;  %1944 = vmatprep.subr.bf16.mxu1 %v2930_v34  ;;  %v3784_v32 = vld [vmem:[%s4126_s0 + $0x38] sm:$0xff]  ;;  %v3011_v33 = vld [vmem:[%s4125_s1 + $0x640] ss:$16 sps:$4 sm:$0xff]  }
  0x91   :  { %v3014_v34 = vld [vmem:[%s4125_s1 + $0x648] ss:$16 sps:$4 sm:$0xff]  }
  0x93   :  { %1741 = vmatpush1.bf16.msra.mxu0 %v2925_v35  ;;  %1945 = vmatpush1.bf16.msra.mxu1 %v2928_v36  ;;  %v3019_v35 = vld [vmem:[%s4125_s1 + $0x664] ss:$16 sps:$4 sm:$0xff]   ;;  %v3022_v36 = vld [vmem:[%s4125_s1 + $0x66c] ss:$16 sps:$4 sm:$0xff]  }
  0x94   :  { %1742 = vmatprep.subr.bf16.mxu0 %v2933_v37  ;;  %1946 = vmatprep.subr.bf16.mxu1 %v2936_v38  ;;  %v2381_v37 = vcombine.high %v3779_v31, %v3784_v32  ;;  %v3017_v38 = vld [vmem:[%s4125_s1 + $0x660] ss:$16 sps:$4 sm:$0xff]  }
  0x97   :  { %1743 = vmatpush1.bf16.msra.mxu0 %v2931_v39  ;;  %1947 = vmatpush1.bf16.msra.mxu1 %v2934_v40  ;;  %v3020_v39 = vld [vmem:[%s4125_s1 + $0x668] ss:$16 sps:$4 sm:$0xff]   ;;  %v3025_v40 = vld [vmem:[%s4125_s1 + $0x684] ss:$16 sps:$4 sm:$0xff]  }
  0x98   :  { %1744 = vmatprep.subr.bf16.mxu0 %v2939_v41  ;;  %1948 = vmatprep.subr.bf16.mxu1 %v2942_v42  ;;  %v3028_v41 = vld [vmem:[%s4125_s1 + $0x68c] ss:$16 sps:$4 sm:$0xff]   ;;  %v3023_v42 = vld [vmem:[%s4125_s1 + $0x680] ss:$16 sps:$4 sm:$0xff]  }
  0x9b   :  { %1745 = vmatpush1.bf16.msra.mxu0 %v2937_v43  ;;  %1949 = vmatpush1.bf16.msra.mxu1 %v2940_v44  ;;  %v3026_v43 = vld [vmem:[%s4125_s1 + $0x688] ss:$16 sps:$4 sm:$0xff]   ;;  %v3031_v44 = vld [vmem:[%s4125_s1 + $0x6a4] ss:$16 sps:$4 sm:$0xff]  }
  0x9c   :  { %1746 = vmatprep.subr.bf16.mxu0 %v2945_v45  ;;  %1950 = vmatprep.subr.bf16.mxu1 %v2948_v46  ;;  %v3034_v45 = vld [vmem:[%s4125_s1 + $0x6ac] ss:$16 sps:$4 sm:$0xff]   ;;  %v3029_v46 = vld [vmem:[%s4125_s1 + $0x6a0] ss:$16 sps:$4 sm:$0xff]  }
  0x9f   :  { %1747 = vmatpush1.bf16.msra.mxu0 %v2943_v47  ;;  %1951 = vmatpush1.bf16.msra.mxu1 %v2946_v48  ;;  %v3032_v47 = vld [vmem:[%s4125_s1 + $0x6a8] ss:$16 sps:$4 sm:$0xff]   ;;  %v3037_v48 = vld [vmem:[%s4125_s1 + $0x6c4] ss:$16 sps:$4 sm:$0xff]  }
  0xa0   :  { %1748 = vmatprep.subr.bf16.mxu0 %v2951_v49  ;;  %1952 = vmatprep.subr.bf16.mxu1 %v2954_v50  ;;  %v3040_v49 = vld [vmem:[%s4125_s1 + $0x6cc] ss:$16 sps:$4 sm:$0xff]   ;;  %v3035_v50 = vld [vmem:[%s4125_s1 + $0x6c0] ss:$16 sps:$4 sm:$0xff]  }
  0xa3   :  { %1749 = vmatpush1.bf16.msra.mxu0 %v2949_v51  ;;  %1953 = vmatpush1.bf16.msra.mxu1 %v2952_v52  ;;  %v3038_v51 = vld [vmem:[%s4125_s1 + $0x6c8] ss:$16 sps:$4 sm:$0xff]   ;;  %v3043_v52 = vld [vmem:[%s4125_s1 + $0x6e4] ss:$16 sps:$4 sm:$0xff]  }
  0xa4   :  { %1750 = vmatprep.subr.bf16.mxu0 %v2957_v53  ;;  %1954 = vmatprep.subr.bf16.mxu1 %v2960_v54  ;;  %v3046_v53 = vld [vmem:[%s4125_s1 + $0x6ec] ss:$16 sps:$4 sm:$0xff]   ;;  %v3041_v54 = vld [vmem:[%s4125_s1 + $0x6e0] ss:$16 sps:$4 sm:$0xff]  }
  0xa7   :  { %1751 = vmatpush1.bf16.msra.mxu0 %v2955_v55  ;;  %1955 = vmatpush1.bf16.msra.mxu1 %v2958_v56  ;;  %v3044_v55 = vld [vmem:[%s4125_s1 + $0x6e8] ss:$16 sps:$4 sm:$0xff]   ;;  %v3049_v56 = vld [vmem:[%s4125_s1 + $0x704] ss:$16 sps:$4 sm:$0xff]  }
  0xa8   :  { %1752 = vmatprep.subr.bf16.mxu0 %v2963_v57  ;;  %1956 = vmatprep.subr.bf16.mxu1 %v2966_v58  ;;  %v3052_v57 = vld [vmem:[%s4125_s1 + $0x70c] ss:$16 sps:$4 sm:$0xff]   ;;  %v3047_v58 = vld [vmem:[%s4125_s1 + $0x700] ss:$16 sps:$4 sm:$0xff]  }
  0xab   :  { %1753 = vmatpush1.bf16.msra.mxu0 %v2961_v59  ;;  %1957 = vmatpush1.bf16.msra.mxu1 %v2964_v60  ;;  %v3050_v59 = vld [vmem:[%s4125_s1 + $0x708] ss:$16 sps:$4 sm:$0xff]   ;;  %v3055_v60 = vld [vmem:[%s4125_s1 + $0x724] ss:$16 sps:$4 sm:$0xff]  }
  0xac   :  { %1754 = vmatprep.subr.bf16.mxu0 %v2969_v61  ;;  %1958 = vmatprep.subr.bf16.mxu1 %v2972_v62  ;;  %v3058_v61 = vld [vmem:[%s4125_s1 + $0x72c] ss:$16 sps:$4 sm:$0xff]   ;;  %v3053_v62 = vld [vmem:[%s4125_s1 + $0x720] ss:$16 sps:$4 sm:$0xff]  }
  0xaf   :  { %1755 = vmatpush1.bf16.msra.mxu0 %v2967_v63  ;;  %1959 = vmatpush1.bf16.msra.mxu1 %v2970_v0  ;;  %v3056_v63 = vld [vmem:[%s4125_s1 + $0x728] ss:$16 sps:$4 sm:$0xff]   ;;  %v3061_v0 = vld [vmem:[%s4125_s1 + $0x744] ss:$16 sps:$4 sm:$0xff]  }
  0xb0   :  { %1756 = vmatprep.subr.bf16.mxu0 %v2975_v1  ;;  %1960 = vmatprep.subr.bf16.mxu1 %v2978_v2  ;;  %v3064_v1 = vld [vmem:[%s4125_s1 + $0x74c] ss:$16 sps:$4 sm:$0xff]   ;;  %v3059_v2 = vld [vmem:[%s4125_s1 + $0x740] ss:$16 sps:$4 sm:$0xff]  }
  0xb3   :  { %1757 = vmatpush1.bf16.msra.mxu0 %v2973_v3  ;;  %1961 = vmatpush1.bf16.msra.mxu1 %v2976_v4  ;;  %v3062_v3 = vld [vmem:[%s4125_s1 + $0x748] ss:$16 sps:$4 sm:$0xff]   ;;  %v3067_v4 = vld [vmem:[%s4125_s1 + $0x764] ss:$16 sps:$4 sm:$0xff]  }
  0xb4   :  { %1758 = vmatprep.subr.bf16.mxu0 %v2981_v5  ;;  %1962 = vmatprep.subr.bf16.mxu1 %v2984_v6  ;;  %v3070_v5 = vld [vmem:[%s4125_s1 + $0x76c] ss:$16 sps:$4 sm:$0xff]   ;;  %v3065_v6 = vld [vmem:[%s4125_s1 + $0x760] ss:$16 sps:$4 sm:$0xff]  }
  0xb7   :  { %1759 = vmatpush1.bf16.msra.mxu0 %v2979_v7  ;;  %1963 = vmatpush1.bf16.msra.mxu1 %v2982_v8  ;;  %v3068_v7 = vld [vmem:[%s4125_s1 + $0x768] ss:$16 sps:$4 sm:$0xff]   ;;  %v3073_v8 = vld [vmem:[%s4125_s1 + $0x784] ss:$16 sps:$4 sm:$0xff]  }
  0xb8   :  { %1760 = vmatprep.subr.bf16.mxu0 %v2988_v9  ;;  %1964 = vmatprep.subr.bf16.mxu1 %v2991_v10  ;;  %v3076_v9 = vld [vmem:[%s4125_s1 + $0x78c] ss:$16 sps:$4 sm:$0xff]   ;;  %v3071_v10 = vld [vmem:[%s4125_s1 + $0x780] ss:$16 sps:$4 sm:$0xff]  }
  0xbb   :  { %1761 = vmatpush1.bf16.msra.mxu0 %v2986_v11  ;;  %1965 = vmatpush1.bf16.msra.mxu1 %v2989_v12  ;;  %v3074_v11 = vld [vmem:[%s4125_s1 + $0x788] ss:$16 sps:$4 sm:$0xff]   ;;  %v3079_v12 = vld [vmem:[%s4125_s1 + $0x7a4] ss:$16 sps:$4 sm:$0xff]  }
  0xbc   :  { %1762 = vmatprep.subr.bf16.mxu0 %v2995_v13  ;;  %1966 = vmatprep.subr.bf16.mxu1 %v2998_v14  ;;  %v3082_v13 = vld [vmem:[%s4125_s1 + $0x7ac] ss:$16 sps:$4 sm:$0xff]   ;;  %v3077_v14 = vld [vmem:[%s4125_s1 + $0x7a0] ss:$16 sps:$4 sm:$0xff]  }
  0xbf   :  { %1763 = vmatpush1.bf16.msra.mxu0 %v2993_v15  ;;  %1967 = vmatpush1.bf16.msra.mxu1 %v2996_v16  ;;  %v3080_v15 = vld [vmem:[%s4125_s1 + $0x7a8] ss:$16 sps:$4 sm:$0xff]   ;;  %v3087_v16 = vld [vmem:[%s4125_s1 + $0x7c4] ss:$16 sps:$4 sm:$0xff]  }
  0xc0   :  { %1783 = vmatprep.subr.bf16.mxu0 %v3001_v17  ;;  %1987 = vmatprep.subr.bf16.mxu1 %v3004_v18  ;;  %v3090_v17 = vld [vmem:[%s4125_s1 + $0x7cc] ss:$16 sps:$4 sm:$0xff]   ;;  %v3085_v18 = vld [vmem:[%s4125_s1 + $0x7c0] ss:$16 sps:$4 sm:$0xff]  }
  0xc2   :  { %1765 = vmatmul.mubr.bf16.vlgmr.msra.gmra.mrb[0].mxu0 %v2378_v19  ;;  %1969 = vmatmul.mubr.bf16.vlgmr.msra.gmra.mrb[0].mxu1 %v2378_v19  ;;  %v3088_v19 = vld [vmem:[%s4125_s1 + $0x7c8] ss:$16 sps:$4 sm:$0xff]  }
  0xc3   :  { %1784 = vmatpush1.bf16.msra.mxu0 %v2999_v21  ;;  %1988 = vmatpush1.bf16.msra.mxu1 %v3002_v22  ;;  %v3096_v21 = vld [vmem:[%s4125_s1 + $0x7ec] ss:$16 sps:$4 sm:$0xff]   ;;  %v3091_v22 = vld [vmem:[%s4125_s1 + $0x7e0] ss:$16 sps:$4 sm:$0xff]  }
  0xc4   :  { %1785 = vmatprep.subr.bf16.mxu0 %v3007_v23  ;;  %1989 = vmatprep.subr.bf16.mxu1 %v3010_v24  ;;  %v3094_v23 = vld [vmem:[%s4125_s1 + $0x7e8] ss:$16 sps:$4 sm:$0xff]  }
  0xc5   :  { %1774 = vmatprep.mubr.bf16.mxu0 %v2387_v25  ;;  %1978 = vmatprep.mubr.bf16.mxu1 %v2387_v25  ;;  %v25_v24 = vld [vmem:[%s4126_s0 + $0x58] sm:$0x11]  ;;  %v2380_v25 = vcombine.low %v3779_v31, %v3784_v32 }
  0xc7   :  { %1786 = vmatpush1.bf16.msra.mxu0 %v3005_v26  ;;  %1990 = vmatpush1.bf16.msra.mxu1 %v3008_v27  ;;  %v2389_v26 = vcombine.high %v25_v24, %v25_v24  ;;  %v2388_v27 = vcombine.low %v25_v24, %v25_v24 }
  0xc8   :  { %1787 = vmatprep.subr.bf16.mxu0 %v3013_v28  ;;  %1991 = vmatprep.subr.bf16.mxu1 %v3016_v29 }
  0xca   :  { %1775 = vmatmul.mubr.bf16.gmra.mrb[4].mxu0 %v2386_v30  ;;  %1979 = vmatmul.mubr.bf16.gmra.mrb[4].mxu1 %v2386_v30 }
  0xcb   :  { %1788 = vmatpush1.bf16.msra.mxu0 %v3011_v33  ;;  %1992 = vmatpush1.bf16.msra.mxu1 %v3014_v34 }
  0xcc   :  { %1789 = vmatprep.subr.bf16.mxu0 %v3019_v35  ;;  %1993 = vmatprep.subr.bf16.mxu1 %v3022_v36 }
  0xcd   :  { %1815 = vmatprep.mubr.bf16.mxu0 %v2381_v37  ;;  %2019 = vmatprep.mubr.bf16.mxu1 %v2381_v37 }
  0xcf   :  { %1790 = vmatpush1.bf16.msra.mxu0 %v3017_v38  ;;  %1994 = vmatpush1.bf16.msra.mxu1 %v3020_v39 }
  0xd0   :  { %1791 = vmatprep.subr.bf16.mxu0 %v3025_v40  ;;  %1995 = vmatprep.subr.bf16.mxu1 %v3028_v41 }
  0xd3   :  { %1792 = vmatpush1.bf16.msra.mxu0 %v3023_v42  ;;  %1996 = vmatpush1.bf16.msra.mxu1 %v3026_v43 }
  0xd4   :  { %1793 = vmatprep.subr.bf16.mxu0 %v3031_v44  ;;  %1997 = vmatprep.subr.bf16.mxu1 %v3034_v45 }
  0xd7   :  { %1794 = vmatpush1.bf16.msra.mxu0 %v3029_v46  ;;  %1998 = vmatpush1.bf16.msra.mxu1 %v3032_v47 }
  0xd8   :  { %1795 = vmatprep.subr.bf16.mxu0 %v3037_v48  ;;  %1999 = vmatprep.subr.bf16.mxu1 %v3040_v49 }
  0xdb   :  { %1796 = vmatpush1.bf16.msra.mxu0 %v3035_v50  ;;  %2000 = vmatpush1.bf16.msra.mxu1 %v3038_v51 }
  0xdc   :  { %1797 = vmatprep.subr.bf16.mxu0 %v3043_v52  ;;  %2001 = vmatprep.subr.bf16.mxu1 %v3046_v53 }
  0xdf   :  { %1798 = vmatpush1.bf16.msra.mxu0 %v3041_v54  ;;  %2002 = vmatpush1.bf16.msra.mxu1 %v3044_v55 }
  0xe0   :  { %1799 = vmatprep.subr.bf16.mxu0 %v3049_v56  ;;  %2003 = vmatprep.subr.bf16.mxu1 %v3052_v57 }
  0xe3   :  { %1800 = vmatpush1.bf16.msra.mxu0 %v3047_v58  ;;  %2004 = vmatpush1.bf16.msra.mxu1 %v3050_v59 }
  0xe4   :  { %1801 = vmatprep.subr.bf16.mxu0 %v3055_v60  ;;  %2005 = vmatprep.subr.bf16.mxu1 %v3058_v61 }
  0xe7   :  { %1802 = vmatpush1.bf16.msra.mxu0 %v3053_v62  ;;  %2006 = vmatpush1.bf16.msra.mxu1 %v3056_v63 }
  0xe8   :  { %1803 = vmatprep.subr.bf16.mxu0 %v3061_v0  ;;  %2007 = vmatprep.subr.bf16.mxu1 %v3064_v1 }
  0xeb   :  { %1804 = vmatpush1.bf16.msra.mxu0 %v3059_v2  ;;  %2008 = vmatpush1.bf16.msra.mxu1 %v3062_v3 }
  0xec   :  { %1805 = vmatprep.subr.bf16.mxu0 %v3067_v4  ;;  %2009 = vmatprep.subr.bf16.mxu1 %v3070_v5 }
  0xef   :  { %1806 = vmatpush1.bf16.msra.mxu0 %v3065_v6  ;;  %2010 = vmatpush1.bf16.msra.mxu1 %v3068_v7 }
  0xf0   :  { %1807 = vmatprep.subr.bf16.mxu0 %v3073_v8  ;;  %2011 = vmatprep.subr.bf16.mxu1 %v3076_v9 }
  0xf3   :  { %1808 = vmatpush1.bf16.msra.mxu0 %v3071_v10  ;;  %2012 = vmatpush1.bf16.msra.mxu1 %v3074_v11  ;;  %v2091_v10 = vlaneseq }
  0xf4   :  { %1809 = vmatprep.subr.bf16.mxu0 %v3079_v12  ;;  %2013 = vmatprep.subr.bf16.mxu1 %v3082_v13 }
  0xf7   :  { %1810 = vmatpush1.bf16.msra.mxu0 %v3077_v14  ;;  %2014 = vmatpush1.bf16.msra.mxu1 %v3080_v15 }
  0xf8   :  { %1811 = vmatprep.subr.bf16.mxu0 %v3087_v16  ;;  %2015 = vmatprep.subr.bf16.mxu1 %v3090_v17  ;;  %v3995_v17 = vshrl.u32 %v2091_v10, 7 }
  0xfb   :  { %1812 = vmatpush1.bf16.msra.mxu0 %v3085_v18  ;;  %2016 = vmatpush1.bf16.msra.mxu1 %v3088_v19 }
  0xfc   :  { %1813 = vmatprep.subr.bf16.mxu0 %v3093_v20  ;;  %2017 = vmatprep.subr.bf16.mxu1 %v3096_v21 }
  0xff   :  { %1814 = vmatpush1.bf16.msra.mxu0 %v3091_v22  ;;  %2018 = vmatpush1.bf16.msra.mxu1 %v3094_v23 }
 0x102   :  { %1816 = vmatmul.mubr.bf16.vlgmr.msra.gmra.mrb[0].mxu0 %v2380_v25  ;;  %2020 = vmatmul.mubr.bf16.vlgmr.msra.gmra.mrb[0].mxu1 %v2380_v25 }
 0x103   :  { %1825 = vmatprep.mubr.bf16.mxu0 %v2389_v26  ;;  %2029 = vmatprep.mubr.bf16.mxu1 %v2389_v26  ;;  %v3998_v26 = vsub.s32 0, %v3995_v17 }
 0x10a   :  { %1826 = vmatmul.mubr.bf16.gmra.mrb[4].mxu0 %v2388_v27  ;;  %2030 = vmatmul.mubr.bf16.gmra.mrb[4].mxu1 %v2388_v27 }
 0x1d5   :  { %v3955_v28 = vpop.f32.mrb[0].mxu0  ;;  %v3957_v29 = vpop.f32.mrb[0].mxu1 }
 0x1d6   :  { %v3959_v30 = vpop.f32.mrb[1].mxu0  ;;  %v3961_v33 = vpop.f32.mrb[1].mxu1 }
 0x1d7   :  { %v3963_v34 = vpop.f32.mrb[2].mxu0  ;;  %v3965_v31 = vpop.f32.mrb[2].mxu1 }
 0x1d8   :  { %v2038_v32 = vadd.f32 %v3963_v34, %v3955_v28  ;;  %v2057_v35 = vadd.f32 %v3965_v31, %v3957_v29  ;;  %v3971_v36 = vpop.f32.mrb[3].mxu0  ;;  %v3973_v37 = vpop.f32.mrb[3].mxu1 }
 0x1d9   :  { %v2048_v38 = vadd.f32 %v3971_v36, %v3959_v30  ;;  %v2066_v39 = vadd.f32 %v3973_v37, %v3961_v33 }
 0x1dd   :  { %v3979_v40 = vpop.f32.mrb[4].mxu0  ;;  %v3981_v41 = vpop.f32.mrb[4].mxu1 }
 0x1de   :  { %v2040_v42 = vsel %vm2039_vm0, %v3979_v40, 0.0  ;;  %v2058_v43 = vsel %vm2039_vm0, %v3981_v41, 0.0  ;;  %v3987_v44 = vpop.f32.mrb[5].mxu0  ;;  %v3989_v45 = vpop.f32.mrb[5].mxu1 }
 0x1df   :  { %v2041_v46 = vadd.f32 %v2040_v42, %v2038_v32  ;;  %v2059_v47 = vadd.f32 %v2058_v43, %v2057_v35  ;;  %v2049_v48 = vsel %vm2039_vm0, %v3987_v44, 0.0  ;;  %v2067_v49 = vsel %vm2039_vm0, %v3989_v45, 0.0  ;;  %v1831_v50 = vpop.f32.mrb[6].mxu0  ;;  %v2035_v51 = vpop.f32.mrb[6].mxu1 }
 0x1e0   :  { %v2050_v52 = vadd.f32 %v2049_v48, %v2048_v38  ;;  %v2068_v53 = vadd.f32 %v2067_v49, %v2066_v39  ;;  %v1832_v54 = vpop.f32.mrb[7].mxu0  ;;  %v2036_v55 = vpop.f32.mrb[7].mxu1 }
 0x1e1   :  { %v2042_v56 = vrot.slane %v2041_v46, 4  ;;  %v2060_v57 = vrot.slane %v2059_v47, 4 }
 0x1e2   :  { %v2051_v58 = vrot.slane %v2050_v52, 4  ;;  %v2069_v59 = vrot.slane %v2068_v53, 4 }
 0x1e3   :  { %v2043_v60 = vadd.f32 %v2042_v56, %v2041_v46  ;;  %v2061_v61 = vadd.f32 %v2060_v57, %v2059_v47 }
 0x1e4   :  { %v2052_v62 = vadd.f32 %v2051_v58, %v2050_v52  ;;  %v2070_v63 = vadd.f32 %v2069_v59, %v2068_v53 }
 0x1e5   :  { %v2044_v0 = vrot.slane %v2043_v60, 2  ;;  %v2062_v1 = vrot.slane %v2061_v61, 2 }
 0x1e6   :  { %v2053_v2 = vrot.slane %v2052_v62, 2  ;;  %v2071_v3 = vrot.slane %v2070_v63, 2 }
 0x1e7   :  { %v2045_v4 = vadd.f32 %v2044_v0, %v2043_v60  ;;  %v2063_v5 = vadd.f32 %v2062_v1, %v2061_v61 }
 0x1e8   :  { %v2054_v6 = vadd.f32 %v2053_v2, %v2052_v62  ;;  %v2072_v7 = vadd.f32 %v2071_v3, %v2070_v63 }
 0x1e9   :  { %v2046_v8 = vrot.slane %v2045_v4, 1  ;;  %v2064_v9 = vrot.slane %v2063_v5, 1 }
 0x1ea   :  { %v2055_v11 = vrot.slane %v2054_v6, 1  ;;  %v2073_v12 = vrot.slane %v2072_v7, 1 }
 0x1eb   :  { %v2047_v13 = vadd.f32 %v2046_v8, %v2045_v4  ;;  %v2065_v14 = vadd.f32 %v2064_v9, %v2063_v5 }
 0x1ec   :  { %v2056_v15 = vadd.f32 %v2055_v11, %v2054_v6  ;;  %v2074_v16 = vadd.f32 %v2073_v12, %v2072_v7 }
 0x1ee   :  { %v2076_v18 = vadd.f32 %v2056_v15, %v2047_v13  ;;  %v2077_v19 = vadd.f32 %v2065_v14, %v2056_v15  ;;  %v2075_v20 = vadd.f32 %v2074_v16, %v2047_v13  ;;  %v2078_v21 = vadd.f32 %v2074_v16, %v2065_v14 }
 0x1f0   :  { %v2079_v22 = vadd.f32 %v2075_v20, %v2065_v14  ;;  %v2080_v23 = vadd.f32 %v2076_v18, %v2074_v16  ;;  %v2081_v24 = vadd.f32 %v2077_v19, %v2047_v13  ;;  %v2082_v25 = vadd.f32 %v2078_v21, %v2056_v15 }
 0x1f2   :  { %v2083_v27 = vadd.f32 %v2079_v22, %v2056_v15  ;;  %v2084_v32 = vadd.f32 %v2080_v23, %v2065_v14  ;;  %v2085_v35 = vadd.f32 %v2081_v24, %v2074_v16  ;;  %v2086_v38 = vadd.f32 %v2082_v25, %v2047_v13 }
 0x1f4   :  { %v2087_v39 = vmul.f32 0.013888889, %v2083_v27  ;;  %v2088_v42 = vmul.f32 0.013888889, %v2084_v32  ;;  %v2089_v43 = vmul.f32 0.013888889, %v2085_v35 }
 0x1f5   :  { %v2090_v46 = vmul.f32 0.013888889, %v2086_v38 }
 0x1f6   :  { %v2094_v47 = vrot.slane %v2087_v39, %v3998_v26  ;;  %v2098_v48 = vrot.slane %v2088_v42, %v3998_v26  ;;  %v2102_v49 = vrot.slane %v2089_v43, %v3998_v26 }
 0x1f7   :  { %v2106_v50 = vrot.slane %v2090_v46, %v3998_v26 }
 0x1f8   :  { %v4005_v51 = vsub.f32 %v3955_v28, %v2094_v47  ;;  %v4008_v52 = vsub.f32 %v3959_v30, %v2098_v48  ;;  %v4011_v53 = vsub.f32 %v3957_v29, %v2102_v49  ;;  %v4014_v54 = vsub.f32 %v3963_v34, %v2094_v47 }
 0x1f9   :  { %v4017_v55 = vsub.f32 %v3961_v33, %v2106_v50  ;;  %v4020_v56 = vsub.f32 %v3971_v36, %v2098_v48  ;;  %v4023_v57 = vsub.f32 %v3965_v31, %v2102_v49  ;;  %v4026_v28 = vsub.f32 %v3973_v37, %v2106_v50 }
 0x1fa   :  { %v4029_v30 = vsub.f32 %v3979_v40, %v2094_v47  ;;  %v4032_v29 = vsub.f32 %v3987_v44, %v2098_v48  ;;  %v4035_v34 = vsub.f32 %v3981_v41, %v2102_v49  ;;  %v4038_v33 = vsub.f32 %v3989_v45, %v2106_v50 }
 0x1fb   :  { %v2119_v36 = vmul.f32 %v4005_v51, %v4005_v51  ;;  %v2120_v31 = vmul.f32 %v4008_v52, %v4008_v52  ;;  %v2121_v37 = vmul.f32 %v4011_v53, %v4011_v53  ;;  %v2122_v40 = vmul.f32 %v4017_v55, %v4017_v55 }
 0x1fc   :  { %v2123_v44 = vmul.f32 %v4014_v54, %v4014_v54  ;;  %v2124_v41 = vmul.f32 %v4020_v56, %v4020_v56  ;;  %v2125_v45 = vmul.f32 %v4023_v57, %v4023_v57  ;;  %v2126_v58 = vmul.f32 %v4026_v28, %v4026_v28 }
 0x1fd   :  { %v2127_v59 = vmul.f32 %v4029_v30, %v4029_v30  ;;  %v2128_v60 = vmul.f32 %v4032_v29, %v4032_v29  ;;  %v2129_v61 = vmul.f32 %v4035_v34, %v4035_v34  ;;  %v2130_v62 = vmul.f32 %v4038_v33, %v4038_v33 }
 0x1fe   :  { %v2131_v63 = vadd.f32 %v2123_v44, %v2119_v36  ;;  %v2140_v0 = vadd.f32 %v2124_v41, %v2120_v31  ;;  %v2149_v1 = vadd.f32 %v2125_v45, %v2121_v37  ;;  %v2158_v2 = vadd.f32 %v2126_v58, %v2122_v40 }
 0x1ff   :  { %v2132_v3 = vsel %vm2039_vm0, %v2127_v59, 0.0  ;;  %v2141_v4 = vsel %vm2039_vm0, %v2128_v60, 0.0  ;;  %v2150_v5 = vsel %vm2039_vm0, %v2129_v61, 0.0  ;;  %v2159_v6 = vsel %vm2039_vm0, %v2130_v62, 0.0 }
 0x200   :  { %v2133_v7 = vadd.f32 %v2132_v3, %v2131_v63  ;;  %v2142_v8 = vadd.f32 %v2141_v4, %v2140_v0  ;;  %v2151_v9 = vadd.f32 %v2150_v5, %v2149_v1  ;;  %v2160_v10 = vadd.f32 %v2159_v6, %v2158_v2  ;;  %v2219_v6 = vld [vmem:[%s4127_s2] ss:$2 sm:$0xf] }
 0x201   :  { %v2227_v5 = vsub.s32 1, %v3995_v17 }
 0x202   :  { %v2134_v11 = vrot.slane %v2133_v7, 4  ;;  %v2143_v12 = vrot.slane %v2142_v8, 4  ;;  %v2152_v13 = vrot.slane %v2151_v9, 4  ;;  %v2161_v14 = vrot.slane %v2160_v10, 4 }
 0x204   :  { %v2135_v15 = vadd.f32 %v2134_v11, %v2133_v7  ;;  %v2144_v16 = vadd.f32 %v2143_v12, %v2142_v8  ;;  %v2153_v18 = vadd.f32 %v2152_v13, %v2151_v9  ;;  %v2162_v19 = vadd.f32 %v2161_v14, %v2160_v10  ;;  %v2646_v9 = vld [vmem:[%s4127_s2 + $0x1] ss:$2 sm:$0xf] }
 0x205   :  { %v2231_v7 = vsub.s32 2, %v3995_v17  ;;  %v2235_v8 = vsub.s32 3, %v3995_v17  ;;  %v2224_v11 = vrot.slane %v2219_v6, %v3998_v26  ;;  %v2228_v12 = vrot.slane %v2219_v6, %v2227_v5 }
 0x206   :  { %v2136_v20 = vrot.slane %v2135_v15, 2  ;;  %v2145_v21 = vrot.slane %v2144_v16, 2  ;;  %v2154_v22 = vrot.slane %v2153_v18, 2  ;;  %v2163_v23 = vrot.slane %v2162_v19, 2 }
 0x207   :  { %v2267_v17 = vrot.slane %v2646_v9, %v2231_v7 }
 0x208   :  { %v2137_v24 = vadd.f32 %v2136_v20, %v2135_v15  ;;  %v2146_v25 = vadd.f32 %v2145_v21, %v2144_v16  ;;  %v2155_v27 = vadd.f32 %v2154_v22, %v2153_v18  ;;  %v2164_v32 = vadd.f32 %v2163_v23, %v2162_v19 }
 0x209   :  { %v2232_v15 = vrot.slane %v2219_v6, %v2231_v7  ;;  %v2236_v16 = vrot.slane %v2219_v6, %v2235_v8  ;;  %v2259_v18 = vrot.slane %v2646_v9, %v3998_v26  ;;  %v2263_v21 = vrot.slane %v2646_v9, %v2227_v5 }
 0x20a   :  { %v2138_v35 = vrot.slane %v2137_v24, 1  ;;  %v2147_v38 = vrot.slane %v2146_v25, 1  ;;  %v2156_v39 = vrot.slane %v2155_v27, 1  ;;  %v2165_v42 = vrot.slane %v2164_v32, 1 }
 0x20b   :  { %v2271_v22 = vrot.slane %v2646_v9, %v2235_v8 }
 0x20c   :  { %v2139_v43 = vadd.f32 %v2138_v35, %v2137_v24  ;;  %v2148_v46 = vadd.f32 %v2147_v38, %v2146_v25  ;;  %v2157_v47 = vadd.f32 %v2156_v39, %v2155_v27  ;;  %v2166_v48 = vadd.f32 %v2165_v42, %v2164_v32 }
 0x20e   :  { %v2167_v49 = vadd.f32 %v2166_v48, %v2139_v43  ;;  %v2168_v50 = vadd.f32 %v2148_v46, %v2139_v43  ;;  %v2169_v36 = vadd.f32 %v2157_v47, %v2148_v46  ;;  %v2170_v31 = vadd.f32 %v2166_v48, %v2157_v47 }
 0x210   :  { %v2171_v37 = vadd.f32 %v2167_v49, %v2157_v47  ;;  %v2172_v40 = vadd.f32 %v2168_v50, %v2166_v48  ;;  %v2173_v44 = vadd.f32 %v2169_v36, %v2139_v43  ;;  %v2174_v41 = vadd.f32 %v2170_v31, %v2148_v46 }
 0x212   :  { %v2175_v45 = vadd.f32 %v2171_v37, %v2148_v46  ;;  %v2176_v58 = vadd.f32 %v2172_v40, %v2157_v47  ;;  %v2177_v59 = vadd.f32 %v2173_v44, %v2166_v48  ;;  %v2178_v60 = vadd.f32 %v2174_v41, %v2139_v43 }
 0x214   :  { %v2179_v61 = vmul.f32 0.013888889, %v2175_v45  ;;  %v2180_v62 = vmul.f32 0.013888889, %v2176_v58  ;;  %v2181_v63 = vmul.f32 0.013888889, %v2177_v59 }
 0x215   :  { %v2182_v0 = vmul.f32 0.013888889, %v2178_v60 }
 0x216   :  { %v2183_v1 = vadd.f32 1e-05, %v2179_v61  ;;  %v2184_v2 = vadd.f32 1e-05, %v2180_v62  ;;  %v2185_v3 = vadd.f32 1e-05, %v2181_v63 }
 0x217   :  { %v2186_v4 = vadd.f32 1e-05, %v2182_v0 }
 0x218   :  { %3099 = vrsqrt.f32 %v2183_v1 }
 0x219   :  { %3101 = vrsqrt.f32 %v2184_v2 }
 0x21a   :  { %3103 = vrsqrt.f32 %v2185_v3 }
 0x21b   :  { %3105 = vrsqrt.f32 %v2186_v4 }
 0x222   :  { %v3100_v10 = vpop.eup %3099 }
 0x223   :  { %v3102_v13 = vpop.eup %3101  ;;  %v2194_v14 = vrot.slane %v3100_v10, %v3998_v26 }
 0x224   :  { %v3104_v19 = vpop.eup %3103  ;;  %v2198_v20 = vrot.slane %v3102_v13, %v3998_v26 }
 0x225   :  { %v3106_v23 = vpop.eup %3105  ;;  %v2202_v24 = vrot.slane %v3104_v19, %v3998_v26  ;;  %v2207_v25 = vmul.f32 %v2194_v14, %v4005_v51  ;;  %v2211_v27 = vmul.f32 %v2194_v14, %v4014_v54  ;;  %v2215_v32 = vmul.f32 %v2194_v14, %v4029_v30 }
 0x226   :  { %v2206_v35 = vrot.slane %v3106_v23, %v3998_v26  ;;  %v2208_v38 = vmul.f32 %v2198_v20, %v4008_v52  ;;  %v2212_v39 = vmul.f32 %v2198_v20, %v4020_v56  ;;  %v2216_v42 = vmul.f32 %v2198_v20, %v4032_v29 }
 0x227   :  { %v2209_v43 = vmul.f32 %v2202_v24, %v4011_v53  ;;  %v2213_v46 = vmul.f32 %v2202_v24, %v4023_v57  ;;  %v2217_v47 = vmul.f32 %v2202_v24, %v4035_v34  ;;  %v2241_v48 = vmul.f32 %v2224_v11, %v2207_v25 }
 0x228   :  { %v2210_v51 = vmul.f32 %v2206_v35, %v4017_v55  ;;  %v2214_v54 = vmul.f32 %v2206_v35, %v4026_v28  ;;  %v2218_v30 = vmul.f32 %v2206_v35, %v4038_v33  ;;  %v2242_v26 = vmul.f32 %v2228_v12, %v2208_v38 }
 0x229   :  { %v2243_v49 = vmul.f32 %v2232_v15, %v2209_v43  ;;  %v2245_v52 = vmul.f32 %v2224_v11, %v2211_v27  ;;  %v2246_v50 = vmul.f32 %v2228_v12, %v2212_v39  ;;  %v2247_v56 = vmul.f32 %v2232_v15, %v2213_v46 }
 0x22a   :  { %v2244_v36 = vmul.f32 %v2236_v16, %v2210_v51  ;;  %v2248_v29 = vmul.f32 %v2236_v16, %v2214_v54  ;;  %v2249_v31 = vmul.f32 %v2224_v11, %v2215_v32  ;;  %v2250_v53 = vmul.f32 %v2228_v12, %v2216_v42 }
 0x22b   :  { %v2251_v37 = vmul.f32 %v2232_v15, %v2217_v47  ;;  %v2252_v57 = vmul.f32 %v2236_v16, %v2218_v30  ;;  %v2276_v40 = vadd.f32 %v2259_v18, %v2241_v48  ;;  %v2277_v34 = vadd.f32 %v2263_v21, %v2242_v26 }
 0x22c   :  { %v2278_v44 = vadd.f32 %v2267_v17, %v2243_v49  ;;  %v2279_v41 = vadd.f32 %v2271_v22, %v2244_v36  ;;  %v2280_v55 = vadd.f32 %v2259_v18, %v2245_v52  ;;  %v2281_v45 = vadd.f32 %v2263_v21, %v2246_v50 }
 0x22d   :  { %v2282_v28 = vadd.f32 %v2267_v17, %v2247_v56  ;;  %v2283_v58 = vadd.f32 %v2271_v22, %v2248_v29  ;;  %v2284_v33 = vadd.f32 %v2259_v18, %v2249_v31  ;;  %v2285_v59 = vadd.f32 %v2263_v21, %v2250_v53 }
 0x22e   :  { %v2286_v60 = vadd.f32 %v2267_v17, %v2251_v37  ;;  %v2287_v61 = vadd.f32 %v2271_v22, %v2252_v57  ;;  %vm2288_vm1 = vcmp.ge.f32.partialorder %v2276_v40, 0.0  ;;  %vm2289_vm2 = vcmp.ge.f32.partialorder %v2277_v34, 0.0 }
 0x22f   :  { %vm2290_vm3 = vcmp.ge.f32.partialorder %v2278_v44, 0.0  ;;  %vm2291_vm4 = vcmp.ge.f32.partialorder %v2279_v41, 0.0  ;;  %vm2292_vm5 = vcmp.ge.f32.partialorder %v2280_v55, 0.0  ;;  %vm2293_vm6 = vcmp.ge.f32.partialorder %v2281_v45, 0.0 }
 0x230   :  { %vm2294_vm7 = vcmp.ge.f32.partialorder %v2282_v28, 0.0  ;;  %vm2295_vm8 = vcmp.ge.f32.partialorder %v2283_v58, 0.0  ;;  %vm2296_vm9 = vcmp.ge.f32.partialorder %v2284_v33, 0.0  ;;  %vm2297_vm10 = vcmp.ge.f32.partialorder %v2285_v59, 0.0 }
 0x231   :  { %vm2298_vm11 = vcmp.ge.f32.partialorder %v2286_v60, 0.0  ;;  %vm2299_vm12 = vcmp.ge.f32.partialorder %v2287_v61, 0.0  ;;  %v2300_v62 = vmul.f32 0.01, %v2276_v40  ;;  %v2301_v63 = vmul.f32 0.01, %v2277_v34 }
 0x232   :  { %v2302_v0 = vmul.f32 0.01, %v2278_v44  ;;  %v2303_v1 = vmul.f32 0.01, %v2279_v41  ;;  %v2304_v2 = vmul.f32 0.01, %v2280_v55 }
 0x233   :  { %v2305_v3 = vmul.f32 0.01, %v2281_v45  ;;  %v2306_v4 = vmul.f32 0.01, %v2282_v28  ;;  %v2307_v5 = vmul.f32 0.01, %v2283_v58  ;;  %v2312_v6 = vsel %vm2288_vm1, %v2276_v40, %v2300_v62 }
 0x234   :  { %v2308_v7 = vmul.f32 0.01, %v2284_v33  ;;  %v2309_v8 = vmul.f32 0.01, %v2285_v59  ;;  %v2310_v9 = vmul.f32 0.01, %v2286_v60  ;;  %v2313_v10 = vsel %vm2289_vm2, %v2277_v34, %v2301_v63 }
 0x235   :  { %v2311_v11 = vmul.f32 0.01, %v2287_v61  ;;  %v2314_v12 = vsel %vm2290_vm3, %v2278_v44, %v2302_v0  ;;  %v2315_v13 = vsel %vm2291_vm4, %v2279_v41, %v2303_v1  ;;  %v2316_v14 = vsel %vm2292_vm5, %v2280_v55, %v2304_v2 }
 0x236   :  { %v2317_v15 = vsel %vm2293_vm6, %v2281_v45, %v2305_v3  ;;  %v2318_v16 = vsel %vm2294_vm7, %v2282_v28, %v2306_v4  ;;  %v2319_v18 = vsel %vm2295_vm8, %v2283_v58, %v2307_v5  ;;  %v2320_v19 = vsel %vm2296_vm9, %v2284_v33, %v2308_v7 }
 0x237   :  { %v2321_v20 = vsel %vm2297_vm10, %v2285_v59, %v2309_v8  ;;  %v2322_v21 = vsel %vm2298_vm11, %v2286_v60, %v2310_v9  ;;  %v2323_v17 = vsel %vm2299_vm12, %v2287_v61, %v2311_v11  ;;  %v2653_v22 = vpack.c.bf16 %v2313_v10, %v2312_v6 }
 0x238   :  { %v2654_v23 = vpack.c.bf16 %v2315_v13, %v2314_v12  ;;  %v2655_v24 = vpack.c.bf16 %v2317_v15, %v2316_v14  ;;  %v2656_v25 = vpack.c.bf16 %v2319_v18, %v2318_v16  ;;  %v2657_v27 = vpack.c.bf16 %v2321_v20, %v2320_v19 }
 0x239   :  { %v2658_v32 = vpack.c.bf16 %v2323_v17, %v2322_v21  ;;  %2364 = vst [vmem:[%s4128_s3] sm:$0xff] %v2653_v22 }
 0x23a   :  { %2365 = vst [vmem:[%s4128_s3 + $0x8] sm:$0xff] %v2654_v23  ;;  %2366 = vst [vmem:[%s4128_s3 + $0x10] sm:$0xff] %v2655_v24 }
 0x23b   :  { %2367 = vst [vmem:[%s4128_s3 + $0x18] sm:$0xff] %v2656_v25  ;;  %2368 = vst [vmem:[%s4128_s3 + $0x20] sm:$0x11] %v2657_v27 }
 0x23c   :  { %2369 = vst [vmem:[%s4128_s3 + $0x28] sm:$0x11] %v2658_v32 }

// kernel: categorical_vae_forward.13
= control target key start
LH: loop header
LB: loop body
LE: loop exit
PB: predicated region body
PF: predicated region fallthrough
CT: control target
= control target key end

     0   :  { %s1774_s1 = inlined_call_operand.vmem [shape: bf16[512,256], index: 1, kind: input, shape index: {}]   ;;  %s1775_s0 = inlined_call_operand.vmem [shape: bf16[72,512], index: 0, kind: input, shape index: {}]   ;;  %s1776_s2 = inlined_call_operand.vmem [shape: f32[2,256], index: 2, kind: input, shape index: {}]   ;;  %s1777_s3 = inlined_call_operand.vmem [shape: bf16[72,256], index: 3, kind: output, shape index: {}]  }
   0x1   :  { %v1139_v0 = vld [vmem:[%s1774_s1 + $0x4] ss:$8 sps:$4 sm:$0xff]   ;;  %v1143_v2 = vld [vmem:[%s1774_s1] ss:$8 sps:$4 sm:$0xff]   ;;  %v1145_v4 = vld [vmem:[%s1774_s1 + $0x14] ss:$8 sps:$4 sm:$0xff]  }
   0x2   :  { %v1141_v1 = vld [vmem:[%s1774_s1 + $0x104] ss:$8 sps:$4 sm:$0xff]   ;;  %510 = vmatprep.subr.bf16.mxu1 %v1139_v0  ;;  %v1144_v3 = vld [vmem:[%s1774_s1 + $0x100] ss:$8 sps:$4 sm:$0xff]   ;;  %v1147_v5 = vld [vmem:[%s1774_s1 + $0x114] ss:$8 sps:$4 sm:$0xff]  }
   0x3   :  { %591 = vmatprep.subr.bf16.mxu0 %v1141_v1  ;;  %511 = vmatpush1.bf16.msra.mxu1 %v1143_v2  ;;  %v1149_v6 = vld [vmem:[%s1774_s1 + $0x10] ss:$8 sps:$4 sm:$0xff]   ;;  %v1151_v8 = vld [vmem:[%s1774_s1 + $0x24] ss:$8 sps:$4 sm:$0xff]   ;;  %v1155_v10 = vld [vmem:[%s1774_s1 + $0x20] ss:$8 sps:$4 sm:$0xff]  }
   0x4   :  { %592 = vmatpush1.bf16.msra.mxu0 %v1144_v3  ;;  %512 = vmatprep.subr.bf16.mxu1 %v1145_v4  ;;  %v1150_v7 = vld [vmem:[%s1774_s1 + $0x110] ss:$8 sps:$4 sm:$0xff]   ;;  %v1153_v9 = vld [vmem:[%s1774_s1 + $0x124] ss:$8 sps:$4 sm:$0xff]   ;;  %v1156_v11 = vld [vmem:[%s1774_s1 + $0x120] ss:$8 sps:$4 sm:$0xff]  }
   0x5   :  { %593 = vmatprep.subr.bf16.mxu0 %v1147_v5  ;;  %v1157_v12 = vld [vmem:[%s1774_s1 + $0x34] ss:$8 sps:$4 sm:$0xff]   ;;  %v1161_v14 = vld [vmem:[%s1774_s1 + $0x30] ss:$8 sps:$4 sm:$0xff]   ;;  %v1163_v16 = vld [vmem:[%s1774_s1 + $0x44] ss:$8 sps:$4 sm:$0xff]  }
   0x6   :  { %v1159_v13 = vld [vmem:[%s1774_s1 + $0x134] ss:$8 sps:$4 sm:$0xff]   ;;  %v1162_v15 = vld [vmem:[%s1774_s1 + $0x130] ss:$8 sps:$4 sm:$0xff]   ;;  %v1165_v17 = vld [vmem:[%s1774_s1 + $0x144] ss:$8 sps:$4 sm:$0xff]  }
   0x7   :  { %513 = vmatpush1.bf16.msra.mxu1 %v1149_v6  ;;  %v1167_v18 = vld [vmem:[%s1774_s1 + $0x40] ss:$8 sps:$4 sm:$0xff]   ;;  %v1169_v20 = vld [vmem:[%s1774_s1 + $0x54] ss:$8 sps:$4 sm:$0xff]   ;;  %v1173_v22 = vld [vmem:[%s1774_s1 + $0x50] ss:$8 sps:$4 sm:$0xff]  }
   0x8   :  { %594 = vmatpush1.bf16.msra.mxu0 %v1150_v7  ;;  %514 = vmatprep.subr.bf16.mxu1 %v1151_v8  ;;  %v1168_v19 = vld [vmem:[%s1774_s1 + $0x140] ss:$8 sps:$4 sm:$0xff]   ;;  %v1171_v21 = vld [vmem:[%s1774_s1 + $0x154] ss:$8 sps:$4 sm:$0xff]   ;;  %v1174_v23 = vld [vmem:[%s1774_s1 + $0x150] ss:$8 sps:$4 sm:$0xff]  }
   0x9   :  { %595 = vmatprep.subr.bf16.mxu0 %v1153_v9  ;;  %v1175_v24 = vld [vmem:[%s1774_s1 + $0x64] ss:$8 sps:$4 sm:$0xff]   ;;  %v1179_v26 = vld [vmem:[%s1774_s1 + $0x60] ss:$8 sps:$4 sm:$0xff]   ;;  %v1181_v28 = vld [vmem:[%s1774_s1 + $0x74] ss:$8 sps:$4 sm:$0xff]  }
   0xa   :  { %v1177_v25 = vld [vmem:[%s1774_s1 + $0x164] ss:$8 sps:$4 sm:$0xff]   ;;  %v1180_v27 = vld [vmem:[%s1774_s1 + $0x160] ss:$8 sps:$4 sm:$0xff]   ;;  %v1183_v29 = vld [vmem:[%s1774_s1 + $0x174] ss:$8 sps:$4 sm:$0xff]  }
   0xb   :  { %515 = vmatpush1.bf16.msra.mxu1 %v1155_v10  ;;  %v1185_v30 = vld [vmem:[%s1774_s1 + $0x70] ss:$8 sps:$4 sm:$0xff]   ;;  %v1187_v32 = vld [vmem:[%s1774_s1 + $0x84] ss:$8 sps:$4 sm:$0xff]   ;;  %v1191_v34 = vld [vmem:[%s1774_s1 + $0x80] ss:$8 sps:$4 sm:$0xff]  }
   0xc   :  { %596 = vmatpush1.bf16.msra.mxu0 %v1156_v11  ;;  %516 = vmatprep.subr.bf16.mxu1 %v1157_v12  ;;  %v1186_v31 = vld [vmem:[%s1774_s1 + $0x170] ss:$8 sps:$4 sm:$0xff]   ;;  %v1189_v33 = vld [vmem:[%s1774_s1 + $0x184] ss:$8 sps:$4 sm:$0xff]   ;;  %v1192_v35 = vld [vmem:[%s1774_s1 + $0x180] ss:$8 sps:$4 sm:$0xff]  }
   0xd   :  { %597 = vmatprep.subr.bf16.mxu0 %v1159_v13  ;;  %v1193_v36 = vld [vmem:[%s1774_s1 + $0x94] ss:$8 sps:$4 sm:$0xff]   ;;  %v1197_v38 = vld [vmem:[%s1774_s1 + $0x90] ss:$8 sps:$4 sm:$0xff]   ;;  %v1199_v40 = vld [vmem:[%s1774_s1 + $0xa4] ss:$8 sps:$4 sm:$0xff]  }
   0xe   :  { %v1195_v37 = vld [vmem:[%s1774_s1 + $0x194] ss:$8 sps:$4 sm:$0xff]   ;;  %v1198_v39 = vld [vmem:[%s1774_s1 + $0x190] ss:$8 sps:$4 sm:$0xff]   ;;  %v1201_v41 = vld [vmem:[%s1774_s1 + $0x1a4] ss:$8 sps:$4 sm:$0xff]  }
   0xf   :  { %517 = vmatpush1.bf16.msra.mxu1 %v1161_v14  ;;  %v1203_v42 = vld [vmem:[%s1774_s1 + $0xa0] ss:$8 sps:$4 sm:$0xff]   ;;  %v1205_v44 = vld [vmem:[%s1774_s1 + $0xb4] ss:$8 sps:$4 sm:$0xff]   ;;  %v1209_v46 = vld [vmem:[%s1774_s1 + $0xb0] ss:$8 sps:$4 sm:$0xff]  }
  0x10   :  { %598 = vmatpush1.bf16.msra.mxu0 %v1162_v15  ;;  %518 = vmatprep.subr.bf16.mxu1 %v1163_v16  ;;  %v1204_v43 = vld [vmem:[%s1774_s1 + $0x1a0] ss:$8 sps:$4 sm:$0xff]   ;;  %v1207_v45 = vld [vmem:[%s1774_s1 + $0x1b4] ss:$8 sps:$4 sm:$0xff]   ;;  %v1210_v47 = vld [vmem:[%s1774_s1 + $0x1b0] ss:$8 sps:$4 sm:$0xff]  }
  0x11   :  { %599 = vmatprep.subr.bf16.mxu0 %v1165_v17  ;;  %v1211_v48 = vld [vmem:[%s1774_s1 + $0xc4] ss:$8 sps:$4 sm:$0xff]   ;;  %v1215_v52 = vld [vmem:[%s1774_s1 + $0xc0] ss:$8 sps:$4 sm:$0xff]   ;;  %v1217_v54 = vld [vmem:[%s1774_s1 + $0xd4] ss:$8 sps:$4 sm:$0xff]  }
  0x12   :  { %v1237_v49 = vld [vmem:[%s1775_s0 + $0x4] ss:$16 sps:$4 sm:$0xff]   ;;  %v1240_v51 = vld [vmem:[%s1775_s0 + $0xc] ss:$16 sps:$4 sm:$0xff]   ;;  %v1216_v53 = vld [vmem:[%s1774_s1 + $0x1c0] ss:$8 sps:$4 sm:$0xff]  }
  0x13   :  { %519 = vmatpush1.bf16.msra.mxu1 %v1167_v18  ;;  %v1213_v50 = vld [vmem:[%s1774_s1 + $0x1c4] ss:$8 sps:$4 sm:$0xff]   ;;  %542 = vmatprep.mubr.bf16.mxu1 %v1237_v49  ;;  %v1219_v55 = vld [vmem:[%s1774_s1 + $0x1d4] ss:$8 sps:$4 sm:$0xff]   ;;  %v1221_v56 = vld [vmem:[%s1774_s1 + $0xd0] ss:$8 sps:$4 sm:$0xff]  }
  0x14   :  { %600 = vmatpush1.bf16.msra.mxu0 %v1168_v19  ;;  %520 = vmatprep.subr.bf16.mxu1 %v1169_v20  ;;  %v1222_v57 = vld [vmem:[%s1774_s1 + $0x1d0] ss:$8 sps:$4 sm:$0xff]   ;;  %v1223_v58 = vld [vmem:[%s1774_s1 + $0xe4] ss:$8 sps:$4 sm:$0xff]   ;;  %v1227_v60 = vld [vmem:[%s1774_s1 + $0xe0] ss:$8 sps:$4 sm:$0xff]  }
  0x15   :  { %601 = vmatprep.subr.bf16.mxu0 %v1171_v21  ;;  %623 = vmatprep.mubr.bf16.mxu0 %v1240_v51  ;;  %v1225_v59 = vld [vmem:[%s1774_s1 + $0x1e4] ss:$8 sps:$4 sm:$0xff]   ;;  %v1228_v61 = vld [vmem:[%s1774_s1 + $0x1e0] ss:$8 sps:$4 sm:$0xff]   ;;  %v1229_v62 = vld [vmem:[%s1774_s1 + $0xf4] ss:$8 sps:$4 sm:$0xff]  }
  0x16   :  { %v1231_v63 = vld [vmem:[%s1774_s1 + $0x1f4] ss:$8 sps:$4 sm:$0xff]   ;;  %v1233_v0 = vld [vmem:[%s1774_s1 + $0xf0] ss:$8 sps:$4 sm:$0xff]   ;;  %v30_v14 = vld [vmem:[%s1775_s0 + $0x80] sm:$0xff] }
  0x17   :  { %521 = vmatpush1.bf16.msra.mxu1 %v1173_v22  ;;  %v1234_v1 = vld [vmem:[%s1774_s1 + $0x1f0] ss:$8 sps:$4 sm:$0xff]   ;;  %v1241_v4 = vld [vmem:[%s1775_s0 + $0x24] ss:$16 sps:$4 sm:$0xff]   ;;  %v1243_v5 = vld [vmem:[%s1775_s0 + $0x2c] ss:$16 sps:$4 sm:$0xff]   ;;  %v1034_v18 = vcombine.high %v30_v14, %v30_v14  ;;  %v1033_v20 = vcombine.low %v30_v14, %v30_v14 }
  0x18   :  { %602 = vmatpush1.bf16.msra.mxu0 %v1174_v23  ;;  %522 = vmatprep.subr.bf16.mxu1 %v1175_v24  ;;  %v1235_v2 = vld [vmem:[%s1775_s0] ss:$16 sps:$4 sm:$0xff]   ;;  %v1238_v3 = vld [vmem:[%s1775_s0 + $0x8] ss:$16 sps:$4 sm:$0xff]   ;;  %v1247_v8 = vld [vmem:[%s1775_s0 + $0x44] ss:$16 sps:$4 sm:$0xff]  }
  0x19   :  { %603 = vmatprep.subr.bf16.mxu0 %v1177_v25  ;;  %v1245_v6 = vld [vmem:[%s1775_s0 + $0x20] ss:$16 sps:$4 sm:$0xff]   ;;  %v1246_v7 = vld [vmem:[%s1775_s0 + $0x28] ss:$16 sps:$4 sm:$0xff]   ;;  %v1249_v9 = vld [vmem:[%s1775_s0 + $0x4c] ss:$16 sps:$4 sm:$0xff]  }
  0x1a   :  { %v1251_v10 = vld [vmem:[%s1775_s0 + $0x40] ss:$16 sps:$4 sm:$0xff]   ;;  %v1252_v11 = vld [vmem:[%s1775_s0 + $0x48] ss:$16 sps:$4 sm:$0xff]   ;;  %v1253_v12 = vld [vmem:[%s1775_s0 + $0x64] ss:$16 sps:$4 sm:$0xff]  }
  0x1b   :  { %523 = vmatpush1.bf16.msra.mxu1 %v1179_v26  ;;  %v1255_v13 = vld [vmem:[%s1775_s0 + $0x6c] ss:$16 sps:$4 sm:$0xff]   ;;  %v1257_v16 = vld [vmem:[%s1775_s0 + $0x60] ss:$16 sps:$4 sm:$0xff]   ;;  %v1258_v17 = vld [vmem:[%s1775_s0 + $0x68] ss:$16 sps:$4 sm:$0xff]  }
  0x1c   :  { %604 = vmatpush1.bf16.msra.mxu0 %v1180_v27  ;;  %524 = vmatprep.subr.bf16.mxu1 %v1181_v28  ;;  %v31_v15 = vld [vmem:[%s1775_s0 + $0x88] sm:$0xff]  ;;  %s1267_s0 = smov 64  }
  0x1d   :  { %605 = vmatprep.subr.bf16.mxu0 %v1183_v29  ;;  %v1036_v19 = vcombine.high %v31_v15, %v31_v15  ;;  %v1035_v21 = vcombine.low %v31_v15, %v31_v15 }
  0x1f   :  { %525 = vmatpush1.bf16.msra.mxu1 %v1185_v30 }
  0x20   :  { %606 = vmatpush1.bf16.msra.mxu0 %v1186_v31  ;;  %526 = vmatprep.subr.bf16.mxu1 %v1187_v32 }
  0x21   :  { %607 = vmatprep.subr.bf16.mxu0 %v1189_v33 }
  0x23   :  { %527 = vmatpush1.bf16.msra.mxu1 %v1191_v34 }
  0x24   :  { %608 = vmatpush1.bf16.msra.mxu0 %v1192_v35  ;;  %528 = vmatprep.subr.bf16.mxu1 %v1193_v36 }
  0x25   :  { %609 = vmatprep.subr.bf16.mxu0 %v1195_v37 }
  0x27   :  { %529 = vmatpush1.bf16.msra.mxu1 %v1197_v38 }
  0x28   :  { %610 = vmatpush1.bf16.msra.mxu0 %v1198_v39  ;;  %530 = vmatprep.subr.bf16.mxu1 %v1199_v40 }
  0x29   :  { %611 = vmatprep.subr.bf16.mxu0 %v1201_v41 }
  0x2b   :  { %531 = vmatpush1.bf16.msra.mxu1 %v1203_v42 }
  0x2c   :  { %612 = vmatpush1.bf16.msra.mxu0 %v1204_v43  ;;  %532 = vmatprep.subr.bf16.mxu1 %v1205_v44 }
  0x2d   :  { %613 = vmatprep.subr.bf16.mxu0 %v1207_v45 }
  0x2f   :  { %533 = vmatpush1.bf16.msra.mxu1 %v1209_v46 }
  0x30   :  { %614 = vmatpush1.bf16.msra.mxu0 %v1210_v47  ;;  %534 = vmatprep.subr.bf16.mxu1 %v1211_v48 }
  0x31   :  { %615 = vmatprep.subr.bf16.mxu0 %v1213_v50 }
  0x33   :  { %535 = vmatpush1.bf16.msra.mxu1 %v1215_v52 }
  0x34   :  { %616 = vmatpush1.bf16.msra.mxu0 %v1216_v53  ;;  %536 = vmatprep.subr.bf16.mxu1 %v1217_v54 }
  0x35   :  { %617 = vmatprep.subr.bf16.mxu0 %v1219_v55 }
  0x37   :  { %537 = vmatpush1.bf16.msra.mxu1 %v1221_v56 }
  0x38   :  { %618 = vmatpush1.bf16.msra.mxu0 %v1222_v57  ;;  %538 = vmatprep.subr.bf16.mxu1 %v1223_v58 }
  0x39   :  { %619 = vmatprep.subr.bf16.mxu0 %v1225_v59 }
  0x3b   :  { %539 = vmatpush1.bf16.msra.mxu1 %v1227_v60 }
  0x3c   :  { %620 = vmatpush1.bf16.msra.mxu0 %v1228_v61  ;;  %540 = vmatprep.subr.bf16.mxu1 %v1229_v62 }
  0x3d   :  { %621 = vmatprep.subr.bf16.mxu0 %v1231_v63 }
  0x3f   :  { %541 = vmatpush1.bf16.msra.mxu1 %v1233_v0 }
  0x40   :  { %622 = vmatpush1.bf16.msra.mxu0 %v1234_v1 }
  0x42   :  { %543 = vmatmul.mubr.bf16.vlgmr.msra.gmra.mrb[0].mxu1 %v1235_v2 }
  0x43   :  { %624 = vmatmul.mubr.bf16.vlgmr.msra.gmra.mrb[0].mxu0 %v1238_v3  ;;  %552 = vmatprep.mubr.bf16.mxu1 %v1241_v4 }
  0x44   :  { %633 = vmatprep.mubr.bf16.mxu0 %v1243_v5 }
  0x4a   :  { %553 = vmatmul.mubr.bf16.gmra.mrb[4].mxu1 %v1245_v6 }
  0x4b   :  { %634 = vmatmul.mubr.bf16.gmra.mrb[4].mxu0 %v1246_v7  ;;  %562 = vmatprep.mubr.bf16.mxu1 %v1247_v8 }
  0x4c   :  { %643 = vmatprep.mubr.bf16.mxu0 %v1249_v9 }
  0x52   :  { %563 = vmatmul.mubr.bf16.gmra.mrb[8].mxu1 %v1251_v10 }
  0x53   :  { %644 = vmatmul.mubr.bf16.gmra.mrb[8].mxu0 %v1252_v11  ;;  %572 = vmatprep.mubr.bf16.mxu1 %v1253_v12 }
  0x54   :  { %653 = vmatprep.mubr.bf16.mxu0 %v1255_v13 }
  0x5a   :  { %573 = vmatmul.mubr.bf16.gmra.mrb[12].mxu1 %v1257_v16 }
  0x5b   :  { %654 = vmatmul.mubr.bf16.gmra.mrb[12].mxu0 %v1258_v17  ;;  %582 = vmatprep.mubr.bf16.mxu1 %v1034_v18 }
  0x5c   :  { %663 = vmatprep.mubr.bf16.mxu0 %v1036_v19 }
  0x62   :  { %583 = vmatmul.mubr.bf16.gmra.mrb[16].mxu1 %v1033_v20 }
  0x63   :  { %664 = vmatmul.mubr.bf16.gmra.mrb[16].mxu0 %v1035_v21 }
 0x115   :  { %v544_v22 = vpop.f32.mrb[0].mxu1 }
 0x116   :  { %v625_v23 = vpop.f32.mrb[0].mxu0  ;;  %v546_v25 = vpop.f32.mrb[1].mxu1 }
 0x117   :  { %v1534_v24 = vadd.f32 %v625_v23, %v544_v22  ;;  %v627_v26 = vpop.f32.mrb[1].mxu0  ;;  %v548_v28 = vpop.f32.mrb[2].mxu1 }
 0x118   :  { %v1536_v27 = vadd.f32 %v627_v26, %v546_v25  ;;  %v629_v29 = vpop.f32.mrb[2].mxu0  ;;  %v550_v31 = vpop.f32.mrb[3].mxu1 }
 0x119   :  { %v1538_v30 = vadd.f32 %v629_v29, %v548_v28  ;;  %v631_v32 = vpop.f32.mrb[3].mxu0 }
 0x11a   :  { %v1540_v33 = vadd.f32 %v631_v32, %v550_v31 }
 0x11b   :  { %v672_v46 = vadd.f32 %v1538_v30, %v1534_v24 }
 0x11c   :  { %v686_v47 = vadd.f32 %v1540_v33, %v1536_v27 }
 0x11d   :  { %v554_v34 = vpop.f32.mrb[4].mxu1 }
 0x11e   :  { %v635_v35 = vpop.f32.mrb[4].mxu0  ;;  %v556_v37 = vpop.f32.mrb[5].mxu1 }
 0x11f   :  { %v1542_v36 = vadd.f32 %v635_v35, %v554_v34  ;;  %v637_v38 = vpop.f32.mrb[5].mxu0  ;;  %v558_v40 = vpop.f32.mrb[6].mxu1 }
 0x120   :  { %v1544_v39 = vadd.f32 %v637_v38, %v556_v37  ;;  %v639_v41 = vpop.f32.mrb[6].mxu0  ;;  %v560_v43 = vpop.f32.mrb[7].mxu1 }
 0x121   :  { %v1546_v42 = vadd.f32 %v639_v41, %v558_v40  ;;  %v641_v44 = vpop.f32.mrb[7].mxu0  ;;  %v673_v50 = vadd.f32 %v672_v46, %v1542_v36 }
 0x122   :  { %v1548_v45 = vadd.f32 %v641_v44, %v560_v43  ;;  %v687_v54 = vadd.f32 %v686_v47, %v1544_v39 }
 0x123   :  { %v674_v62 = vadd.f32 %v673_v50, %v1546_v42 }
 0x124   :  { %v688_v63 = vadd.f32 %v687_v54, %v1548_v45 }
 0x125   :  { %v564_v48 = vpop.f32.mrb[8].mxu1 }
 0x126   :  { %v645_v49 = vpop.f32.mrb[8].mxu0  ;;  %v566_v52 = vpop.f32.mrb[9].mxu1 }
 0x127   :  { %v1555_v51 = vadd.f32 %v645_v49, %v564_v48  ;;  %v647_v53 = vpop.f32.mrb[9].mxu0  ;;  %v568_v56 = vpop.f32.mrb[10].mxu1 }
 0x128   :  { %v1558_v55 = vadd.f32 %v647_v53, %v566_v52  ;;  %v649_v57 = vpop.f32.mrb[10].mxu0  ;;  %v570_v59 = vpop.f32.mrb[11].mxu1  ;;  %v704_v53 = vlaneseq }
 0x129   :  { %v1560_v58 = vadd.f32 %v649_v57, %v568_v56  ;;  %v651_v60 = vpop.f32.mrb[11].mxu0  ;;  %v675_v0 = vadd.f32 %v674_v62, %v1555_v51 }
 0x12a   :  { %v1562_v61 = vadd.f32 %v651_v60, %v570_v59  ;;  %v689_v1 = vadd.f32 %v688_v63, %v1558_v55  ;;  %v1590_v54 = vand.u32 127, %v704_v53  ;;  %v1597_v62 = vshrl.u32 %v704_v53, 7 }
 0x12b   :  { %v676_v10 = vadd.f32 %v675_v0, %v1560_v58 }
 0x12c   :  { %v690_v14 = vadd.f32 %v689_v1, %v1562_v61  ;;  %vm706_vm0 = vcmp.lt.s32.totalorder %v1590_v54, 64  ;;  %v1101_v54 = vld [vmem:[%s1776_s2 + $0x1] ss:$2 sm:$0x3] }
 0x12d   :  { %v574_v2 = vpop.f32.mrb[12].mxu1 }
 0x12e   :  { %v655_v3 = vpop.f32.mrb[12].mxu0  ;;  %v576_v5 = vpop.f32.mrb[13].mxu1 }
 0x12f   :  { %v1568_v4 = vadd.f32 %v655_v3, %v574_v2  ;;  %v657_v6 = vpop.f32.mrb[13].mxu0  ;;  %v578_v8 = vpop.f32.mrb[14].mxu1  ;;  %v1600_v3 = vsub.s32 0, %v1597_v62 }
 0x130   :  { %v1570_v7 = vadd.f32 %v657_v6, %v576_v5  ;;  %v659_v9 = vpop.f32.mrb[14].mxu0  ;;  %v580_v12 = vpop.f32.mrb[15].mxu1 }
 0x131   :  { %v1573_v11 = vadd.f32 %v659_v9, %v578_v8  ;;  %v661_v13 = vpop.f32.mrb[15].mxu0  ;;  %v677_v16 = vadd.f32 %v676_v10, %v1568_v4 }
 0x132   :  { %v1576_v15 = vadd.f32 %v661_v13, %v580_v12  ;;  %v691_v17 = vadd.f32 %v690_v14, %v1570_v7 }
 0x133   :  { %v678_v20 = vadd.f32 %v677_v16, %v1573_v11 }
 0x134   :  { %v692_v25 = vadd.f32 %v691_v17, %v1576_v15 }
 0x135   :  { %v584_v18 = vpop.f32.mrb[16].mxu1 }
 0x136   :  { %v665_v19 = vpop.f32.mrb[16].mxu0  ;;  %v586_v22 = vpop.f32.mrb[17].mxu1 }
 0x137   :  { %v1581_v21 = vadd.f32 %v665_v19, %v584_v18  ;;  %v667_v23 = vpop.f32.mrb[17].mxu0  ;;  %v588_v28 = vpop.f32.mrb[18].mxu1 }
 0x138   :  { %v1584_v26 = vadd.f32 %v667_v23, %v586_v22  ;;  %v669_v29 = vpop.f32.mrb[18].mxu0  ;;  %v589_v32 = vpop.f32.mrb[19].mxu1 }
 0x139   :  { %v679_v31 = vadd.f32 %v678_v20, %v1581_v21  ;;  %v670_v34 = vpop.f32.mrb[19].mxu0 }
 0x13a   :  { %v693_v35 = vadd.f32 %v692_v25, %v1584_v26 }
 0x13b   :  { %v680_v37 = vrot.slane %v679_v31, 4 }
 0x13c   :  { %v694_v38 = vrot.slane %v693_v35, 4 }
 0x13d   :  { %v681_v40 = vadd.f32 %v680_v37, %v679_v31 }
 0x13e   :  { %v695_v41 = vadd.f32 %v694_v38, %v693_v35 }
 0x13f   :  { %v682_v43 = vrot.slane %v681_v40, 2 }
 0x140   :  { %v696_v44 = vrot.slane %v695_v41, 2 }
 0x141   :  { %v683_v46 = vadd.f32 %v682_v43, %v681_v40 }
 0x142   :  { %v697_v47 = vadd.f32 %v696_v44, %v695_v41 }
 0x143   :  { %v684_v48 = vrot.slane %v683_v46, 1 }
 0x144   :  { %v698_v50 = vrot.slane %v697_v47, 1 }
 0x145   :  { %v685_v49 = vadd.f32 %v684_v48, %v683_v46 }
 0x146   :  { %v699_v52 = vadd.f32 %v698_v50, %v697_v47 }
 0x147   :  { %700 = vrot.lane.b32.xlu0 %v685_v49, %s1267_s0 }
 0x14b   :  { %702 = vrot.lane.b32.xlu0 %v699_v52, %s1267_s0 }
 0x1b9   :  { %v701_v56 = vpop.permute.xlu0 %700 }
 0x1bd   :  { %v703_v57 = vpop.permute.xlu0 %702 }
 0x1be   :  { %v707_v59 = vsel %vm706_vm0, %v701_v56, %v703_v57  ;;  %v708_v60 = vsel %vm706_vm0, %v703_v57, %v701_v56 }
 0x1bf   :  { %v709_v63 = vadd.f32 %v708_v60, %v685_v49  ;;  %v710_v0 = vadd.f32 %v707_v59, %v699_v52 }
 0x1c1   :  { %v711_v1 = vadd.f32 %v709_v63, %v699_v52  ;;  %v712_v2 = vadd.f32 %v710_v0, %v685_v49 }
 0x1c3   :  { %v713_v5 = vadd.f32 %v711_v1, %v707_v59  ;;  %v714_v6 = vadd.f32 %v712_v2, %v708_v60 }
 0x1c5   :  { %v715_v8 = vmul.f32 0.0034722222, %v713_v5  ;;  %v716_v9 = vmul.f32 0.0034722222, %v714_v6 }
 0x1c7   :  { %v720_v10 = vrot.slane %v715_v8, %v1600_v3  ;;  %v724_v12 = vrot.slane %v716_v9, %v1600_v3 }
 0x1c9   :  { %v1605_v13 = vsub.f32 %v1534_v24, %v720_v10  ;;  %v1608_v14 = vsub.f32 %v1538_v30, %v720_v10  ;;  %v1611_v16 = vsub.f32 %v1542_v36, %v720_v10  ;;  %v1614_v17 = vsub.f32 %v1546_v42, %v720_v10 }
 0x1ca   :  { %v1621_v20 = vsub.f32 %v1555_v51, %v720_v10  ;;  %v1626_v22 = vsub.f32 %v1536_v27, %v724_v12  ;;  %v1629_v36 = vsub.f32 %v1540_v33, %v724_v12  ;;  %v1632_v42 = vsub.f32 %v1544_v39, %v724_v12 }
 0x1cb   :  { %v743_v18 = vmul.f32 %v1605_v13, %v1605_v13  ;;  %v745_v19 = vmul.f32 %v1608_v14, %v1608_v14  ;;  %v747_v24 = vmul.f32 %v1611_v16, %v1611_v16  ;;  %v1635_v23 = vsub.f32 %v1560_v58, %v720_v10 }
 0x1cc   :  { %v749_v51 = vmul.f32 %v1614_v17, %v1614_v17  ;;  %v1640_v28 = vsub.f32 %v1548_v45, %v724_v12  ;;  %v744_v27 = vmul.f32 %v1626_v22, %v1626_v22  ;;  %v746_v33 = vmul.f32 %v1629_v36, %v1629_v36 }
 0x1cd   :  { %v761_v30 = vadd.f32 %v745_v19, %v743_v18  ;;  %v1647_v29 = vsub.f32 %v1568_v4, %v720_v10  ;;  %v751_v39 = vmul.f32 %v1621_v20, %v1621_v20  ;;  %v1652_v31 = vsub.f32 %v1558_v55, %v724_v12 }
 0x1ce   :  { %v748_v45 = vmul.f32 %v1632_v42, %v1632_v42  ;;  %v775_v32 = vadd.f32 %v746_v33, %v744_v27  ;;  %v1657_v34 = vsub.f32 %v1573_v11, %v720_v10  ;;  %v753_v35 = vmul.f32 %v1635_v23, %v1635_v23 }
 0x1cf   :  { %v762_v25 = vadd.f32 %v761_v30, %v747_v24  ;;  %v1662_v4 = vsub.f32 %v1562_v61, %v724_v12  ;;  %v750_v38 = vmul.f32 %v1640_v28, %v1640_v28  ;;  %v1667_v55 = vsub.f32 %v1581_v21, %v720_v10 }
 0x1d0   :  { %v776_v40 = vadd.f32 %v775_v32, %v748_v45  ;;  %v755_v41 = vmul.f32 %v1647_v29, %v1647_v29  ;;  %v1672_v11 = vsub.f32 %v1570_v7, %v724_v12  ;;  %v752_v44 = vmul.f32 %v1652_v31, %v1652_v31 }
 0x1d1   :  { %v763_v58 = vadd.f32 %v762_v25, %v749_v51  ;;  %v757_v61 = vmul.f32 %v1657_v34, %v1657_v34  ;;  %v1679_v48 = vsub.f32 %v1576_v15, %v724_v12  ;;  %v754_v21 = vmul.f32 %v1662_v4, %v1662_v4 }
 0x1d2   :  { %v777_v46 = vadd.f32 %v776_v40, %v750_v38  ;;  %v759_v50 = vmul.f32 %v1667_v55, %v1667_v55  ;;  %v1686_v52 = vsub.f32 %v1584_v26, %v724_v12  ;;  %v756_v53 = vmul.f32 %v1672_v11, %v1672_v11 }
 0x1d3   :  { %v764_v37 = vadd.f32 %v763_v58, %v751_v39  ;;  %v758_v15 = vmul.f32 %v1679_v48, %v1679_v48 }
 0x1d4   :  { %v778_v49 = vadd.f32 %v777_v46, %v752_v44  ;;  %v760_v63 = vmul.f32 %v1686_v52, %v1686_v52  ;;  %v841_v44 = vsub.s32 1, %v1597_v62 }
 0x1d5   :  { %v765_v43 = vadd.f32 %v764_v37, %v753_v35 }
 0x1d6   :  { %v779_v56 = vadd.f32 %v778_v49, %v754_v21 }
 0x1d7   :  { %v766_v47 = vadd.f32 %v765_v43, %v755_v41  ;;  %v833_v43 = vld [vmem:[%s1776_s2] ss:$2 sm:$0x3] }
 0x1d8   :  { %v780_v59 = vadd.f32 %v779_v56, %v756_v53  ;;  %v842_v49 = vrot.slane %v833_v43, %v841_v44 }
 0x1d9   :  { %v767_v7 = vadd.f32 %v766_v47, %v757_v61  ;;  %v838_v47 = vrot.slane %v833_v43, %v1600_v3 }
 0x1da   :  { %v781_v0 = vadd.f32 %v780_v59, %v758_v15 }
 0x1db   :  { %v768_v57 = vadd.f32 %v767_v7, %v759_v50  ;;  %v869_v50 = vrot.slane %v1101_v54, %v1600_v3  ;;  %v873_v7 = vrot.slane %v1101_v54, %v841_v44 }
 0x1dc   :  { %v782_v2 = vadd.f32 %v781_v0, %v760_v63 }
 0x1dd   :  { %v769_v60 = vrot.slane %v768_v57, 4 }
 0x1de   :  { %v783_v6 = vrot.slane %v782_v2, 4 }
 0x1df   :  { %v770_v1 = vadd.f32 %v769_v60, %v768_v57 }
 0x1e0   :  { %v784_v8 = vadd.f32 %v783_v6, %v782_v2 }
 0x1e1   :  { %v771_v5 = vrot.slane %v770_v1, 2 }
 0x1e2   :  { %v785_v10 = vrot.slane %v784_v8, 2 }
 0x1e3   :  { %v772_v26 = vadd.f32 %v771_v5, %v770_v1 }
 0x1e4   :  { %v786_v18 = vadd.f32 %v785_v10, %v784_v8 }
 0x1e5   :  { %v773_v9 = vrot.slane %v772_v26, 1 }
 0x1e6   :  { %v787_v19 = vrot.slane %v786_v18, 1 }
 0x1e7   :  { %v774_v12 = vadd.f32 %v773_v9, %v772_v26 }
 0x1e8   :  { %v788_v24 = vadd.f32 %v787_v19, %v786_v18 }
 0x1e9   :  { %789 = vrot.lane.b32.xlu1 %v774_v12, %s1267_s0 }
 0x1ed   :  { %791 = vrot.lane.b32.xlu1 %v788_v24, %s1267_s0 }
 0x25b   :  { %v790_v30 = vpop.permute.xlu1 %789 }
 0x25f   :  { %v792_v51 = vpop.permute.xlu1 %791 }
 0x260   :  { %v793_v25 = vsel %vm706_vm0, %v790_v30, %v792_v51  ;;  %v794_v27 = vsel %vm706_vm0, %v792_v51, %v790_v30 }
 0x261   :  { %v795_v33 = vadd.f32 %v794_v27, %v774_v12  ;;  %v796_v39 = vadd.f32 %v793_v25, %v788_v24 }
 0x263   :  { %v797_v58 = vadd.f32 %v795_v33, %v788_v24  ;;  %v798_v45 = vadd.f32 %v796_v39, %v774_v12 }
 0x265   :  { %v799_v32 = vadd.f32 %v797_v58, %v793_v25  ;;  %v800_v35 = vadd.f32 %v798_v45, %v794_v27 }
 0x267   :  { %v801_v37 = vmul.f32 0.0034722222, %v799_v32  ;;  %v802_v38 = vmul.f32 0.0034722222, %v800_v35 }
 0x269   :  { %v803_v40 = vadd.f32 1e-05, %v801_v37  ;;  %v804_v41 = vadd.f32 1e-05, %v802_v38 }
 0x26b   :  { %1263 = vrsqrt.f32 %v803_v40 }
 0x26c   :  { %1265 = vrsqrt.f32 %v804_v41 }
 0x275   :  { %v1264_v46 = vpop.eup %1263 }
 0x276   :  { %v1266_v61 = vpop.eup %1265  ;;  %v810_v21 = vrot.slane %v1264_v46, %v1600_v3 }
 0x277   :  { %v814_v53 = vrot.slane %v1266_v61, %v1600_v3 }
 0x278   :  { %v815_v56 = vmul.f32 %v810_v21, %v1605_v13  ;;  %v817_v62 = vmul.f32 %v810_v21, %v1608_v14  ;;  %v819_v57 = vmul.f32 %v810_v21, %v1611_v16  ;;  %v821_v15 = vmul.f32 %v810_v21, %v1614_v17 }
 0x279   :  { %v816_v59 = vmul.f32 %v814_v53, %v1626_v22  ;;  %v818_v60 = vmul.f32 %v814_v53, %v1629_v36  ;;  %v820_v63 = vmul.f32 %v814_v53, %v1632_v42  ;;  %v822_v0 = vmul.f32 %v814_v53, %v1640_v28 }
 0x27a   :  { %v823_v1 = vmul.f32 %v810_v21, %v1621_v20  ;;  %v824_v3 = vmul.f32 %v814_v53, %v1652_v31  ;;  %v825_v13 = vmul.f32 %v810_v21, %v1635_v23  ;;  %v826_v14 = vmul.f32 %v814_v53, %v1662_v4 }
 0x27b   :  { %v827_v16 = vmul.f32 %v810_v21, %v1647_v29  ;;  %v828_v17 = vmul.f32 %v814_v53, %v1672_v11  ;;  %v829_v22 = vmul.f32 %v810_v21, %v1657_v34  ;;  %v830_v36 = vmul.f32 %v814_v53, %v1679_v48 }
 0x27c   :  { %v831_v42 = vmul.f32 %v810_v21, %v1667_v55  ;;  %v832_v28 = vmul.f32 %v814_v53, %v1686_v52  ;;  %v845_v2 = vmul.f32 %v838_v47, %v815_v56  ;;  %v846_v20 = vmul.f32 %v842_v49, %v816_v59 }
 0x27d   :  { %v847_v5 = vmul.f32 %v838_v47, %v817_v62  ;;  %v848_v31 = vmul.f32 %v842_v49, %v818_v60  ;;  %v849_v6 = vmul.f32 %v838_v47, %v819_v57  ;;  %v850_v23 = vmul.f32 %v842_v49, %v820_v63 }
 0x27e   :  { %v851_v26 = vmul.f32 %v838_v47, %v821_v15  ;;  %v852_v4 = vmul.f32 %v842_v49, %v822_v0  ;;  %v853_v8 = vmul.f32 %v838_v47, %v823_v1  ;;  %v854_v29 = vmul.f32 %v842_v49, %v824_v3 }
 0x27f   :  { %v855_v9 = vmul.f32 %v838_v47, %v825_v13  ;;  %v856_v11 = vmul.f32 %v842_v49, %v826_v14  ;;  %v857_v10 = vmul.f32 %v838_v47, %v827_v16  ;;  %v858_v34 = vmul.f32 %v842_v49, %v828_v17 }
 0x280   :  { %v859_v12 = vmul.f32 %v838_v47, %v829_v22  ;;  %v860_v48 = vmul.f32 %v842_v49, %v830_v36  ;;  %v861_v18 = vmul.f32 %v838_v47, %v831_v42  ;;  %v862_v55 = vmul.f32 %v842_v49, %v832_v28 }
 0x281   :  { %v876_v19 = vadd.f32 %v869_v50, %v845_v2  ;;  %v877_v52 = vadd.f32 %v873_v7, %v846_v20  ;;  %v878_v24 = vadd.f32 %v869_v50, %v847_v5  ;;  %v879_v30 = vadd.f32 %v873_v7, %v848_v31 }
 0x282   :  { %v880_v51 = vadd.f32 %v869_v50, %v849_v6  ;;  %v881_v25 = vadd.f32 %v873_v7, %v850_v23  ;;  %v882_v27 = vadd.f32 %v869_v50, %v851_v26  ;;  %v883_v33 = vadd.f32 %v873_v7, %v852_v4 }
 0x283   :  { %v884_v39 = vadd.f32 %v869_v50, %v853_v8  ;;  %v885_v58 = vadd.f32 %v873_v7, %v854_v29  ;;  %v886_v45 = vadd.f32 %v869_v50, %v855_v9  ;;  %v887_v32 = vadd.f32 %v873_v7, %v856_v11 }
 0x284   :  { %v888_v35 = vadd.f32 %v869_v50, %v857_v10  ;;  %v889_v37 = vadd.f32 %v873_v7, %v858_v34  ;;  %v890_v38 = vadd.f32 %v869_v50, %v859_v12  ;;  %v891_v40 = vadd.f32 %v873_v7, %v860_v48 }
 0x285   :  { %v892_v41 = vadd.f32 %v869_v50, %v861_v18  ;;  %v893_v43 = vadd.f32 %v873_v7, %v862_v55  ;;  %vm896_vm3 = vcmp.ge.f32.partialorder %v878_v24, 0.0  ;;  %vm897_vm4 = vcmp.ge.f32.partialorder %v879_v30, 0.0 }
 0x286   :  { %vm898_vm5 = vcmp.ge.f32.partialorder %v880_v51, 0.0  ;;  %vm899_vm6 = vcmp.ge.f32.partialorder %v881_v25, 0.0  ;;  %vm900_vm7 = vcmp.ge.f32.partialorder %v882_v27, 0.0  ;;  %vm902_vm9 = vcmp.ge.f32.partialorder %v884_v39, 0.0 }
 0x287   :  { %vm903_vm10 = vcmp.ge.f32.partialorder %v885_v58, 0.0  ;;  %vm904_vm11 = vcmp.ge.f32.partialorder %v886_v45, 0.0  ;;  %vm905_vm12 = vcmp.ge.f32.partialorder %v887_v32, 0.0  ;;  %vm907_vm14 = vcmp.ge.f32.partialorder %v889_v37, 0.0 }
 0x288   :  { %vm908_vm15 = vcmp.ge.f32.partialorder %v890_v38, 0.0  ;;  %vm909_vm0 = vcmp.ge.f32.partialorder %v891_v40, 0.0  ;;  %vm910_vm1 = vcmp.ge.f32.partialorder %v892_v41, 0.0  ;;  %vm911_vm2 = vcmp.ge.f32.partialorder %v893_v43, 0.0 }
 0x289   :  { %v912_v44 = vmul.f32 0.01, %v876_v19  ;;  %v913_v54 = vmul.f32 0.01, %v877_v52  ;;  %v914_v46 = vmul.f32 0.01, %v878_v24 }
 0x28a   :  { %v915_v61 = vmul.f32 0.01, %v879_v30  ;;  %v916_v47 = vmul.f32 0.01, %v880_v51  ;;  %v917_v21 = vmul.f32 0.01, %v881_v25 }
 0x28b   :  { %v918_v49 = vmul.f32 0.01, %v882_v27  ;;  %v919_v50 = vmul.f32 0.01, %v883_v33  ;;  %v920_v7 = vmul.f32 0.01, %v884_v39  ;;  %v932_v0 = vsel %vm896_vm3, %v878_v24, %v914_v46 }
 0x28c   :  { %vm1778_vm8 = vcmp.ge.f32.partialorder %v876_v19, 0.0  ;;  %v921_v56 = vmul.f32 0.01, %v885_v58  ;;  %v922_v62 = vmul.f32 0.01, %v886_v45  ;;  %vm1779_vm13 = vcmp.ge.f32.partialorder %v877_v52, 0.0 }
 0x28d   :  { %v930_v53 = vsel %vm1778_vm8, %v876_v19, %v912_v44  ;;  %v923_v57 = vmul.f32 0.01, %v887_v32  ;;  %v931_v15 = vsel %vm1779_vm13, %v877_v52, %v913_v54  ;;  %v924_v59 = vmul.f32 0.01, %v888_v35 }
 0x28e   :  { %v925_v60 = vmul.f32 0.01, %v889_v37  ;;  %v926_v63 = vmul.f32 0.01, %v890_v38  ;;  %v927_v1 = vmul.f32 0.01, %v891_v40  ;;  %v933_v14 = vsel %vm897_vm4, %v879_v30, %v915_v61 }
 0x28f   :  { %v928_v3 = vmul.f32 0.01, %v892_v41  ;;  %v929_v13 = vmul.f32 0.01, %v893_v43  ;;  %v934_v16 = vsel %vm898_vm5, %v880_v51, %v916_v47  ;;  %v935_v17 = vsel %vm899_vm6, %v881_v25, %v917_v21 }
 0x290   :  { %v936_v22 = vsel %vm900_vm7, %v882_v27, %v918_v49  ;;  %vm1780_vm8 = vcmp.ge.f32.partialorder %v883_v33, 0.0  ;;  %v938_v42 = vsel %vm902_vm9, %v884_v39, %v920_v7  ;;  %v939_v28 = vsel %vm903_vm10, %v885_v58, %v921_v56 }
 0x291   :  { %v937_v36 = vsel %vm1780_vm8, %v883_v33, %v919_v50  ;;  %v940_v2 = vsel %vm904_vm11, %v886_v45, %v922_v62  ;;  %v941_v20 = vsel %vm905_vm12, %v887_v32, %v923_v57  ;;  %vm1781_vm3 = vcmp.ge.f32.partialorder %v888_v35, 0.0 }
 0x292   :  { %v942_v5 = vsel %vm1781_vm3, %v888_v35, %v924_v59  ;;  %v943_v31 = vsel %vm907_vm14, %v889_v37, %v925_v60  ;;  %v944_v6 = vsel %vm908_vm15, %v890_v38, %v926_v63  ;;  %v945_v23 = vsel %vm909_vm0, %v891_v40, %v927_v1 }
 0x293   :  { %v946_v26 = vsel %vm910_vm1, %v892_v41, %v928_v3  ;;  %v947_v4 = vsel %vm911_vm2, %v893_v43, %v929_v13  ;;  %v1111_v8 = vpack.c.bf16 %v931_v15, %v930_v53  ;;  %v1112_v29 = vpack.c.bf16 %v933_v14, %v932_v0 }
 0x294   :  { %v1113_v9 = vpack.c.bf16 %v935_v17, %v934_v16  ;;  %v1114_v11 = vpack.c.bf16 %v937_v36, %v936_v22  ;;  %v1115_v10 = vpack.c.bf16 %v939_v28, %v938_v42  ;;  %v1116_v34 = vpack.c.bf16 %v941_v20, %v940_v2 }
 0x295   :  { %v1117_v12 = vpack.c.bf16 %v943_v31, %v942_v5  ;;  %v1118_v48 = vpack.c.bf16 %v945_v23, %v944_v6  ;;  %v1119_v18 = vpack.c.bf16 %v947_v4, %v946_v26  ;;  %1004 = vst [vmem:[%s1777_s3] sm:$0xff] %v1111_v8  ;;  %1005 = vst [vmem:[%s1777_s3 + $0x8] sm:$0xff] %v1112_v29 }
 0x296   :  { %1006 = vst [vmem:[%s1777_s3 + $0x10] sm:$0xff] %v1113_v9  ;;  %1007 = vst [vmem:[%s1777_s3 + $0x18] sm:$0xff] %v1114_v11 }
 0x297   :  { %1008 = vst [vmem:[%s1777_s3 + $0x20] sm:$0xff] %v1115_v10  ;;  %1009 = vst [vmem:[%s1777_s3 + $0x28] sm:$0xff] %v1116_v34 }
 0x298   :  { %1010 = vst [vmem:[%s1777_s3 + $0x30] sm:$0xff] %v1117_v12  ;;  %1011 = vst [vmem:[%s1777_s3 + $0x38] sm:$0xff] %v1118_v48 }
 0x299   :  { %1012 = vst [vmem:[%s1777_s3 + $0x40] sm:$0xff] %v1119_v18 }

// kernel: categorical_vae_forward.14
= control target key start
LH: loop header
LB: loop body
LE: loop exit
PB: predicated region body
PF: predicated region fallthrough
CT: control target
= control target key end

     0   :  { %s4625_s1 = inlined_call_operand.vmem [shape: bf16[256,256], index: 1, kind: input, shape index: {}]   ;;  %s4626_s0 = inlined_call_operand.vmem [shape: bf16[288,256], index: 0, kind: input, shape index: {}]   ;;  %s4627_s2 = inlined_call_operand.vmem [shape: f32[2,256], index: 2, kind: input, shape index: {}]   ;;  %s4628_s3 = inlined_call_operand.vmem [shape: bf16[288,256], index: 3, kind: output, shape index: {}]  }
   0x1   :  { %v1881_v0 = vld [vmem:[%s4625_s1 + $0x4] ss:$8 sps:$4 sm:$0xff]   ;;  %v1883_v1 = vld [vmem:[%s4625_s1] ss:$8 sps:$4 sm:$0xff]   ;;  %v1884_v2 = vld [vmem:[%s4625_s1 + $0x14] ss:$8 sps:$4 sm:$0xff]  }
   0x2   :  { %422 = vmatprep.subr.bf16.mxu0 %v1881_v0  ;;  %1848 = vmatprep.subr.bf16.mxu1 %v1881_v0  ;;  %v1886_v3 = vld [vmem:[%s4625_s1 + $0x10] ss:$8 sps:$4 sm:$0xff]   ;;  %v1887_v4 = vld [vmem:[%s4625_s1 + $0x24] ss:$8 sps:$4 sm:$0xff]   ;;  %v1889_v5 = vld [vmem:[%s4625_s1 + $0x20] ss:$8 sps:$4 sm:$0xff]  }
   0x3   :  { %423 = vmatpush1.bf16.msra.mxu0 %v1883_v1  ;;  %1864 = vmatpush1.bf16.msra.mxu1 %v1883_v1  ;;  %v1890_v6 = vld [vmem:[%s4625_s1 + $0x34] ss:$8 sps:$4 sm:$0xff]   ;;  %v1892_v7 = vld [vmem:[%s4625_s1 + $0x30] ss:$8 sps:$4 sm:$0xff]   ;;  %v1893_v8 = vld [vmem:[%s4625_s1 + $0x44] ss:$8 sps:$4 sm:$0xff]  }
   0x4   :  { %424 = vmatprep.subr.bf16.mxu0 %v1884_v2  ;;  %1849 = vmatprep.subr.bf16.mxu1 %v1884_v2  ;;  %v1895_v9 = vld [vmem:[%s4625_s1 + $0x40] ss:$8 sps:$4 sm:$0xff]   ;;  %v1896_v10 = vld [vmem:[%s4625_s1 + $0x54] ss:$8 sps:$4 sm:$0xff]   ;;  %v1898_v11 = vld [vmem:[%s4625_s1 + $0x50] ss:$8 sps:$4 sm:$0xff]  }
   0x5   :  { %v1899_v12 = vld [vmem:[%s4625_s1 + $0x64] ss:$8 sps:$4 sm:$0xff]   ;;  %v1901_v14 = vld [vmem:[%s4625_s1 + $0x60] ss:$8 sps:$4 sm:$0xff]   ;;  %v1902_v15 = vld [vmem:[%s4625_s1 + $0x74] ss:$8 sps:$4 sm:$0xff]  }
   0x6   :  { %v1931_v13 = vld [vmem:[%s4626_s0 + $0x4] ss:$8 sps:$4 sm:$0xff]   ;;  %v1904_v16 = vld [vmem:[%s4625_s1 + $0x70] ss:$8 sps:$4 sm:$0xff]   ;;  %v1946_v18 = vld [vmem:[%s4626_s0 + $0x94] ss:$8 sps:$4 sm:$0xff]  }
   0x7   :  { %425 = vmatpush1.bf16.msra.mxu0 %v1886_v3  ;;  %1865 = vmatpush1.bf16.msra.mxu1 %v1886_v3  ;;  %v1905_v17 = vld [vmem:[%s4625_s1 + $0x84] ss:$8 sps:$4 sm:$0xff]   ;;  %v1907_v19 = vld [vmem:[%s4625_s1 + $0x80] ss:$8 sps:$4 sm:$0xff]   ;;  %v1908_v20 = vld [vmem:[%s4625_s1 + $0x94] ss:$8 sps:$4 sm:$0xff]  }
   0x8   :  { %426 = vmatprep.subr.bf16.mxu0 %v1887_v4  ;;  %1850 = vmatprep.subr.bf16.mxu1 %v1887_v4  ;;  %v1910_v21 = vld [vmem:[%s4625_s1 + $0x90] ss:$8 sps:$4 sm:$0xff]   ;;  %v1911_v22 = vld [vmem:[%s4625_s1 + $0xa4] ss:$8 sps:$4 sm:$0xff]   ;;  %v1913_v23 = vld [vmem:[%s4625_s1 + $0xa0] ss:$8 sps:$4 sm:$0xff]  }
   0x9   :  { %454 = vmatprep.mubr.bf16.mxu0 %v1931_v13  ;;  %544 = vmatprep.mubr.bf16.mxu1 %v1946_v18  ;;  %v1914_v24 = vld [vmem:[%s4625_s1 + $0xb4] ss:$8 sps:$4 sm:$0xff]   ;;  %v1916_v25 = vld [vmem:[%s4625_s1 + $0xb0] ss:$8 sps:$4 sm:$0xff]   ;;  %v1917_v26 = vld [vmem:[%s4625_s1 + $0xc4] ss:$8 sps:$4 sm:$0xff]  }
   0xa   :  { %v1919_v27 = vld [vmem:[%s4625_s1 + $0xc0] ss:$8 sps:$4 sm:$0xff]   ;;  %v1920_v28 = vld [vmem:[%s4625_s1 + $0xd4] ss:$8 sps:$4 sm:$0xff]   ;;  %v1922_v29 = vld [vmem:[%s4625_s1 + $0xd0] ss:$8 sps:$4 sm:$0xff]  }
   0xb   :  { %427 = vmatpush1.bf16.msra.mxu0 %v1889_v5  ;;  %1866 = vmatpush1.bf16.msra.mxu1 %v1889_v5  ;;  %v1923_v30 = vld [vmem:[%s4625_s1 + $0xe4] ss:$8 sps:$4 sm:$0xff]   ;;  %v1925_v31 = vld [vmem:[%s4625_s1 + $0xe0] ss:$8 sps:$4 sm:$0xff]   ;;  %v1926_v32 = vld [vmem:[%s4625_s1 + $0xf4] ss:$8 sps:$4 sm:$0xff]  }
   0xc   :  { %428 = vmatprep.subr.bf16.mxu0 %v1890_v6  ;;  %1851 = vmatprep.subr.bf16.mxu1 %v1890_v6  ;;  %v1928_v33 = vld [vmem:[%s4625_s1 + $0xf0] ss:$8 sps:$4 sm:$0xff]   ;;  %v1929_v34 = vld [vmem:[%s4626_s0] ss:$8 sps:$4 sm:$0xff]   ;;  %v1932_v36 = vld [vmem:[%s4626_s0 + $0x14] ss:$8 sps:$4 sm:$0xff]  }
   0xd   :  { %v1944_v35 = vld [vmem:[%s4626_s0 + $0x90] ss:$8 sps:$4 sm:$0xff]   ;;  %v1950_v37 = vld [vmem:[%s4626_s0 + $0xa4] ss:$8 sps:$4 sm:$0xff]   ;;  %v1952_v39 = vld [vmem:[%s4626_s0 + $0xa0] ss:$8 sps:$4 sm:$0xff]  }
   0xe   :  { %v1934_v38 = vld [vmem:[%s4626_s0 + $0x10] ss:$8 sps:$4 sm:$0xff]   ;;  %v1935_v40 = vld [vmem:[%s4626_s0 + $0x24] ss:$8 sps:$4 sm:$0xff]   ;;  %v1956_v41 = vld [vmem:[%s4626_s0 + $0xb4] ss:$8 sps:$4 sm:$0xff]  }
   0xf   :  { %429 = vmatpush1.bf16.msra.mxu0 %v1892_v7  ;;  %1867 = vmatpush1.bf16.msra.mxu1 %v1892_v7  ;;  %v1937_v42 = vld [vmem:[%s4626_s0 + $0x20] ss:$8 sps:$4 sm:$0xff]   ;;  %v1958_v43 = vld [vmem:[%s4626_s0 + $0xb0] ss:$8 sps:$4 sm:$0xff]   ;;  %v1938_v44 = vld [vmem:[%s4626_s0 + $0x34] ss:$8 sps:$4 sm:$0xff]  }
  0x10   :  { %430 = vmatprep.subr.bf16.mxu0 %v1893_v8  ;;  %1852 = vmatprep.subr.bf16.mxu1 %v1893_v8  ;;  %v1962_v45 = vld [vmem:[%s4626_s0 + $0xc4] ss:$8 sps:$4 sm:$0xff]   ;;  %v1940_v46 = vld [vmem:[%s4626_s0 + $0x30] ss:$8 sps:$4 sm:$0xff]   ;;  %v1964_v47 = vld [vmem:[%s4626_s0 + $0xc0] ss:$8 sps:$4 sm:$0xff]  }
  0x11   :  { %v1941_v48 = vld [vmem:[%s4626_s0 + $0x44] ss:$8 sps:$4 sm:$0xff]   ;;  %v1968_v49 = vld [vmem:[%s4626_s0 + $0xd4] ss:$8 sps:$4 sm:$0xff]   ;;  %v1943_v50 = vld [vmem:[%s4626_s0 + $0x40] ss:$8 sps:$4 sm:$0xff]  }
  0x12   :  { %v1970_v51 = vld [vmem:[%s4626_s0 + $0xd0] ss:$8 sps:$4 sm:$0xff]   ;;  %v1947_v52 = vld [vmem:[%s4626_s0 + $0x54] ss:$8 sps:$4 sm:$0xff]   ;;  %v1971_v53 = vld [vmem:[%s4626_s0 + $0xe4] ss:$8 sps:$4 sm:$0xff]  }
  0x13   :  { %431 = vmatpush1.bf16.msra.mxu0 %v1895_v9  ;;  %1868 = vmatpush1.bf16.msra.mxu1 %v1895_v9  ;;  %v1949_v54 = vld [vmem:[%s4626_s0 + $0x50] ss:$8 sps:$4 sm:$0xff]   ;;  %v1973_v55 = vld [vmem:[%s4626_s0 + $0xe0] ss:$8 sps:$4 sm:$0xff]   ;;  %v1953_v56 = vld [vmem:[%s4626_s0 + $0x64] ss:$8 sps:$4 sm:$0xff]  }
  0x14   :  { %432 = vmatprep.subr.bf16.mxu0 %v1896_v10  ;;  %1853 = vmatprep.subr.bf16.mxu1 %v1896_v10  ;;  %v1974_v57 = vld [vmem:[%s4626_s0 + $0xf4] ss:$8 sps:$4 sm:$0xff]   ;;  %v1955_v58 = vld [vmem:[%s4626_s0 + $0x60] ss:$8 sps:$4 sm:$0xff]   ;;  %v1976_v59 = vld [vmem:[%s4626_s0 + $0xf0] ss:$8 sps:$4 sm:$0xff]  }
  0x15   :  { %v1959_v60 = vld [vmem:[%s4626_s0 + $0x74] ss:$8 sps:$4 sm:$0xff]   ;;  %v1977_v61 = vld [vmem:[%s4626_s0 + $0x104] ss:$8 sps:$4 sm:$0xff]   ;;  %v1961_v62 = vld [vmem:[%s4626_s0 + $0x70] ss:$8 sps:$4 sm:$0xff]  }
  0x16   :  { %v1979_v63 = vld [vmem:[%s4626_s0 + $0x100] ss:$8 sps:$4 sm:$0xff]   ;;  %v1965_v0 = vld [vmem:[%s4626_s0 + $0x84] ss:$8 sps:$4 sm:$0xff]   ;;  %v1980_v1 = vld [vmem:[%s4626_s0 + $0x114] ss:$8 sps:$4 sm:$0xff]  }
  0x17   :  { %433 = vmatpush1.bf16.msra.mxu0 %v1898_v11  ;;  %1869 = vmatpush1.bf16.msra.mxu1 %v1898_v11  ;;  %v1967_v2 = vld [vmem:[%s4626_s0 + $0x80] ss:$8 sps:$4 sm:$0xff]   ;;  %v1982_v3 = vld [vmem:[%s4626_s0 + $0x110] ss:$8 sps:$4 sm:$0xff]   ;;  %s1987_s0 = smov 64  }
  0x18   :  { %434 = vmatprep.subr.bf16.mxu0 %v1899_v12  ;;  %1854 = vmatprep.subr.bf16.mxu1 %v1899_v12 }
  0x1b   :  { %435 = vmatpush1.bf16.msra.mxu0 %v1901_v14  ;;  %1870 = vmatpush1.bf16.msra.mxu1 %v1901_v14 }
  0x1c   :  { %436 = vmatprep.subr.bf16.mxu0 %v1902_v15  ;;  %1855 = vmatprep.subr.bf16.mxu1 %v1902_v15 }
  0x1f   :  { %437 = vmatpush1.bf16.msra.mxu0 %v1904_v16  ;;  %1871 = vmatpush1.bf16.msra.mxu1 %v1904_v16 }
  0x20   :  { %438 = vmatprep.subr.bf16.mxu0 %v1905_v17  ;;  %1856 = vmatprep.subr.bf16.mxu1 %v1905_v17 }
  0x23   :  { %439 = vmatpush1.bf16.msra.mxu0 %v1907_v19  ;;  %1872 = vmatpush1.bf16.msra.mxu1 %v1907_v19 }
  0x24   :  { %440 = vmatprep.subr.bf16.mxu0 %v1908_v20  ;;  %1857 = vmatprep.subr.bf16.mxu1 %v1908_v20 }
  0x27   :  { %441 = vmatpush1.bf16.msra.mxu0 %v1910_v21  ;;  %1873 = vmatpush1.bf16.msra.mxu1 %v1910_v21 }
  0x28   :  { %442 = vmatprep.subr.bf16.mxu0 %v1911_v22  ;;  %1858 = vmatprep.subr.bf16.mxu1 %v1911_v22 }
  0x2b   :  { %443 = vmatpush1.bf16.msra.mxu0 %v1913_v23  ;;  %1874 = vmatpush1.bf16.msra.mxu1 %v1913_v23 }
  0x2c   :  { %444 = vmatprep.subr.bf16.mxu0 %v1914_v24  ;;  %1859 = vmatprep.subr.bf16.mxu1 %v1914_v24 }
  0x2f   :  { %445 = vmatpush1.bf16.msra.mxu0 %v1916_v25  ;;  %1875 = vmatpush1.bf16.msra.mxu1 %v1916_v25 }
  0x30   :  { %446 = vmatprep.subr.bf16.mxu0 %v1917_v26  ;;  %1860 = vmatprep.subr.bf16.mxu1 %v1917_v26 }
  0x33   :  { %447 = vmatpush1.bf16.msra.mxu0 %v1919_v27  ;;  %1876 = vmatpush1.bf16.msra.mxu1 %v1919_v27 }
  0x34   :  { %448 = vmatprep.subr.bf16.mxu0 %v1920_v28  ;;  %1861 = vmatprep.subr.bf16.mxu1 %v1920_v28 }
  0x37   :  { %449 = vmatpush1.bf16.msra.mxu0 %v1922_v29  ;;  %1877 = vmatpush1.bf16.msra.mxu1 %v1922_v29 }
  0x38   :  { %450 = vmatprep.subr.bf16.mxu0 %v1923_v30  ;;  %1862 = vmatprep.subr.bf16.mxu1 %v1923_v30 }
  0x3b   :  { %451 = vmatpush1.bf16.msra.mxu0 %v1925_v31  ;;  %1878 = vmatpush1.bf16.msra.mxu1 %v1925_v31 }
  0x3c   :  { %452 = vmatprep.subr.bf16.mxu0 %v1926_v32  ;;  %1863 = vmatprep.subr.bf16.mxu1 %v1926_v32 }
  0x3f   :  { %453 = vmatpush1.bf16.msra.mxu0 %v1928_v33  ;;  %1879 = vmatpush1.bf16.msra.mxu1 %v1928_v33 }
  0x42   :  { %455 = vmatmul.mubr.bf16.vlgmr.msra.gmra.mrb[0].mxu0 %v1929_v34  ;;  %545 = vmatmul.mubr.bf16.vlgmr.msra.gmra.mrb[0].mxu1 %v1944_v35 }
  0x43   :  { %464 = vmatprep.mubr.bf16.mxu0 %v1932_v36  ;;  %554 = vmatprep.mubr.bf16.mxu1 %v1950_v37 }
  0x4a   :  { %465 = vmatmul.mubr.bf16.gmra.mrb[4].mxu0 %v1934_v38  ;;  %555 = vmatmul.mubr.bf16.gmra.mrb[4].mxu1 %v1952_v39 }
  0x4b   :  { %474 = vmatprep.mubr.bf16.mxu0 %v1935_v40  ;;  %564 = vmatprep.mubr.bf16.mxu1 %v1956_v41 }
  0x52   :  { %475 = vmatmul.mubr.bf16.gmra.mrb[8].mxu0 %v1937_v42  ;;  %565 = vmatmul.mubr.bf16.gmra.mrb[8].mxu1 %v1958_v43 }
  0x53   :  { %484 = vmatprep.mubr.bf16.mxu0 %v1938_v44  ;;  %574 = vmatprep.mubr.bf16.mxu1 %v1962_v45 }
  0x5a   :  { %485 = vmatmul.mubr.bf16.gmra.mrb[12].mxu0 %v1940_v46  ;;  %575 = vmatmul.mubr.bf16.gmra.mrb[12].mxu1 %v1964_v47 }
  0x5b   :  { %494 = vmatprep.mubr.bf16.mxu0 %v1941_v48  ;;  %584 = vmatprep.mubr.bf16.mxu1 %v1968_v49 }
  0x62   :  { %495 = vmatmul.mubr.bf16.gmra.mrb[16].mxu0 %v1943_v50  ;;  %585 = vmatmul.mubr.bf16.gmra.mrb[16].mxu1 %v1970_v51 }
  0x63   :  { %504 = vmatprep.mubr.bf16.mxu0 %v1947_v52  ;;  %594 = vmatprep.mubr.bf16.mxu1 %v1971_v53 }
  0x6a   :  { %505 = vmatmul.mubr.bf16.gmra.mrb[20].mxu0 %v1949_v54  ;;  %595 = vmatmul.mubr.bf16.gmra.mrb[20].mxu1 %v1973_v55 }
  0x6b   :  { %514 = vmatprep.mubr.bf16.mxu0 %v1953_v56  ;;  %604 = vmatprep.mubr.bf16.mxu1 %v1974_v57 }
  0x72   :  { %515 = vmatmul.mubr.bf16.gmra.mrb[24].mxu0 %v1955_v58  ;;  %605 = vmatmul.mubr.bf16.gmra.mrb[24].mxu1 %v1976_v59 }
  0x73   :  { %524 = vmatprep.mubr.bf16.mxu0 %v1959_v60  ;;  %614 = vmatprep.mubr.bf16.mxu1 %v1977_v61 }
  0x7a   :  { %525 = vmatmul.mubr.bf16.gmra.mrb[28].mxu0 %v1961_v62  ;;  %615 = vmatmul.mubr.bf16.gmra.mrb[28].mxu1 %v1979_v63 }
  0x7b   :  { %534 = vmatprep.mubr.bf16.mxu0 %v1965_v0  ;;  %624 = vmatprep.mubr.bf16.mxu1 %v1980_v1 }
  0x82   :  { %535 = vmatmul.mubr.bf16.gmra.mrb[32].mxu0 %v1967_v2  ;;  %625 = vmatmul.mubr.bf16.gmra.mrb[32].mxu1 %v1982_v3 }
 0x115   :  { %v2212_v4 = vpop.f32.mrb[0].mxu0  ;;  %v2214_v5 = vpop.f32.mrb[0].mxu1 }
 0x116   :  { %v2216_v6 = vpop.f32.mrb[1].mxu0  ;;  %v2218_v7 = vpop.f32.mrb[1].mxu1 }
 0x117   :  { %v2220_v8 = vpop.f32.mrb[2].mxu0  ;;  %v2222_v9 = vpop.f32.mrb[2].mxu1 }
 0x118   :  { %v635_v10 = vadd.f32 %v2220_v8, %v2212_v4  ;;  %v2226_v11 = vpop.f32.mrb[3].mxu0  ;;  %v2228_v12 = vpop.f32.mrb[3].mxu1 }
 0x119   :  { %v676_v13 = vadd.f32 %v2226_v11, %v2216_v6 }
 0x11d   :  { %v2232_v14 = vpop.f32.mrb[4].mxu0  ;;  %v2234_v15 = vpop.f32.mrb[4].mxu1 }
 0x11e   :  { %v636_v16 = vadd.f32 %v635_v10, %v2232_v14  ;;  %v2237_v17 = vpop.f32.mrb[5].mxu0  ;;  %v2239_v18 = vpop.f32.mrb[5].mxu1 }
 0x11f   :  { %v677_v19 = vadd.f32 %v676_v13, %v2237_v17  ;;  %v2242_v20 = vpop.f32.mrb[6].mxu0  ;;  %v2244_v21 = vpop.f32.mrb[6].mxu1 }
 0x120   :  { %v637_v22 = vadd.f32 %v636_v16, %v2242_v20  ;;  %v2247_v23 = vpop.f32.mrb[7].mxu0  ;;  %v2249_v24 = vpop.f32.mrb[7].mxu1 }
 0x121   :  { %v678_v25 = vadd.f32 %v677_v19, %v2247_v23 }
 0x125   :  { %v2252_v26 = vpop.f32.mrb[8].mxu0  ;;  %v2254_v27 = vpop.f32.mrb[8].mxu1 }
 0x126   :  { %v638_v28 = vadd.f32 %v637_v22, %v2252_v26  ;;  %v2257_v29 = vpop.f32.mrb[9].mxu0  ;;  %v2259_v30 = vpop.f32.mrb[9].mxu1 }
 0x127   :  { %v679_v31 = vadd.f32 %v678_v25, %v2257_v29  ;;  %v2262_v32 = vpop.f32.mrb[10].mxu0  ;;  %v2264_v33 = vpop.f32.mrb[10].mxu1 }
 0x128   :  { %v639_v34 = vadd.f32 %v638_v28, %v2262_v32  ;;  %v2267_v35 = vpop.f32.mrb[11].mxu0  ;;  %v2269_v36 = vpop.f32.mrb[11].mxu1 }
 0x129   :  { %4721 = vst [vmem:[#allocation2_spill] sm:$0xff] %v2267_v35  ;;  %v680_v37 = vadd.f32 %v679_v31, %v2267_v35 }
 0x12d   :  { %v2272_v38 = vpop.f32.mrb[12].mxu0  ;;  %v2274_v39 = vpop.f32.mrb[12].mxu1 }
 0x12e   :  { %v640_v40 = vadd.f32 %v639_v34, %v2272_v38  ;;  %v2277_v41 = vpop.f32.mrb[13].mxu0  ;;  %v2279_v42 = vpop.f32.mrb[13].mxu1 }
 0x12f   :  { %4722 = vst [vmem:[#allocation3_spill] sm:$0xff] %v2277_v41  ;;  %v681_v43 = vadd.f32 %v680_v37, %v2277_v41  ;;  %v2282_v44 = vpop.f32.mrb[14].mxu0  ;;  %v2284_v45 = vpop.f32.mrb[14].mxu1 }
 0x130   :  { %v641_v46 = vadd.f32 %v640_v40, %v2282_v44  ;;  %v2287_v47 = vpop.f32.mrb[15].mxu0  ;;  %v2289_v48 = vpop.f32.mrb[15].mxu1 }
 0x131   :  { %4723 = vst [vmem:[#allocation4_spill] sm:$0xff] %v2287_v47  ;;  %v682_v49 = vadd.f32 %v681_v43, %v2287_v47 }
 0x135   :  { %v2292_v50 = vpop.f32.mrb[16].mxu0  ;;  %v2294_v51 = vpop.f32.mrb[16].mxu1 }
 0x136   :  { %v642_v52 = vadd.f32 %v641_v46, %v2292_v50  ;;  %v2297_v53 = vpop.f32.mrb[17].mxu0  ;;  %v2299_v54 = vpop.f32.mrb[17].mxu1 }
 0x137   :  { %4724 = vst [vmem:[#allocation5_spill] sm:$0xff] %v2297_v53  ;;  %v683_v55 = vadd.f32 %v682_v49, %v2297_v53  ;;  %v2302_v56 = vpop.f32.mrb[18].mxu0  ;;  %v2304_v57 = vpop.f32.mrb[18].mxu1 }
 0x138   :  { %v643_v58 = vadd.f32 %v642_v52, %v2302_v56  ;;  %v2307_v59 = vpop.f32.mrb[19].mxu0  ;;  %v2309_v60 = vpop.f32.mrb[19].mxu1 }
 0x139   :  { %4725 = vst [vmem:[#allocation6_spill] sm:$0xff] %v2307_v59  ;;  %4726 = vst [vmem:[#allocation7_spill] sm:$0xff] %v2309_v60  ;;  %v684_v61 = vadd.f32 %v683_v55, %v2307_v59 }
 0x13d   :  { %v2312_v62 = vpop.f32.mrb[20].mxu0  ;;  %v2314_v63 = vpop.f32.mrb[20].mxu1 }
 0x13e   :  { %4727 = vst [vmem:[#allocation8_spill] sm:$0xff] %v2312_v62  ;;  %v644_v0 = vadd.f32 %v643_v58, %v2312_v62  ;;  %v2317_v1 = vpop.f32.mrb[21].mxu0  ;;  %v2319_v2 = vpop.f32.mrb[21].mxu1 }
 0x13f   :  { %4728 = vst [vmem:[#allocation9_spill] sm:$0xff] %v2317_v1  ;;  %4729 = vst [vmem:[#allocation10_spill] sm:$0xff] %v2319_v2  ;;  %v685_v3 = vadd.f32 %v684_v61, %v2317_v1  ;;  %v2322_v10 = vpop.f32.mrb[22].mxu0  ;;  %v2324_v13 = vpop.f32.mrb[22].mxu1 }
 0x140   :  { %4730 = vst [vmem:[#allocation11_spill] sm:$0xff] %v2322_v10  ;;  %v645_v16 = vadd.f32 %v644_v0, %v2322_v10  ;;  %v2327_v19 = vpop.f32.mrb[23].mxu0  ;;  %v2329_v22 = vpop.f32.mrb[23].mxu1 }
 0x141   :  { %4731 = vst [vmem:[#allocation12_spill] sm:$0xff] %v2327_v19  ;;  %4732 = vst [vmem:[#allocation13_spill] sm:$0xff] %v2329_v22  ;;  %v686_v25 = vadd.f32 %v685_v3, %v2327_v19 }
 0x145   :  { %v2332_v28 = vpop.f32.mrb[24].mxu0  ;;  %v2334_v31 = vpop.f32.mrb[24].mxu1 }
 0x146   :  { %4733 = vst [vmem:[#allocation14_spill] sm:$0xff] %v2332_v28  ;;  %v646_v34 = vadd.f32 %v645_v16, %v2332_v28  ;;  %v2337_v37 = vpop.f32.mrb[25].mxu0  ;;  %v2339_v40 = vpop.f32.mrb[25].mxu1 }
 0x147   :  { %4734 = vst [vmem:[#allocation15_spill] sm:$0xff] %v2337_v37  ;;  %4735 = vst [vmem:[#allocation16_spill] sm:$0xff] %v2339_v40  ;;  %v687_v43 = vadd.f32 %v686_v25, %v2337_v37  ;;  %v2342_v46 = vpop.f32.mrb[26].mxu0  ;;  %v2344_v49 = vpop.f32.mrb[26].mxu1 }
 0x148   :  { %4736 = vst [vmem:[#allocation17_spill] sm:$0xff] %v2342_v46  ;;  %4737 = vst [vmem:[#allocation18_spill] sm:$0xff] %v2344_v49  ;;  %v647_v52 = vadd.f32 %v646_v34, %v2342_v46  ;;  %v2347_v55 = vpop.f32.mrb[27].mxu0  ;;  %v2349_v58 = vpop.f32.mrb[27].mxu1 }
 0x149   :  { %4738 = vst [vmem:[#allocation19_spill] sm:$0xff] %v2347_v55  ;;  %4739 = vst [vmem:[#allocation20_spill] sm:$0xff] %v2349_v58  ;;  %v688_v61 = vadd.f32 %v687_v43, %v2347_v55 }
 0x14d   :  { %v2352_v0 = vpop.f32.mrb[28].mxu0  ;;  %v2354_v3 = vpop.f32.mrb[28].mxu1 }
 0x14e   :  { %4740 = vst [vmem:[#allocation21_spill] sm:$0xff] %v2352_v0  ;;  %4741 = vst [vmem:[#allocation22_spill] sm:$0xff] %v2354_v3  ;;  %v648_v16 = vadd.f32 %v647_v52, %v2352_v0  ;;  %v2357_v19 = vpop.f32.mrb[29].mxu0  ;;  %v2359_v25 = vpop.f32.mrb[29].mxu1 }
 0x14f   :  { %4742 = vst [vmem:[#allocation23_spill] sm:$0xff] %v2357_v19  ;;  %4743 = vst [vmem:[#allocation24_spill] sm:$0xff] %v2359_v25  ;;  %v689_v37 = vadd.f32 %v688_v61, %v2357_v19  ;;  %v2362_v1 = vpop.f32.mrb[30].mxu0  ;;  %v2364_v34 = vpop.f32.mrb[30].mxu1 }
 0x150   :  { %4744 = vst [vmem:[#allocation25_spill] sm:$0xff] %v2362_v1  ;;  %v649_v59 = vadd.f32 %v648_v16, %v2362_v1  ;;  %v2367_v46 = vpop.f32.mrb[31].mxu0  ;;  %v2369_v43 = vpop.f32.mrb[31].mxu1 }
 0x151   :  { %4745 = vst [vmem:[#allocation26_spill] sm:$0xff] %v2367_v46  ;;  %v690_v55 = vadd.f32 %v689_v37, %v2367_v46 }
 0x155   :  { %v2372_v53 = vpop.f32.mrb[32].mxu0  ;;  %v2374_v52 = vpop.f32.mrb[32].mxu1 }
 0x156   :  { %4746 = vst [vmem:[#allocation27_spill] sm:$0xff] %v2372_v53  ;;  %v650_v0 = vadd.f32 %v649_v59, %v2372_v53  ;;  %v2377_v28 = vpop.f32.mrb[33].mxu0  ;;  %v2379_v61 = vpop.f32.mrb[33].mxu1 }
 0x157   :  { %4747 = vst [vmem:[#allocation28_spill] sm:$0xff] %v2377_v28  ;;  %v691_v19 = vadd.f32 %v690_v55, %v2377_v28  ;;  %v2382_v47 = vpop.f32.mrb[34].mxu0  ;;  %v2384_v16 = vpop.f32.mrb[34].mxu1 }
 0x158   :  { %4748 = vst [vmem:[#allocation29_spill] sm:$0xff] %v2382_v47  ;;  %v651_v1 = vadd.f32 %v650_v0, %v2382_v47  ;;  %v2387_v10 = vpop.f32.mrb[35].mxu0  ;;  %v2389_v37 = vpop.f32.mrb[35].mxu1 }
 0x159   :  { %v692_v46 = vadd.f32 %v691_v19, %v2387_v10 }
 0x15a   :  { %v652_v59 = vadd.f32 %v651_v1, %v2214_v5 }
 0x15b   :  { %v693_v53 = vadd.f32 %v692_v46, %v2218_v7 }
 0x15c   :  { %v653_v41 = vadd.f32 %v652_v59, %v2222_v9 }
 0x15d   :  { %v694_v55 = vadd.f32 %v693_v53, %v2228_v12 }
 0x15e   :  { %v654_v28 = vadd.f32 %v653_v41, %v2234_v15 }
 0x15f   :  { %v695_v62 = vadd.f32 %v694_v55, %v2239_v18 }
 0x160   :  { %v655_v0 = vadd.f32 %v654_v28, %v2244_v21 }
 0x161   :  { %v696_v47 = vadd.f32 %v695_v62, %v2249_v24 }
 0x162   :  { %v656_v35 = vadd.f32 %v655_v0, %v2254_v27 }
 0x163   :  { %v697_v19 = vadd.f32 %v696_v47, %v2259_v30 }
 0x164   :  { %v657_v1 = vadd.f32 %v656_v35, %v2264_v33 }
 0x165   :  { %v698_v46 = vadd.f32 %v697_v19, %v2269_v36 }
 0x166   :  { %v658_v59 = vadd.f32 %v657_v1, %v2274_v39 }
 0x167   :  { %v699_v53 = vadd.f32 %v698_v46, %v2279_v42 }
 0x168   :  { %v659_v41 = vadd.f32 %v658_v59, %v2284_v45 }
 0x169   :  { %v700_v55 = vadd.f32 %v699_v53, %v2289_v48 }
 0x16a   :  { %v660_v28 = vadd.f32 %v659_v41, %v2294_v51 }
 0x16b   :  { %v701_v62 = vadd.f32 %v700_v55, %v2299_v54 }
 0x16c   :  { %v661_v0 = vadd.f32 %v660_v28, %v2304_v57 }
 0x16d   :  { %v702_v47 = vadd.f32 %v701_v62, %v2309_v60 }
 0x16e   :  { %v662_v35 = vadd.f32 %v661_v0, %v2314_v63 }
 0x16f   :  { %v703_v19 = vadd.f32 %v702_v47, %v2319_v2 }
 0x170   :  { %v663_v1 = vadd.f32 %v662_v35, %v2324_v13 }
 0x171   :  { %v704_v46 = vadd.f32 %v703_v19, %v2329_v22 }
 0x172   :  { %v664_v59 = vadd.f32 %v663_v1, %v2334_v31 }
 0x173   :  { %v705_v53 = vadd.f32 %v704_v46, %v2339_v40 }
 0x174   :  { %v665_v41 = vadd.f32 %v664_v59, %v2344_v49 }
 0x175   :  { %v706_v55 = vadd.f32 %v705_v53, %v2349_v58 }
 0x176   :  { %v666_v28 = vadd.f32 %v665_v41, %v2354_v3 }
 0x177   :  { %v707_v62 = vadd.f32 %v706_v55, %v2359_v25 }
 0x178   :  { %v667_v0 = vadd.f32 %v666_v28, %v2364_v34 }
 0x179   :  { %v708_v47 = vadd.f32 %v707_v62, %v2369_v43 }
 0x17a   :  { %v668_v35 = vadd.f32 %v667_v0, %v2374_v52  ;;  %v721_v0 = vlaneseq }
 0x17b   :  { %v709_v19 = vadd.f32 %v708_v47, %v2379_v61 }
 0x17c   :  { %v669_v1 = vadd.f32 %v668_v35, %v2384_v16  ;;  %v2430_v35 = vand.u32 127, %v721_v0 }
 0x17d   :  { %v710_v46 = vadd.f32 %v709_v19, %v2389_v37 }
 0x17e   :  { %v670_v40 = vrot.slane %v669_v1, 4  ;;  %vm723_vm0 = vcmp.lt.s32.totalorder %v2430_v35, 64  ;;  %v1066_v35 = vld [vmem:[%s4627_s2] ss:$2 sm:$0x3] }
 0x17f   :  { %v711_v59 = vrot.slane %v710_v46, 4 }
 0x180   :  { %v671_v22 = vadd.f32 %v670_v40, %v669_v1 }
 0x181   :  { %v712_v53 = vadd.f32 %v711_v59, %v710_v46 }
 0x182   :  { %v672_v58 = vrot.slane %v671_v22, 2 }
 0x183   :  { %v713_v41 = vrot.slane %v712_v53, 2 }
 0x184   :  { %v673_v2 = vadd.f32 %v672_v58, %v671_v22 }
 0x185   :  { %v714_v55 = vadd.f32 %v713_v41, %v712_v53 }
 0x186   :  { %v674_v25 = vrot.slane %v673_v2, 1 }
 0x187   :  { %v715_v3 = vrot.slane %v714_v55, 1 }
 0x188   :  { %v675_v28 = vadd.f32 %v674_v25, %v673_v2 }
 0x189   :  { %v716_v62 = vadd.f32 %v715_v3, %v714_v55  ;;  %v2437_v3 = vshrl.u32 %v721_v0, 7 }
 0x18a   :  { %717 = vrot.lane.b32.xlu0 %v675_v28, %s1987_s0 }
 0x18b   :  { %v2440_v53 = vsub.s32 0, %v2437_v3 }
 0x18e   :  { %719 = vrot.lane.b32.xlu0 %v716_v62, %s1987_s0 }
 0x1fc   :  { %v718_v47 = vpop.permute.xlu0 %717 }
 0x200   :  { %v720_v40 = vpop.permute.xlu0 %719 }
 0x201   :  { %v724_v22 = vsel %vm723_vm0, %v718_v47, %v720_v40  ;;  %v725_v2 = vsel %vm723_vm0, %v720_v40, %v718_v47 }
 0x202   :  { %v726_v58 = vadd.f32 %v725_v2, %v675_v28  ;;  %v727_v25 = vadd.f32 %v724_v22, %v716_v62 }
 0x204   :  { %v728_v19 = vadd.f32 %v726_v58, %v716_v62  ;;  %v729_v1 = vadd.f32 %v727_v25, %v675_v28 }
 0x206   :  { %v730_v46 = vadd.f32 %v728_v19, %v724_v22  ;;  %v731_v59 = vadd.f32 %v729_v1, %v725_v2 }
 0x208   :  { %v732_v41 = vmul.f32 0.00086805556, %v730_v46  ;;  %v733_v55 = vmul.f32 0.00086805556, %v731_v59 }
 0x20a   :  { %v2443_v60 = vrot.slane %v732_v41, %v2440_v53  ;;  %v2446_v49 = vrot.slane %v733_v55, %v2440_v53 }
 0x20c   :  { %v2450_v47 = vsub.f32 %v2364_v34, %v2443_v60  ;;  %v2454_v28 = vsub.f32 %v2369_v43, %v2446_v49  ;;  %v2458_v62 = vsub.f32 %v2374_v52, %v2443_v60  ;;  %v2462_v0 = vsub.f32 %v2379_v61, %v2446_v49 }
 0x20d   :  { %v2466_v40 = vsub.f32 %v2384_v16, %v2443_v60  ;;  %v2470_v34 = vsub.f32 %v2389_v37, %v2446_v49  ;;  %v2474_v43 = vsub.f32 %v2212_v4, %v2443_v60  ;;  %v2478_v52 = vsub.f32 %v2220_v8, %v2443_v60 }
 0x20e   :  { %4749 = vst [vmem:[#allocation30_spill] sm:$0xff] %v2450_v47  ;;  %4750 = vst [vmem:[#allocation31_spill] sm:$0xff] %v2458_v62  ;;  %v2482_v61 = vsub.f32 %v2232_v14, %v2443_v60  ;;  %v2490_v37 = vsub.f32 %v2242_v20, %v2443_v60  ;;  %v2494_v4 = vsub.f32 %v2252_v26, %v2443_v60 }
 0x20f   :  { %4751 = vst [vmem:[#allocation32_spill] sm:$0xff] %v2466_v40  ;;  %v814_v16 = vmul.f32 %v2474_v43, %v2474_v43  ;;  %v816_v22 = vmul.f32 %v2478_v52, %v2478_v52  ;;  %v2500_v14 = vsub.f32 %v2216_v6, %v2446_v49  ;;  %v2504_v58 = vsub.f32 %v2226_v11, %v2446_v49 }
 0x210   :  { %v818_v8 = vmul.f32 %v2482_v61, %v2482_v61  ;;  %v2508_v20 = vsub.f32 %v2262_v32, %v2443_v60  ;;  %v820_v26 = vmul.f32 %v2490_v37, %v2490_v37  ;;  %v2514_v19 = vsub.f32 %v2272_v38, %v2443_v60 }
 0x211   :  { %v886_v2 = vadd.f32 %v816_v22, %v814_v16  ;;  %v822_v6 = vmul.f32 %v2494_v4, %v2494_v4  ;;  %v2520_v11 = vsub.f32 %v2237_v17, %v2446_v49  ;;  %v2524_v32 = vsub.f32 %v2282_v44, %v2443_v60 }
 0x212   :  { %4752 = vst [vmem:[#allocation33_spill] sm:$0xff] %v2508_v20  ;;  %4753 = vst [vmem:[#allocation34_spill] sm:$0xff] %v2514_v19  ;;  %v824_v46 = vmul.f32 %v2508_v20, %v2508_v20  ;;  %v815_v38 = vmul.f32 %v2500_v14, %v2500_v14  ;;  %v817_v41 = vmul.f32 %v2504_v58, %v2504_v58 }
 0x213   :  { %v887_v25 = vadd.f32 %v886_v2, %v818_v8  ;;  %4754 = vst [vmem:[#allocation35_spill] sm:$0xff] %v2524_v32  ;;  %v2534_v55 = vsub.f32 %v2247_v23, %v2446_v49  ;;  %v2538_v17 = vsub.f32 %v2292_v50, %v2443_v60  ;;  %v826_v44 = vmul.f32 %v2514_v19, %v2514_v19 }
 0x214   :  { %v2544_v22 = vsub.f32 %v2257_v29, %v2446_v49  ;;  %v2548_v8 = vsub.f32 %v2302_v56, %v2443_v60  ;;  %v828_v23 = vmul.f32 %v2524_v32, %v2524_v32  ;;  %v819_v50 = vmul.f32 %v2520_v11, %v2520_v11 }
 0x215   :  { %v888_v1 = vadd.f32 %v887_v25, %v820_v26  ;;  %4755 = vst [vmem:[#allocation36_spill] sm:$0xff] %v2538_v17  ;;  %v927_v26 = vadd.f32 %v817_v41, %v815_v38  ;;  %v4757_v25 = vld [vmem:[#allocation2_spill] sm:$0xff]  ;;  %v830_v56 = vmul.f32 %v2538_v17, %v2538_v17  ;;  %v4763_v38 = vld [vmem:[#allocation11_spill] sm:$0xff] }
 0x216   :  { %4756 = vst [vmem:[#allocation37_spill] sm:$0xff] %v2548_v8  ;;  %v2572_v41 = vsub.f32 %v4763_v38, %v2443_v60  ;;  %v823_v17 = vmul.f32 %v2544_v22, %v2544_v22 }
 0x217   :  { %v889_v59 = vadd.f32 %v888_v1, %v822_v6  ;;  %v2556_v6 = vsub.f32 %v4757_v25, %v2446_v49  ;;  %v4759_v1 = vld [vmem:[#allocation8_spill] sm:$0xff]  ;;  %v832_v25 = vmul.f32 %v2548_v8, %v2548_v8 }
 0x218   :  { %v2560_v29 = vsub.f32 %v4759_v1, %v2443_v60  ;;  %4764 = vst [vmem:[#allocation11_spill] sm:$0xff] %v2572_v41 }
 0x219   :  { %v890_v16 = vadd.f32 %v889_v59, %v824_v46  ;;  %4758 = vst [vmem:[#allocation2_spill] sm:$0xff] %v2556_v6  ;;  %v821_v59 = vmul.f32 %v2534_v55, %v2534_v55  ;;  %v825_v8 = vmul.f32 %v2556_v6, %v2556_v6 }
 0x21a   :  { %4760 = vst [vmem:[#allocation8_spill] sm:$0xff] %v2560_v29 }
 0x21b   :  { %v891_v2 = vadd.f32 %v890_v16, %v826_v44  ;;  %v928_v44 = vadd.f32 %v927_v26, %v819_v50  ;;  %v4761_v16 = vld [vmem:[#allocation3_spill] sm:$0xff]  ;;  %v4767_v50 = vld [vmem:[#allocation14_spill] sm:$0xff] }
 0x21c   :  { %v2568_v32 = vsub.f32 %v4761_v16, %v2446_v49  ;;  %v2584_v26 = vsub.f32 %v4767_v50, %v2443_v60  ;;  %v834_v16 = vmul.f32 %v2560_v29, %v2560_v29 }
 0x21d   :  { %v892_v46 = vadd.f32 %v891_v2, %v828_v23  ;;  %v929_v23 = vadd.f32 %v928_v44, %v821_v59  ;;  %v4765_v2 = vld [vmem:[#allocation4_spill] sm:$0xff]  ;;  %v4771_v59 = vld [vmem:[#allocation17_spill] sm:$0xff] }
 0x21e   :  { %4762 = vst [vmem:[#allocation3_spill] sm:$0xff] %v2568_v32  ;;  %v2580_v19 = vsub.f32 %v4765_v2, %v2446_v49  ;;  %4768 = vst [vmem:[#allocation14_spill] sm:$0xff] %v2584_v26  ;;  %v2596_v44 = vsub.f32 %v4771_v59, %v2443_v60  ;;  %v836_v2 = vmul.f32 %v2572_v41, %v2572_v41 }
 0x21f   :  { %v893_v1 = vadd.f32 %v892_v46, %v830_v56  ;;  %v930_v56 = vadd.f32 %v929_v23, %v823_v17  ;;  %v4769_v46 = vld [vmem:[#allocation5_spill] sm:$0xff]  ;;  %v827_v29 = vmul.f32 %v2568_v32, %v2568_v32 }
 0x220   :  { %4766 = vst [vmem:[#allocation4_spill] sm:$0xff] %v2580_v19  ;;  %v2592_v20 = vsub.f32 %v4769_v46, %v2446_v49  ;;  %4772 = vst [vmem:[#allocation17_spill] sm:$0xff] %v2596_v44  ;;  %v4775_v17 = vld [vmem:[#allocation21_spill] sm:$0xff]  ;;  %v838_v46 = vmul.f32 %v2584_v26, %v2584_v26  ;;  %v829_v41 = vmul.f32 %v2580_v19, %v2580_v19 }
 0x221   :  { %v894_v38 = vadd.f32 %v893_v1, %v832_v25  ;;  %v931_v25 = vadd.f32 %v930_v56, %v825_v8  ;;  %v4773_v1 = vld [vmem:[#allocation6_spill] sm:$0xff]  ;;  %v2608_v23 = vsub.f32 %v4775_v17, %v2443_v60  ;;  %v4778_v8 = vld [vmem:[#allocation25_spill] sm:$0xff] }
 0x222   :  { %4770 = vst [vmem:[#allocation5_spill] sm:$0xff] %v2592_v20  ;;  %v2604_v6 = vsub.f32 %v4773_v1, %v2446_v49  ;;  %v2620_v56 = vsub.f32 %v4778_v8, %v2443_v60  ;;  %v840_v1 = vmul.f32 %v2596_v44, %v2596_v44  ;;  %v831_v26 = vmul.f32 %v2592_v20, %v2592_v20 }
 0x223   :  { %v895_v50 = vadd.f32 %v894_v38, %v834_v16  ;;  %4776 = vst [vmem:[#allocation21_spill] sm:$0xff] %v2608_v23  ;;  %v932_v16 = vadd.f32 %v931_v25, %v827_v29  ;;  %v4777_v38 = vld [vmem:[#allocation9_spill] sm:$0xff]  ;;  %v4781_v29 = vld [vmem:[#allocation27_spill] sm:$0xff] }
 0x224   :  { %4774 = vst [vmem:[#allocation6_spill] sm:$0xff] %v2604_v6  ;;  %v2616_v32 = vsub.f32 %v4777_v38, %v2446_v49  ;;  %4779 = vst [vmem:[#allocation9_spill] sm:$0xff] %v2620_v56  ;;  %v2632_v25 = vsub.f32 %v4781_v29, %v2443_v60  ;;  %v842_v38 = vmul.f32 %v2608_v23, %v2608_v23 }
 0x225   :  { %v896_v59 = vadd.f32 %v895_v50, %v836_v2  ;;  %v933_v2 = vadd.f32 %v932_v16, %v829_v41  ;;  %v4780_v50 = vld [vmem:[#allocation12_spill] sm:$0xff]  ;;  %v833_v44 = vmul.f32 %v2604_v6, %v2604_v6  ;;  %v4784_v41 = vld [vmem:[#allocation29_spill] sm:$0xff] }
 0x226   :  { %v2628_v19 = vsub.f32 %v4780_v50, %v2446_v49  ;;  %4782 = vst [vmem:[#allocation25_spill] sm:$0xff] %v2632_v25  ;;  %v2644_v16 = vsub.f32 %v4784_v41, %v2443_v60  ;;  %v844_v50 = vmul.f32 %v2620_v56, %v2620_v56  ;;  %v835_v23 = vmul.f32 %v2616_v32, %v2616_v32 }
 0x227   :  { %v897_v17 = vadd.f32 %v896_v59, %v838_v46  ;;  %v934_v46 = vadd.f32 %v933_v2, %v831_v26  ;;  %v4783_v59 = vld [vmem:[#allocation15_spill] sm:$0xff]  ;;  %v2656_v26 = vsub.f32 %v2214_v5, %v2443_v60  ;;  %v846_v2 = vmul.f32 %v2632_v25, %v2632_v25 }
 0x228   :  { %v2640_v20 = vsub.f32 %v4783_v59, %v2446_v49  ;;  %4785 = vst [vmem:[#allocation12_spill] sm:$0xff] %v2644_v16  ;;  %v837_v41 = vmul.f32 %v2628_v19, %v2628_v19  ;;  %v848_v5 = vmul.f32 %v2644_v16, %v2644_v16 }
 0x229   :  { %v898_v8 = vadd.f32 %v897_v17, %v840_v1  ;;  %v935_v1 = vadd.f32 %v934_v46, %v833_v44  ;;  %v4786_v17 = vld [vmem:[#allocation19_spill] sm:$0xff]  ;;  %v2668_v44 = vsub.f32 %v2222_v9, %v2443_v60  ;;  %v850_v9 = vmul.f32 %v2656_v26, %v2656_v26 }
 0x22a   :  { %v2652_v6 = vsub.f32 %v4786_v17, %v2446_v49  ;;  %v839_v17 = vmul.f32 %v2640_v20, %v2640_v20 }
 0x22b   :  { %v899_v29 = vadd.f32 %v898_v8, %v842_v38  ;;  %v936_v38 = vadd.f32 %v935_v1, %v835_v23  ;;  %v4787_v8 = vld [vmem:[#allocation23_spill] sm:$0xff]  ;;  %v2680_v23 = vsub.f32 %v2234_v15, %v2443_v60  ;;  %v852_v15 = vmul.f32 %v2668_v44, %v2668_v44 }
 0x22c   :  { %v2664_v56 = vsub.f32 %v4787_v8, %v2446_v49  ;;  %v841_v8 = vmul.f32 %v2652_v6, %v2652_v6 }
 0x22d   :  { %v900_v59 = vadd.f32 %v899_v29, %v844_v50  ;;  %v937_v50 = vadd.f32 %v936_v38, %v837_v41  ;;  %v4788_v29 = vld [vmem:[#allocation26_spill] sm:$0xff]  ;;  %v2692_v41 = vsub.f32 %v2244_v21, %v2443_v60  ;;  %v854_v21 = vmul.f32 %v2680_v23, %v2680_v23 }
 0x22e   :  { %v2676_v25 = vsub.f32 %v4788_v29, %v2446_v49  ;;  %v843_v29 = vmul.f32 %v2664_v56, %v2664_v56 }
 0x22f   :  { %v901_v46 = vadd.f32 %v900_v59, %v846_v2  ;;  %v938_v2 = vadd.f32 %v937_v50, %v839_v17  ;;  %v4789_v59 = vld [vmem:[#allocation28_spill] sm:$0xff]  ;;  %v2704_v17 = vsub.f32 %v2254_v27, %v2443_v60  ;;  %v856_v27 = vmul.f32 %v2692_v41, %v2692_v41 }
 0x230   :  { %v2688_v16 = vsub.f32 %v4789_v59, %v2446_v49  ;;  %v845_v59 = vmul.f32 %v2676_v25, %v2676_v25 }
 0x231   :  { %v902_v1 = vadd.f32 %v901_v46, %v848_v5  ;;  %v939_v5 = vadd.f32 %v938_v2, %v841_v8  ;;  %v2700_v46 = vsub.f32 %v2387_v10, %v2446_v49  ;;  %v2716_v10 = vsub.f32 %v2264_v33, %v2443_v60 }
 0x232   :  { %v847_v2 = vmul.f32 %v2688_v16, %v2688_v16  ;;  %v858_v33 = vmul.f32 %v2704_v17, %v2704_v17 }
 0x233   :  { %v903_v38 = vadd.f32 %v902_v1, %v850_v9  ;;  %v940_v9 = vadd.f32 %v939_v5, %v843_v29  ;;  %v2712_v1 = vsub.f32 %v2218_v7, %v2446_v49  ;;  %v2728_v7 = vsub.f32 %v2274_v39, %v2443_v60 }
 0x234   :  { %v849_v5 = vmul.f32 %v2700_v46, %v2700_v46  ;;  %v860_v39 = vmul.f32 %v2716_v10, %v2716_v10 }
 0x235   :  { %v904_v50 = vadd.f32 %v903_v38, %v852_v15  ;;  %v941_v15 = vadd.f32 %v940_v9, %v845_v59  ;;  %v2724_v38 = vsub.f32 %v2228_v12, %v2446_v49  ;;  %v2740_v12 = vsub.f32 %v2284_v45, %v2443_v60 }
 0x236   :  { %v851_v9 = vmul.f32 %v2712_v1, %v2712_v1  ;;  %v862_v45 = vmul.f32 %v2728_v7, %v2728_v7 }
 0x237   :  { %v905_v8 = vadd.f32 %v904_v50, %v854_v21  ;;  %v942_v21 = vadd.f32 %v941_v15, %v847_v2  ;;  %v2736_v50 = vsub.f32 %v2239_v18, %v2446_v49  ;;  %v2752_v18 = vsub.f32 %v2294_v51, %v2443_v60 }
 0x238   :  { %v853_v15 = vmul.f32 %v2724_v38, %v2724_v38  ;;  %v864_v51 = vmul.f32 %v2740_v12, %v2740_v12 }
 0x239   :  { %v906_v29 = vadd.f32 %v905_v8, %v856_v27  ;;  %v943_v27 = vadd.f32 %v942_v21, %v849_v5  ;;  %v2748_v8 = vsub.f32 %v2249_v24, %v2446_v49  ;;  %4790 = vst [vmem:[#allocation27_spill] sm:$0xff] %v2752_v18  ;;  %v2764_v24 = vsub.f32 %v2304_v57, %v2443_v60 }
 0x23a   :  { %v855_v21 = vmul.f32 %v2736_v50, %v2736_v50  ;;  %v866_v57 = vmul.f32 %v2752_v18, %v2752_v18 }
 0x23b   :  { %v907_v59 = vadd.f32 %v906_v29, %v858_v33  ;;  %v944_v33 = vadd.f32 %v943_v27, %v851_v9  ;;  %v2760_v29 = vsub.f32 %v2259_v30, %v2446_v49  ;;  %4791 = vst [vmem:[#allocation15_spill] sm:$0xff] %v2764_v24  ;;  %v2776_v30 = vsub.f32 %v2314_v63, %v2443_v60 }
 0x23c   :  { %v857_v27 = vmul.f32 %v2748_v8, %v2748_v8  ;;  %v868_v63 = vmul.f32 %v2764_v24, %v2764_v24 }
 0x23d   :  { %v908_v2 = vadd.f32 %v907_v59, %v860_v39  ;;  %v945_v39 = vadd.f32 %v944_v33, %v853_v15  ;;  %v2772_v59 = vsub.f32 %v2269_v36, %v2446_v49  ;;  %4792 = vst [vmem:[#allocation29_spill] sm:$0xff] %v2776_v30  ;;  %v2788_v36 = vsub.f32 %v2324_v13, %v2443_v60 }
 0x23e   :  { %v859_v33 = vmul.f32 %v2760_v29, %v2760_v29  ;;  %v870_v13 = vmul.f32 %v2776_v30, %v2776_v30 }
 0x23f   :  { %v909_v5 = vadd.f32 %v908_v2, %v862_v45  ;;  %v946_v45 = vadd.f32 %v945_v39, %v855_v21  ;;  %v2784_v2 = vsub.f32 %v2279_v42, %v2446_v49  ;;  %4793 = vst [vmem:[#allocation19_spill] sm:$0xff] %v2788_v36  ;;  %v2800_v42 = vsub.f32 %v2334_v31, %v2443_v60 }
 0x240   :  { %v861_v39 = vmul.f32 %v2772_v59, %v2772_v59  ;;  %v872_v31 = vmul.f32 %v2788_v36, %v2788_v36 }
 0x241   :  { %v910_v9 = vadd.f32 %v909_v5, %v864_v51  ;;  %v947_v51 = vadd.f32 %v946_v45, %v857_v27  ;;  %v2796_v5 = vsub.f32 %v2289_v48, %v2446_v49  ;;  %4794 = vst [vmem:[#allocation23_spill] sm:$0xff] %v2800_v42  ;;  %v4795_v27 = vld [vmem:[#allocation18_spill] sm:$0xff]  ;;  %v863_v30 = vmul.f32 %v2784_v2, %v2784_v2 }
 0x242   :  { %v2812_v48 = vsub.f32 %v4795_v27, %v2443_v60 }
 0x243   :  { %v911_v15 = vadd.f32 %v910_v9, %v866_v57  ;;  %v948_v57 = vadd.f32 %v947_v51, %v859_v33  ;;  %v2808_v9 = vsub.f32 %v2299_v54, %v2446_v49  ;;  %v4798_v33 = vld [vmem:[#allocation22_spill] sm:$0xff]  ;;  %v874_v51 = vmul.f32 %v2800_v42, %v2800_v42 }
 0x244   :  { %4796 = vst [vmem:[#allocation26_spill] sm:$0xff] %v2812_v48  ;;  %v2824_v54 = vsub.f32 %v4798_v33, %v2443_v60  ;;  %v865_v36 = vmul.f32 %v2796_v5, %v2796_v5  ;;  %v4801_v33 = vld [vmem:[#allocation13_spill] sm:$0xff] }
 0x245   :  { %v912_v21 = vadd.f32 %v911_v15, %v868_v63  ;;  %v949_v63 = vadd.f32 %v948_v57, %v861_v39  ;;  %v4797_v15 = vld [vmem:[#allocation7_spill] sm:$0xff]  ;;  %v876_v39 = vmul.f32 %v2812_v48, %v2812_v48  ;;  %v867_v60 = vmul.f32 %v2808_v9, %v2808_v9 }
 0x246   :  { %v2820_v24 = vsub.f32 %v4797_v15, %v2446_v49  ;;  %4799 = vst [vmem:[#allocation28_spill] sm:$0xff] %v2824_v54  ;;  %v2840_v42 = vsub.f32 %v4801_v33, %v2446_v49  ;;  %v4803_v33 = vld [vmem:[#allocation20_spill] sm:$0xff] }
 0x247   :  { %v913_v45 = vadd.f32 %v912_v21, %v870_v13  ;;  %v950_v13 = vadd.f32 %v949_v63, %v863_v30  ;;  %v4800_v21 = vld [vmem:[#allocation10_spill] sm:$0xff] }
 0x248   :  { %v2832_v18 = vsub.f32 %v4800_v21, %v2446_v49  ;;  %v4802_v21 = vld [vmem:[#allocation16_spill] sm:$0xff] }
 0x249   :  { %v914_v27 = vadd.f32 %v913_v45, %v872_v31  ;;  %v951_v15 = vadd.f32 %v950_v13, %v865_v36  ;;  %v878_v31 = vmul.f32 %v2824_v54, %v2824_v54  ;;  %v869_v45 = vmul.f32 %v2820_v24, %v2820_v24 }
 0x24a   :  { %v2848_v48 = vsub.f32 %v4802_v21, %v2446_v49  ;;  %v2856_v54 = vsub.f32 %v4803_v33, %v2446_v49  ;;  %v4805_v21 = vld [vmem:[#allocation24_spill] sm:$0xff] }
 0x24b   :  { %v915_v57 = vadd.f32 %v914_v27, %v874_v51  ;;  %v952_v63 = vadd.f32 %v951_v15, %v867_v60  ;;  %v880_v51 = vmul.f32 %v2450_v47, %v2450_v47  ;;  %v871_v27 = vmul.f32 %v2832_v18, %v2832_v18 }
 0x24c   :  { %4804 = vst [vmem:[#allocation18_spill] sm:$0xff] %v2856_v54  ;;  %v873_v60 = vmul.f32 %v2840_v42, %v2840_v42  ;;  %v2864_v47 = vsub.f32 %v4805_v21, %v2446_v49  ;;  %v881_v21 = vmul.f32 %v2454_v28, %v2454_v28 }
 0x24d   :  { %v916_v30 = vadd.f32 %v915_v57, %v876_v39  ;;  %v953_v13 = vadd.f32 %v952_v63, %v869_v45  ;;  %v882_v39 = vmul.f32 %v2458_v62, %v2458_v62  ;;  %v875_v45 = vmul.f32 %v2848_v48, %v2848_v48 }
 0x24e   :  { %4806 = vst [vmem:[#allocation7_spill] sm:$0xff] %v2864_v47 }
 0x24f   :  { %v917_v36 = vadd.f32 %v916_v30, %v878_v31  ;;  %v954_v15 = vadd.f32 %v953_v13, %v871_v27  ;;  %v884_v31 = vmul.f32 %v2466_v40, %v2466_v40  ;;  %v879_v27 = vmul.f32 %v2864_v47, %v2864_v47 }
 0x251   :  { %v918_v57 = vadd.f32 %v917_v36, %v880_v51  ;;  %v955_v63 = vadd.f32 %v954_v15, %v873_v60  ;;  %v877_v51 = vmul.f32 %v2856_v54, %v2856_v54 }
 0x253   :  { %v919_v30 = vadd.f32 %v918_v57, %v882_v39  ;;  %v956_v36 = vadd.f32 %v955_v63, %v875_v45  ;;  %v883_v57 = vmul.f32 %v2462_v0, %v2462_v0 }
 0x255   :  { %v920_v33 = vadd.f32 %v919_v30, %v884_v31  ;;  %v957_v13 = vadd.f32 %v956_v36, %v877_v51  ;;  %v885_v31 = vmul.f32 %v2470_v34, %v2470_v34 }
 0x257   :  { %v921_v62 = vrot.slane %v920_v33, 4  ;;  %v958_v40 = vadd.f32 %v957_v13, %v879_v27 }
 0x259   :  { %v922_v49 = vadd.f32 %v921_v62, %v920_v33  ;;  %v959_v60 = vadd.f32 %v958_v40, %v881_v21 }
 0x25b   :  { %v923_v39 = vrot.slane %v922_v49, 2  ;;  %v960_v30 = vadd.f32 %v959_v60, %v883_v57 }
 0x25d   :  { %v924_v15 = vadd.f32 %v923_v39, %v922_v49  ;;  %v961_v63 = vadd.f32 %v960_v30, %v885_v31 }
 0x25f   :  { %v925_v45 = vrot.slane %v924_v15, 1  ;;  %v962_v47 = vrot.slane %v961_v63, 4 }
 0x261   :  { %v926_v54 = vadd.f32 %v925_v45, %v924_v15  ;;  %v963_v62 = vadd.f32 %v962_v47, %v961_v63 }
 0x263   :  { %968 = vrot.lane.b32.xlu1 %v926_v54, %s1987_s0  ;;  %v964_v33 = vrot.slane %v963_v62, 2 }
 0x265   :  { %v965_v51 = vadd.f32 %v964_v33, %v963_v62 }
 0x267   :  { %v966_v36 = vrot.slane %v965_v51, 1 }
 0x269   :  { %v967_v27 = vadd.f32 %v966_v36, %v965_v51  ;;  %v1074_v36 = vsub.s32 1, %v2437_v3 }
 0x26b   :  { %970 = vrot.lane.b32.xlu1 %v967_v27, %s1987_s0 }
 0x2d5   :  { %v969_v13 = vpop.permute.xlu1 %968 }
 0x2dd   :  { %v971_v40 = vpop.permute.xlu1 %970 }
 0x2de   :  { %v973_v49 = vsel %vm723_vm0, %v971_v40, %v969_v13  ;;  %v972_v21 = vsel %vm723_vm0, %v969_v13, %v971_v40  ;;  %v2900_v40 = vrot.slane %v1066_v35, %v2440_v53 }
 0x2df   :  { %v974_v39 = vadd.f32 %v973_v49, %v926_v54  ;;  %v975_v57 = vadd.f32 %v972_v21, %v967_v27 }
 0x2e1   :  { %v976_v60 = vadd.f32 %v974_v39, %v967_v27  ;;  %v977_v15 = vadd.f32 %v975_v57, %v926_v54  ;;  %v1775_v54 = vld [vmem:[%s4627_s2 + $0x1] ss:$2 sm:$0x3] }
 0x2e2   :  { %v2905_v3 = vrot.slane %v1775_v54, %v2440_v53 }
 0x2e3   :  { %v978_v31 = vadd.f32 %v976_v60, %v972_v21  ;;  %v979_v47 = vadd.f32 %v977_v15, %v973_v49  ;;  %v2902_v49 = vrot.slane %v1066_v35, %v1074_v36  ;;  %v2907_v21 = vrot.slane %v1775_v54, %v1074_v36  ;;  %v4816_v35 = vld [vmem:[#allocation5_spill] sm:$0xff] }
 0x2e4   :  { %4807 = vst [vmem:[#allocation22_spill] sm:$0xff] %v2905_v3  ;;  %v4823_v3 = vld [vmem:[#allocation14_spill] sm:$0xff] }
 0x2e5   :  { %v980_v30 = vmul.f32 0.00086805556, %v978_v31  ;;  %v981_v45 = vmul.f32 0.00086805556, %v979_v47  ;;  %4808 = vst [vmem:[#allocation10_spill] sm:$0xff] %v2907_v21  ;;  %v4809_v31 = vld [vmem:[#allocation33_spill] sm:$0xff] }
 0x2e6   :  { %v4810_v47 = vld [vmem:[#allocation2_spill] sm:$0xff]  ;;  %v4821_v21 = vld [vmem:[#allocation11_spill] sm:$0xff] }
 0x2e7   :  { %v982_v63 = vadd.f32 1e-05, %v980_v30  ;;  %v983_v62 = vadd.f32 1e-05, %v981_v45  ;;  %v4811_v30 = vld [vmem:[#allocation34_spill] sm:$0xff]  ;;  %v4812_v45 = vld [vmem:[#allocation3_spill] sm:$0xff] }
 0x2e9   :  { %1983 = vrsqrt.f32 %v982_v63  ;;  %v4813_v63 = vld [vmem:[#allocation35_spill] sm:$0xff] }
 0x2ea   :  { %1985 = vrsqrt.f32 %v983_v62  ;;  %v4814_v62 = vld [vmem:[#allocation4_spill] sm:$0xff] }
 0x2f3   :  { %v1984_v33 = vpop.eup %1983 }
 0x2f4   :  { %v1986_v51 = vpop.eup %1985  ;;  %v2894_v27 = vrot.slane %v1984_v33, %v2440_v53 }
 0x2f5   :  { %v2897_v13 = vrot.slane %v1986_v51, %v2440_v53  ;;  %v4815_v51 = vld [vmem:[#allocation36_spill] sm:$0xff] }
 0x2f6   :  { %v2911_v39 = vmul.f32 %v2894_v27, %v2474_v43  ;;  %v2915_v57 = vmul.f32 %v2894_v27, %v2478_v52  ;;  %v2919_v60 = vmul.f32 %v2894_v27, %v2482_v61  ;;  %v2935_v52 = vmul.f32 %v2894_v27, %v2490_v37 }
 0x2f7   :  { %v2923_v15 = vmul.f32 %v2897_v13, %v2500_v14  ;;  %v2927_v53 = vmul.f32 %v2897_v13, %v2504_v58  ;;  %v2931_v43 = vmul.f32 %v2897_v13, %v2520_v11  ;;  %v2939_v61 = vmul.f32 %v2897_v13, %v2534_v55 }
 0x2f8   :  { %v2943_v14 = vmul.f32 %v2894_v27, %v2494_v4  ;;  %v2947_v58 = vmul.f32 %v2897_v13, %v2544_v22  ;;  %v2951_v11 = vmul.f32 %v2894_v27, %v4809_v31  ;;  %v2955_v37 = vmul.f32 %v2897_v13, %v4810_v47  ;;  %v4817_v31 = vld [vmem:[#allocation37_spill] sm:$0xff] }
 0x2f9   :  { %v2959_v55 = vmul.f32 %v2894_v27, %v4811_v30  ;;  %v2963_v4 = vmul.f32 %v2897_v13, %v4812_v45  ;;  %v2967_v22 = vmul.f32 %v2894_v27, %v4813_v63  ;;  %v2971_v33 = vmul.f32 %v2897_v13, %v4814_v62  ;;  %v4818_v30 = vld [vmem:[#allocation6_spill] sm:$0xff]  ;;  %v4819_v63 = vld [vmem:[#allocation8_spill] sm:$0xff] }
 0x2fa   :  { %v2975_v36 = vmul.f32 %v2894_v27, %v4815_v51  ;;  %v2979_v54 = vmul.f32 %v2897_v13, %v4816_v35  ;;  %v2983_v47 = vmul.f32 %v2894_v27, %v4817_v31  ;;  %v2987_v45 = vmul.f32 %v2897_v13, %v4818_v30 }
 0x2fb   :  { %v2991_v62 = vmul.f32 %v2894_v27, %v4819_v63  ;;  %v2995_v51 = vmul.f32 %v2897_v13, %v2616_v32  ;;  %v2999_v35 = vmul.f32 %v2894_v27, %v4821_v21  ;;  %v3003_v31 = vmul.f32 %v2897_v13, %v2628_v19 }
 0x2fc   :  { %v3007_v30 = vmul.f32 %v2894_v27, %v4823_v3  ;;  %v3011_v63 = vmul.f32 %v2897_v13, %v2640_v20  ;;  %v3019_v21 = vmul.f32 %v2897_v13, %v2652_v6  ;;  %v3027_v3 = vmul.f32 %v2897_v13, %v2664_v56 }
 0x2fd   :  { %4820 = vst [vmem:[#allocation13_spill] sm:$0xff] %v2991_v62  ;;  %4822 = vst [vmem:[#allocation16_spill] sm:$0xff] %v2999_v35  ;;  %v4825_v62 = vld [vmem:[#allocation17_spill] sm:$0xff] }
 0x2fe   :  { %4824 = vst [vmem:[#allocation20_spill] sm:$0xff] %v3007_v30  ;;  %v3015_v32 = vmul.f32 %v2894_v27, %v4825_v62  ;;  %v4827_v35 = vld [vmem:[#allocation21_spill] sm:$0xff]  ;;  %v3035_v62 = vmul.f32 %v2897_v13, %v2676_v25  ;;  %v3055_v25 = vmul.f32 %v2894_v27, %v2656_v26  ;;  %v3075_v26 = vmul.f32 %v2897_v13, %v2736_v50 }
 0x2ff   :  { %v3023_v19 = vmul.f32 %v2894_v27, %v4827_v35  ;;  %v4829_v30 = vld [vmem:[#allocation9_spill] sm:$0xff]  ;;  %v3043_v35 = vmul.f32 %v2897_v13, %v2688_v16  ;;  %v3063_v16 = vmul.f32 %v2894_v27, %v2668_v44  ;;  %v3083_v44 = vmul.f32 %v2897_v13, %v2748_v8 }
 0x300   :  { %4826 = vst [vmem:[#allocation24_spill] sm:$0xff] %v3015_v32  ;;  %v3031_v20 = vmul.f32 %v2894_v27, %v4829_v30  ;;  %v4830_v32 = vld [vmem:[#allocation25_spill] sm:$0xff]  ;;  %v3051_v30 = vmul.f32 %v2897_v13, %v2700_v46  ;;  %v3071_v46 = vmul.f32 %v2894_v27, %v2680_v23  ;;  %v3091_v23 = vmul.f32 %v2897_v13, %v2760_v29 }
 0x301   :  { %4828 = vst [vmem:[#allocation33_spill] sm:$0xff] %v3023_v19  ;;  %v3039_v6 = vmul.f32 %v2894_v27, %v4830_v32  ;;  %v4831_v19 = vld [vmem:[#allocation12_spill] sm:$0xff]  ;;  %v3059_v32 = vmul.f32 %v2897_v13, %v2712_v1  ;;  %v3079_v1 = vmul.f32 %v2894_v27, %v2692_v41  ;;  %v3095_v50 = vmul.f32 %v2894_v27, %v2716_v10 }
 0x302   :  { %v3047_v56 = vmul.f32 %v2894_v27, %v4831_v19  ;;  %v3067_v19 = vmul.f32 %v2897_v13, %v2724_v38  ;;  %v3087_v38 = vmul.f32 %v2894_v27, %v2704_v17  ;;  %v3099_v41 = vmul.f32 %v2897_v13, %v2772_v59 }
 0x303   :  { %4832 = vst [vmem:[#allocation2_spill] sm:$0xff] %v3095_v50  ;;  %v3103_v8 = vmul.f32 %v2894_v27, %v2728_v7  ;;  %v3107_v17 = vmul.f32 %v2897_v13, %v2784_v2  ;;  %v3111_v29 = vmul.f32 %v2894_v27, %v2740_v12  ;;  %v3115_v10 = vmul.f32 %v2897_v13, %v2796_v5  ;;  %v4835_v50 = vld [vmem:[#allocation27_spill] sm:$0xff] }
 0x304   :  { %v3119_v59 = vmul.f32 %v2894_v27, %v4835_v50  ;;  %v3123_v7 = vmul.f32 %v2897_v13, %v2808_v9  ;;  %v3131_v12 = vmul.f32 %v2897_v13, %v2820_v24  ;;  %v3139_v50 = vmul.f32 %v2897_v13, %v2832_v18 }
 0x305   :  { %4833 = vst [vmem:[#allocation34_spill] sm:$0xff] %v3103_v8  ;;  %4834 = vst [vmem:[#allocation3_spill] sm:$0xff] %v3111_v29  ;;  %v4837_v8 = vld [vmem:[#allocation15_spill] sm:$0xff]  ;;  %v4839_v29 = vld [vmem:[#allocation29_spill] sm:$0xff] }
 0x306   :  { %4836 = vst [vmem:[#allocation35_spill] sm:$0xff] %v3119_v59  ;;  %v3127_v2 = vmul.f32 %v2894_v27, %v4837_v8  ;;  %v3135_v5 = vmul.f32 %v2894_v27, %v4839_v29  ;;  %4841 = vst [vmem:[#allocation5_spill] sm:$0xff] %v3139_v50  ;;  %v4842_v59 = vld [vmem:[#allocation19_spill] sm:$0xff]  ;;  %v3147_v8 = vmul.f32 %v2897_v13, %v2840_v42  ;;  %v4849_v50 = vld [vmem:[#allocation18_spill] sm:$0xff] }
 0x307   :  { %v3143_v9 = vmul.f32 %v2894_v27, %v4842_v59  ;;  %v3155_v29 = vmul.f32 %v2897_v13, %v2848_v48  ;;  %v3163_v59 = vmul.f32 %v2897_v13, %v4849_v50 }
 0x308   :  { %4838 = vst [vmem:[#allocation4_spill] sm:$0xff] %v3127_v2  ;;  %4840 = vst [vmem:[#allocation36_spill] sm:$0xff] %v3135_v5  ;;  %v4845_v2 = vld [vmem:[#allocation23_spill] sm:$0xff]  ;;  %v4847_v5 = vld [vmem:[#allocation26_spill] sm:$0xff] }
 0x309   :  { %4843 = vst [vmem:[#allocation37_spill] sm:$0xff] %v3143_v9  ;;  %4844 = vst [vmem:[#allocation6_spill] sm:$0xff] %v3147_v8  ;;  %v3151_v24 = vmul.f32 %v2894_v27, %v4845_v2  ;;  %v3159_v18 = vmul.f32 %v2894_v27, %v4847_v5  ;;  %v4850_v9 = vld [vmem:[#allocation28_spill] sm:$0xff]  ;;  %v4852_v8 = vld [vmem:[#allocation7_spill] sm:$0xff]  ;;  %v3179_v5 = vmul.f32 %v2897_v13, %v2454_v28 }
 0x30a   :  { %v3167_v42 = vmul.f32 %v2894_v27, %v4850_v9  ;;  %v3171_v2 = vmul.f32 %v2897_v13, %v4852_v8  ;;  %v3187_v9 = vmul.f32 %v2897_v13, %v2462_v0  ;;  %v3199_v28 = vmul.f32 %v2900_v40, %v2911_v39 }
 0x30b   :  { %4846 = vst [vmem:[#allocation8_spill] sm:$0xff] %v3151_v24  ;;  %4848 = vst [vmem:[#allocation11_spill] sm:$0xff] %v3159_v18  ;;  %v4853_v24 = vld [vmem:[#allocation30_spill] sm:$0xff]  ;;  %v4854_v18 = vld [vmem:[#allocation31_spill] sm:$0xff]  ;;  %v3207_v0 = vmul.f32 %v2900_v40, %v2915_v57  ;;  %v3223_v39 = vmul.f32 %v2900_v40, %v2935_v52  ;;  %v3227_v57 = vmul.f32 %v2902_v49, %v2939_v61 }
 0x30c   :  { %4851 = vst [vmem:[#allocation14_spill] sm:$0xff] %v3167_v42  ;;  %v3175_v48 = vmul.f32 %v2894_v27, %v4853_v24  ;;  %v3183_v50 = vmul.f32 %v2894_v27, %v4854_v18  ;;  %v4855_v42 = vld [vmem:[#allocation32_spill] sm:$0xff]  ;;  %v3195_v24 = vmul.f32 %v2897_v13, %v2470_v34  ;;  %v3203_v18 = vmul.f32 %v2902_v49, %v2923_v15 }
 0x30d   :  { %v3191_v8 = vmul.f32 %v2894_v27, %v4855_v42  ;;  %v3211_v27 = vmul.f32 %v2902_v49, %v2927_v53  ;;  %v3215_v34 = vmul.f32 %v2900_v40, %v2919_v60  ;;  %v3219_v13 = vmul.f32 %v2902_v49, %v2931_v43  ;;  %v4859_v42 = vld [vmem:[#allocation16_spill] sm:$0xff] }
 0x30e   :  { %v3231_v15 = vmul.f32 %v2900_v40, %v2943_v14  ;;  %v3235_v60 = vmul.f32 %v2902_v49, %v2947_v58  ;;  %v3239_v53 = vmul.f32 %v2900_v40, %v2951_v11  ;;  %v3243_v43 = vmul.f32 %v2902_v49, %v2955_v37 }
 0x30f   :  { %v3247_v52 = vmul.f32 %v2900_v40, %v2959_v55  ;;  %v3251_v61 = vmul.f32 %v2902_v49, %v2963_v4  ;;  %v3255_v14 = vmul.f32 %v2900_v40, %v2967_v22  ;;  %v3259_v58 = vmul.f32 %v2902_v49, %v2971_v33  ;;  %v4857_v22 = vld [vmem:[#allocation13_spill] sm:$0xff] }
 0x310   :  { %v3263_v11 = vmul.f32 %v2900_v40, %v2975_v36  ;;  %v3267_v37 = vmul.f32 %v2902_v49, %v2979_v54  ;;  %v3271_v55 = vmul.f32 %v2900_v40, %v2983_v47  ;;  %v3275_v4 = vmul.f32 %v2902_v49, %v2987_v45 }
 0x311   :  { %v3279_v33 = vmul.f32 %v2900_v40, %v4857_v22  ;;  %v3283_v36 = vmul.f32 %v2902_v49, %v2995_v51  ;;  %v3287_v54 = vmul.f32 %v2900_v40, %v4859_v42  ;;  %v3291_v47 = vmul.f32 %v2902_v49, %v3003_v31 }
 0x312   :  { %4856 = vst [vmem:[#allocation17_spill] sm:$0xff] %v3271_v55  ;;  %v4861_v55 = vld [vmem:[#allocation20_spill] sm:$0xff]  ;;  %v3299_v22 = vmul.f32 %v2902_v49, %v3011_v63  ;;  %v3307_v42 = vmul.f32 %v2902_v49, %v3019_v21  ;;  %v3319_v63 = vmul.f32 %v2900_v40, %v3031_v20  ;;  %v3327_v21 = vmul.f32 %v2900_v40, %v3039_v6 }
 0x313   :  { %4858 = vst [vmem:[#allocation21_spill] sm:$0xff] %v3279_v33  ;;  %4860 = vst [vmem:[#allocation9_spill] sm:$0xff] %v3287_v54  ;;  %v3295_v45 = vmul.f32 %v2900_v40, %v4861_v55  ;;  %v4862_v33 = vld [vmem:[#allocation24_spill] sm:$0xff]  ;;  %v4863_v54 = vld [vmem:[#allocation33_spill] sm:$0xff]  ;;  %v3315_v55 = vmul.f32 %v2902_v49, %v3027_v3  ;;  %v3335_v3 = vmul.f32 %v2900_v40, %v3047_v56 }
 0x314   :  { %v3303_v51 = vmul.f32 %v2900_v40, %v4862_v33  ;;  %v3311_v31 = vmul.f32 %v2900_v40, %v4863_v54  ;;  %v3323_v33 = vmul.f32 %v2902_v49, %v3035_v62  ;;  %v3331_v54 = vmul.f32 %v2902_v49, %v3043_v35 }
 0x315   :  { %v3339_v20 = vmul.f32 %v2902_v49, %v3051_v30  ;;  %v3343_v62 = vmul.f32 %v2900_v40, %v3055_v25  ;;  %v3347_v6 = vmul.f32 %v2902_v49, %v3059_v32  ;;  %v3351_v35 = vmul.f32 %v2900_v40, %v3063_v16 }
 0x316   :  { %v3355_v56 = vmul.f32 %v2902_v49, %v3067_v19  ;;  %v3359_v30 = vmul.f32 %v2900_v40, %v3071_v46  ;;  %v3363_v25 = vmul.f32 %v2902_v49, %v3075_v26  ;;  %v3367_v32 = vmul.f32 %v2900_v40, %v3079_v1 }
 0x317   :  { %v3371_v16 = vmul.f32 %v2902_v49, %v3083_v44  ;;  %v3375_v19 = vmul.f32 %v2900_v40, %v3087_v38  ;;  %v3379_v46 = vmul.f32 %v2902_v49, %v3091_v23  ;;  %v3387_v1 = vmul.f32 %v2902_v49, %v3099_v41 }
 0x318   :  { %4864 = vst [vmem:[#allocation25_spill] sm:$0xff] %v3359_v30  ;;  %4865 = vst [vmem:[#allocation12_spill] sm:$0xff] %v3367_v32  ;;  %v4867_v30 = vld [vmem:[#allocation2_spill] sm:$0xff]  ;;  %v3395_v38 = vmul.f32 %v2902_v49, %v3107_v17 }
 0x319   :  { %4866 = vst [vmem:[#allocation27_spill] sm:$0xff] %v3375_v19  ;;  %v3383_v26 = vmul.f32 %v2900_v40, %v4867_v30  ;;  %v4869_v32 = vld [vmem:[#allocation34_spill] sm:$0xff]  ;;  %v4871_v19 = vld [vmem:[#allocation3_spill] sm:$0xff]  ;;  %v3403_v30 = vmul.f32 %v2902_v49, %v3115_v10 }
 0x31a   :  { %v3391_v44 = vmul.f32 %v2900_v40, %v4869_v32  ;;  %v3399_v23 = vmul.f32 %v2900_v40, %v4871_v19  ;;  %v3411_v32 = vmul.f32 %v2902_v49, %v3123_v7  ;;  %v3419_v19 = vmul.f32 %v2902_v49, %v3131_v12 }
 0x31b   :  { %4868 = vst [vmem:[#allocation15_spill] sm:$0xff] %v3383_v26  ;;  %4873 = vst [vmem:[#allocation23_spill] sm:$0xff] %v3403_v30  ;;  %v4874_v26 = vld [vmem:[#allocation35_spill] sm:$0xff]  ;;  %v4881_v30 = vld [vmem:[#allocation5_spill] sm:$0xff] }
 0x31c   :  { %4870 = vst [vmem:[#allocation29_spill] sm:$0xff] %v3391_v44  ;;  %4872 = vst [vmem:[#allocation19_spill] sm:$0xff] %v3399_v23  ;;  %v3407_v41 = vmul.f32 %v2900_v40, %v4874_v26  ;;  %v4877_v44 = vld [vmem:[#allocation4_spill] sm:$0xff]  ;;  %v3427_v26 = vmul.f32 %v2902_v49, %v4881_v30 }
 0x31d   :  { %4876 = vst [vmem:[#allocation18_spill] sm:$0xff] %v3411_v32  ;;  %v3415_v17 = vmul.f32 %v2900_v40, %v4877_v44  ;;  %v4879_v23 = vld [vmem:[#allocation36_spill] sm:$0xff]  ;;  %v4884_v32 = vld [vmem:[#allocation6_spill] sm:$0xff] }
 0x31e   :  { %4875 = vst [vmem:[#allocation26_spill] sm:$0xff] %v3407_v41  ;;  %v3423_v10 = vmul.f32 %v2900_v40, %v4879_v23  ;;  %v4882_v41 = vld [vmem:[#allocation37_spill] sm:$0xff]  ;;  %v3435_v44 = vmul.f32 %v2902_v49, %v4884_v32  ;;  %v3443_v23 = vmul.f32 %v2902_v49, %v3155_v29  ;;  %v3463_v29 = vmul.f32 %v2900_v40, %v3175_v48 }
 0x31f   :  { %4878 = vst [vmem:[#allocation28_spill] sm:$0xff] %v3415_v17  ;;  %v3431_v7 = vmul.f32 %v2900_v40, %v4882_v41  ;;  %v4885_v17 = vld [vmem:[#allocation8_spill] sm:$0xff]  ;;  %v3451_v41 = vmul.f32 %v2902_v49, %v3163_v59  ;;  %v3471_v59 = vmul.f32 %v2900_v40, %v3183_v50  ;;  %v3483_v48 = vmul.f32 %v2902_v49, %v3195_v24 }
 0x320   :  { %4880 = vst [vmem:[#allocation7_spill] sm:$0xff] %v3423_v10  ;;  %v3439_v12 = vmul.f32 %v2900_v40, %v4885_v17  ;;  %v4886_v10 = vld [vmem:[#allocation11_spill] sm:$0xff]  ;;  %v3459_v17 = vmul.f32 %v2902_v49, %v3171_v2  ;;  %4888 = vst [vmem:[#allocation31_spill] sm:$0xff] %v3463_v29  ;;  %v3479_v2 = vmul.f32 %v2900_v40, %v3191_v8  ;;  %v4890_v29 = vld [vmem:[#allocation22_spill] sm:$0xff] }
 0x321   :  { %4883 = vst [vmem:[#allocation30_spill] sm:$0xff] %v3431_v7  ;;  %v3447_v30 = vmul.f32 %v2900_v40, %v4886_v10  ;;  %v4887_v7 = vld [vmem:[#allocation14_spill] sm:$0xff]  ;;  %v3467_v10 = vmul.f32 %v2902_v49, %v3179_v5  ;;  %v3487_v5 = vadd.f32 %v4890_v29, %v3199_v28  ;;  %v3511_v24 = vadd.f32 %v4890_v29, %v3223_v39 }
 0x322   :  { %v3455_v32 = vmul.f32 %v2900_v40, %v4887_v7  ;;  %v3475_v7 = vmul.f32 %v2902_v49, %v3187_v9  ;;  %v3495_v9 = vadd.f32 %v4890_v29, %v3207_v0  ;;  %v3503_v49 = vadd.f32 %v4890_v29, %v3215_v34 }
 0x323   :  { %4889 = vst [vmem:[#allocation32_spill] sm:$0xff] %v3467_v10  ;;  %v4891_v10 = vld [vmem:[#allocation10_spill] sm:$0xff]  ;;  %vm1235_vm1 = vcmp.ge.f32.partialorder %v3487_v5, 0.0  ;;  %vm1241_vm7 = vcmp.ge.f32.partialorder %v3511_v24, 0.0 }
 0x324   :  { %v3491_v50 = vadd.f32 %v4891_v10, %v3203_v18  ;;  %v3499_v40 = vadd.f32 %v4891_v10, %v3211_v27  ;;  %v3507_v8 = vadd.f32 %v4891_v10, %v3219_v13  ;;  %v3515_v28 = vadd.f32 %v4891_v10, %v3227_v57 }
 0x325   :  { %v3519_v18 = vadd.f32 %v4890_v29, %v3231_v15  ;;  %v3523_v0 = vadd.f32 %v4891_v10, %v3235_v60  ;;  %v3527_v27 = vadd.f32 %v4890_v29, %v3239_v53  ;;  %v3531_v34 = vadd.f32 %v4891_v10, %v3243_v43  ;;  %v4893_v43 = vld [vmem:[#allocation17_spill] sm:$0xff] }
 0x326   :  { %v3535_v13 = vadd.f32 %v4890_v29, %v3247_v52  ;;  %v3539_v39 = vadd.f32 %v4891_v10, %v3251_v61  ;;  %v3543_v57 = vadd.f32 %v4890_v29, %v3255_v14  ;;  %v3547_v15 = vadd.f32 %v4891_v10, %v3259_v58  ;;  %v4894_v14 = vld [vmem:[#allocation21_spill] sm:$0xff] }
 0x327   :  { %v3551_v60 = vadd.f32 %v4890_v29, %v3263_v11  ;;  %v3555_v53 = vadd.f32 %v4891_v10, %v3267_v37  ;;  %v3559_v52 = vadd.f32 %v4890_v29, %v4893_v43  ;;  %v3563_v61 = vadd.f32 %v4891_v10, %v3275_v4 }
 0x328   :  { %v3567_v58 = vadd.f32 %v4890_v29, %v4894_v14  ;;  %v3571_v11 = vadd.f32 %v4891_v10, %v3283_v36  ;;  %v3579_v43 = vadd.f32 %v4891_v10, %v3291_v47  ;;  %v3583_v4 = vadd.f32 %v4890_v29, %v3295_v45 }
 0x329   :  { %4892 = vst [vmem:[#allocation13_spill] sm:$0xff] %v3551_v60  ;;  %v4895_v60 = vld [vmem:[#allocation9_spill] sm:$0xff]  ;;  %v3587_v14 = vadd.f32 %v4891_v10, %v3299_v22  ;;  %v3591_v36 = vadd.f32 %v4890_v29, %v3303_v51  ;;  %v3599_v47 = vadd.f32 %v4890_v29, %v3311_v31  ;;  %v3603_v45 = vadd.f32 %v4891_v10, %v3315_v55 }
 0x32a   :  { %v3575_v37 = vadd.f32 %v4890_v29, %v4895_v60  ;;  %v3595_v60 = vadd.f32 %v4891_v10, %v3307_v42  ;;  %v3607_v22 = vadd.f32 %v4890_v29, %v3319_v63  ;;  %v3611_v51 = vadd.f32 %v4891_v10, %v3323_v33 }
 0x32b   :  { %v3615_v42 = vadd.f32 %v4890_v29, %v3327_v21  ;;  %v3619_v31 = vadd.f32 %v4891_v10, %v3331_v54  ;;  %v3623_v55 = vadd.f32 %v4890_v29, %v3335_v3  ;;  %v3627_v63 = vadd.f32 %v4891_v10, %v3339_v20 }
 0x32c   :  { %v3631_v33 = vadd.f32 %v4890_v29, %v3343_v62  ;;  %v3635_v21 = vadd.f32 %v4891_v10, %v3347_v6  ;;  %v3639_v54 = vadd.f32 %v4890_v29, %v3351_v35  ;;  %v3643_v3 = vadd.f32 %v4891_v10, %v3355_v56 }
 0x32d   :  { %4896 = vst [vmem:[#allocation16_spill] sm:$0xff] %v3623_v55  ;;  %v4899_v55 = vld [vmem:[#allocation25_spill] sm:$0xff]  ;;  %v3651_v62 = vadd.f32 %v4891_v10, %v3363_v25  ;;  %v3659_v35 = vadd.f32 %v4891_v10, %v3371_v16  ;;  %vm1236_vm2 = vcmp.ge.f32.partialorder %v3491_v50, 0.0  ;;  %vm1237_vm3 = vcmp.ge.f32.partialorder %v3495_v9, 0.0 }
 0x32e   :  { %4897 = vst [vmem:[#allocation20_spill] sm:$0xff] %v3631_v33  ;;  %4898 = vst [vmem:[#allocation24_spill] sm:$0xff] %v3639_v54  ;;  %v3647_v20 = vadd.f32 %v4890_v29, %v4899_v55  ;;  %v4901_v33 = vld [vmem:[#allocation12_spill] sm:$0xff]  ;;  %v4903_v54 = vld [vmem:[#allocation27_spill] sm:$0xff]  ;;  %v3667_v55 = vadd.f32 %v4891_v10, %v3379_v46  ;;  %vm1238_vm4 = vcmp.ge.f32.partialorder %v3499_v40, 0.0  ;;  %vm1239_vm5 = vcmp.ge.f32.partialorder %v3503_v49, 0.0 }
 0x32f   :  { %v3655_v6 = vadd.f32 %v4890_v29, %v4901_v33  ;;  %v3663_v56 = vadd.f32 %v4890_v29, %v4903_v54  ;;  %v3675_v33 = vadd.f32 %v4891_v10, %v3387_v1  ;;  %v3683_v54 = vadd.f32 %v4891_v10, %v3395_v38 }
 0x330   :  { %4900 = vst [vmem:[#allocation33_spill] sm:$0xff] %v3647_v20  ;;  %4905 = vst [vmem:[#allocation3_spill] sm:$0xff] %v3667_v55  ;;  %v4906_v20 = vld [vmem:[#allocation15_spill] sm:$0xff]  ;;  %vm1240_vm6 = vcmp.ge.f32.partialorder %v3507_v8, 0.0  ;;  %vm1242_vm8 = vcmp.ge.f32.partialorder %v3515_v28, 0.0  ;;  %vm1243_vm9 = vcmp.ge.f32.partialorder %v3519_v18, 0.0 }
 0x331   :  { %4902 = vst [vmem:[#allocation2_spill] sm:$0xff] %v3655_v6  ;;  %4904 = vst [vmem:[#allocation34_spill] sm:$0xff] %v3663_v56  ;;  %v3671_v25 = vadd.f32 %v4890_v29, %v4906_v20  ;;  %v4909_v6 = vld [vmem:[#allocation29_spill] sm:$0xff]  ;;  %v4911_v56 = vld [vmem:[#allocation19_spill] sm:$0xff]  ;;  %vm1244_vm10 = vcmp.ge.f32.partialorder %v3523_v0, 0.0  ;;  %vm1245_vm11 = vcmp.ge.f32.partialorder %v3527_v27, 0.0 }
 0x332   :  { %4908 = vst [vmem:[#allocation4_spill] sm:$0xff] %v3675_v33  ;;  %v3679_v16 = vadd.f32 %v4890_v29, %v4909_v6  ;;  %v3687_v46 = vadd.f32 %v4890_v29, %v4911_v56  ;;  %v4913_v55 = vld [vmem:[#allocation23_spill] sm:$0xff]  ;;  %v4916_v33 = vld [vmem:[#allocation18_spill] sm:$0xff]  ;;  %v3707_v56 = vadd.f32 %v4891_v10, %v3419_v19  ;;  %v3727_v19 = vadd.f32 %v4890_v29, %v3439_v12 }
 0x333   :  { %4907 = vst [vmem:[#allocation35_spill] sm:$0xff] %v3671_v25  ;;  %v3691_v20 = vadd.f32 %v4891_v10, %v4913_v55  ;;  %v4914_v25 = vld [vmem:[#allocation26_spill] sm:$0xff]  ;;  %v3699_v6 = vadd.f32 %v4891_v10, %v4916_v33  ;;  %v3747_v12 = vadd.f32 %v4891_v10, %v3459_v17  ;;  %v3776_v17 = vadd.f32 %v4890_v29, %v3479_v2 }
 0x334   :  { %4910 = vst [vmem:[#allocation36_spill] sm:$0xff] %v3679_v16  ;;  %4912 = vst [vmem:[#allocation5_spill] sm:$0xff] %v3687_v46  ;;  %v3695_v1 = vadd.f32 %v4890_v29, %v4914_v25  ;;  %v4918_v16 = vld [vmem:[#allocation28_spill] sm:$0xff]  ;;  %v4919_v46 = vld [vmem:[#allocation7_spill] sm:$0xff]  ;;  %v3715_v25 = vadd.f32 %v4891_v10, %v3427_v26  ;;  %v3735_v26 = vadd.f32 %v4890_v29, %v3447_v30  ;;  %vm1246_vm12 = vcmp.ge.f32.partialorder %v3531_v34, 0.0 }
 0x335   :  { %4917 = vst [vmem:[#allocation6_spill] sm:$0xff] %v3699_v6  ;;  %v3703_v38 = vadd.f32 %v4890_v29, %v4918_v16  ;;  %v3711_v55 = vadd.f32 %v4890_v29, %v4919_v46  ;;  %v3723_v16 = vadd.f32 %v4891_v10, %v3435_v44  ;;  %4923 = vst [vmem:[#allocation14_spill] sm:$0xff] %v3727_v19  ;;  %v4929_v19 = vld [vmem:[#allocation31_spill] sm:$0xff]  ;;  %v1313_v2 = vmul.f32 0.01, %v3511_v24 }
 0x336   :  { %4915 = vst [vmem:[#allocation37_spill] sm:$0xff] %v3695_v1  ;;  %4921 = vst [vmem:[#allocation11_spill] sm:$0xff] %v3715_v25  ;;  %v4922_v1 = vld [vmem:[#allocation30_spill] sm:$0xff]  ;;  %v3731_v46 = vadd.f32 %v4891_v10, %v3443_v23  ;;  %v3743_v44 = vadd.f32 %v4890_v29, %v3455_v32  ;;  %v3751_v23 = vadd.f32 %v4890_v29, %v4929_v19  ;;  %v1309_v19 = vmul.f32 0.01, %v3495_v9 }
 0x337   :  { %4920 = vst [vmem:[#allocation8_spill] sm:$0xff] %v3711_v55  ;;  %v3719_v33 = vadd.f32 %v4890_v29, %v4922_v1  ;;  %4925 = vst [vmem:[#allocation10_spill] sm:$0xff] %v3735_v26  ;;  %v3739_v1 = vadd.f32 %v4891_v10, %v3451_v41  ;;  %v3759_v41 = vadd.f32 %v4890_v29, %v3471_v59  ;;  %v1307_v59 = vmul.f32 0.01, %v3487_v5 }
 0x338   :  { %4924 = vst [vmem:[#allocation22_spill] sm:$0xff] %v3731_v46  ;;  %4927 = vst [vmem:[#allocation21_spill] sm:$0xff] %v3743_v44  ;;  %v4931_v46 = vld [vmem:[#allocation32_spill] sm:$0xff]  ;;  %v3763_v32 = vadd.f32 %v4891_v10, %v3475_v7  ;;  %v1308_v7 = vmul.f32 0.01, %v3491_v50  ;;  %vm1247_vm13 = vcmp.ge.f32.partialorder %v3535_v13, 0.0 }
 0x339   :  { %4926 = vst [vmem:[#allocation17_spill] sm:$0xff] %v3739_v1  ;;  %4928 = vst [vmem:[#allocation9_spill] sm:$0xff] %v3747_v12  ;;  %v3755_v30 = vadd.f32 %v4891_v10, %v4931_v46  ;;  %v3784_v46 = vadd.f32 %v4891_v10, %v3483_v48  ;;  %v1312_v29 = vmul.f32 0.01, %v3507_v8  ;;  %v3797_v10 = vsel %vm1235_vm1, %v3487_v5, %v1307_v59 }
 0x33a   :  { %4930 = vst [vmem:[#allocation25_spill] sm:$0xff] %v3751_v23  ;;  %4933 = vst [vmem:[#allocation27_spill] sm:$0xff] %v3759_v41  ;;  %v1311_v41 = vmul.f32 0.01, %v3503_v49  ;;  %v1316_v48 = vmul.f32 0.01, %v3523_v0  ;;  %v3806_v12 = vsel %vm1236_vm2, %v3491_v50, %v1308_v7 }
 0x33b   :  { %4932 = vst [vmem:[#allocation12_spill] sm:$0xff] %v3755_v30  ;;  %4934 = vst [vmem:[#allocation15_spill] sm:$0xff] %v3763_v32  ;;  %v1310_v32 = vmul.f32 0.01, %v3499_v40  ;;  %v1315_v30 = vmul.f32 0.01, %v3519_v18 }
 0x33c   :  { %4935 = vst [vmem:[#allocation29_spill] sm:$0xff] %v3776_v17  ;;  %4936 = vst [vmem:[#allocation19_spill] sm:$0xff] %v3784_v46  ;;  %v1314_v17 = vmul.f32 0.01, %v3515_v28  ;;  %v1317_v46 = vmul.f32 0.01, %v3527_v27 }
 0x33d   :  { %4937 = vst [vmem:[#allocation23_spill] sm:$0xff] %v3797_v10  ;;  %v1318_v23 = vmul.f32 0.01, %v3531_v34  ;;  %4938 = vst [vmem:[#allocation26_spill] sm:$0xff] %v3806_v12  ;;  %vm1248_vm14 = vcmp.ge.f32.partialorder %v3539_v39, 0.0  ;;  %v3819_v10 = vsel %vm1237_vm3, %v3495_v9, %v1309_v19  ;;  %vm1249_vm15 = vcmp.ge.f32.partialorder %v3543_v57, 0.0 }
 0x33e   :  { %v1319_v44 = vmul.f32 0.01, %v3535_v13  ;;  %v3811_v5 = vmul.f32 0.01, %v3539_v39  ;;  %v3814_v59 = vmul.f32 0.01, %v3543_v57  ;;  %v3834_v26 = vsel %vm1238_vm4, %v3499_v40, %v1310_v32 }
 0x33f   :  { %4939 = vst [vmem:[#allocation18_spill] sm:$0xff] %v3819_v10  ;;  %v3823_v50 = vmul.f32 0.01, %v3547_v15  ;;  %v4940_v7 = vld [vmem:[#allocation13_spill] sm:$0xff]  ;;  %v3829_v1 = vmul.f32 0.01, %v3555_v53 }
 0x340   :  { %v3826_v12 = vmul.f32 0.01, %v4940_v7  ;;  %4942 = vst [vmem:[#allocation7_spill] sm:$0xff] %v3834_v26  ;;  %vm1250_vm0 = vcmp.ge.f32.partialorder %v3547_v15, 0.0  ;;  %v3838_v9 = vmul.f32 0.01, %v3559_v52 }
 0x341   :  { %4941 = vst [vmem:[#allocation28_spill] sm:$0xff] %v3829_v1  ;;  %v3841_v19 = vmul.f32 0.01, %v3563_v61  ;;  %v3844_v10 = vmul.f32 0.01, %v3567_v58  ;;  %v3849_v1 = vsel %vm1239_vm5, %v3503_v49, %v1311_v41  ;;  %vm1251_vm1 = vcmp.ge.f32.partialorder %v4940_v7, 0.0 }
 0x342   :  { %4944 = vst [vmem:[#allocation31_spill] sm:$0xff] %v3849_v1  ;;  %v3853_v40 = vmul.f32 0.01, %v3571_v11  ;;  %v3856_v32 = vmul.f32 0.01, %v3575_v37  ;;  %vm1252_vm2 = vcmp.ge.f32.partialorder %v3555_v53, 0.0 }
 0x343   :  { %4943 = vst [vmem:[#allocation30_spill] sm:$0xff] %v3844_v10  ;;  %v3859_v26 = vmul.f32 0.01, %v3579_v43  ;;  %v3864_v10 = vsel %vm1240_vm6, %v3507_v8, %v1312_v29  ;;  %v3868_v49 = vmul.f32 0.01, %v3583_v4  ;;  %vm1253_vm3 = vcmp.ge.f32.partialorder %v3559_v52, 0.0 }
 0x344   :  { %4946 = vst [vmem:[#allocation13_spill] sm:$0xff] %v3864_v10  ;;  %v3871_v41 = vmul.f32 0.01, %v3587_v14  ;;  %v3874_v1 = vmul.f32 0.01, %v3591_v36  ;;  %vm1254_vm4 = vcmp.ge.f32.partialorder %v3563_v61, 0.0 }
 0x345   :  { %4945 = vst [vmem:[#allocation32_spill] sm:$0xff] %v3859_v26  ;;  %v3879_v26 = vsel %vm1241_vm7, %v3511_v24, %v1313_v2  ;;  %v3883_v8 = vmul.f32 0.01, %v3595_v60  ;;  %v3886_v29 = vmul.f32 0.01, %v3599_v47  ;;  %vm1255_vm5 = vcmp.ge.f32.partialorder %v3567_v58, 0.0 }
 0x346   :  { %4947 = vst [vmem:[#allocation38_spill] sm:$0xff] %v3874_v1  ;;  %4948 = vst [vmem:[#allocation39_spill] sm:$0xff] %v3879_v26  ;;  %v3889_v10 = vmul.f32 0.01, %v3603_v45  ;;  %v3894_v1 = vsel %vm1242_vm8, %v3515_v28, %v1314_v17  ;;  %v3898_v24 = vmul.f32 0.01, %v3607_v22 }
 0x347   :  { %4950 = vst [vmem:[#allocation41_spill] sm:$0xff] %v3894_v1  ;;  %v3901_v2 = vmul.f32 0.01, %v3611_v51  ;;  %v3904_v26 = vmul.f32 0.01, %v3615_v42  ;;  %v4956_v17 = vld [vmem:[#allocation16_spill] sm:$0xff] }
 0x348   :  { %4949 = vst [vmem:[#allocation40_spill] sm:$0xff] %v3889_v10  ;;  %4951 = vst [vmem:[#allocation42_spill] sm:$0xff] %v3898_v24  ;;  %v3909_v10 = vsel %vm1243_vm9, %v3519_v18, %v1315_v30  ;;  %v3913_v28 = vmul.f32 0.01, %v3619_v31  ;;  %v3916_v1 = vmul.f32 0.01, %v4956_v17 }
 0x349   :  { %4952 = vst [vmem:[#allocation43_spill] sm:$0xff] %v3901_v2  ;;  %4953 = vst [vmem:[#allocation44_spill] sm:$0xff] %v3904_v26  ;;  %v3919_v24 = vmul.f32 0.01, %v3627_v63  ;;  %v3924_v26 = vsel %vm1244_vm10, %v3523_v0, %v1316_v48  ;;  %vm1256_vm6 = vcmp.ge.f32.partialorder %v3571_v11, 0.0  ;;  %v4959_v18 = vld [vmem:[#allocation20_spill] sm:$0xff] }
 0x34a   :  { %4954 = vst [vmem:[#allocation45_spill] sm:$0xff] %v3909_v10  ;;  %4955 = vst [vmem:[#allocation46_spill] sm:$0xff] %v3913_v28  ;;  %v3928_v30 = vmul.f32 0.01, %v4959_v18  ;;  %v3931_v10 = vmul.f32 0.01, %v3635_v21 }
 0x34b   :  { %4957 = vst [vmem:[#allocation16_spill] sm:$0xff] %v3919_v24  ;;  %4958 = vst [vmem:[#allocation47_spill] sm:$0xff] %v3924_v26  ;;  %v4961_v28 = vld [vmem:[#allocation24_spill] sm:$0xff]  ;;  %v3939_v24 = vsel %vm1245_vm11, %v3527_v27, %v1317_v46  ;;  %vm1257_vm7 = vcmp.ge.f32.partialorder %v3575_v37, 0.0  ;;  %v3946_v0 = vmul.f32 0.01, %v3643_v3  ;;  %v3957_v27 = vsel %vm1246_vm12, %v3531_v34, %v1318_v23 }
 0x34c   :  { %4960 = vst [vmem:[#allocation20_spill] sm:$0xff] %v3931_v10  ;;  %v3934_v2 = vmul.f32 0.01, %v4961_v28  ;;  %4963 = vst [vmem:[#allocation48_spill] sm:$0xff] %v3939_v24  ;;  %v4965_v48 = vld [vmem:[#allocation33_spill] sm:$0xff]  ;;  %vm1261_vm11 = vcmp.ge.f32.partialorder %v3591_v36, 0.0  ;;  %v3975_v34 = vsel %vm1247_vm13, %v3535_v13, %v1319_v44  ;;  %v3994_v13 = vsel %vm1248_vm14, %v3539_v39, %v3811_v5 }
 0x34d   :  { %4964 = vst [vmem:[#allocation49_spill] sm:$0xff] %v3946_v0  ;;  %v3949_v26 = vmul.f32 0.01, %v4965_v48  ;;  %4968 = vst [vmem:[#allocation51_spill] sm:$0xff] %v3957_v27  ;;  %v4969_v46 = vld [vmem:[#allocation2_spill] sm:$0xff]  ;;  %vm1265_vm12 = vcmp.ge.f32.partialorder %v3607_v22, 0.0  ;;  %v4013_v39 = vsel %vm1249_vm15, %v3543_v57, %v3814_v59  ;;  %v4032_v57 = vsel %vm1250_vm0, %v3547_v15, %v3823_v50 }
 0x34e   :  { %4962 = vst [vmem:[#allocation24_spill] sm:$0xff] %v3934_v2  ;;  %v3952_v2 = vmul.f32 0.01, %v3651_v62  ;;  %v3964_v24 = vmul.f32 0.01, %v4969_v46  ;;  %4974 = vst [vmem:[#allocation53_spill] sm:$0xff] %v3975_v34  ;;  %v4051_v15 = vsel %vm1251_vm1, %v4940_v7, %v3826_v12 }
 0x34f   :  { %4966 = vst [vmem:[#allocation33_spill] sm:$0xff] %v3949_v26  ;;  %v3967_v26 = vmul.f32 0.01, %v3659_v35  ;;  %v4975_v23 = vld [vmem:[#allocation3_spill] sm:$0xff]  ;;  %4981 = vst [vmem:[#allocation54_spill] sm:$0xff] %v3994_v13  ;;  %vm1269_vm13 = vcmp.ge.f32.partialorder %v4956_v17, 0.0 }
 0x350   :  { %4967 = vst [vmem:[#allocation50_spill] sm:$0xff] %v3952_v2  ;;  %4970 = vst [vmem:[#allocation2_spill] sm:$0xff] %v3964_v24  ;;  %v4972_v2 = vld [vmem:[#allocation34_spill] sm:$0xff]  ;;  %v3982_v27 = vmul.f32 0.01, %v4975_v23  ;;  %v4982_v44 = vld [vmem:[#allocation36_spill] sm:$0xff] }
 0x351   :  { %4971 = vst [vmem:[#allocation52_spill] sm:$0xff] %v3967_v26  ;;  %v3970_v0 = vmul.f32 0.01, %v4972_v2  ;;  %v4977_v26 = vld [vmem:[#allocation35_spill] sm:$0xff]  ;;  %v4001_v34 = vmul.f32 0.01, %v4982_v44 }
 0x352   :  { %4976 = vst [vmem:[#allocation3_spill] sm:$0xff] %v3982_v27  ;;  %v3985_v24 = vmul.f32 0.01, %v4977_v26  ;;  %4986 = vst [vmem:[#allocation55_spill] sm:$0xff] %v4013_v39  ;;  %vm1273_vm14 = vcmp.ge.f32.partialorder %v4961_v28, 0.0  ;;  %v4987_v13 = vld [vmem:[#allocation37_spill] sm:$0xff] }
 0x353   :  { %4973 = vst [vmem:[#allocation34_spill] sm:$0xff] %v3970_v0  ;;  %v4979_v0 = vld [vmem:[#allocation4_spill] sm:$0xff]  ;;  %v4020_v5 = vmul.f32 0.01, %v3691_v20  ;;  %4989 = vst [vmem:[#allocation56_spill] sm:$0xff] %v4032_v57  ;;  %vm1277_vm15 = vcmp.ge.f32.partialorder %v4969_v46, 0.0 }
 0x354   :  { %4978 = vst [vmem:[#allocation35_spill] sm:$0xff] %v3985_v24  ;;  %v3988_v10 = vmul.f32 0.01, %v4979_v0  ;;  %v4004_v24 = vmul.f32 0.01, %v3683_v54  ;;  %4993 = vst [vmem:[#allocation60_spill] sm:$0xff] %v4051_v15 }
 0x355   :  { %v4039_v59 = vmul.f32 0.01, %v3703_v38  ;;  %v4042_v39 = vmul.f32 0.01, %v3707_v56  ;;  %vm1281_vm0 = vcmp.ge.f32.partialorder %v4977_v26, 0.0  ;;  %v4999_v7 = vld [vmem:[#allocation14_spill] sm:$0xff] }
 0x356   :  { %4980 = vst [vmem:[#allocation4_spill] sm:$0xff] %v3988_v10  ;;  %4983 = vst [vmem:[#allocation36_spill] sm:$0xff] %v4004_v24  ;;  %v4984_v10 = vld [vmem:[#allocation5_spill] sm:$0xff]  ;;  %v4023_v24 = vmul.f32 0.01, %v4987_v13  ;;  %vm5028_vm8 = vcmp.ge.f32.partialorder %v3587_v14, 0.0 }
 0x357   :  { %v4007_v27 = vmul.f32 0.01, %v4984_v10  ;;  %4990 = vst [vmem:[#allocation57_spill] sm:$0xff] %v4039_v59  ;;  %4991 = vst [vmem:[#allocation58_spill] sm:$0xff] %v4042_v39  ;;  %v4058_v50 = vmul.f32 0.01, %v3715_v25 }
 0x358   :  { %v4061_v57 = vmul.f32 0.01, %v3719_v33  ;;  %v4997_v39 = vld [vmem:[#allocation28_spill] sm:$0xff]  ;;  %vm1285_vm1 = vcmp.ge.f32.partialorder %v4984_v10, 0.0  ;;  %v4077_v15 = vmul.f32 0.01, %v4999_v7 }
 0x359   :  { %4985 = vst [vmem:[#allocation5_spill] sm:$0xff] %v4007_v27  ;;  %v4026_v27 = vmul.f32 0.01, %v3699_v6  ;;  %4994 = vst [vmem:[#allocation61_spill] sm:$0xff] %v4058_v50  ;;  %v4070_v12 = vsel %vm1252_vm2, %v3555_v53, %v4997_v39  ;;  %v4089_v53 = vsel %vm1253_vm3, %v3559_v52, %v3838_v9  ;;  %vm1289_vm2 = vcmp.ge.f32.partialorder %v3703_v38, 0.0  ;;  %v5006_v39 = vld [vmem:[#allocation17_spill] sm:$0xff] }
 0x35a   :  { %4995 = vst [vmem:[#allocation62_spill] sm:$0xff] %v4061_v57  ;;  %4998 = vst [vmem:[#allocation28_spill] sm:$0xff] %v4070_v12  ;;  %v5001_v57 = vld [vmem:[#allocation22_spill] sm:$0xff]  ;;  %v4096_v12 = vmul.f32 0.01, %v5006_v39  ;;  %v4108_v52 = vsel %vm1254_vm4, %v3563_v61, %v3841_v19  ;;  %vm1293_vm3 = vcmp.ge.f32.partialorder %v3719_v33, 0.0 }
 0x35b   :  { %4988 = vst [vmem:[#allocation37_spill] sm:$0xff] %v4026_v27  ;;  %v4045_v27 = vmul.f32 0.01, %v3711_v55  ;;  %5000 = vst [vmem:[#allocation14_spill] sm:$0xff] %v4077_v15  ;;  %v4080_v50 = vmul.f32 0.01, %v5001_v57 }
 0x35c   :  { %5005 = vst [vmem:[#allocation65_spill] sm:$0xff] %v4089_v53  ;;  %5007 = vst [vmem:[#allocation17_spill] sm:$0xff] %v4096_v12  ;;  %v5013_v9 = vld [vmem:[#allocation25_spill] sm:$0xff]  ;;  %v5019_v55 = vld [vmem:[#allocation30_spill] sm:$0xff]  ;;  %vm5026_vm4 = vcmp.ge.f32.partialorder %v3579_v43, 0.0 }
 0x35d   :  { %4992 = vst [vmem:[#allocation59_spill] sm:$0xff] %v4045_v27  ;;  %v4064_v27 = vmul.f32 0.01, %v3723_v16  ;;  %5002 = vst [vmem:[#allocation64_spill] sm:$0xff] %v4080_v50  ;;  %v5008_v50 = vld [vmem:[#allocation21_spill] sm:$0xff]  ;;  %v4127_v61 = vsel %vm1255_vm5, %v3567_v58, %v5019_v55  ;;  %v5021_v19 = vld [vmem:[#allocation15_spill] sm:$0xff]  ;;  %v4140_v58 = vsel %vm1256_vm6, %v3571_v11, %v3853_v40  ;;  %v4150_v55 = vsel %vm1257_vm7, %v3575_v37, %v3856_v32 }
 0x35e   :  { %v4099_v15 = vmul.f32 0.01, %v5008_v50  ;;  %5012 = vst [vmem:[#allocation66_spill] sm:$0xff] %v4108_v52  ;;  %v4115_v53 = vmul.f32 0.01, %v5013_v9  ;;  %5020 = vst [vmem:[#allocation30_spill] sm:$0xff] %v4127_v61 }
 0x35f   :  { %4996 = vst [vmem:[#allocation63_spill] sm:$0xff] %v4064_v27  ;;  %v5003_v27 = vld [vmem:[#allocation10_spill] sm:$0xff]  ;;  %v1376_v52 = vmul.f32 0.01, %v5021_v19  ;;  %v5023_v57 = vld [vmem:[#allocation19_spill] sm:$0xff]  ;;  %5024 = vst [vmem:[#allocation15_spill] sm:$0xff] %v4140_v58  ;;  %v4168_v58 = vsel %vm5028_vm8, %v3587_v14, %v3871_v41 }
 0x360   :  { %v4083_v59 = vmul.f32 0.01, %v5003_v27  ;;  %5009 = vst [vmem:[#allocation21_spill] sm:$0xff] %v4099_v15  ;;  %5014 = vst [vmem:[#allocation25_spill] sm:$0xff] %v4115_v53  ;;  %v5015_v15 = vld [vmem:[#allocation12_spill] sm:$0xff]  ;;  %vm1301_vm5 = vcmp.ge.f32.partialorder %v5013_v9, 0.0 }
 0x361   :  { %v4118_v12 = vmul.f32 0.01, %v5015_v15  ;;  %vm1302_vm9 = vcmp.ge.f32.partialorder %v5015_v15, 0.0  ;;  %v5025_v61 = vld [vmem:[#allocation32_spill] sm:$0xff]  ;;  %vm5027_vm6 = vcmp.ge.f32.partialorder %v3583_v4, 0.0  ;;  %vm1306_vm10 = vcmp.ge.f32.partialorder %v5023_v57, 0.0 }
 0x362   :  { %5004 = vst [vmem:[#allocation10_spill] sm:$0xff] %v4083_v59  ;;  %v5010_v59 = vld [vmem:[#allocation9_spill] sm:$0xff]  ;;  %v4156_v11 = vsel %vm5026_vm4, %v3579_v43, %v5025_v61  ;;  %v4162_v40 = vsel %vm5027_vm6, %v3583_v4, %v3868_v49  ;;  %v5029_v37 = vld [vmem:[#allocation38_spill] sm:$0xff]  ;;  %vm5030_vm4 = vcmp.ge.f32.partialorder %v3595_v60, 0.0  ;;  %vm5031_vm8 = vcmp.ge.f32.partialorder %v3599_v47, 0.0  ;;  %v5032_v32 = vld [vmem:[#allocation40_spill] sm:$0xff] }
 0x363   :  { %v4102_v6 = vmul.f32 0.01, %v5010_v59  ;;  %5016 = vst [vmem:[#allocation12_spill] sm:$0xff] %v4118_v12  ;;  %v5022_v12 = vld [vmem:[#allocation29_spill] sm:$0xff]  ;;  %v4176_v43 = vsel %vm1261_vm11, %v3591_v36, %v5029_v37  ;;  %v4182_v4 = vsel %vm5030_vm4, %v3595_v60, %v3883_v8  ;;  %v4188_v14 = vsel %vm5031_vm8, %v3599_v47, %v3886_v29  ;;  %v5034_v36 = vld [vmem:[#allocation42_spill] sm:$0xff]  ;;  %v5035_v60 = vld [vmem:[#allocation43_spill] sm:$0xff] }
 0x364   :  { %v1377_v53 = vmul.f32 0.01, %v5022_v12  ;;  %vm1305_vm7 = vcmp.ge.f32.partialorder %v5022_v12, 0.0  ;;  %vm5033_vm6 = vcmp.ge.f32.partialorder %v3603_v45, 0.0  ;;  %v4200_v41 = vsel %vm1265_vm12, %v3607_v22, %v5034_v36  ;;  %v5037_v47 = vld [vmem:[#allocation44_spill] sm:$0xff] }
 0x365   :  { %5011 = vst [vmem:[#allocation9_spill] sm:$0xff] %v4102_v6  ;;  %v5017_v6 = vld [vmem:[#allocation27_spill] sm:$0xff]  ;;  %v4194_v49 = vsel %vm5033_vm6, %v3603_v45, %v5032_v32  ;;  %vm5036_vm11 = vcmp.ge.f32.partialorder %v3611_v51, 0.0  ;;  %vm5038_vm4 = vcmp.ge.f32.partialorder %v3615_v42, 0.0  ;;  %v5039_v45 = vld [vmem:[#allocation46_spill] sm:$0xff]  ;;  %vm5040_vm8 = vcmp.ge.f32.partialorder %v3619_v31, 0.0 }
 0x366   :  { %v4121_v25 = vmul.f32 0.01, %v5017_v6  ;;  %v4206_v8 = vsel %vm5036_vm11, %v3611_v51, %v5035_v60  ;;  %v4212_v29 = vsel %vm5038_vm4, %v3615_v42, %v5037_v47  ;;  %v4218_v61 = vsel %vm5040_vm8, %v3619_v31, %v5039_v45  ;;  %v5041_v51 = vld [vmem:[#allocation16_spill] sm:$0xff] }
 0x367   :  { %v4224_v22 = vsel %vm1269_vm13, %v4956_v17, %v3916_v1  ;;  %vm5042_vm12 = vcmp.ge.f32.partialorder %v3627_v63, 0.0  ;;  %vm5043_vm6 = vcmp.ge.f32.partialorder %v4959_v18, 0.0  ;;  %v5044_v31 = vld [vmem:[#allocation20_spill] sm:$0xff]  ;;  %vm5045_vm11 = vcmp.ge.f32.partialorder %v3635_v21, 0.0 }
 0x368   :  { %5018 = vst [vmem:[#allocation27_spill] sm:$0xff] %v4121_v25  ;;  %v1378_v25 = vmul.f32 0.01, %v5023_v57  ;;  %v4230_v37 = vsel %vm5042_vm12, %v3627_v63, %v5041_v51  ;;  %v4236_v42 = vsel %vm5043_vm6, %v4959_v18, %v3928_v30  ;;  %v4242_v32 = vsel %vm5045_vm11, %v3635_v21, %v5044_v31  ;;  %v5046_v1 = vld [vmem:[#allocation24_spill] sm:$0xff]  ;;  %v5047_v63 = vld [vmem:[#allocation49_spill] sm:$0xff]  ;;  %v5051_v21 = vld [vmem:[#allocation50_spill] sm:$0xff] }
 0x369   :  { %v4248_v17 = vsel %vm1273_vm14, %v4961_v28, %v5046_v1  ;;  %vm5048_vm13 = vcmp.ge.f32.partialorder %v3643_v3, 0.0  ;;  %v5049_v18 = vld [vmem:[#allocation33_spill] sm:$0xff]  ;;  %vm5050_vm4 = vcmp.ge.f32.partialorder %v4965_v48, 0.0  ;;  %vm5052_vm8 = vcmp.ge.f32.partialorder %v3651_v62, 0.0  ;;  %v5053_v28 = vld [vmem:[#allocation2_spill] sm:$0xff] }
 0x36a   :  { %v4254_v36 = vsel %vm5048_vm13, %v3643_v3, %v5047_v63  ;;  %v4260_v30 = vsel %vm5050_vm4, %v4965_v48, %v5049_v18  ;;  %v4266_v60 = vsel %vm5052_vm8, %v3651_v62, %v5051_v21  ;;  %v4272_v47 = vsel %vm1277_vm15, %v4969_v46, %v5053_v28  ;;  %v5054_v3 = vld [vmem:[#allocation52_spill] sm:$0xff]  ;;  %v5056_v48 = vld [vmem:[#allocation34_spill] sm:$0xff]  ;;  %v5058_v62 = vld [vmem:[#allocation3_spill] sm:$0xff] }
 0x36b   :  { %vm5055_vm14 = vcmp.ge.f32.partialorder %v3659_v35, 0.0  ;;  %vm5057_vm12 = vcmp.ge.f32.partialorder %v4972_v2, 0.0  ;;  %vm5059_vm6 = vcmp.ge.f32.partialorder %v4975_v23, 0.0  ;;  %v5060_v46 = vld [vmem:[#allocation35_spill] sm:$0xff]  ;;  %vm5062_vm15 = vcmp.ge.f32.partialorder %v4979_v0, 0.0 }
 0x36c   :  { %v4278_v45 = vsel %vm5055_vm14, %v3659_v35, %v5054_v3  ;;  %v4284_v51 = vsel %vm5057_vm12, %v4972_v2, %v5056_v48  ;;  %v4290_v31 = vsel %vm5059_vm6, %v4975_v23, %v5058_v62  ;;  %v4296_v1 = vsel %vm1281_vm0, %v4977_v26, %v5060_v46  ;;  %v5061_v35 = vld [vmem:[#allocation4_spill] sm:$0xff]  ;;  %v5066_v26 = vld [vmem:[#allocation5_spill] sm:$0xff]  ;;  %v5079_v46 = vld [vmem:[#allocation11_spill] sm:$0xff] }
 0x36d   :  { %v4302_v63 = vsel %vm5062_vm15, %v4979_v0, %v5061_v35  ;;  %vm5063_vm11 = vcmp.ge.f32.partialorder %v4982_v44, 0.0  ;;  %v5064_v23 = vld [vmem:[#allocation36_spill] sm:$0xff]  ;;  %vm5065_vm13 = vcmp.ge.f32.partialorder %v3683_v54, 0.0  ;;  %v4320_v21 = vsel %vm1285_vm1, %v4984_v10, %v5066_v26  ;;  %v5072_v10 = vld [vmem:[#allocation57_spill] sm:$0xff] }
 0x36e   :  { %v4308_v2 = vsel %vm5063_vm11, %v4982_v44, %v4001_v34  ;;  %v4314_v18 = vsel %vm5065_vm13, %v3683_v54, %v5064_v23  ;;  %vm5067_vm0 = vcmp.ge.f32.partialorder %v3691_v20, 0.0  ;;  %vm5068_vm4 = vcmp.ge.f32.partialorder %v4987_v13, 0.0  ;;  %v5069_v54 = vld [vmem:[#allocation37_spill] sm:$0xff]  ;;  %v5070_v44 = vld [vmem:[#allocation6_spill] sm:$0xff] }
 0x36f   :  { %v4326_v0 = vsel %vm5067_vm0, %v3691_v20, %v4020_v5  ;;  %v4332_v34 = vsel %vm5068_vm4, %v4987_v13, %v4023_v24  ;;  %vm5071_vm8 = vcmp.ge.f32.partialorder %v5070_v44, 0.0  ;;  %v4344_v3 = vsel %vm1289_vm2, %v3703_v38, %v5072_v10  ;;  %v5073_v20 = vld [vmem:[#allocation58_spill] sm:$0xff]  ;;  %v5075_v24 = vld [vmem:[#allocation59_spill] sm:$0xff]  ;;  %v5076_v13 = vld [vmem:[#allocation8_spill] sm:$0xff] }
 0x370   :  { %v4338_v28 = vsel %vm5071_vm8, %v5070_v44, %v5069_v54  ;;  %vm5074_vm1 = vcmp.ge.f32.partialorder %v3707_v56, 0.0  ;;  %vm5077_vm14 = vcmp.ge.f32.partialorder %v5076_v13, 0.0  ;;  %v5078_v62 = vld [vmem:[#allocation61_spill] sm:$0xff]  ;;  %vm5080_vm12 = vcmp.ge.f32.partialorder %v5079_v46, 0.0  ;;  %v5081_v38 = vld [vmem:[#allocation62_spill] sm:$0xff]  ;;  %v5086_v10 = vld [vmem:[#allocation64_spill] sm:$0xff] }
 0x371   :  { %v4350_v5 = vsel %vm5074_vm1, %v3707_v56, %v5073_v20  ;;  %v4356_v48 = vsel %vm5077_vm14, %v5076_v13, %v5075_v24  ;;  %v4362_v35 = vsel %vm5080_vm12, %v5079_v46, %v5078_v62  ;;  %v4368_v23 = vsel %vm1293_vm3, %v3719_v33, %v5081_v38  ;;  %v5082_v56 = vld [vmem:[#allocation63_spill] sm:$0xff]  ;;  %v5084_v54 = vld [vmem:[#allocation14_spill] sm:$0xff]  ;;  %v5098_v38 = vld [vmem:[#allocation9_spill] sm:$0xff] }
 0x372   :  { %vm5083_vm2 = vcmp.ge.f32.partialorder %v3723_v16, 0.0  ;;  %vm5085_vm6 = vcmp.ge.f32.partialorder %v4999_v7, 0.0  ;;  %v5087_v20 = vld [vmem:[#allocation22_spill] sm:$0xff]  ;;  %vm5090_vm3 = vcmp.ge.f32.partialorder %v5003_v27, 0.0  ;;  %vm5093_vm11 = vcmp.ge.f32.partialorder %v5006_v39, 0.0 }
 0x373   :  { %v4374_v26 = vsel %vm5083_vm2, %v3723_v16, %v5082_v56  ;;  %v4380_v44 = vsel %vm5085_vm6, %v4999_v7, %v5084_v54  ;;  %vm5088_vm15 = vcmp.ge.f32.partialorder %v5087_v20, 0.0  ;;  %v5089_v33 = vld [vmem:[#allocation10_spill] sm:$0xff]  ;;  %v5092_v16 = vld [vmem:[#allocation17_spill] sm:$0xff]  ;;  %vm5096_vm13 = vcmp.ge.f32.partialorder %v5008_v50, 0.0 }
 0x374   :  { %v4386_v24 = vsel %vm5088_vm15, %v5087_v20, %v5086_v10  ;;  %v4392_v13 = vsel %vm5090_vm3, %v5003_v27, %v5089_v33  ;;  %v4398_v62 = vsel %vm5093_vm11, %v5006_v39, %v5092_v16  ;;  %v5095_v7 = vld [vmem:[#allocation21_spill] sm:$0xff]  ;;  %vm5099_vm0 = vcmp.ge.f32.partialorder %v5010_v59, 0.0  ;;  %v5103_v39 = vld [vmem:[#allocation12_spill] sm:$0xff]  ;;  %v5112_v33 = vld [vmem:[#allocation23_spill] sm:$0xff] }
 0x375   :  { %5091 = vst [vmem:[#allocation29_spill] sm:$0xff] %v4392_v13  ;;  %5094 = vst [vmem:[#allocation19_spill] sm:$0xff] %v4398_v62  ;;  %v4404_v46 = vsel %vm5096_vm13, %v5008_v50, %v5095_v7  ;;  %v4410_v56 = vsel %vm5099_vm0, %v5010_v59, %v5098_v38  ;;  %v5101_v27 = vld [vmem:[#allocation25_spill] sm:$0xff]  ;;  %v4422_v10 = vsel %vm1302_vm9, %v5015_v15, %v5103_v39  ;;  %v5105_v50 = vld [vmem:[#allocation27_spill] sm:$0xff]  ;;  %vm5106_vm4 = vcmp.ge.f32.partialorder %v5017_v6, 0.0 }
 0x376   :  { %5097 = vst [vmem:[#allocation32_spill] sm:$0xff] %v4404_v46  ;;  %5100 = vst [vmem:[#allocation38_spill] sm:$0xff] %v4410_v56  ;;  %v4416_v54 = vsel %vm1301_vm5, %v5013_v9, %v5101_v27  ;;  %v4428_v20 = vsel %vm5106_vm4, %v5017_v6, %v5105_v50  ;;  %vm5108_vm8 = vcmp.ge.f32.partialorder %v5021_v19, 0.0  ;;  %v4438_v9 = vsel %vm1305_vm7, %v5022_v12, %v1377_v53  ;;  %v5113_v16 = vld [vmem:[#allocation26_spill] sm:$0xff]  ;;  %v5115_v38 = vld [vmem:[#allocation7_spill] sm:$0xff] }
 0x377   :  { %5102 = vst [vmem:[#allocation40_spill] sm:$0xff] %v4416_v54  ;;  %5104 = vst [vmem:[#allocation42_spill] sm:$0xff] %v4422_v10  ;;  %v4433_v59 = vsel %vm5108_vm8, %v5021_v19, %v1376_v52  ;;  %v4443_v15 = vsel %vm1306_vm10, %v5023_v57, %v1378_v25  ;;  %v1812_v7 = vpack.c.bf16 %v5113_v16, %v5112_v33  ;;  %v5114_v6 = vld [vmem:[#allocation18_spill] sm:$0xff]  ;;  %v5116_v39 = vld [vmem:[#allocation31_spill] sm:$0xff] }
 0x378   :  { %5107 = vst [vmem:[#allocation43_spill] sm:$0xff] %v4428_v20  ;;  %5109 = vst [vmem:[#allocation44_spill] sm:$0xff] %v4433_v59  ;;  %v1813_v27 = vpack.c.bf16 %v5115_v38, %v5114_v6  ;;  %v5117_v50 = vld [vmem:[#allocation13_spill] sm:$0xff]  ;;  %v5118_v19 = vld [vmem:[#allocation39_spill] sm:$0xff] }
 0x379   :  { %5110 = vst [vmem:[#allocation46_spill] sm:$0xff] %v4438_v9  ;;  %5111 = vst [vmem:[#allocation16_spill] sm:$0xff] %v4443_v15  ;;  %v1814_v52 = vpack.c.bf16 %v5117_v50, %v5116_v39  ;;  %v5119_v59 = vld [vmem:[#allocation41_spill] sm:$0xff]  ;;  %v5121_v12 = vld [vmem:[#allocation47_spill] sm:$0xff] }
 0x37a   :  { %v1815_v20 = vpack.c.bf16 %v5119_v59, %v5118_v19  ;;  %v5120_v10 = vld [vmem:[#allocation45_spill] sm:$0xff]  ;;  %v5122_v9 = vld [vmem:[#allocation48_spill] sm:$0xff]  ;;  %v5123_v54 = vld [vmem:[#allocation51_spill] sm:$0xff]  ;;  %1667 = vst [vmem:[%s4628_s3] sm:$0xff] %v1812_v7 }
 0x37b   :  { %v1816_v53 = vpack.c.bf16 %v5121_v12, %v5120_v10  ;;  %v1817_v56 = vpack.c.bf16 %v5123_v54, %v5122_v9  ;;  %v5124_v25 = vld [vmem:[#allocation53_spill] sm:$0xff]  ;;  %v5125_v57 = vld [vmem:[#allocation54_spill] sm:$0xff]  ;;  %v5126_v46 = vld [vmem:[#allocation55_spill] sm:$0xff]  ;;  %1668 = vst [vmem:[%s4628_s3 + $0x8] sm:$0xff] %v1813_v27 }
 0x37c   :  { %v1818_v15 = vpack.c.bf16 %v5125_v57, %v5124_v25  ;;  %v5127_v33 = vld [vmem:[#allocation56_spill] sm:$0xff]  ;;  %v5130_v13 = vld [vmem:[#allocation65_spill] sm:$0xff]  ;;  %v5131_v39 = vld [vmem:[#allocation66_spill] sm:$0xff]  ;;  %1669 = vst [vmem:[%s4628_s3 + $0x10] sm:$0xff] %v1814_v52 }
 0x37d   :  { %v1819_v16 = vpack.c.bf16 %v5127_v33, %v5126_v46  ;;  %v5128_v62 = vld [vmem:[#allocation60_spill] sm:$0xff]  ;;  %v1821_v50 = vpack.c.bf16 %v5131_v39, %v5130_v13  ;;  %v5132_v54 = vld [vmem:[#allocation30_spill] sm:$0xff]  ;;  %v5133_v10 = vld [vmem:[#allocation15_spill] sm:$0xff]  ;;  %v1823_v46 = vpack.c.bf16 %v4156_v11, %v4150_v55  ;;  %v1825_v13 = vpack.c.bf16 %v4182_v4, %v4176_v43  ;;  %1670 = vst [vmem:[%s4628_s3 + $0x18] sm:$0xff] %v1815_v20 }
 0x37e   :  { %v5129_v6 = vld [vmem:[#allocation28_spill] sm:$0xff]  ;;  %v1822_v59 = vpack.c.bf16 %v5133_v10, %v5132_v54  ;;  %1671 = vst [vmem:[%s4628_s3 + $0x20] sm:$0xff] %v1816_v53  ;;  %1672 = vst [vmem:[%s4628_s3 + $0x28] sm:$0xff] %v1817_v56  ;;  %v1827_v55 = vpack.c.bf16 %v4206_v8, %v4200_v41  ;;  %v1828_v11 = vpack.c.bf16 %v4218_v61, %v4212_v29 }
 0x37f   :  { %v1820_v38 = vpack.c.bf16 %v5129_v6, %v5128_v62  ;;  %v1824_v62 = vpack.c.bf16 %v4168_v58, %v4162_v40  ;;  %v1826_v58 = vpack.c.bf16 %v4194_v49, %v4188_v14  ;;  %v1829_v40 = vpack.c.bf16 %v4230_v37, %v4224_v22  ;;  %1673 = vst [vmem:[%s4628_s3 + $0x30] sm:$0xff] %v1818_v15 }
 0x380   :  { %1674 = vst [vmem:[%s4628_s3 + $0x38] sm:$0xff] %v1819_v16  ;;  %1676 = vst [vmem:[%s4628_s3 + $0x48] sm:$0xff] %v1821_v50  ;;  %v1830_v43 = vpack.c.bf16 %v4242_v32, %v4236_v42  ;;  %v1831_v4 = vpack.c.bf16 %v4254_v36, %v4248_v17  ;;  %v1832_v14 = vpack.c.bf16 %v4266_v60, %v4260_v30  ;;  %v5134_v36 = vld [vmem:[#allocation29_spill] sm:$0xff]  ;;  %v5135_v30 = vld [vmem:[#allocation19_spill] sm:$0xff] }
 0x381   :  { %1675 = vst [vmem:[%s4628_s3 + $0x40] sm:$0xff] %v1820_v38  ;;  %v1833_v49 = vpack.c.bf16 %v4278_v45, %v4272_v47  ;;  %1677 = vst [vmem:[%s4628_s3 + $0x50] sm:$0xff] %v1822_v59  ;;  %v1834_v41 = vpack.c.bf16 %v4290_v31, %v4284_v51  ;;  %v1835_v8 = vpack.c.bf16 %v4302_v63, %v4296_v1  ;;  %v5136_v47 = vld [vmem:[#allocation32_spill] sm:$0xff]  ;;  %v5137_v45 = vld [vmem:[#allocation38_spill] sm:$0xff] }
 0x382   :  { %1678 = vst [vmem:[%s4628_s3 + $0x58] sm:$0xff] %v1823_v46  ;;  %1679 = vst [vmem:[%s4628_s3 + $0x60] sm:$0xff] %v1824_v62  ;;  %v1836_v29 = vpack.c.bf16 %v4314_v18, %v4308_v2  ;;  %v1837_v61 = vpack.c.bf16 %v4326_v0, %v4320_v21  ;;  %v1838_v22 = vpack.c.bf16 %v4338_v28, %v4332_v34  ;;  %v5138_v31 = vld [vmem:[#allocation40_spill] sm:$0xff]  ;;  %v5139_v1 = vld [vmem:[#allocation42_spill] sm:$0xff] }
 0x383   :  { %1680 = vst [vmem:[%s4628_s3 + $0x68] sm:$0xff] %v1825_v13  ;;  %1681 = vst [vmem:[%s4628_s3 + $0x70] sm:$0xff] %v1826_v58  ;;  %v1839_v37 = vpack.c.bf16 %v4350_v5, %v4344_v3  ;;  %v1840_v42 = vpack.c.bf16 %v4362_v35, %v4356_v48  ;;  %v1841_v32 = vpack.c.bf16 %v4374_v26, %v4368_v23  ;;  %v5140_v2 = vld [vmem:[#allocation43_spill] sm:$0xff]  ;;  %v5141_v18 = vld [vmem:[#allocation44_spill] sm:$0xff] }
 0x384   :  { %1682 = vst [vmem:[%s4628_s3 + $0x78] sm:$0xff] %v1827_v55  ;;  %1683 = vst [vmem:[%s4628_s3 + $0x80] sm:$0xff] %v1828_v11  ;;  %v1842_v17 = vpack.c.bf16 %v4386_v24, %v4380_v44  ;;  %v1843_v60 = vpack.c.bf16 %v5135_v30, %v5134_v36  ;;  %v1844_v51 = vpack.c.bf16 %v5137_v45, %v5136_v47  ;;  %v5142_v0 = vld [vmem:[#allocation46_spill] sm:$0xff]  ;;  %v5143_v34 = vld [vmem:[#allocation16_spill] sm:$0xff] }
 0x385   :  { %1684 = vst [vmem:[%s4628_s3 + $0x88] sm:$0xff] %v1829_v40  ;;  %1685 = vst [vmem:[%s4628_s3 + $0x90] sm:$0xff] %v1830_v43  ;;  %v1845_v63 = vpack.c.bf16 %v5139_v1, %v5138_v31  ;;  %v1846_v21 = vpack.c.bf16 %v5141_v18, %v5140_v2  ;;  %v1847_v28 = vpack.c.bf16 %v5143_v34, %v5142_v0 }
 0x386   :  { %1686 = vst [vmem:[%s4628_s3 + $0x98] sm:$0xff] %v1831_v4  ;;  %1687 = vst [vmem:[%s4628_s3 + $0xa0] sm:$0xff] %v1832_v14 }
 0x387   :  { %1688 = vst [vmem:[%s4628_s3 + $0xa8] sm:$0xff] %v1833_v49  ;;  %1689 = vst [vmem:[%s4628_s3 + $0xb0] sm:$0xff] %v1834_v41 }
 0x388   :  { %1690 = vst [vmem:[%s4628_s3 + $0xb8] sm:$0xff] %v1835_v8  ;;  %1691 = vst [vmem:[%s4628_s3 + $0xc0] sm:$0xff] %v1836_v29 }
 0x389   :  { %1692 = vst [vmem:[%s4628_s3 + $0xc8] sm:$0xff] %v1837_v61  ;;  %1693 = vst [vmem:[%s4628_s3 + $0xd0] sm:$0xff] %v1838_v22 }
 0x38a   :  { %1694 = vst [vmem:[%s4628_s3 + $0xd8] sm:$0xff] %v1839_v37  ;;  %1695 = vst [vmem:[%s4628_s3 + $0xe0] sm:$0xff] %v1840_v42 }
 0x38b   :  { %1696 = vst [vmem:[%s4628_s3 + $0xe8] sm:$0xff] %v1841_v32  ;;  %1697 = vst [vmem:[%s4628_s3 + $0xf0] sm:$0xff] %v1842_v17 }
 0x38c   :  { %1698 = vst [vmem:[%s4628_s3 + $0xf8] sm:$0xff] %v1843_v60  ;;  %1699 = vst [vmem:[%s4628_s3 + $0x100] sm:$0xff] %v1844_v51 }
 0x38d   :  { %1700 = vst [vmem:[%s4628_s3 + $0x108] sm:$0xff] %v1845_v63  ;;  %1701 = vst [vmem:[%s4628_s3 + $0x110] sm:$0xff] %v1846_v21 }
 0x38e   :  { %1702 = vst [vmem:[%s4628_s3 + $0x118] sm:$0xff] %v1847_v28 }

// kernel: categorical_vae_forward.15
= control target key start
LH: loop header
LB: loop body
LE: loop exit
PB: predicated region body
PF: predicated region fallthrough
CT: control target
= control target key end

     0   :  { %v3626_v22 = vmov 0   ;;  %vm2057_vm0 = vcmask 523264   ;;  %vm3628_vm1 = vmmov 0   ;;  %s4713_s1 = inlined_call_operand.vmem [shape: bf16[576,1152], index: 1, kind: input, shape index: {}]   ;;  %s4714_s0 = inlined_call_operand.vmem [shape: bf16[8,576], index: 0, kind: input, shape index: {}]   ;;  %s4715_s2 = inlined_call_operand.vmem [shape: f32[8,1], index: 2, kind: input, shape index: {}]   ;;  %s4716_s3 = inlined_call_operand.vmem [shape: f32[8,1152], index: 3, kind: output, shape index: {}]  }
   0x1   :  { %v3134_v0 = vld [vmem:[%s4713_s1 + $0x4] ss:$36 sps:$4 sm:$0xff]   ;;  %v3136_v1 = vld [vmem:[%s4713_s1 + $0xc] ss:$36 sps:$4 sm:$0xff]   ;;  %v3142_v5 = vld [vmem:[%s4713_s1 + $0x54] ss:$36 sps:$4 sm:$0xff]   ;;  %3133 = vset.pattern.permute.xlu0 %v3626_v22 }
   0x2   :  { %2061 = vmatprep.subr.bf16.mxu0 %v3134_v0  ;;  %v3138_v2 = vld [vmem:[%s4713_s1] ss:$36 sps:$4 sm:$0xff]   ;;  %v3139_v3 = vld [vmem:[%s4713_s1 + $0x8] ss:$36 sps:$4 sm:$0xff]   ;;  %2184 = vmatprep.subr.bf16.mxu1 %v3136_v1  ;;  %v3145_v7 = vld [vmem:[%s4713_s1 + $0x50] ss:$36 sps:$4 sm:$0xff]  }
   0x3   :  { %v3140_v4 = vld [vmem:[%s4713_s1 + $0x4c] ss:$36 sps:$4 sm:$0xff]   ;;  %2062 = vmatpush1.bf16.msra.mxu0 %v3138_v2  ;;  %2185 = vmatpush1.bf16.msra.mxu1 %v3139_v3  ;;  %v3146_v8 = vld [vmem:[%s4713_s1 + $0x94] ss:$36 sps:$4 sm:$0xff]   ;;  %v3148_v9 = vld [vmem:[%s4713_s1 + $0x9c] ss:$36 sps:$4 sm:$0xff]  }
   0x4   :  { %v3144_v6 = vld [vmem:[%s4713_s1 + $0x48] ss:$36 sps:$4 sm:$0xff]   ;;  %2063 = vmatprep.subr.bf16.mxu0 %v3140_v4  ;;  %2186 = vmatprep.subr.bf16.mxu1 %v3142_v5  ;;  %v3150_v10 = vld [vmem:[%s4713_s1 + $0x90] ss:$36 sps:$4 sm:$0xff]   ;;  %v3151_v11 = vld [vmem:[%s4713_s1 + $0x98] ss:$36 sps:$4 sm:$0xff]  }
   0x5   :  { %v3152_v12 = vld [vmem:[%s4713_s1 + $0xdc] ss:$36 sps:$4 sm:$0xff]   ;;  %v3154_v13 = vld [vmem:[%s4713_s1 + $0xe4] ss:$36 sps:$4 sm:$0xff]   ;;  %v3160_v17 = vld [vmem:[%s4713_s1 + $0x12c] ss:$36 sps:$4 sm:$0xff]  }
   0x6   :  { %v3156_v14 = vld [vmem:[%s4713_s1 + $0xd8] ss:$36 sps:$4 sm:$0xff]   ;;  %v3157_v15 = vld [vmem:[%s4713_s1 + $0xe0] ss:$36 sps:$4 sm:$0xff]   ;;  %v3163_v19 = vld [vmem:[%s4713_s1 + $0x128] ss:$36 sps:$4 sm:$0xff]  }
   0x7   :  { %2064 = vmatpush1.bf16.msra.mxu0 %v3144_v6  ;;  %2187 = vmatpush1.bf16.msra.mxu1 %v3145_v7  ;;  %v3158_v16 = vld [vmem:[%s4713_s1 + $0x124] ss:$36 sps:$4 sm:$0xff]   ;;  %v3164_v20 = vld [vmem:[%s4713_s1 + $0x16c] ss:$36 sps:$4 sm:$0xff]   ;;  %v3166_v21 = vld [vmem:[%s4713_s1 + $0x174] ss:$36 sps:$4 sm:$0xff]  }
   0x8   :  { %2065 = vmatprep.subr.bf16.mxu0 %v3146_v8  ;;  %2188 = vmatprep.subr.bf16.mxu1 %v3148_v9  ;;  %v3162_v18 = vld [vmem:[%s4713_s1 + $0x120] ss:$36 sps:$4 sm:$0xff]   ;;  %v3168_v23 = vld [vmem:[%s4713_s1 + $0x168] ss:$36 sps:$4 sm:$0xff]   ;;  %v3169_v24 = vld [vmem:[%s4713_s1 + $0x170] ss:$36 sps:$4 sm:$0xff]  }
   0x9   :  { %v3170_v25 = vld [vmem:[%s4713_s1 + $0x1b4] ss:$36 sps:$4 sm:$0xff]   ;;  %v3172_v26 = vld [vmem:[%s4713_s1 + $0x1bc] ss:$36 sps:$4 sm:$0xff]   ;;  %v3178_v30 = vld [vmem:[%s4713_s1 + $0x204] ss:$36 sps:$4 sm:$0xff]  }
   0xa   :  { %v3174_v27 = vld [vmem:[%s4713_s1 + $0x1b0] ss:$36 sps:$4 sm:$0xff]   ;;  %v3175_v28 = vld [vmem:[%s4713_s1 + $0x1b8] ss:$36 sps:$4 sm:$0xff]   ;;  %v3181_v32 = vld [vmem:[%s4713_s1 + $0x200] ss:$36 sps:$4 sm:$0xff]  }
   0xb   :  { %2066 = vmatpush1.bf16.msra.mxu0 %v3150_v10  ;;  %2189 = vmatpush1.bf16.msra.mxu1 %v3151_v11  ;;  %v3176_v29 = vld [vmem:[%s4713_s1 + $0x1fc] ss:$36 sps:$4 sm:$0xff]   ;;  %v3182_v33 = vld [vmem:[%s4713_s1 + $0x244] ss:$36 sps:$4 sm:$0xff]   ;;  %v3184_v34 = vld [vmem:[%s4713_s1 + $0x24c] ss:$36 sps:$4 sm:$0xff]  }
   0xc   :  { %2067 = vmatprep.subr.bf16.mxu0 %v3152_v12  ;;  %2190 = vmatprep.subr.bf16.mxu1 %v3154_v13  ;;  %v3180_v31 = vld [vmem:[%s4713_s1 + $0x1f8] ss:$36 sps:$4 sm:$0xff]   ;;  %v3186_v35 = vld [vmem:[%s4713_s1 + $0x240] ss:$36 sps:$4 sm:$0xff]   ;;  %v3187_v36 = vld [vmem:[%s4713_s1 + $0x248] ss:$36 sps:$4 sm:$0xff]  }
   0xd   :  { %v3188_v37 = vld [vmem:[%s4713_s1 + $0x28c] ss:$36 sps:$4 sm:$0xff]   ;;  %v3190_v38 = vld [vmem:[%s4713_s1 + $0x294] ss:$36 sps:$4 sm:$0xff]   ;;  %v3196_v42 = vld [vmem:[%s4713_s1 + $0x2dc] ss:$36 sps:$4 sm:$0xff]  }
   0xe   :  { %v3192_v39 = vld [vmem:[%s4713_s1 + $0x288] ss:$36 sps:$4 sm:$0xff]   ;;  %v3193_v40 = vld [vmem:[%s4713_s1 + $0x290] ss:$36 sps:$4 sm:$0xff]   ;;  %v3199_v44 = vld [vmem:[%s4713_s1 + $0x2d8] ss:$36 sps:$4 sm:$0xff]  }
   0xf   :  { %2068 = vmatpush1.bf16.msra.mxu0 %v3156_v14  ;;  %2191 = vmatpush1.bf16.msra.mxu1 %v3157_v15  ;;  %v3194_v41 = vld [vmem:[%s4713_s1 + $0x2d4] ss:$36 sps:$4 sm:$0xff]   ;;  %v3200_v45 = vld [vmem:[%s4713_s1 + $0x31c] ss:$36 sps:$4 sm:$0xff]   ;;  %v3202_v46 = vld [vmem:[%s4713_s1 + $0x324] ss:$36 sps:$4 sm:$0xff]  }
  0x10   :  { %2069 = vmatprep.subr.bf16.mxu0 %v3158_v16  ;;  %2192 = vmatprep.subr.bf16.mxu1 %v3160_v17  ;;  %v3198_v43 = vld [vmem:[%s4713_s1 + $0x2d0] ss:$36 sps:$4 sm:$0xff]   ;;  %v15_v47 = vld [vmem:[%s4714_s0] sm:$0xff]  ;;  %v3204_v48 = vld [vmem:[%s4713_s1 + $0x318] ss:$36 sps:$4 sm:$0xff]  }
  0x11   :  { %v3794_v49 = vcombine.high %v15_v47, %v15_v47  ;;  %v3205_v50 = vld [vmem:[%s4713_s1 + $0x320] ss:$36 sps:$4 sm:$0xff]   ;;  %v3208_v52 = vld [vmem:[%s4713_s1 + $0x36c] ss:$36 sps:$4 sm:$0xff]   ;;  %v3214_v56 = vld [vmem:[%s4713_s1 + $0x3b4] ss:$36 sps:$4 sm:$0xff]   ;;  %v3858_v6 = vcombine.low %v15_v47, %v15_v47 }
  0x12   :  { %v3206_v51 = vld [vmem:[%s4713_s1 + $0x364] ss:$36 sps:$4 sm:$0xff]   ;;  %v3212_v55 = vld [vmem:[%s4713_s1 + $0x3ac] ss:$36 sps:$4 sm:$0xff]   ;;  %v3218_v59 = vld [vmem:[%s4713_s1 + $0x3f4] ss:$36 sps:$4 sm:$0xff]  }
  0x13   :  { %2070 = vmatpush1.bf16.msra.mxu0 %v3162_v18  ;;  %2193 = vmatpush1.bf16.msra.mxu1 %v3163_v19  ;;  %v3210_v53 = vld [vmem:[%s4713_s1 + $0x360] ss:$36 sps:$4 sm:$0xff]   ;;  %v3211_v54 = vld [vmem:[%s4713_s1 + $0x368] ss:$36 sps:$4 sm:$0xff]   ;;  %v3217_v58 = vld [vmem:[%s4713_s1 + $0x3b0] ss:$36 sps:$4 sm:$0xff]  }
  0x14   :  { %2071 = vmatprep.subr.bf16.mxu0 %v3164_v20  ;;  %2194 = vmatprep.subr.bf16.mxu1 %v3166_v21  ;;  %v3216_v57 = vld [vmem:[%s4713_s1 + $0x3a8] ss:$36 sps:$4 sm:$0xff]   ;;  %v3220_v60 = vld [vmem:[%s4713_s1 + $0x3fc] ss:$36 sps:$4 sm:$0xff]   ;;  %v3222_v61 = vld [vmem:[%s4713_s1 + $0x3f0] ss:$36 sps:$4 sm:$0xff]  }
  0x15   :  { %2093 = vmatprep.mubr.bf16.mxu0 %v3794_v49  ;;  %2216 = vmatprep.mubr.bf16.mxu1 %v3794_v49  ;;  %v3223_v62 = vld [vmem:[%s4713_s1 + $0x3f8] ss:$36 sps:$4 sm:$0xff]   ;;  %v3226_v0 = vld [vmem:[%s4713_s1 + $0x444] ss:$36 sps:$4 sm:$0xff]   ;;  %v3236_v4 = vld [vmem:[%s4713_s1 + $0x48c] ss:$36 sps:$4 sm:$0xff]  }
  0x16   :  { %v3224_v63 = vld [vmem:[%s4713_s1 + $0x43c] ss:$36 sps:$4 sm:$0xff]   ;;  %v3233_v3 = vld [vmem:[%s4713_s1 + $0x484] ss:$36 sps:$4 sm:$0xff]   ;;  %v3240_v8 = vld [vmem:[%s4713_s1 + $0x4cc] ss:$36 sps:$4 sm:$0xff]  }
  0x17   :  { %2072 = vmatpush1.bf16.msra.mxu0 %v3168_v23  ;;  %2195 = vmatpush1.bf16.msra.mxu1 %v3169_v24  ;;  %v3228_v1 = vld [vmem:[%s4713_s1 + $0x438] ss:$36 sps:$4 sm:$0xff]   ;;  %v3229_v2 = vld [vmem:[%s4713_s1 + $0x440] ss:$36 sps:$4 sm:$0xff]   ;;  %v3234_v7 = vld [vmem:[%s4713_s1 + $0x488] ss:$36 sps:$4 sm:$0xff]  }
  0x18   :  { %2073 = vmatprep.subr.bf16.mxu0 %v3170_v25  ;;  %2196 = vmatprep.subr.bf16.mxu1 %v3172_v26  ;;  %v3231_v5 = vld [vmem:[%s4713_s1 + $0x480] ss:$36 sps:$4 sm:$0xff]   ;;  %v3243_v9 = vld [vmem:[%s4713_s1 + $0x4d4] ss:$36 sps:$4 sm:$0xff]   ;;  %v3238_v10 = vld [vmem:[%s4713_s1 + $0x4c8] ss:$36 sps:$4 sm:$0xff]  }
  0x19   :  { %v3241_v11 = vld [vmem:[%s4713_s1 + $0x4d0] ss:$36 sps:$4 sm:$0xff]   ;;  %v3249_v13 = vld [vmem:[%s4713_s1 + $0x51c] ss:$36 sps:$4 sm:$0xff]   ;;  %v3255_v17 = vld [vmem:[%s4713_s1 + $0x564] ss:$36 sps:$4 sm:$0xff]  }
  0x1a   :  { %v3246_v12 = vld [vmem:[%s4713_s1 + $0x514] ss:$36 sps:$4 sm:$0xff]   ;;  %v3252_v16 = vld [vmem:[%s4713_s1 + $0x55c] ss:$36 sps:$4 sm:$0xff]   ;;  %v3258_v20 = vld [vmem:[%s4713_s1 + $0x5a4] ss:$36 sps:$4 sm:$0xff]  }
  0x1b   :  { %2074 = vmatpush1.bf16.msra.mxu0 %v3174_v27  ;;  %2197 = vmatpush1.bf16.msra.mxu1 %v3175_v28  ;;  %v3244_v14 = vld [vmem:[%s4713_s1 + $0x510] ss:$36 sps:$4 sm:$0xff]   ;;  %v3247_v15 = vld [vmem:[%s4713_s1 + $0x518] ss:$36 sps:$4 sm:$0xff]   ;;  %v3253_v19 = vld [vmem:[%s4713_s1 + $0x560] ss:$36 sps:$4 sm:$0xff]  }
  0x1c   :  { %2075 = vmatprep.subr.bf16.mxu0 %v3176_v29  ;;  %2198 = vmatprep.subr.bf16.mxu1 %v3178_v30  ;;  %v3250_v18 = vld [vmem:[%s4713_s1 + $0x558] ss:$36 sps:$4 sm:$0xff]   ;;  %v3261_v21 = vld [vmem:[%s4713_s1 + $0x5ac] ss:$36 sps:$4 sm:$0xff]   ;;  %v3256_v23 = vld [vmem:[%s4713_s1 + $0x5a0] ss:$36 sps:$4 sm:$0xff]  }
  0x1d   :  { %v3259_v24 = vld [vmem:[%s4713_s1 + $0x5a8] ss:$36 sps:$4 sm:$0xff]   ;;  %v3267_v26 = vld [vmem:[%s4713_s1 + $0x5f4] ss:$36 sps:$4 sm:$0xff]   ;;  %v3273_v30 = vld [vmem:[%s4713_s1 + $0x63c] ss:$36 sps:$4 sm:$0xff]  }
  0x1e   :  { %v3264_v25 = vld [vmem:[%s4713_s1 + $0x5ec] ss:$36 sps:$4 sm:$0xff]   ;;  %v3270_v29 = vld [vmem:[%s4713_s1 + $0x634] ss:$36 sps:$4 sm:$0xff]  }
  0x1f   :  { %2076 = vmatpush1.bf16.msra.mxu0 %v3180_v31  ;;  %2199 = vmatpush1.bf16.msra.mxu1 %v3181_v32  ;;  %v3262_v27 = vld [vmem:[%s4713_s1 + $0x5e8] ss:$36 sps:$4 sm:$0xff]   ;;  %v3265_v28 = vld [vmem:[%s4713_s1 + $0x5f0] ss:$36 sps:$4 sm:$0xff]  }
  0x20   :  { %2077 = vmatprep.subr.bf16.mxu0 %v3182_v33  ;;  %2200 = vmatprep.subr.bf16.mxu1 %v3184_v34  ;;  %v3934_v31 = vld [vmem:[%s4714_s0 + $0x8] sm:$0xff]  ;;  %v3268_v33 = vld [vmem:[%s4713_s1 + $0x630] ss:$36 sps:$4 sm:$0xff]   ;;  %v3271_v34 = vld [vmem:[%s4713_s1 + $0x638] ss:$36 sps:$4 sm:$0xff]  }
  0x21   :  { %v3938_v32 = vcombine.high %v3934_v31, %v3934_v31  ;;  %v3294_v47 = vld [vmem:[%s4713_s1 + $0x754] ss:$36 sps:$4 sm:$0xff]  }
  0x23   :  { %2078 = vmatpush1.bf16.msra.mxu0 %v3186_v35  ;;  %2201 = vmatpush1.bf16.msra.mxu1 %v3187_v36  ;;  %v3276_v35 = vld [vmem:[%s4713_s1 + $0x67c] ss:$36 sps:$4 sm:$0xff]   ;;  %v3279_v36 = vld [vmem:[%s4713_s1 + $0x684] ss:$36 sps:$4 sm:$0xff]  }
  0x24   :  { %2079 = vmatprep.subr.bf16.mxu0 %v3188_v37  ;;  %2202 = vmatprep.subr.bf16.mxu1 %v3190_v38  ;;  %v3274_v37 = vld [vmem:[%s4713_s1 + $0x678] ss:$36 sps:$4 sm:$0xff]   ;;  %v3277_v38 = vld [vmem:[%s4713_s1 + $0x680] ss:$36 sps:$4 sm:$0xff]  }
  0x27   :  { %2080 = vmatpush1.bf16.msra.mxu0 %v3192_v39  ;;  %2203 = vmatpush1.bf16.msra.mxu1 %v3193_v40  ;;  %v3282_v39 = vld [vmem:[%s4713_s1 + $0x6c4] ss:$36 sps:$4 sm:$0xff]   ;;  %v3285_v40 = vld [vmem:[%s4713_s1 + $0x6cc] ss:$36 sps:$4 sm:$0xff]  }
  0x28   :  { %2081 = vmatprep.subr.bf16.mxu0 %v3194_v41  ;;  %2204 = vmatprep.subr.bf16.mxu1 %v3196_v42  ;;  %v3280_v41 = vld [vmem:[%s4713_s1 + $0x6c0] ss:$36 sps:$4 sm:$0xff]   ;;  %v3283_v42 = vld [vmem:[%s4713_s1 + $0x6c8] ss:$36 sps:$4 sm:$0xff]  }
  0x2b   :  { %2082 = vmatpush1.bf16.msra.mxu0 %v3198_v43  ;;  %2205 = vmatpush1.bf16.msra.mxu1 %v3199_v44  ;;  %v3288_v43 = vld [vmem:[%s4713_s1 + $0x70c] ss:$36 sps:$4 sm:$0xff]   ;;  %v3291_v44 = vld [vmem:[%s4713_s1 + $0x714] ss:$36 sps:$4 sm:$0xff]  }
  0x2c   :  { %2083 = vmatprep.subr.bf16.mxu0 %v3200_v45  ;;  %2206 = vmatprep.subr.bf16.mxu1 %v3202_v46  ;;  %v3286_v45 = vld [vmem:[%s4713_s1 + $0x708] ss:$36 sps:$4 sm:$0xff]   ;;  %v3289_v46 = vld [vmem:[%s4713_s1 + $0x710] ss:$36 sps:$4 sm:$0xff]  }
  0x2f   :  { %2084 = vmatpush1.bf16.msra.mxu0 %v3204_v48  ;;  %2207 = vmatpush1.bf16.msra.mxu1 %v3205_v50  ;;  %v3297_v48 = vld [vmem:[%s4713_s1 + $0x75c] ss:$36 sps:$4 sm:$0xff]   ;;  %v3292_v50 = vld [vmem:[%s4713_s1 + $0x750] ss:$36 sps:$4 sm:$0xff]  }
  0x30   :  { %2085 = vmatprep.subr.bf16.mxu0 %v3206_v51  ;;  %2208 = vmatprep.subr.bf16.mxu1 %v3208_v52  ;;  %v3295_v51 = vld [vmem:[%s4713_s1 + $0x758] ss:$36 sps:$4 sm:$0xff]  }
  0x31   :  { %v3300_v52 = vld [vmem:[%s4713_s1 + $0x79c] ss:$36 sps:$4 sm:$0xff]  }
  0x33   :  { %2086 = vmatpush1.bf16.msra.mxu0 %v3210_v53  ;;  %2209 = vmatpush1.bf16.msra.mxu1 %v3211_v54  ;;  %v3303_v53 = vld [vmem:[%s4713_s1 + $0x7a4] ss:$36 sps:$4 sm:$0xff]   ;;  %v3298_v54 = vld [vmem:[%s4713_s1 + $0x798] ss:$36 sps:$4 sm:$0xff]  }
  0x34   :  { %2087 = vmatprep.subr.bf16.mxu0 %v3212_v55  ;;  %2210 = vmatprep.subr.bf16.mxu1 %v3214_v56  ;;  %v3301_v55 = vld [vmem:[%s4713_s1 + $0x7a0] ss:$36 sps:$4 sm:$0xff]  }
  0x35   :  { %v3306_v56 = vld [vmem:[%s4713_s1 + $0x7e4] ss:$36 sps:$4 sm:$0xff]  }
  0x37   :  { %2088 = vmatpush1.bf16.msra.mxu0 %v3216_v57  ;;  %2211 = vmatpush1.bf16.msra.mxu1 %v3217_v58  ;;  %v3309_v57 = vld [vmem:[%s4713_s1 + $0x7ec] ss:$36 sps:$4 sm:$0xff]   ;;  %v3304_v58 = vld [vmem:[%s4713_s1 + $0x7e0] ss:$36 sps:$4 sm:$0xff]  }
  0x38   :  { %2089 = vmatprep.subr.bf16.mxu0 %v3218_v59  ;;  %2212 = vmatprep.subr.bf16.mxu1 %v3220_v60  ;;  %v3307_v59 = vld [vmem:[%s4713_s1 + $0x7e8] ss:$36 sps:$4 sm:$0xff]  }
  0x39   :  { %v3312_v60 = vld [vmem:[%s4713_s1 + $0x82c] ss:$36 sps:$4 sm:$0xff]  }
  0x3b   :  { %2090 = vmatpush1.bf16.msra.mxu0 %v3222_v61  ;;  %2213 = vmatpush1.bf16.msra.mxu1 %v3223_v62  ;;  %v3315_v61 = vld [vmem:[%s4713_s1 + $0x834] ss:$36 sps:$4 sm:$0xff]   ;;  %v3310_v62 = vld [vmem:[%s4713_s1 + $0x828] ss:$36 sps:$4 sm:$0xff]  }
  0x3c   :  { %2091 = vmatprep.subr.bf16.mxu0 %v3224_v63  ;;  %2214 = vmatprep.subr.bf16.mxu1 %v3226_v0  ;;  %v3313_v63 = vld [vmem:[%s4713_s1 + $0x830] ss:$36 sps:$4 sm:$0xff]  }
  0x3d   :  { %v3318_v0 = vld [vmem:[%s4713_s1 + $0x874] ss:$36 sps:$4 sm:$0xff]  }
  0x3f   :  { %2092 = vmatpush1.bf16.msra.mxu0 %v3228_v1  ;;  %2215 = vmatpush1.bf16.msra.mxu1 %v3229_v2  ;;  %v3321_v1 = vld [vmem:[%s4713_s1 + $0x87c] ss:$36 sps:$4 sm:$0xff]   ;;  %v3316_v2 = vld [vmem:[%s4713_s1 + $0x870] ss:$36 sps:$4 sm:$0xff]  }
  0x40   :  { %2102 = vmatprep.subr.bf16.mxu0 %v3233_v3  ;;  %2225 = vmatprep.subr.bf16.mxu1 %v3236_v4  ;;  %v3319_v3 = vld [vmem:[%s4713_s1 + $0x878] ss:$36 sps:$4 sm:$0xff]  }
  0x41   :  { %v3324_v4 = vld [vmem:[%s4713_s1 + $0x8bc] ss:$36 sps:$4 sm:$0xff]  }
  0x42   :  { %2094 = vmatmul.mubr.bf16.vlgmr.msra.gmra.mrb[0].mxu0 %v3858_v6  ;;  %2217 = vmatmul.mubr.bf16.vlgmr.msra.gmra.mrb[0].mxu1 %v3858_v6 }
  0x43   :  { %2103 = vmatpush1.bf16.msra.mxu0 %v3231_v5  ;;  %2226 = vmatpush1.bf16.msra.mxu1 %v3234_v7  ;;  %v3327_v5 = vld [vmem:[%s4713_s1 + $0x8c4] ss:$36 sps:$4 sm:$0xff]   ;;  %v3322_v7 = vld [vmem:[%s4713_s1 + $0x8b8] ss:$36 sps:$4 sm:$0xff]  }
  0x44   :  { %2104 = vmatprep.subr.bf16.mxu0 %v3240_v8  ;;  %2227 = vmatprep.subr.bf16.mxu1 %v3243_v9  ;;  %v3325_v8 = vld [vmem:[%s4713_s1 + $0x8c0] ss:$36 sps:$4 sm:$0xff]  }
  0x45   :  { %2134 = vmatprep.mubr.bf16.mxu0 %v3938_v32  ;;  %2257 = vmatprep.mubr.bf16.mxu1 %v3938_v32  ;;  %v3331_v9 = vld [vmem:[%s4713_s1 + $0x904] ss:$36 sps:$4 sm:$0xff]  }
  0x47   :  { %2105 = vmatpush1.bf16.msra.mxu0 %v3238_v10  ;;  %2228 = vmatpush1.bf16.msra.mxu1 %v3241_v11  ;;  %v3334_v10 = vld [vmem:[%s4713_s1 + $0x90c] ss:$36 sps:$4 sm:$0xff]   ;;  %v3329_v11 = vld [vmem:[%s4713_s1 + $0x900] ss:$36 sps:$4 sm:$0xff]  }
  0x48   :  { %2106 = vmatprep.subr.bf16.mxu0 %v3246_v12  ;;  %2229 = vmatprep.subr.bf16.mxu1 %v3249_v13  ;;  %v3332_v12 = vld [vmem:[%s4713_s1 + $0x908] ss:$36 sps:$4 sm:$0xff]   ;;  %v4070_v13 = vcombine.low %v3934_v31, %v3934_v31  ;;  %v3358_v31 = vld [vmem:[%s4713_s1 + $0x18] ss:$36 sps:$4 sm:$0xff]  }
  0x4b   :  { %2107 = vmatpush1.bf16.msra.mxu0 %v3244_v14  ;;  %2230 = vmatpush1.bf16.msra.mxu1 %v3247_v15  ;;  %v3338_v14 = vld [vmem:[%s4713_s1 + $0x94c] ss:$36 sps:$4 sm:$0xff]   ;;  %v3341_v15 = vld [vmem:[%s4713_s1 + $0x954] ss:$36 sps:$4 sm:$0xff]  }
  0x4c   :  { %2108 = vmatprep.subr.bf16.mxu0 %v3252_v16  ;;  %2231 = vmatprep.subr.bf16.mxu1 %v3255_v17  ;;  %v3336_v16 = vld [vmem:[%s4713_s1 + $0x948] ss:$36 sps:$4 sm:$0xff]   ;;  %v3339_v17 = vld [vmem:[%s4713_s1 + $0x950] ss:$36 sps:$4 sm:$0xff]  }
  0x4f   :  { %2109 = vmatpush1.bf16.msra.mxu0 %v3250_v18  ;;  %2232 = vmatpush1.bf16.msra.mxu1 %v3253_v19  ;;  %v3344_v18 = vld [vmem:[%s4713_s1 + $0x994] ss:$36 sps:$4 sm:$0xff]   ;;  %v3347_v19 = vld [vmem:[%s4713_s1 + $0x99c] ss:$36 sps:$4 sm:$0xff]  }
  0x50   :  { %2110 = vmatprep.subr.bf16.mxu0 %v3258_v20  ;;  %2233 = vmatprep.subr.bf16.mxu1 %v3261_v21  ;;  %v3342_v20 = vld [vmem:[%s4713_s1 + $0x990] ss:$36 sps:$4 sm:$0xff]   ;;  %v3345_v21 = vld [vmem:[%s4713_s1 + $0x998] ss:$36 sps:$4 sm:$0xff]  }
  0x53   :  { %2111 = vmatpush1.bf16.msra.mxu0 %v3256_v23  ;;  %2234 = vmatpush1.bf16.msra.mxu1 %v3259_v24  ;;  %v3350_v23 = vld [vmem:[%s4713_s1 + $0x9dc] ss:$36 sps:$4 sm:$0xff]   ;;  %v3353_v24 = vld [vmem:[%s4713_s1 + $0x9e4] ss:$36 sps:$4 sm:$0xff]  }
  0x54   :  { %2112 = vmatprep.subr.bf16.mxu0 %v3264_v25  ;;  %2235 = vmatprep.subr.bf16.mxu1 %v3267_v26  ;;  %v3348_v25 = vld [vmem:[%s4713_s1 + $0x9d8] ss:$36 sps:$4 sm:$0xff]   ;;  %v3351_v26 = vld [vmem:[%s4713_s1 + $0x9e0] ss:$36 sps:$4 sm:$0xff]  }
  0x57   :  { %2113 = vmatpush1.bf16.msra.mxu0 %v3262_v27  ;;  %2236 = vmatpush1.bf16.msra.mxu1 %v3265_v28  ;;  %v3357_v27 = vld [vmem:[%s4713_s1 + $0x14] ss:$36 sps:$4 sm:$0xff]   ;;  %v3360_v28 = vld [vmem:[%s4713_s1 + $0x1c] ss:$36 sps:$4 sm:$0xff]  }
  0x58   :  { %2114 = vmatprep.subr.bf16.mxu0 %v3270_v29  ;;  %2237 = vmatprep.subr.bf16.mxu1 %v3273_v30  ;;  %v4121_v29 = vld [vmem:[%s4714_s0 + $0x10] ss:$0 sps:$4 sm:$0xff]  }
  0x59   :  { %v3355_v30 = vld [vmem:[%s4713_s1 + $0x10] ss:$36 sps:$4 sm:$0xff]  }
  0x5b   :  { %2115 = vmatpush1.bf16.msra.mxu0 %v3268_v33  ;;  %2238 = vmatpush1.bf16.msra.mxu1 %v3271_v34  ;;  %v3363_v33 = vld [vmem:[%s4713_s1 + $0x5c] ss:$36 sps:$4 sm:$0xff]   ;;  %v3366_v34 = vld [vmem:[%s4713_s1 + $0x64] ss:$36 sps:$4 sm:$0xff]  }
  0x5c   :  { %2116 = vmatprep.subr.bf16.mxu0 %v3276_v35  ;;  %2239 = vmatprep.subr.bf16.mxu1 %v3279_v36  ;;  %v3361_v35 = vld [vmem:[%s4713_s1 + $0x58] ss:$36 sps:$4 sm:$0xff]   ;;  %v3364_v36 = vld [vmem:[%s4713_s1 + $0x60] ss:$36 sps:$4 sm:$0xff]  }
  0x5f   :  { %2117 = vmatpush1.bf16.msra.mxu0 %v3274_v37  ;;  %2240 = vmatpush1.bf16.msra.mxu1 %v3277_v38  ;;  %v3369_v37 = vld [vmem:[%s4713_s1 + $0xa4] ss:$36 sps:$4 sm:$0xff]   ;;  %v3372_v38 = vld [vmem:[%s4713_s1 + $0xac] ss:$36 sps:$4 sm:$0xff]  }
  0x60   :  { %2118 = vmatprep.subr.bf16.mxu0 %v3282_v39  ;;  %2241 = vmatprep.subr.bf16.mxu1 %v3285_v40  ;;  %v3367_v39 = vld [vmem:[%s4713_s1 + $0xa0] ss:$36 sps:$4 sm:$0xff]   ;;  %v3370_v40 = vld [vmem:[%s4713_s1 + $0xa8] ss:$36 sps:$4 sm:$0xff]  }
  0x63   :  { %2119 = vmatpush1.bf16.msra.mxu0 %v3280_v41  ;;  %2242 = vmatpush1.bf16.msra.mxu1 %v3283_v42  ;;  %v3375_v41 = vld [vmem:[%s4713_s1 + $0xec] ss:$36 sps:$4 sm:$0xff]   ;;  %v3378_v42 = vld [vmem:[%s4713_s1 + $0xf4] ss:$36 sps:$4 sm:$0xff]  }
  0x64   :  { %2120 = vmatprep.subr.bf16.mxu0 %v3288_v43  ;;  %2243 = vmatprep.subr.bf16.mxu1 %v3291_v44  ;;  %v378_v43 = vld [vmem:[%s4715_s2] sm:$0xff]  ;;  %v3373_v44 = vld [vmem:[%s4713_s1 + $0xe8] ss:$36 sps:$4 sm:$0xff]  }
  0x65   :  { %381 = vperm.xlu0 %3133, %v378_v43   ;;  %v3460_v43 = vld [vmem:[%s4713_s1 + $0x4e0] ss:$36 sps:$4 sm:$0xff]  }
  0x67   :  { %2121 = vmatpush1.bf16.msra.mxu0 %v3286_v45  ;;  %2244 = vmatpush1.bf16.msra.mxu1 %v3289_v46  ;;  %v3376_v45 = vld [vmem:[%s4713_s1 + $0xf0] ss:$36 sps:$4 sm:$0xff]  }
  0x68   :  { %2122 = vmatprep.subr.bf16.mxu0 %v3294_v47  ;;  %2245 = vmatprep.subr.bf16.mxu1 %v3297_v48  ;;  %v3381_v46 = vld [vmem:[%s4713_s1 + $0x134] ss:$36 sps:$4 sm:$0xff]   ;;  %v3384_v47 = vld [vmem:[%s4713_s1 + $0x13c] ss:$36 sps:$4 sm:$0xff]  }
  0x69   :  { %v3379_v48 = vld [vmem:[%s4713_s1 + $0x130] ss:$36 sps:$4 sm:$0xff]  }
  0x6b   :  { %2123 = vmatpush1.bf16.msra.mxu0 %v3292_v50  ;;  %2246 = vmatpush1.bf16.msra.mxu1 %v3295_v51  ;;  %v3382_v50 = vld [vmem:[%s4713_s1 + $0x138] ss:$36 sps:$4 sm:$0xff]  }
  0x6c   :  { %2124 = vmatprep.subr.bf16.mxu0 %v3300_v52  ;;  %2247 = vmatprep.subr.bf16.mxu1 %v3303_v53  ;;  %v3387_v51 = vld [vmem:[%s4713_s1 + $0x17c] ss:$36 sps:$4 sm:$0xff]   ;;  %v3390_v52 = vld [vmem:[%s4713_s1 + $0x184] ss:$36 sps:$4 sm:$0xff]  }
  0x6d   :  { %v3385_v53 = vld [vmem:[%s4713_s1 + $0x178] ss:$36 sps:$4 sm:$0xff]  }
  0x6f   :  { %2125 = vmatpush1.bf16.msra.mxu0 %v3298_v54  ;;  %2248 = vmatpush1.bf16.msra.mxu1 %v3301_v55  ;;  %v3388_v54 = vld [vmem:[%s4713_s1 + $0x180] ss:$36 sps:$4 sm:$0xff]  }
  0x70   :  { %2126 = vmatprep.subr.bf16.mxu0 %v3306_v56  ;;  %2249 = vmatprep.subr.bf16.mxu1 %v3309_v57  ;;  %v3393_v55 = vld [vmem:[%s4713_s1 + $0x1c4] ss:$36 sps:$4 sm:$0xff]   ;;  %v3396_v56 = vld [vmem:[%s4713_s1 + $0x1cc] ss:$36 sps:$4 sm:$0xff]  }
  0x71   :  { %v3391_v57 = vld [vmem:[%s4713_s1 + $0x1c0] ss:$36 sps:$4 sm:$0xff]  }
  0x73   :  { %2127 = vmatpush1.bf16.msra.mxu0 %v3304_v58  ;;  %2250 = vmatpush1.bf16.msra.mxu1 %v3307_v59  ;;  %v3394_v58 = vld [vmem:[%s4713_s1 + $0x1c8] ss:$36 sps:$4 sm:$0xff]  }
  0x74   :  { %2128 = vmatprep.subr.bf16.mxu0 %v3312_v60  ;;  %2251 = vmatprep.subr.bf16.mxu1 %v3315_v61  ;;  %v3399_v59 = vld [vmem:[%s4713_s1 + $0x20c] ss:$36 sps:$4 sm:$0xff]   ;;  %v3402_v60 = vld [vmem:[%s4713_s1 + $0x214] ss:$36 sps:$4 sm:$0xff]  }
  0x75   :  { %v3397_v61 = vld [vmem:[%s4713_s1 + $0x208] ss:$36 sps:$4 sm:$0xff]  }
  0x77   :  { %2129 = vmatpush1.bf16.msra.mxu0 %v3310_v62  ;;  %2252 = vmatpush1.bf16.msra.mxu1 %v3313_v63  ;;  %v3400_v62 = vld [vmem:[%s4713_s1 + $0x210] ss:$36 sps:$4 sm:$0xff]  }
  0x78   :  { %2130 = vmatprep.subr.bf16.mxu0 %v3318_v0  ;;  %2253 = vmatprep.subr.bf16.mxu1 %v3321_v1  ;;  %v3405_v63 = vld [vmem:[%s4713_s1 + $0x254] ss:$36 sps:$4 sm:$0xff]   ;;  %v3408_v0 = vld [vmem:[%s4713_s1 + $0x25c] ss:$36 sps:$4 sm:$0xff]  }
  0x79   :  { %v3403_v1 = vld [vmem:[%s4713_s1 + $0x250] ss:$36 sps:$4 sm:$0xff]  }
  0x7b   :  { %2131 = vmatpush1.bf16.msra.mxu0 %v3316_v2  ;;  %2254 = vmatpush1.bf16.msra.mxu1 %v3319_v3  ;;  %v3406_v2 = vld [vmem:[%s4713_s1 + $0x258] ss:$36 sps:$4 sm:$0xff]  }
  0x7c   :  { %2132 = vmatprep.subr.bf16.mxu0 %v3324_v4  ;;  %2255 = vmatprep.subr.bf16.mxu1 %v3327_v5  ;;  %v3411_v3 = vld [vmem:[%s4713_s1 + $0x29c] ss:$36 sps:$4 sm:$0xff]   ;;  %v3414_v4 = vld [vmem:[%s4713_s1 + $0x2a4] ss:$36 sps:$4 sm:$0xff]  }
  0x7d   :  { %v3409_v5 = vld [vmem:[%s4713_s1 + $0x298] ss:$36 sps:$4 sm:$0xff]  }
  0x7f   :  { %2133 = vmatpush1.bf16.msra.mxu0 %v3322_v7  ;;  %2256 = vmatpush1.bf16.msra.mxu1 %v3325_v8  ;;  %v3412_v7 = vld [vmem:[%s4713_s1 + $0x2a0] ss:$36 sps:$4 sm:$0xff]  }
  0x80   :  { %2143 = vmatprep.subr.bf16.mxu0 %v3331_v9  ;;  %2266 = vmatprep.subr.bf16.mxu1 %v3334_v10  ;;  %v3417_v8 = vld [vmem:[%s4713_s1 + $0x2e4] ss:$36 sps:$4 sm:$0xff]   ;;  %v3420_v9 = vld [vmem:[%s4713_s1 + $0x2ec] ss:$36 sps:$4 sm:$0xff]  }
  0x81   :  { %v3415_v10 = vld [vmem:[%s4713_s1 + $0x2e0] ss:$36 sps:$4 sm:$0xff]  }
  0x82   :  { %2135 = vmatmul.mubr.bf16.vlgmr.msra.gmra.mrb[0].mxu0 %v4070_v13  ;;  %2258 = vmatmul.mubr.bf16.vlgmr.msra.gmra.mrb[0].mxu1 %v4070_v13 }
  0x83   :  { %2144 = vmatpush1.bf16.msra.mxu0 %v3329_v11  ;;  %2267 = vmatpush1.bf16.msra.mxu1 %v3332_v12  ;;  %v3418_v11 = vld [vmem:[%s4713_s1 + $0x2e8] ss:$36 sps:$4 sm:$0xff]  }
  0x84   :  { %2145 = vmatprep.subr.bf16.mxu0 %v3338_v14  ;;  %2268 = vmatprep.subr.bf16.mxu1 %v3341_v15  ;;  %v3423_v12 = vld [vmem:[%s4713_s1 + $0x32c] ss:$36 sps:$4 sm:$0xff]   ;;  %v3426_v14 = vld [vmem:[%s4713_s1 + $0x334] ss:$36 sps:$4 sm:$0xff]  }
  0x85   :  { %2175 = vmatprep.mubr.bf16.mxu0 %v3626_v22  ;;  %2298 = vmatprep.mubr.bf16.mxu1 %v3626_v22  ;;  %v3421_v15 = vld [vmem:[%s4713_s1 + $0x328] ss:$36 sps:$4 sm:$0xff]  }
  0x87   :  { %2146 = vmatpush1.bf16.msra.mxu0 %v3336_v16  ;;  %2269 = vmatpush1.bf16.msra.mxu1 %v3339_v17  ;;  %v3424_v16 = vld [vmem:[%s4713_s1 + $0x330] ss:$36 sps:$4 sm:$0xff]  }
  0x88   :  { %2147 = vmatprep.subr.bf16.mxu0 %v3344_v18  ;;  %2270 = vmatprep.subr.bf16.mxu1 %v3347_v19  ;;  %v3429_v17 = vld [vmem:[%s4713_s1 + $0x374] ss:$36 sps:$4 sm:$0xff]   ;;  %v3432_v18 = vld [vmem:[%s4713_s1 + $0x37c] ss:$36 sps:$4 sm:$0xff]  }
  0x89   :  { %v3427_v19 = vld [vmem:[%s4713_s1 + $0x370] ss:$36 sps:$4 sm:$0xff]  }
  0x8b   :  { %2148 = vmatpush1.bf16.msra.mxu0 %v3342_v20  ;;  %2271 = vmatpush1.bf16.msra.mxu1 %v3345_v21  ;;  %v3430_v20 = vld [vmem:[%s4713_s1 + $0x378] ss:$36 sps:$4 sm:$0xff]  }
  0x8c   :  { %2149 = vmatprep.subr.bf16.mxu0 %v3350_v23  ;;  %2272 = vmatprep.subr.bf16.mxu1 %v3353_v24  ;;  %v3435_v21 = vld [vmem:[%s4713_s1 + $0x3bc] ss:$36 sps:$4 sm:$0xff]   ;;  %v3438_v23 = vld [vmem:[%s4713_s1 + $0x3c4] ss:$36 sps:$4 sm:$0xff]  }
  0x8d   :  { %v3433_v24 = vld [vmem:[%s4713_s1 + $0x3b8] ss:$36 sps:$4 sm:$0xff]  }
  0x8f   :  { %2150 = vmatpush1.bf16.msra.mxu0 %v3348_v25  ;;  %2273 = vmatpush1.bf16.msra.mxu1 %v3351_v26  ;;  %v3436_v25 = vld [vmem:[%s4713_s1 + $0x3c0] ss:$36 sps:$4 sm:$0xff]  }
  0x90   :  { %2307 = vmatprep.subr.bf16.mxu0 %v3357_v27  ;;  %2430 = vmatprep.subr.bf16.mxu1 %v3360_v28  ;;  %v3441_v26 = vld [vmem:[%s4713_s1 + $0x404] ss:$36 sps:$4 sm:$0xff]   ;;  %v3444_v27 = vld [vmem:[%s4713_s1 + $0x40c] ss:$36 sps:$4 sm:$0xff]  }
  0x91   :  { %v3439_v28 = vld [vmem:[%s4713_s1 + $0x400] ss:$36 sps:$4 sm:$0xff]  }
  0x92   :  { %3024 = vmatmul.mubr.msk.bf16.vlgmr.msra.gmra.mrb[0].mxu0 %vm2057_vm0, %v4121_v29  ;;  %3025 = vmatmul.mubr.msk.bf16.vlgmr.msra.gmra.mrb[0].mxu1 %vm2057_vm0, %v4121_v29 }
  0x93   :  { %2308 = vmatpush1.bf16.msra.mxu0 %v3355_v30  ;;  %2431 = vmatpush1.bf16.msra.mxu1 %v3358_v31  ;;  %v3442_v30 = vld [vmem:[%s4713_s1 + $0x408] ss:$36 sps:$4 sm:$0xff]  }
  0x94   :  { %2309 = vmatprep.subr.bf16.mxu0 %v3363_v33  ;;  %2432 = vmatprep.subr.bf16.mxu1 %v3366_v34  ;;  %v3447_v31 = vld [vmem:[%s4713_s1 + $0x44c] ss:$36 sps:$4 sm:$0xff]   ;;  %v3450_v33 = vld [vmem:[%s4713_s1 + $0x454] ss:$36 sps:$4 sm:$0xff]  }
  0x95   :  { %2339 = vmatprep.mubr.bf16.mxu0 %v3794_v49  ;;  %2462 = vmatprep.mubr.bf16.mxu1 %v3794_v49  ;;  %v3445_v34 = vld [vmem:[%s4713_s1 + $0x448] ss:$36 sps:$4 sm:$0xff]  }
  0x97   :  { %2310 = vmatpush1.bf16.msra.mxu0 %v3361_v35  ;;  %2433 = vmatpush1.bf16.msra.mxu1 %v3364_v36  ;;  %v3448_v35 = vld [vmem:[%s4713_s1 + $0x450] ss:$36 sps:$4 sm:$0xff]  }
  0x98   :  { %2311 = vmatprep.subr.bf16.mxu0 %v3369_v37  ;;  %2434 = vmatprep.subr.bf16.mxu1 %v3372_v38  ;;  %v3453_v36 = vld [vmem:[%s4713_s1 + $0x494] ss:$36 sps:$4 sm:$0xff]   ;;  %v3456_v37 = vld [vmem:[%s4713_s1 + $0x49c] ss:$36 sps:$4 sm:$0xff]  }
  0x99   :  { %v3451_v38 = vld [vmem:[%s4713_s1 + $0x490] ss:$36 sps:$4 sm:$0xff]  }
  0x9b   :  { %2312 = vmatpush1.bf16.msra.mxu0 %v3367_v39  ;;  %2435 = vmatpush1.bf16.msra.mxu1 %v3370_v40  ;;  %v3454_v39 = vld [vmem:[%s4713_s1 + $0x498] ss:$36 sps:$4 sm:$0xff]  }
  0x9c   :  { %2313 = vmatprep.subr.bf16.mxu0 %v3375_v41  ;;  %2436 = vmatprep.subr.bf16.mxu1 %v3378_v42  ;;  %v3459_v40 = vld [vmem:[%s4713_s1 + $0x4dc] ss:$36 sps:$4 sm:$0xff]   ;;  %v3462_v41 = vld [vmem:[%s4713_s1 + $0x4e4] ss:$36 sps:$4 sm:$0xff]  }
  0x9d   :  { %v3457_v42 = vld [vmem:[%s4713_s1 + $0x4d8] ss:$36 sps:$4 sm:$0xff]  }
  0x9f   :  { %2314 = vmatpush1.bf16.msra.mxu0 %v3373_v44  ;;  %2437 = vmatpush1.bf16.msra.mxu1 %v3376_v45  ;;  %v3465_v44 = vld [vmem:[%s4713_s1 + $0x524] ss:$36 sps:$4 sm:$0xff]   ;;  %v3468_v45 = vld [vmem:[%s4713_s1 + $0x52c] ss:$36 sps:$4 sm:$0xff]  }
  0xa0   :  { %2315 = vmatprep.subr.bf16.mxu0 %v3381_v46  ;;  %2438 = vmatprep.subr.bf16.mxu1 %v3384_v47  ;;  %v3463_v46 = vld [vmem:[%s4713_s1 + $0x520] ss:$36 sps:$4 sm:$0xff]   ;;  %v3466_v47 = vld [vmem:[%s4713_s1 + $0x528] ss:$36 sps:$4 sm:$0xff]  }
  0xa3   :  { %2316 = vmatpush1.bf16.msra.mxu0 %v3379_v48  ;;  %2439 = vmatpush1.bf16.msra.mxu1 %v3382_v50  ;;  %v3471_v48 = vld [vmem:[%s4713_s1 + $0x56c] ss:$36 sps:$4 sm:$0xff]   ;;  %v3474_v50 = vld [vmem:[%s4713_s1 + $0x574] ss:$36 sps:$4 sm:$0xff]  }
  0xa4   :  { %2317 = vmatprep.subr.bf16.mxu0 %v3387_v51  ;;  %2440 = vmatprep.subr.bf16.mxu1 %v3390_v52  ;;  %v3469_v51 = vld [vmem:[%s4713_s1 + $0x568] ss:$36 sps:$4 sm:$0xff]   ;;  %v3472_v52 = vld [vmem:[%s4713_s1 + $0x570] ss:$36 sps:$4 sm:$0xff]  }
  0xa7   :  { %2318 = vmatpush1.bf16.msra.mxu0 %v3385_v53  ;;  %2441 = vmatpush1.bf16.msra.mxu1 %v3388_v54  ;;  %v3477_v53 = vld [vmem:[%s4713_s1 + $0x5b4] ss:$36 sps:$4 sm:$0xff]   ;;  %v3480_v54 = vld [vmem:[%s4713_s1 + $0x5bc] ss:$36 sps:$4 sm:$0xff]  }
  0xa8   :  { %2319 = vmatprep.subr.bf16.mxu0 %v3393_v55  ;;  %2442 = vmatprep.subr.bf16.mxu1 %v3396_v56  ;;  %v3475_v55 = vld [vmem:[%s4713_s1 + $0x5b0] ss:$36 sps:$4 sm:$0xff]   ;;  %v3478_v56 = vld [vmem:[%s4713_s1 + $0x5b8] ss:$36 sps:$4 sm:$0xff]  }
  0xab   :  { %2320 = vmatpush1.bf16.msra.mxu0 %v3391_v57  ;;  %2443 = vmatpush1.bf16.msra.mxu1 %v3394_v58  ;;  %v3483_v57 = vld [vmem:[%s4713_s1 + $0x5fc] ss:$36 sps:$4 sm:$0xff]   ;;  %v3486_v58 = vld [vmem:[%s4713_s1 + $0x604] ss:$36 sps:$4 sm:$0xff]  }
  0xac   :  { %2321 = vmatprep.subr.bf16.mxu0 %v3399_v59  ;;  %2444 = vmatprep.subr.bf16.mxu1 %v3402_v60  ;;  %v3481_v59 = vld [vmem:[%s4713_s1 + $0x5f8] ss:$36 sps:$4 sm:$0xff]   ;;  %v3484_v60 = vld [vmem:[%s4713_s1 + $0x600] ss:$36 sps:$4 sm:$0xff]  }
  0xaf   :  { %2322 = vmatpush1.bf16.msra.mxu0 %v3397_v61  ;;  %2445 = vmatpush1.bf16.msra.mxu1 %v3400_v62  ;;  %v3489_v61 = vld [vmem:[%s4713_s1 + $0x644] ss:$36 sps:$4 sm:$0xff]   ;;  %v3492_v62 = vld [vmem:[%s4713_s1 + $0x64c] ss:$36 sps:$4 sm:$0xff]  }
  0xb0   :  { %2323 = vmatprep.subr.bf16.mxu0 %v3405_v63  ;;  %2446 = vmatprep.subr.bf16.mxu1 %v3408_v0  ;;  %v3487_v63 = vld [vmem:[%s4713_s1 + $0x640] ss:$36 sps:$4 sm:$0xff]   ;;  %v3490_v0 = vld [vmem:[%s4713_s1 + $0x648] ss:$36 sps:$4 sm:$0xff]  }
  0xb3   :  { %2324 = vmatpush1.bf16.msra.mxu0 %v3403_v1  ;;  %2447 = vmatpush1.bf16.msra.mxu1 %v3406_v2  ;;  %v3495_v1 = vld [vmem:[%s4713_s1 + $0x68c] ss:$36 sps:$4 sm:$0xff]   ;;  %v3498_v2 = vld [vmem:[%s4713_s1 + $0x694] ss:$36 sps:$4 sm:$0xff]  }
  0xb4   :  { %2325 = vmatprep.subr.bf16.mxu0 %v3411_v3  ;;  %2448 = vmatprep.subr.bf16.mxu1 %v3414_v4  ;;  %v3493_v3 = vld [vmem:[%s4713_s1 + $0x688] ss:$36 sps:$4 sm:$0xff]   ;;  %v3496_v4 = vld [vmem:[%s4713_s1 + $0x690] ss:$36 sps:$4 sm:$0xff]  }
  0xb7   :  { %2326 = vmatpush1.bf16.msra.mxu0 %v3409_v5  ;;  %2449 = vmatpush1.bf16.msra.mxu1 %v3412_v7  ;;  %v3501_v5 = vld [vmem:[%s4713_s1 + $0x6d4] ss:$36 sps:$4 sm:$0xff]   ;;  %v3504_v7 = vld [vmem:[%s4713_s1 + $0x6dc] ss:$36 sps:$4 sm:$0xff]  }
  0xb8   :  { %2327 = vmatprep.subr.bf16.mxu0 %v3417_v8  ;;  %2450 = vmatprep.subr.bf16.mxu1 %v3420_v9  ;;  %v3499_v8 = vld [vmem:[%s4713_s1 + $0x6d0] ss:$36 sps:$4 sm:$0xff]   ;;  %v3502_v9 = vld [vmem:[%s4713_s1 + $0x6d8] ss:$36 sps:$4 sm:$0xff]  }
  0xbb   :  { %2328 = vmatpush1.bf16.msra.mxu0 %v3415_v10  ;;  %2451 = vmatpush1.bf16.msra.mxu1 %v3418_v11  ;;  %v3507_v10 = vld [vmem:[%s4713_s1 + $0x71c] ss:$36 sps:$4 sm:$0xff]   ;;  %v3510_v11 = vld [vmem:[%s4713_s1 + $0x724] ss:$36 sps:$4 sm:$0xff]  }
  0xbc   :  { %2329 = vmatprep.subr.bf16.mxu0 %v3423_v12  ;;  %2452 = vmatprep.subr.bf16.mxu1 %v3426_v14  ;;  %v3505_v12 = vld [vmem:[%s4713_s1 + $0x718] ss:$36 sps:$4 sm:$0xff]   ;;  %v3508_v14 = vld [vmem:[%s4713_s1 + $0x720] ss:$36 sps:$4 sm:$0xff]  }
  0xbf   :  { %2330 = vmatpush1.bf16.msra.mxu0 %v3421_v15  ;;  %2453 = vmatpush1.bf16.msra.mxu1 %v3424_v16  ;;  %v3513_v15 = vld [vmem:[%s4713_s1 + $0x764] ss:$36 sps:$4 sm:$0xff]   ;;  %v3516_v16 = vld [vmem:[%s4713_s1 + $0x76c] ss:$36 sps:$4 sm:$0xff]  }
  0xc0   :  { %2331 = vmatprep.subr.bf16.mxu0 %v3429_v17  ;;  %2454 = vmatprep.subr.bf16.mxu1 %v3432_v18  ;;  %v3511_v17 = vld [vmem:[%s4713_s1 + $0x760] ss:$36 sps:$4 sm:$0xff]   ;;  %v3514_v18 = vld [vmem:[%s4713_s1 + $0x768] ss:$36 sps:$4 sm:$0xff]  }
  0xc3   :  { %2332 = vmatpush1.bf16.msra.mxu0 %v3427_v19  ;;  %2455 = vmatpush1.bf16.msra.mxu1 %v3430_v20  ;;  %v3519_v19 = vld [vmem:[%s4713_s1 + $0x7ac] ss:$36 sps:$4 sm:$0xff]   ;;  %v3522_v20 = vld [vmem:[%s4713_s1 + $0x7b4] ss:$36 sps:$4 sm:$0xff]  }
  0xc4   :  { %2333 = vmatprep.subr.bf16.mxu0 %v3435_v21  ;;  %2456 = vmatprep.subr.bf16.mxu1 %v3438_v23  ;;  %v3517_v21 = vld [vmem:[%s4713_s1 + $0x7a8] ss:$36 sps:$4 sm:$0xff]   ;;  %v3520_v23 = vld [vmem:[%s4713_s1 + $0x7b0] ss:$36 sps:$4 sm:$0xff]  }
  0xc7   :  { %2334 = vmatpush1.bf16.msra.mxu0 %v3433_v24  ;;  %2457 = vmatpush1.bf16.msra.mxu1 %v3436_v25  ;;  %v3525_v24 = vld [vmem:[%s4713_s1 + $0x7f4] ss:$36 sps:$4 sm:$0xff]   ;;  %v3528_v25 = vld [vmem:[%s4713_s1 + $0x7fc] ss:$36 sps:$4 sm:$0xff]  }
  0xc8   :  { %2335 = vmatprep.subr.bf16.mxu0 %v3441_v26  ;;  %2458 = vmatprep.subr.bf16.mxu1 %v3444_v27  ;;  %v3523_v26 = vld [vmem:[%s4713_s1 + $0x7f0] ss:$36 sps:$4 sm:$0xff]   ;;  %v3526_v27 = vld [vmem:[%s4713_s1 + $0x7f8] ss:$36 sps:$4 sm:$0xff]  }
  0xcb   :  { %2336 = vmatpush1.bf16.msra.mxu0 %v3439_v28  ;;  %2459 = vmatpush1.bf16.msra.mxu1 %v3442_v30  ;;  %v3531_v28 = vld [vmem:[%s4713_s1 + $0x83c] ss:$36 sps:$4 sm:$0xff]   ;;  %v3534_v30 = vld [vmem:[%s4713_s1 + $0x844] ss:$36 sps:$4 sm:$0xff]  }
  0xcc   :  { %2337 = vmatprep.subr.bf16.mxu0 %v3447_v31  ;;  %2460 = vmatprep.subr.bf16.mxu1 %v3450_v33  ;;  %v3529_v31 = vld [vmem:[%s4713_s1 + $0x838] ss:$36 sps:$4 sm:$0xff]   ;;  %v3532_v33 = vld [vmem:[%s4713_s1 + $0x840] ss:$36 sps:$4 sm:$0xff]  }
  0xcf   :  { %2338 = vmatpush1.bf16.msra.mxu0 %v3445_v34  ;;  %2461 = vmatpush1.bf16.msra.mxu1 %v3448_v35  ;;  %v3537_v34 = vld [vmem:[%s4713_s1 + $0x884] ss:$36 sps:$4 sm:$0xff]   ;;  %v3540_v35 = vld [vmem:[%s4713_s1 + $0x88c] ss:$36 sps:$4 sm:$0xff]  }
  0xd0   :  { %2348 = vmatprep.subr.bf16.mxu0 %v3453_v36  ;;  %2471 = vmatprep.subr.bf16.mxu1 %v3456_v37  ;;  %v3535_v36 = vld [vmem:[%s4713_s1 + $0x880] ss:$36 sps:$4 sm:$0xff]   ;;  %v3538_v37 = vld [vmem:[%s4713_s1 + $0x888] ss:$36 sps:$4 sm:$0xff]  }
  0xd2   :  { %2340 = vmatmul.mubr.bf16.vlgmr.msra.gmra.mrb[4].mxu0 %v3858_v6  ;;  %2463 = vmatmul.mubr.bf16.vlgmr.msra.gmra.mrb[4].mxu1 %v3858_v6 }
  0xd3   :  { %2349 = vmatpush1.bf16.msra.mxu0 %v3451_v38  ;;  %2472 = vmatpush1.bf16.msra.mxu1 %v3454_v39  ;;  %v3543_v38 = vld [vmem:[%s4713_s1 + $0x8cc] ss:$36 sps:$4 sm:$0xff]   ;;  %v3546_v39 = vld [vmem:[%s4713_s1 + $0x8d4] ss:$36 sps:$4 sm:$0xff]  }
  0xd4   :  { %2350 = vmatprep.subr.bf16.mxu0 %v3459_v40  ;;  %2473 = vmatprep.subr.bf16.mxu1 %v3462_v41  ;;  %v3541_v40 = vld [vmem:[%s4713_s1 + $0x8c8] ss:$36 sps:$4 sm:$0xff]   ;;  %v3544_v41 = vld [vmem:[%s4713_s1 + $0x8d0] ss:$36 sps:$4 sm:$0xff]  }
  0xd5   :  { %2380 = vmatprep.mubr.bf16.mxu0 %v3938_v32  ;;  %2503 = vmatprep.mubr.bf16.mxu1 %v3938_v32 }
  0xd7   :  { %2351 = vmatpush1.bf16.msra.mxu0 %v3457_v42  ;;  %2474 = vmatpush1.bf16.msra.mxu1 %v3460_v43  ;;  %v3549_v42 = vld [vmem:[%s4713_s1 + $0x914] ss:$36 sps:$4 sm:$0xff]   ;;  %v3552_v43 = vld [vmem:[%s4713_s1 + $0x91c] ss:$36 sps:$4 sm:$0xff]  }
  0xd8   :  { %2352 = vmatprep.subr.bf16.mxu0 %v3465_v44  ;;  %2475 = vmatprep.subr.bf16.mxu1 %v3468_v45  ;;  %v3547_v44 = vld [vmem:[%s4713_s1 + $0x910] ss:$36 sps:$4 sm:$0xff]   ;;  %v3550_v45 = vld [vmem:[%s4713_s1 + $0x918] ss:$36 sps:$4 sm:$0xff]  }
  0xdb   :  { %2353 = vmatpush1.bf16.msra.mxu0 %v3463_v46  ;;  %2476 = vmatpush1.bf16.msra.mxu1 %v3466_v47  ;;  %v3555_v46 = vld [vmem:[%s4713_s1 + $0x95c] ss:$36 sps:$4 sm:$0xff]   ;;  %v3558_v47 = vld [vmem:[%s4713_s1 + $0x964] ss:$36 sps:$4 sm:$0xff]  }
  0xdc   :  { %2354 = vmatprep.subr.bf16.mxu0 %v3471_v48  ;;  %2477 = vmatprep.subr.bf16.mxu1 %v3474_v50  ;;  %v3553_v48 = vld [vmem:[%s4713_s1 + $0x958] ss:$36 sps:$4 sm:$0xff]   ;;  %v3556_v50 = vld [vmem:[%s4713_s1 + $0x960] ss:$36 sps:$4 sm:$0xff]  }
  0xdf   :  { %2355 = vmatpush1.bf16.msra.mxu0 %v3469_v51  ;;  %2478 = vmatpush1.bf16.msra.mxu1 %v3472_v52  ;;  %v3561_v51 = vld [vmem:[%s4713_s1 + $0x9a4] ss:$36 sps:$4 sm:$0xff]   ;;  %v3564_v52 = vld [vmem:[%s4713_s1 + $0x9ac] ss:$36 sps:$4 sm:$0xff]  }
  0xe0   :  { %2356 = vmatprep.subr.bf16.mxu0 %v3477_v53  ;;  %2479 = vmatprep.subr.bf16.mxu1 %v3480_v54  ;;  %v3559_v53 = vld [vmem:[%s4713_s1 + $0x9a0] ss:$36 sps:$4 sm:$0xff]   ;;  %v3562_v54 = vld [vmem:[%s4713_s1 + $0x9a8] ss:$36 sps:$4 sm:$0xff]  }
  0xe3   :  { %2357 = vmatpush1.bf16.msra.mxu0 %v3475_v55  ;;  %2480 = vmatpush1.bf16.msra.mxu1 %v3478_v56  ;;  %v3567_v55 = vld [vmem:[%s4713_s1 + $0x9ec] ss:$36 sps:$4 sm:$0xff]  }
  0xe4   :  { %2358 = vmatprep.subr.bf16.mxu0 %v3483_v57  ;;  %2481 = vmatprep.subr.bf16.mxu1 %v3486_v58  ;;  %v3565_v56 = vld [vmem:[%s4713_s1 + $0x9e8] ss:$36 sps:$4 sm:$0xff]   ;;  %v3568_v57 = vld [vmem:[%s4713_s1 + $0x9f0] ss:$36 sps:$4 sm:$0xff]   ;;  %v3571_v58 = vld [vmem:[%s4713_s1 + $0x260] ss:$36 sps:$4 sm:$0xff]  }
  0xe7   :  { %2359 = vmatpush1.bf16.msra.mxu0 %v3481_v59  ;;  %2482 = vmatpush1.bf16.msra.mxu1 %v3484_v60  ;;  %v3573_v59 = vld [vmem:[%s4713_s1 + $0x6e0] ss:$36 sps:$4 sm:$0xff]  }
  0xe8   :  { %2360 = vmatprep.subr.bf16.mxu0 %v3489_v61  ;;  %2483 = vmatprep.subr.bf16.mxu1 %v3492_v62  ;;  %v3572_v60 = vld [vmem:[%s4713_s1 + $0x20] ss:$36 sps:$4 sm:$0xff]   ;;  %v3575_v62 = vld [vmem:[%s4713_s1 + $0x2a8] ss:$36 sps:$4 sm:$0xff]  }
  0xe9   :  { %v3574_v61 = vld [vmem:[%s4713_s1 + $0x4a0] ss:$36 sps:$4 sm:$0xff]  }
  0xeb   :  { %2361 = vmatpush1.bf16.msra.mxu0 %v3487_v63  ;;  %2484 = vmatpush1.bf16.msra.mxu1 %v3490_v0  ;;  %v3577_v63 = vld [vmem:[%s4713_s1 + $0x728] ss:$36 sps:$4 sm:$0xff]  }
  0xec   :  { %2362 = vmatprep.subr.bf16.mxu0 %v3495_v1  ;;  %2485 = vmatprep.subr.bf16.mxu1 %v3498_v2  ;;  %v3576_v0 = vld [vmem:[%s4713_s1 + $0x68] ss:$36 sps:$4 sm:$0xff]   ;;  %v3579_v2 = vld [vmem:[%s4713_s1 + $0x2f0] ss:$36 sps:$4 sm:$0xff]  }
  0xed   :  { %v3578_v1 = vld [vmem:[%s4713_s1 + $0x4e8] ss:$36 sps:$4 sm:$0xff]  }
  0xef   :  { %2363 = vmatpush1.bf16.msra.mxu0 %v3493_v3  ;;  %2486 = vmatpush1.bf16.msra.mxu1 %v3496_v4  ;;  %v3580_v3 = vld [vmem:[%s4713_s1 + $0xb0] ss:$36 sps:$4 sm:$0xff]  }
  0xf0   :  { %2364 = vmatprep.subr.bf16.mxu0 %v3501_v5  ;;  %2487 = vmatprep.subr.bf16.mxu1 %v3504_v7  ;;  %v3582_v4 = vld [vmem:[%s4713_s1 + $0x530] ss:$36 sps:$4 sm:$0xff]   ;;  %v3583_v5 = vld [vmem:[%s4713_s1 + $0x338] ss:$36 sps:$4 sm:$0xff]  }
  0xf1   :  { %v3586_v7 = vld [vmem:[%s4713_s1 + $0x578] ss:$36 sps:$4 sm:$0xff]  }
  0xf3   :  { %2365 = vmatpush1.bf16.msra.mxu0 %v3499_v8  ;;  %2488 = vmatpush1.bf16.msra.mxu1 %v3502_v9  ;;  %v3587_v8 = vld [vmem:[%s4713_s1 + $0x380] ss:$36 sps:$4 sm:$0xff]  }
  0xf4   :  { %2366 = vmatprep.subr.bf16.mxu0 %v3507_v10  ;;  %2489 = vmatprep.subr.bf16.mxu1 %v3510_v11  ;;  %v3589_v9 = vld [vmem:[%s4713_s1 + $0x800] ss:$36 sps:$4 sm:$0xff]  }
  0xf5   :  { %v3588_v10 = vld [vmem:[%s4713_s1 + $0x140] ss:$36 sps:$4 sm:$0xff]  }
  0xf6   :  { %v3590_v11 = vld [vmem:[%s4713_s1 + $0x5c0] ss:$36 sps:$4 sm:$0xff]  }
  0xf7   :  { %2367 = vmatpush1.bf16.msra.mxu0 %v3505_v12  ;;  %2490 = vmatpush1.bf16.msra.mxu1 %v3508_v14  ;;  %v3591_v12 = vld [vmem:[%s4713_s1 + $0x3c8] ss:$36 sps:$4 sm:$0xff]  }
  0xf8   :  { %2368 = vmatprep.subr.bf16.mxu0 %v3513_v15  ;;  %2491 = vmatprep.subr.bf16.mxu1 %v3516_v16  ;;  %v3593_v14 = vld [vmem:[%s4713_s1 + $0x848] ss:$36 sps:$4 sm:$0xff]  }
  0xf9   :  { %v3592_v15 = vld [vmem:[%s4713_s1 + $0x188] ss:$36 sps:$4 sm:$0xff]  }
  0xfa   :  { %v3594_v16 = vld [vmem:[%s4713_s1 + $0x608] ss:$36 sps:$4 sm:$0xff]  }
  0xfb   :  { %2369 = vmatpush1.bf16.msra.mxu0 %v3511_v17  ;;  %2492 = vmatpush1.bf16.msra.mxu1 %v3514_v18  ;;  %v3595_v17 = vld [vmem:[%s4713_s1 + $0x410] ss:$36 sps:$4 sm:$0xff]  }
  0xfc   :  { %2370 = vmatprep.subr.bf16.mxu0 %v3519_v19  ;;  %2493 = vmatprep.subr.bf16.mxu1 %v3522_v20  ;;  %v3597_v18 = vld [vmem:[%s4713_s1 + $0x890] ss:$36 sps:$4 sm:$0xff]  }
  0xfd   :  { %v3596_v19 = vld [vmem:[%s4713_s1 + $0x1d0] ss:$36 sps:$4 sm:$0xff]  }
  0xfe   :  { %v3598_v20 = vld [vmem:[%s4713_s1 + $0x650] ss:$36 sps:$4 sm:$0xff]  }
  0xff   :  { %2371 = vmatpush1.bf16.msra.mxu0 %v3517_v21  ;;  %2494 = vmatpush1.bf16.msra.mxu1 %v3520_v23  ;;  %v3599_v21 = vld [vmem:[%s4713_s1 + $0x458] ss:$36 sps:$4 sm:$0xff]  }
 0x100   :  { %2372 = vmatprep.subr.bf16.mxu0 %v3525_v24  ;;  %2495 = vmatprep.subr.bf16.mxu1 %v3528_v25  ;;  %v3601_v23 = vld [vmem:[%s4713_s1 + $0x8d8] ss:$36 sps:$4 sm:$0xff]  }
 0x101   :  { %v3600_v24 = vld [vmem:[%s4713_s1 + $0x218] ss:$36 sps:$4 sm:$0xff]  }
 0x102   :  { %v3602_v25 = vld [vmem:[%s4713_s1 + $0x698] ss:$36 sps:$4 sm:$0xff]  }
 0x103   :  { %2373 = vmatpush1.bf16.msra.mxu0 %v3523_v26  ;;  %2496 = vmatpush1.bf16.msra.mxu1 %v3526_v27  ;;  %v3603_v26 = vld [vmem:[%s4713_s1 + $0x920] ss:$36 sps:$4 sm:$0xff]   ;;  %v3627_v27 = vmov 0.0  }
 0x104   :  { %2374 = vmatprep.subr.bf16.mxu0 %v3531_v28  ;;  %2497 = vmatprep.subr.bf16.mxu1 %v3534_v30  ;;  %v3604_v28 = vld [vmem:[%s4713_s1 + $0x968] ss:$36 sps:$4 sm:$0xff]   ;;  %v3605_v30 = vld [vmem:[%s4713_s1 + $0x9b0] ss:$36 sps:$4 sm:$0xff]  }
 0x107   :  { %2375 = vmatpush1.bf16.msra.mxu0 %v3529_v31  ;;  %2498 = vmatpush1.bf16.msra.mxu1 %v3532_v33  ;;  %v382_v31 = vpop.permute.xlu0 %381 }
 0x108   :  { %2376 = vmatprep.subr.bf16.mxu0 %v3537_v34  ;;  %2499 = vmatprep.subr.bf16.mxu1 %v3540_v35 }
 0x10b   :  { %2377 = vmatpush1.bf16.msra.mxu0 %v3535_v36  ;;  %2500 = vmatpush1.bf16.msra.mxu1 %v3538_v37 }
 0x10c   :  { %2378 = vmatprep.subr.bf16.mxu0 %v3543_v38  ;;  %2501 = vmatprep.subr.bf16.mxu1 %v3546_v39 }
 0x10f   :  { %2379 = vmatpush1.bf16.msra.mxu0 %v3541_v40  ;;  %2502 = vmatpush1.bf16.msra.mxu1 %v3544_v41 }
 0x110   :  { %2389 = vmatprep.subr.bf16.mxu0 %v3549_v42  ;;  %2512 = vmatprep.subr.bf16.mxu1 %v3552_v43 }
 0x112   :  { %2381 = vmatmul.mubr.bf16.vlgmr.msra.gmra.mrb[4].mxu0 %v4070_v13  ;;  %2504 = vmatmul.mubr.bf16.vlgmr.msra.gmra.mrb[4].mxu1 %v4070_v13 }
 0x113   :  { %2390 = vmatpush1.bf16.msra.mxu0 %v3547_v44  ;;  %2513 = vmatpush1.bf16.msra.mxu1 %v3550_v45 }
 0x114   :  { %2391 = vmatprep.subr.bf16.mxu0 %v3555_v46  ;;  %2514 = vmatprep.subr.bf16.mxu1 %v3558_v47 }
 0x115   :  { %2421 = vmatprep.mubr.bf16.mxu0 %v3626_v22  ;;  %2544 = vmatprep.mubr.bf16.mxu1 %v3626_v22  ;;  %v3570_v22 = vld [vmem:[%s4713_s1 + $0x9f4] ss:$36 sps:$4 sm:$0xff]  }
 0x117   :  { %2392 = vmatpush1.bf16.msra.mxu0 %v3553_v48  ;;  %2515 = vmatpush1.bf16.msra.mxu1 %v3556_v50 }
 0x118   :  { %2393 = vmatprep.subr.bf16.mxu0 %v3561_v51  ;;  %2516 = vmatprep.subr.bf16.mxu1 %v3564_v52 }
 0x11b   :  { %2394 = vmatpush1.bf16.msra.mxu0 %v3559_v53  ;;  %2517 = vmatpush1.bf16.msra.mxu1 %v3562_v54 }
 0x11c   :  { %2395 = vmatprep.subr.bf16.mxu0 %v3567_v55  ;;  %2518 = vmatprep.subr.bf16.mxu1 %v3570_v22 }
 0x11f   :  { %2396 = vmatpush1.bf16.msra.mxu0 %v3565_v56  ;;  %2519 = vmatpush1.bf16.msra.mxu1 %v3568_v57 }
 0x120   :  { %3029 = vmatprep.subr.bf16.mxu0 %v3571_v58  ;;  %3051 = vmatprep.subr.bf16.mxu1 %v3573_v59 }
 0x122   :  { %3026 = vmatmul.mubr.msk.bf16.vlgmr.msra.gmra.mrb[4].mxu0 %vm2057_vm0, %v4121_v29  ;;  %3027 = vmatmul.mubr.msk.bf16.vlgmr.msra.gmra.mrb[4].mxu1 %vm2057_vm0, %v4121_v29  ;;  %v3581_v29 = vld [vmem:[%s4713_s1 + $0x770] ss:$36 sps:$4 sm:$0xff]  }
 0x123   :  { %3030 = vmatpush3.bf16.msra.mxu0 %v3572_v60  ;;  %3052 = vmatpush3.bf16.msra.mxu1 %v3574_v61 }
 0x124   :  { %3031 = vmatprep.subr.bf16.mxu0 %v3575_v62  ;;  %3053 = vmatprep.subr.bf16.mxu1 %v3577_v63 }
 0x125   :  { %2585 = vmatprep.mubr.bf16.mxu0 %v3794_v49  ;;  %2625 = vmatprep.mubr.bf16.mxu1 %v3938_v32  ;;  %v3585_v49 = vld [vmem:[%s4713_s1 + $0x7b8] ss:$36 sps:$4 sm:$0xff]  }
 0x126   :  { %v3584_v32 = vld [vmem:[%s4713_s1 + $0xf8] ss:$36 sps:$4 sm:$0xff]  }
 0x127   :  { %3032 = vmatpush3.bf16.msra.mxu0 %v3576_v0  ;;  %3054 = vmatpush3.bf16.msra.mxu1 %v3578_v1 }
 0x128   :  { %3033 = vmatprep.subr.bf16.mxu0 %v3579_v2  ;;  %3055 = vmatprep.subr.bf16.mxu1 %v3581_v29 }
 0x12b   :  { %3034 = vmatpush3.bf16.msra.mxu0 %v3580_v3  ;;  %3056 = vmatpush3.bf16.msra.mxu1 %v3582_v4 }
 0x12c   :  { %3035 = vmatprep.subr.bf16.mxu0 %v3583_v5  ;;  %3057 = vmatprep.subr.bf16.mxu1 %v3585_v49 }
 0x12f   :  { %3036 = vmatpush3.bf16.msra.mxu0 %v3584_v32  ;;  %3058 = vmatpush3.bf16.msra.mxu1 %v3586_v7 }
 0x130   :  { %3037 = vmatprep.subr.bf16.mxu0 %v3587_v8  ;;  %3059 = vmatprep.subr.bf16.mxu1 %v3589_v9 }
 0x133   :  { %3038 = vmatpush3.bf16.msra.mxu0 %v3588_v10  ;;  %3060 = vmatpush3.bf16.msra.mxu1 %v3590_v11 }
 0x134   :  { %3039 = vmatprep.subr.bf16.mxu0 %v3591_v12  ;;  %3061 = vmatprep.subr.bf16.mxu1 %v3593_v14 }
 0x137   :  { %3040 = vmatpush3.bf16.msra.mxu0 %v3592_v15  ;;  %3062 = vmatpush3.bf16.msra.mxu1 %v3594_v16 }
 0x138   :  { %3041 = vmatprep.subr.bf16.mxu0 %v3595_v17  ;;  %3063 = vmatprep.subr.bf16.mxu1 %v3597_v18 }
 0x13b   :  { %3042 = vmatpush3.bf16.msra.mxu0 %v3596_v19  ;;  %3064 = vmatpush3.bf16.msra.mxu1 %v3598_v20 }
 0x13c   :  { %3043 = vmatprep.subr.bf16.mxu0 %v3599_v21  ;;  %3065 = vmatprep.subr.bf16.mxu1 %v3601_v23 }
 0x13f   :  { %3044 = vmatpush3.bf16.msra.mxu0 %v3600_v24  ;;  %3066 = vmatpush3.bf16.msra.mxu1 %v3602_v25 }
 0x140   :  { %3078 = vmatprep.subr.bf16.mxu0 %v3627_v27 }
 0x142   :  { %2586 = vmatmul.mubr.bf16.vlgmr.msra.gmra.mrb[8].mxu0 %v3858_v6  ;;  %2626 = vmatmul.mubr.bf16.vlgmr.msra.gmra.mrb[8].mxu1 %v4070_v13  ;;  %v3606_v6 = vld [vmem:[%s4713_s1 + $0x9f8] ss:$36 sps:$4 sm:$0xff]   ;;  %v3625_v13 = vld [vmem:[%s4714_s0 + $0x10] ss:$0 sps:$4 sm:$0xff]  }
 0x143   :  { %3079 = vmatpush3.bf16.msra.mxu0 %v3603_v26  ;;  %3086 = vmatprep.mubr.msk.bf16.mxu0 %vm3628_vm1, %v3627_v27 }
 0x144   :  { %3080 = vmatprep.subr.bf16.mxu0 %v3627_v27 }
 0x147   :  { %3081 = vmatpush3.bf16.msra.mxu0 %v3604_v28 }
 0x148   :  { %3082 = vmatprep.subr.bf16.mxu0 %v3627_v27 }
 0x14b   :  { %3083 = vmatpush3.bf16.msra.mxu0 %v3605_v30 }
 0x14c   :  { %3084 = vmatprep.subr.bf16.mxu0 %v3627_v27 }
 0x14f   :  { %3085 = vmatpush3.bf16.msra.mxu0 %v3606_v6 }
 0x152   :  { %3087 = vmatmul.mubr.msk.bf16.vlgmr.msra.gmra.mrb[12].mxu0 %vm2057_vm0, %v3625_v13 }
 0x165   :  { %v2177_v33 = vpop.f32.mrb[0].mxu0  ;;  %v2300_v34 = vpop.f32.mrb[0].mxu1 }
 0x166   :  { %v3090_v35 = vadd.f32 %v2177_v33, %v382_v31  ;;  %v3092_v36 = vadd.f32 %v2300_v34, %v382_v31  ;;  %v2179_v37 = vpop.f32.mrb[1].mxu0  ;;  %v2302_v38 = vpop.f32.mrb[1].mxu1 }
 0x167   :  { %v3091_v39 = vadd.f32 %v2179_v37, %v382_v31  ;;  %v3093_v40 = vadd.f32 %v2302_v38, %v382_v31  ;;  %v2181_v41 = vpop.f32.mrb[2].mxu0  ;;  %v2304_v42 = vpop.f32.mrb[2].mxu1 }
 0x168   :  { %3607 = vtanh.f32 %v3090_v35  ;;  %v2182_v43 = vpop.f32.mrb[3].mxu0  ;;  %v2305_v44 = vpop.f32.mrb[3].mxu1 }
 0x169   :  { %3609 = vtanh.f32 %v3092_v36 }
 0x16a   :  { %3611 = vtanh.f32 %v3091_v39 }
 0x16b   :  { %3613 = vtanh.f32 %v3093_v40 }
 0x172   :  { %v3608_v45 = vpop.eup %3607 }
 0x173   :  { %v3610_v46 = vpop.eup %3609  ;;  %2682 = vst [vmem:[%s4716_s3] sm:$0xff] %v3608_v45 }
 0x174   :  { %v3612_v47 = vpop.eup %3611  ;;  %2684 = vst [vmem:[%s4716_s3 + $0x10] sm:$0xff] %v3610_v46 }
 0x175   :  { %v3614_v48 = vpop.eup %3613  ;;  %2683 = vst [vmem:[%s4716_s3 + $0x8] sm:$0xff] %v3612_v47 }
 0x176   :  { %2685 = vst [vmem:[%s4716_s3 + $0x18] sm:$0xff] %v3614_v48 }
 0x1f5   :  { %v2423_v50 = vpop.f32.mrb[4].mxu0  ;;  %v2546_v51 = vpop.f32.mrb[4].mxu1 }
 0x1f6   :  { %v3094_v52 = vadd.f32 %v2423_v50, %v382_v31  ;;  %v3096_v53 = vadd.f32 %v2546_v51, %v382_v31  ;;  %v2425_v54 = vpop.f32.mrb[5].mxu0  ;;  %v2548_v55 = vpop.f32.mrb[5].mxu1 }
 0x1f7   :  { %v3095_v22 = vadd.f32 %v2425_v54, %v382_v31  ;;  %v3097_v56 = vadd.f32 %v2548_v55, %v382_v31  ;;  %v2427_v57 = vpop.f32.mrb[6].mxu0  ;;  %v2550_v58 = vpop.f32.mrb[6].mxu1 }
 0x1f8   :  { %3615 = vtanh.f32 %v3094_v52  ;;  %v2428_v59 = vpop.f32.mrb[7].mxu0  ;;  %v2551_v60 = vpop.f32.mrb[7].mxu1 }
 0x1f9   :  { %3617 = vtanh.f32 %v3096_v53 }
 0x1fa   :  { %3619 = vtanh.f32 %v3095_v22 }
 0x1fb   :  { %3621 = vtanh.f32 %v3097_v56 }
 0x202   :  { %v3616_v61 = vpop.eup %3615 }
 0x203   :  { %v3618_v62 = vpop.eup %3617  ;;  %2686 = vst [vmem:[%s4716_s3 + $0x20] sm:$0xff] %v3616_v61 }
 0x204   :  { %v3620_v63 = vpop.eup %3619  ;;  %2688 = vst [vmem:[%s4716_s3 + $0x30] sm:$0xff] %v3618_v62 }
 0x205   :  { %v3622_v0 = vpop.eup %3621  ;;  %2687 = vst [vmem:[%s4716_s3 + $0x28] sm:$0xff] %v3620_v63 }
 0x206   :  { %2689 = vst [vmem:[%s4716_s3 + $0x38] sm:$0xff] %v3622_v0 }
 0x215   :  { %v3045_v1 = vpop.f32.mrb[8].mxu0  ;;  %v3067_v2 = vpop.f32.mrb[8].mxu1 }
 0x216   :  { %v3046_v29 = vpop.f32.mrb[9].mxu0  ;;  %v3068_v3 = vpop.f32.mrb[9].mxu1 }
 0x217   :  { %v3047_v4 = vadd.f32 %v3046_v29, %v3045_v1  ;;  %v3048_v5 = vpop.f32.mrb[10].mxu0  ;;  %v3069_v49 = vadd.f32 %v3068_v3, %v3067_v2  ;;  %v3070_v32 = vpop.f32.mrb[10].mxu1 }
 0x218   :  { %v3049_v7 = vpop.f32.mrb[11].mxu0  ;;  %v3071_v8 = vpop.f32.mrb[11].mxu1 }
 0x219   :  { %v2588_v9 = vadd.f32 %v3047_v4, %v382_v31 }
 0x21b   :  { %v2628_v10 = vadd.f32 %v3069_v49, %v2588_v9 }
 0x225   :  { %v2667_v11 = vpop.f32.mrb[12].mxu0 }
 0x226   :  { %v2668_v12 = vadd.f32 %v2667_v11, %v2628_v10  ;;  %v3088_v14 = vpop.f32.mrb[13].mxu0 }
 0x227   :  { %v2670_v15 = vpop.f32.mrb[14].mxu0 }
 0x228   :  { %3623 = vtanh.f32 %v2668_v12  ;;  %v3089_v16 = vpop.f32.mrb[15].mxu0 }
 0x232   :  { %v3624_v17 = vpop.eup %3623 }
 0x233   :  { %2690 = vst [vmem:[%s4716_s3 + $0x40] sm:$0xff] %v3624_v17 }

</bundles_post_ra>
